<compile_context>
chip_gen: v6e
topology: v6e:2x2x1
jax: 0.10.0
libtpu: 0.0.40
codegen_flags: <defaults>
</compile_context>

<pallas_src>
import functools
import math

import jax
import jax.numpy as jnp
from jax.experimental import pallas as pl
from jax.experimental.pallas import tpu as pltpu


def _round_up(x, m):
    return ((x + m - 1) // m) * m


def custom_lstm_forward(x, w_ih, w_hh, b_ih, b_hh, *,
                        time_chunk=None, batch_tile=None,
                        recurrent_dot_dtype=jnp.bfloat16):
    """x: (T, B, I) f32. Returns (hidden_seq (T,B,H), (h_T (B,H), c_T (B,H)))."""
    T, B, I = x.shape
    H = w_hh.shape[0]
    assert w_ih.shape == (I, 4 * H)

    f32 = jnp.float32
    rec_dt = jnp.dtype(recurrent_dot_dtype)
    dot_precision = (jax.lax.Precision.HIGHEST
                     if rec_dt == jnp.dtype(jnp.float32) else None)

    # ---- lane/sublane friendly padding -------------------------------------
    Hp = max(128, _round_up(H, 128))          # lane-dense gates and h/c
    G = 4 * Hp

    if batch_tile is None:
        batch_tile = min(_round_up(B, 8), 128)
    Bt = _round_up(batch_tile, 8)
    B_pad = _round_up(B, Bt)
    n_bt = B_pad // Bt

    if time_chunk is None:
        # keep the double-buffered hidden_seq out block around ~2 MiB
        time_chunk = min(64, max(1, (2 << 20) // (2 * Bt * Hp * 4)))
    Tc = max(1, min(int(time_chunk), T))
    n_tc = -(-T // Tc)                        # cdiv; never degenerates to Tc=1
    T_pad = n_tc * Tc
    need_tail_mask = (T_pad != T)

    def pad_gate_cols(w):
        # (..., 4H) -> (..., 4Hp): zero-pad each gate block independently so
        # padded lanes see gates == 0 => padded h/c lanes stay exactly 0.
        parts = []
        for g in range(4):
            p = w[..., g * H:(g + 1) * H]
            cfg = [(0, 0)] * (w.ndim - 1) + [(0, Hp - H)]
            parts.append(jnp.pad(p, cfg))
        return jnp.concatenate(parts, axis=-1)

    w_ih_p = pad_gate_cols(w_ih.astype(f32))                        # (I, G) f32
    w_hh_p = pad_gate_cols(
        jnp.pad(w_hh.astype(f32), ((0, Hp - H), (0, 0)))            # (Hp, G)
    ).astype(rec_dt)
    bias_p = pad_gate_cols((b_ih + b_hh).astype(f32)).reshape(1, G)

    x_p = jnp.pad(x.astype(f32),
                  ((0, T_pad - T), (0, B_pad - B), (0, 0)))         # (T_pad,B_pad,I)

    # ---- fused recurrent kernel ---------------------------------------------
    def kernel(x_ref, w_ih_ref, b_ref, w_hh_ref,
               hseq_ref, hT_ref, cT_ref, h_sc, c_sc):
        t_chunk = pl.program_id(1)

        @pl.when(t_chunk == 0)                # new batch tile: reset state
        def _():
            h_sc[...] = jnp.zeros_like(h_sc)
            c_sc[...] = jnp.zeros_like(c_sc)

        # Tiny loop-invariant operands held in vregs across the chunk
        # (I rows of W_ih + bias: ~1.5 vregs at H=128, I=2).
        w_ih_rows = [w_ih_ref[k:k + 1, :] for k in range(I)]        # I x (1, G)
        bias = b_ref[...]                                           # (1, G)

        def step(t, carry):
            h, c = carry
            # Only the truly sequential matmul goes to the MXU; W_hh is read
            # from its VMEM-resident ref each step (no long live range).
            gates = jnp.dot(h.astype(rec_dt), w_hh_ref[...],
                            preferred_element_type=jnp.float32,
                            precision=dot_precision)
            # Fused input projection: K = input_size (=2) broadcast-FMAs on
            # the VPU — not on the recurrent critical path, no MXU drain.
            x_t = x_ref[t]                                          # (Bt, I)
            for k in range(I):
                gates = gates + x_t[:, k:k + 1] * w_ih_rows[k]
            gates = gates + bias

            # Slice first (lane-aligned, Hp % 128 == 0), then nonlinearity.
            ingate = jax.nn.sigmoid(gates[:, 0 * Hp:1 * Hp])
            forgetgate = jax.nn.sigmoid(gates[:, 1 * Hp:2 * Hp])
            cellgate = jnp.tanh(gates[:, 2 * Hp:3 * Hp])
            outgate = jax.nn.sigmoid(gates[:, 3 * Hp:4 * Hp])

            c_new = forgetgate * c + ingate * cellgate
            h_new = outgate * jnp.tanh(c_new)

            if need_tail_mask:                # only the padded tail chunk
                valid = (t_chunk * Tc + t) < T
                h_new = jnp.where(valid, h_new, h)
                c_new = jnp.where(valid, c_new, c)

            hseq_ref[t] = h_new.astype(hseq_ref.dtype)
            return h_new, c_new

        h_fin, c_fin = jax.lax.fori_loop(
            0, Tc, step, (h_sc[...], c_sc[...]), unroll=min(Tc, 4))

        h_sc[...] = h_fin
        c_sc[...] = c_fin

        @pl.when(t_chunk == pl.num_programs(1) - 1)
        def _():
            hT_ref[...] = h_fin.astype(hT_ref.dtype)
            cT_ref[...] = c_fin.astype(cT_ref.dtype)

    out_shapes = (
        jax.ShapeDtypeStruct((T_pad, B_pad, Hp), x.dtype),   # hidden_seq (padded)
        jax.ShapeDtypeStruct((B_pad, Hp), x.dtype),          # h_T (padded)
        jax.ShapeDtypeStruct((B_pad, Hp), x.dtype),          # c_T (padded)
    )

    # VMEM budget (double-buffered): 2*Tc*Bt*(Hp*4 + I*4) + Hp*G*itemsize(rec)
    # + small weights + 2*Bt*Hp*4 scratch — a few MiB, well under the 32 MiB
    # default scoped limit on every generation (incl. v7x's 64 MiB physical).
    grid_spec = pltpu.PrefetchScalarGridSpec(
        num_scalar_prefetch=0,
        grid=(n_bt, n_tc),                    # batch tiles x time chunks
        in_specs=[
            pl.BlockSpec((Tc, Bt, I), lambda b, c: (c, b, 0)),   # x chunk
            pl.BlockSpec((I, G), lambda b, c: (0, 0)),           # W_ih (resident)
            pl.BlockSpec((1, G), lambda b, c: (0, 0)),           # bias (resident)
            pl.BlockSpec((Hp, G), lambda b, c: (0, 0)),          # W_hh (resident)
        ],
        out_specs=[
            pl.BlockSpec((Tc, Bt, Hp), lambda b, c: (c, b, 0)),  # hidden_seq
            pl.BlockSpec((Bt, Hp), lambda b, c: (b, 0)),         # h_T
            pl.BlockSpec((Bt, Hp), lambda b, c: (b, 0)),         # c_T
        ],
        scratch_shapes=[
            pltpu.VMEM((Bt, Hp), jnp.float32),                   # h state (f32)
            pltpu.VMEM((Bt, Hp), jnp.float32),                   # c state (f32)
        ],
    )

    # TODO(synk): on v5e, keep W_hh stationary across the chunk with
    # pltpu.matmul_push_rhs/matmul_acc_lhs/matmul_pop (128x128 weight tiles).
    hseq_p, hT_p, cT_p = pl.pallas_call(
        kernel,
        out_shape=out_shapes,
        grid_spec=grid_spec,
        compiler_params=pltpu.CompilerParams(
            # batch tiles are independent (-> v7x's 2nd TC); time is sequential
            dimension_semantics=("parallel", "arbitrary")),
    )(x_p, w_ih_p, bias_p, w_hh_p)

    hidden_seq = hseq_p[:T, :B, :H]
    h_T = hT_p[:B, :H]
    c_T = cT_p[:B, :H]
    return hidden_seq, (h_T, c_T)


def _reference_lstm(x, w_ih, w_hh, b_ih, b_hh):
    # Pure-JAX f32 reference (HIGHEST precision so the f32-path comparison is
    # not polluted by XLA's default bf16 matmul passes).
    T, B, I = x.shape
    H = w_hh.shape[0]
    hp = jax.lax.Precision.HIGHEST
    h = jnp.zeros((B, H), jnp.float32)
    c = jnp.zeros((B, H), jnp.float32)
    outs = []
    for t in range(T):
        gates = (jnp.dot(x[t], w_ih, precision=hp)
                 + jnp.dot(h, w_hh, precision=hp) + b_ih + b_hh)
        i = jax.nn.sigmoid(gates[:, 0 * H:1 * H])
        f = jax.nn.sigmoid(gates[:, 1 * H:2 * H])
        g = jnp.tanh(gates[:, 2 * H:3 * H])
        o = jax.nn.sigmoid(gates[:, 3 * H:4 * H])
        c = f * c + i * g
        h = o * jnp.tanh(c)
        outs.append(h[None])
    return jnp.concatenate(outs, axis=0), (h, c)


if __name__ == "__main__":
    # Small shapes consistent with the module (input_size=2, hidden_size=64).
    # T=10 with time_chunk=4 exercises the padded/masked tail chunk;
    # batch=16 with batch_tile=8 exercises the parallel batch-tile axis.
    seq_len, batch, input_size, hidden_size = 10, 16, 2, 64

    key = jax.random.PRNGKey(0)
    k_x, k_wih, k_whh, k_bih, k_bhh = jax.random.split(key, 5)

    std = 1.0 / math.sqrt(hidden_size)
    x = jax.random.normal(k_x, (seq_len, batch, input_size), jnp.float32)
    w_ih = jax.random.uniform(k_wih, (input_size, 4 * hidden_size), jnp.float32, -std, std)
    w_hh = jax.random.uniform(k_whh, (hidden_size, 4 * hidden_size), jnp.float32, -std, std)
    b_ih = jax.random.uniform(k_bih, (4 * hidden_size,), jnp.float32, -std, std)
    b_hh = jax.random.uniform(k_bhh, (4 * hidden_size,), jnp.float32, -std, std)

    ref_seq, (ref_h, ref_c) = _reference_lstm(x, w_ih, w_hh, b_ih, b_hh)

    # 1) strict check: f32 recurrent matmul path
    run_f32 = jax.jit(functools.partial(
        custom_lstm_forward, time_chunk=4, batch_tile=8,
        recurrent_dot_dtype=jnp.float32))
    seq32, (h32, c32) = run_f32(x, w_ih, w_hh, b_ih, b_hh)
    jax.block_until_ready((seq32, h32, c32))
    assert jnp.allclose(seq32, ref_seq, atol=1e-4, rtol=1e-4)
    assert jnp.allclose(h32, ref_h, atol=1e-4, rtol=1e-4)
    assert jnp.allclose(c32, ref_c, atol=1e-4, rtol=1e-4)

    # 2) default fast path: bf16 MXU operands (f32 accumulate + f32 cell state)
    run_bf16 = jax.jit(functools.partial(
        custom_lstm_forward, time_chunk=4, batch_tile=8))
    hidden_seq, (h_T, c_T) = run_bf16(x, w_ih, w_hh, b_ih, b_hh)
    jax.block_until_ready((hidden_seq, h_T, c_T))
    assert jnp.allclose(hidden_seq, ref_seq, atol=2e-2, rtol=2e-2)
    assert jnp.allclose(h_T, ref_h, atol=2e-2, rtol=2e-2)
    assert jnp.allclose(c_T, ref_c, atol=2e-2, rtol=2e-2)

    print("KERNEL_OK")
</pallas_src>

<mosaic_0001>
module attributes {stable_mosaic.version = 11 : i64} {
  func.func @kernel(%arg0: i32, %arg1: i32, %arg2: memref<4x8x2xf32, #tpu.memory_space<vmem>>, %arg3: memref<2x512xf32, #tpu.memory_space<vmem>>, %arg4: memref<1x512xf32, #tpu.memory_space<vmem>>, %arg5: memref<128x512xf32, #tpu.memory_space<vmem>>, %arg6: memref<4x8x128xf32, #tpu.memory_space<vmem>>, %arg7: memref<8x128xf32, #tpu.memory_space<vmem>>, %arg8: memref<8x128xf32, #tpu.memory_space<vmem>>, %arg9: memref<8x128xf32, #tpu.memory_space<vmem>>, %arg10: memref<8x128xf32, #tpu.memory_space<vmem>>) attributes {dimension_semantics = [#tpu.dimension_semantics<parallel>, #tpu.dimension_semantics<arbitrary>], iteration_bounds = array<i64: 2, 3>, scalar_prefetch = 0 : i64, scratch_operands = 2 : i64, tpu.core_type = #tpu.core_type<tc>, window_params = [{transform_indices = @transform_0, window_bounds = array<i64: 4, 8, 2>}, {pipeline_mode = #tpu.pipeline_mode<synchronous>, transform_indices = @transform_1, window_bounds = array<i64: 2, 512>}, {pipeline_mode = #tpu.pipeline_mode<synchronous>, transform_indices = @transform_2, window_bounds = array<i64: 1, 512>}, {pipeline_mode = #tpu.pipeline_mode<synchronous>, transform_indices = @transform_3, window_bounds = array<i64: 128, 512>}, {transform_indices = @transform_4, window_bounds = array<i64: 4, 8, 128>}, {transform_indices = @transform_5, window_bounds = array<i64: 8, 128>}, {transform_indices = @transform_6, window_bounds = array<i64: 8, 128>}]} {
    %c0_i32 = arith.constant 0 : i32
    %0 = arith.cmpi eq, %arg1, %c0_i32 : i32
    %1 = arith.extui %0 : i1 to i32
    %c0_i32_0 = arith.constant 0 : i32
    %2 = arith.cmpi ne, %1, %c0_i32_0 : i32
    scf.if %2 {
      %cst_62 = arith.constant 0.000000e+00 : f32
      %217 = vector.broadcast %cst_62 : f32 to vector<8x128xf32>
      %c0_63 = arith.constant 0 : index
      %c0_64 = arith.constant 0 : index
      %218 = vector.load %arg9[%c0_63, %c0_64] : memref<8x128xf32, #tpu.memory_space<vmem>>, vector<8x128xf32>
      tpu.vector_store %arg9[%c0_63, %c0_64], %217 {strides = array<i32>} : memref<8x128xf32, #tpu.memory_space<vmem>>, vector<8x128xf32>,
      %cst_65 = arith.constant 0.000000e+00 : f32
      %219 = vector.broadcast %cst_65 : f32 to vector<8x128xf32>
      %c0_66 = arith.constant 0 : index
      %c0_67 = arith.constant 0 : index
      %220 = vector.load %arg10[%c0_66, %c0_67] : memref<8x128xf32, #tpu.memory_space<vmem>>, vector<8x128xf32>
      tpu.vector_store %arg10[%c0_66, %c0_67], %219 {strides = array<i32>} : memref<8x128xf32, #tpu.memory_space<vmem>>, vector<8x128xf32>,
    } else {
    }
    %c0 = arith.constant 0 : index
    %c0_1 = arith.constant 0 : index
    %3 = vector.load %arg3[%c0, %c0_1] : memref<2x512xf32, #tpu.memory_space<vmem>>, vector<1x512xf32>
    %c1 = arith.constant 1 : index
    %c0_2 = arith.constant 0 : index
    %4 = vector.load %arg3[%c1, %c0_2] : memref<2x512xf32, #tpu.memory_space<vmem>>, vector<1x512xf32>
    %c0_3 = arith.constant 0 : index
    %c0_4 = arith.constant 0 : index
    %5 = vector.load %arg4[%c0_3, %c0_4] : memref<1x512xf32, #tpu.memory_space<vmem>>, vector<1x512xf32>
    %c0_5 = arith.constant 0 : index
    %c0_6 = arith.constant 0 : index
    %6 = vector.load %arg9[%c0_5, %c0_6] : memref<8x128xf32, #tpu.memory_space<vmem>>, vector<8x128xf32>
    %c0_7 = arith.constant 0 : index
    %c0_8 = arith.constant 0 : index
    %7 = vector.load %arg10[%c0_7, %c0_8] : memref<8x128xf32, #tpu.memory_space<vmem>>, vector<8x128xf32>
    %c0_i32_9 = arith.constant 0 : i32
    %c0_10 = arith.constant 0 : index
    %c0_11 = arith.constant 0 : index
    %8 = vector.load %arg5[%c0_10, %c0_11] : memref<128x512xf32, #tpu.memory_space<vmem>>, vector<128x512xf32>
    %cst = arith.constant dense<0.000000e+00> : vector<8x512xf32>
    %9 = tpu.matmul %6, %8, %cst {dimension_numbers = #tpu.dot_dimension_numbers<[1], [0], [0], [1], [0, 0, 1, 1], [], []>, precision = #tpu.contract_precision<fp32>} : vector<8x128xf32>, vector<128x512xf32>, vector<8x512xf32> -> vector<8x512xf32>
    %10 = arith.index_cast %c0_i32_9 : i32 to index
    %c0_12 = arith.constant 0 : index
    %c0_13 = arith.constant 0 : index
    %11 = vector.load %arg2[%10, %c0_12, %c0_13] : memref<4x8x2xf32, #tpu.memory_space<vmem>>, vector<1x8x2xf32>
    %12 = vector.shape_cast %11 : vector<1x8x2xf32> to vector<8x2xf32>
    %13 = vector.extract_strided_slice %12 {offsets = [0, 0], sizes = [8, 1], strides = [1, 1]} : vector<8x2xf32> to vector<8x1xf32>
    %14 = vector.broadcast %13 : vector<8x1xf32> to vector<8x512xf32>
    %15 = vector.broadcast %3 : vector<1x512xf32> to vector<8x512xf32>
    %16 = arith.mulf %14, %15 : vector<8x512xf32>
    %17 = arith.addf %9, %16 : vector<8x512xf32>
    %18 = vector.extract_strided_slice %12 {offsets = [0, 1], sizes = [8, 1], strides = [1, 1]} : vector<8x2xf32> to vector<8x1xf32>
    %19 = vector.broadcast %18 : vector<8x1xf32> to vector<8x512xf32>
    %20 = vector.broadcast %4 : vector<1x512xf32> to vector<8x512xf32>
    %21 = arith.mulf %19, %20 : vector<8x512xf32>
    %22 = arith.addf %17, %21 : vector<8x512xf32>
    %23 = vector.broadcast %5 : vector<1x512xf32> to vector<8x512xf32>
    %24 = arith.addf %22, %23 : vector<8x512xf32>
    %25 = vector.extract_strided_slice %24 {offsets = [0, 0], sizes = [8, 128], strides = [1, 1]} : vector<8x512xf32> to vector<8x128xf32>
    %26 = arith.negf %25 : vector<8x128xf32>
    %27 = math.exp %26 : vector<8x128xf32>
    %cst_14 = arith.constant 1.000000e+00 : f32
    %28 = vector.broadcast %cst_14 : f32 to vector<8x128xf32>
    %29 = arith.addf %28, %27 : vector<8x128xf32>
    %30 = arith.divf %28, %29 : vector<8x128xf32>
    %31 = vector.extract_strided_slice %24 {offsets = [0, 128], sizes = [8, 128], strides = [1, 1]} : vector<8x512xf32> to vector<8x128xf32>
    %32 = arith.negf %31 : vector<8x128xf32>
    %33 = math.exp %32 : vector<8x128xf32>
    %cst_15 = arith.constant 1.000000e+00 : f32
    %34 = vector.broadcast %cst_15 : f32 to vector<8x128xf32>
    %35 = arith.addf %34, %33 : vector<8x128xf32>
    %36 = arith.divf %34, %35 : vector<8x128xf32>
    %37 = vector.extract_strided_slice %24 {offsets = [0, 256], sizes = [8, 128], strides = [1, 1]} : vector<8x512xf32> to vector<8x128xf32>
    %38 = math.tanh %37 : vector<8x128xf32>
    %39 = vector.extract_strided_slice %24 {offsets = [0, 384], sizes = [8, 128], strides = [1, 1]} : vector<8x512xf32> to vector<8x128xf32>
    %40 = arith.negf %39 : vector<8x128xf32>
    %41 = math.exp %40 : vector<8x128xf32>
    %cst_16 = arith.constant 1.000000e+00 : f32
    %42 = vector.broadcast %cst_16 : f32 to vector<8x128xf32>
    %43 = arith.addf %42, %41 : vector<8x128xf32>
    %44 = arith.divf %42, %43 : vector<8x128xf32>
    %45 = arith.mulf %36, %7 : vector<8x128xf32>
    %46 = arith.mulf %30, %38 : vector<8x128xf32>
    %47 = arith.addf %45, %46 : vector<8x128xf32>
    %48 = math.tanh %47 : vector<8x128xf32>
    %49 = arith.mulf %44, %48 : vector<8x128xf32>
    %c4_i32 = arith.constant 4 : i32
    %50 = arith.muli %arg1, %c4_i32 : i32
    %51 = arith.addi %50, %c0_i32_9 : i32
    %c10_i32 = arith.constant 10 : i32
    %52 = arith.cmpi slt, %51, %c10_i32 : i32
    %53 = arith.select %52, %49, %6 : vector<8x128xf32>
    %54 = arith.select %52, %47, %7 : vector<8x128xf32>
    %55 = arith.index_cast %c0_i32_9 : i32 to index
    %c0_17 = arith.constant 0 : index
    %c0_18 = arith.constant 0 : index
    %56 = vector.load %arg6[%55, %c0_17, %c0_18] : memref<4x8x128xf32, #tpu.memory_space<vmem>>, vector<1x8x128xf32>
    %57 = vector.shape_cast %56 : vector<1x8x128xf32> to vector<8x128xf32>
    %58 = vector.shape_cast %53 : vector<8x128xf32> to vector<1x8x128xf32>
    tpu.vector_store %arg6[%55, %c0_17, %c0_18], %58 {strides = array<i32>} : memref<4x8x128xf32, #tpu.memory_space<vmem>>, vector<1x8x128xf32>,
    %c1_i32 = arith.constant 1 : i32
    %c0_19 = arith.constant 0 : index
    %c0_20 = arith.constant 0 : index
    %59 = vector.load %arg5[%c0_19, %c0_20] : memref<128x512xf32, #tpu.memory_space<vmem>>, vector<128x512xf32>
    %cst_21 = arith.constant dense<0.000000e+00> : vector<8x512xf32>
    %60 = tpu.matmul %53, %59, %cst_21 {dimension_numbers = #tpu.dot_dimension_numbers<[1], [0], [0], [1], [0, 0, 1, 1], [], []>, precision = #tpu.contract_precision<fp32>} : vector<8x128xf32>, vector<128x512xf32>, vector<8x512xf32> -> vector<8x512xf32>
    %61 = arith.index_cast %c1_i32 : i32 to index
    %c0_22 = arith.constant 0 : index
    %c0_23 = arith.constant 0 : index
    %62 = vector.load %arg2[%61, %c0_22, %c0_23] : memref<4x8x2xf32, #tpu.memory_space<vmem>>, vector<1x8x2xf32>
    %63 = vector.shape_cast %62 : vector<1x8x2xf32> to vector<8x2xf32>
    %64 = vector.extract_strided_slice %63 {offsets = [0, 0], sizes = [8, 1], strides = [1, 1]} : vector<8x2xf32> to vector<8x1xf32>
    %65 = vector.broadcast %64 : vector<8x1xf32> to vector<8x512xf32>
    %66 = vector.broadcast %3 : vector<1x512xf32> to vector<8x512xf32>
    %67 = arith.mulf %65, %66 : vector<8x512xf32>
    %68 = arith.addf %60, %67 : vector<8x512xf32>
    %69 = vector.extract_strided_slice %63 {offsets = [0, 1], sizes = [8, 1], strides = [1, 1]} : vector<8x2xf32> to vector<8x1xf32>
    %70 = vector.broadcast %69 : vector<8x1xf32> to vector<8x512xf32>
    %71 = vector.broadcast %4 : vector<1x512xf32> to vector<8x512xf32>
    %72 = arith.mulf %70, %71 : vector<8x512xf32>
    %73 = arith.addf %68, %72 : vector<8x512xf32>
    %74 = vector.broadcast %5 : vector<1x512xf32> to vector<8x512xf32>
    %75 = arith.addf %73, %74 : vector<8x512xf32>
    %76 = vector.extract_strided_slice %75 {offsets = [0, 0], sizes = [8, 128], strides = [1, 1]} : vector<8x512xf32> to vector<8x128xf32>
    %77 = arith.negf %76 : vector<8x128xf32>
    %78 = math.exp %77 : vector<8x128xf32>
    %cst_24 = arith.constant 1.000000e+00 : f32
    %79 = vector.broadcast %cst_24 : f32 to vector<8x128xf32>
    %80 = arith.addf %79, %78 : vector<8x128xf32>
    %81 = arith.divf %79, %80 : vector<8x128xf32>
    %82 = vector.extract_strided_slice %75 {offsets = [0, 128], sizes = [8, 128], strides = [1, 1]} : vector<8x512xf32> to vector<8x128xf32>
    %83 = arith.negf %82 : vector<8x128xf32>
    %84 = math.exp %83 : vector<8x128xf32>
    %cst_25 = arith.constant 1.000000e+00 : f32
    %85 = vector.broadcast %cst_25 : f32 to vector<8x128xf32>
    %86 = arith.addf %85, %84 : vector<8x128xf32>
    %87 = arith.divf %85, %86 : vector<8x128xf32>
    %88 = vector.extract_strided_slice %75 {offsets = [0, 256], sizes = [8, 128], strides = [1, 1]} : vector<8x512xf32> to vector<8x128xf32>
    %89 = math.tanh %88 : vector<8x128xf32>
    %90 = vector.extract_strided_slice %75 {offsets = [0, 384], sizes = [8, 128], strides = [1, 1]} : vector<8x512xf32> to vector<8x128xf32>
    %91 = arith.negf %90 : vector<8x128xf32>
    %92 = math.exp %91 : vector<8x128xf32>
    %cst_26 = arith.constant 1.000000e+00 : f32
    %93 = vector.broadcast %cst_26 : f32 to vector<8x128xf32>
    %94 = arith.addf %93, %92 : vector<8x128xf32>
    %95 = arith.divf %93, %94 : vector<8x128xf32>
    %96 = arith.mulf %87, %54 : vector<8x128xf32>
    %97 = arith.mulf %81, %89 : vector<8x128xf32>
    %98 = arith.addf %96, %97 : vector<8x128xf32>
    %99 = math.tanh %98 : vector<8x128xf32>
    %100 = arith.mulf %95, %99 : vector<8x128xf32>
    %c4_i32_27 = arith.constant 4 : i32
    %101 = arith.muli %arg1, %c4_i32_27 : i32
    %102 = arith.addi %101, %c1_i32 : i32
    %c10_i32_28 = arith.constant 10 : i32
    %103 = arith.cmpi slt, %102, %c10_i32_28 : i32
    %104 = arith.select %103, %100, %53 : vector<8x128xf32>
    %105 = arith.select %103, %98, %54 : vector<8x128xf32>
    %106 = arith.index_cast %c1_i32 : i32 to index
    %c0_29 = arith.constant 0 : index
    %c0_30 = arith.constant 0 : index
    %107 = vector.load %arg6[%106, %c0_29, %c0_30] : memref<4x8x128xf32, #tpu.memory_space<vmem>>, vector<1x8x128xf32>
    %108 = vector.shape_cast %107 : vector<1x8x128xf32> to vector<8x128xf32>
    %109 = vector.shape_cast %104 : vector<8x128xf32> to vector<1x8x128xf32>
    tpu.vector_store %arg6[%106, %c0_29, %c0_30], %109 {strides = array<i32>} : memref<4x8x128xf32, #tpu.memory_space<vmem>>, vector<1x8x128xf32>,
    %c2_i32 = arith.constant 2 : i32
    %c0_31 = arith.constant 0 : index
    %c0_32 = arith.constant 0 : index
    %110 = vector.load %arg5[%c0_31, %c0_32] : memref<128x512xf32, #tpu.memory_space<vmem>>, vector<128x512xf32>
    %cst_33 = arith.constant dense<0.000000e+00> : vector<8x512xf32>
    %111 = tpu.matmul %104, %110, %cst_33 {dimension_numbers = #tpu.dot_dimension_numbers<[1], [0], [0], [1], [0, 0, 1, 1], [], []>, precision = #tpu.contract_precision<fp32>} : vector<8x128xf32>, vector<128x512xf32>, vector<8x512xf32> -> vector<8x512xf32>
    %112 = arith.index_cast %c2_i32 : i32 to index
    %c0_34 = arith.constant 0 : index
    %c0_35 = arith.constant 0 : index
    %113 = vector.load %arg2[%112, %c0_34, %c0_35] : memref<4x8x2xf32, #tpu.memory_space<vmem>>, vector<1x8x2xf32>
    %114 = vector.shape_cast %113 : vector<1x8x2xf32> to vector<8x2xf32>
    %115 = vector.extract_strided_slice %114 {offsets = [0, 0], sizes = [8, 1], strides = [1, 1]} : vector<8x2xf32> to vector<8x1xf32>
    %116 = vector.broadcast %115 : vector<8x1xf32> to vector<8x512xf32>
    %117 = vector.broadcast %3 : vector<1x512xf32> to vector<8x512xf32>
    %118 = arith.mulf %116, %117 : vector<8x512xf32>
    %119 = arith.addf %111, %118 : vector<8x512xf32>
    %120 = vector.extract_strided_slice %114 {offsets = [0, 1], sizes = [8, 1], strides = [1, 1]} : vector<8x2xf32> to vector<8x1xf32>
    %121 = vector.broadcast %120 : vector<8x1xf32> to vector<8x512xf32>
    %122 = vector.broadcast %4 : vector<1x512xf32> to vector<8x512xf32>
    %123 = arith.mulf %121, %122 : vector<8x512xf32>
    %124 = arith.addf %119, %123 : vector<8x512xf32>
    %125 = vector.broadcast %5 : vector<1x512xf32> to vector<8x512xf32>
    %126 = arith.addf %124, %125 : vector<8x512xf32>
    %127 = vector.extract_strided_slice %126 {offsets = [0, 0], sizes = [8, 128], strides = [1, 1]} : vector<8x512xf32> to vector<8x128xf32>
    %128 = arith.negf %127 : vector<8x128xf32>
    %129 = math.exp %128 : vector<8x128xf32>
    %cst_36 = arith.constant 1.000000e+00 : f32
    %130 = vector.broadcast %cst_36 : f32 to vector<8x128xf32>
    %131 = arith.addf %130, %129 : vector<8x128xf32>
    %132 = arith.divf %130, %131 : vector<8x128xf32>
    %133 = vector.extract_strided_slice %126 {offsets = [0, 128], sizes = [8, 128], strides = [1, 1]} : vector<8x512xf32> to vector<8x128xf32>
    %134 = arith.negf %133 : vector<8x128xf32>
    %135 = math.exp %134 : vector<8x128xf32>
    %cst_37 = arith.constant 1.000000e+00 : f32
    %136 = vector.broadcast %cst_37 : f32 to vector<8x128xf32>
    %137 = arith.addf %136, %135 : vector<8x128xf32>
    %138 = arith.divf %136, %137 : vector<8x128xf32>
    %139 = vector.extract_strided_slice %126 {offsets = [0, 256], sizes = [8, 128], strides = [1, 1]} : vector<8x512xf32> to vector<8x128xf32>
    %140 = math.tanh %139 : vector<8x128xf32>
    %141 = vector.extract_strided_slice %126 {offsets = [0, 384], sizes = [8, 128], strides = [1, 1]} : vector<8x512xf32> to vector<8x128xf32>
    %142 = arith.negf %141 : vector<8x128xf32>
    %143 = math.exp %142 : vector<8x128xf32>
    %cst_38 = arith.constant 1.000000e+00 : f32
    %144 = vector.broadcast %cst_38 : f32 to vector<8x128xf32>
    %145 = arith.addf %144, %143 : vector<8x128xf32>
    %146 = arith.divf %144, %145 : vector<8x128xf32>
    %147 = arith.mulf %138, %105 : vector<8x128xf32>
    %148 = arith.mulf %132, %140 : vector<8x128xf32>
    %149 = arith.addf %147, %148 : vector<8x128xf32>
    %150 = math.tanh %149 : vector<8x128xf32>
    %151 = arith.mulf %146, %150 : vector<8x128xf32>
    %c4_i32_39 = arith.constant 4 : i32
    %152 = arith.muli %arg1, %c4_i32_39 : i32
    %153 = arith.addi %152, %c2_i32 : i32
    %c10_i32_40 = arith.constant 10 : i32
    %154 = arith.cmpi slt, %153, %c10_i32_40 : i32
    %155 = arith.select %154, %151, %104 : vector<8x128xf32>
    %156 = arith.select %154, %149, %105 : vector<8x128xf32>
    %157 = arith.index_cast %c2_i32 : i32 to index
    %c0_41 = arith.constant 0 : index
    %c0_42 = arith.constant 0 : index
    %158 = vector.load %arg6[%157, %c0_41, %c0_42] : memref<4x8x128xf32, #tpu.memory_space<vmem>>, vector<1x8x128xf32>
    %159 = vector.shape_cast %158 : vector<1x8x128xf32> to vector<8x128xf32>
    %160 = vector.shape_cast %155 : vector<8x128xf32> to vector<1x8x128xf32>
    tpu.vector_store %arg6[%157, %c0_41, %c0_42], %160 {strides = array<i32>} : memref<4x8x128xf32, #tpu.memory_space<vmem>>, vector<1x8x128xf32>,
    %c3_i32 = arith.constant 3 : i32
    %c0_43 = arith.constant 0 : index
    %c0_44 = arith.constant 0 : index
    %161 = vector.load %arg5[%c0_43, %c0_44] : memref<128x512xf32, #tpu.memory_space<vmem>>, vector<128x512xf32>
    %cst_45 = arith.constant dense<0.000000e+00> : vector<8x512xf32>
    %162 = tpu.matmul %155, %161, %cst_45 {dimension_numbers = #tpu.dot_dimension_numbers<[1], [0], [0], [1], [0, 0, 1, 1], [], []>, precision = #tpu.contract_precision<fp32>} : vector<8x128xf32>, vector<128x512xf32>, vector<8x512xf32> -> vector<8x512xf32>
    %163 = arith.index_cast %c3_i32 : i32 to index
    %c0_46 = arith.constant 0 : index
    %c0_47 = arith.constant 0 : index
    %164 = vector.load %arg2[%163, %c0_46, %c0_47] : memref<4x8x2xf32, #tpu.memory_space<vmem>>, vector<1x8x2xf32>
    %165 = vector.shape_cast %164 : vector<1x8x2xf32> to vector<8x2xf32>
    %166 = vector.extract_strided_slice %165 {offsets = [0, 0], sizes = [8, 1], strides = [1, 1]} : vector<8x2xf32> to vector<8x1xf32>
    %167 = vector.broadcast %166 : vector<8x1xf32> to vector<8x512xf32>
    %168 = vector.broadcast %3 : vector<1x512xf32> to vector<8x512xf32>
    %169 = arith.mulf %167, %168 : vector<8x512xf32>
    %170 = arith.addf %162, %169 : vector<8x512xf32>
    %171 = vector.extract_strided_slice %165 {offsets = [0, 1], sizes = [8, 1], strides = [1, 1]} : vector<8x2xf32> to vector<8x1xf32>
    %172 = vector.broadcast %171 : vector<8x1xf32> to vector<8x512xf32>
    %173 = vector.broadcast %4 : vector<1x512xf32> to vector<8x512xf32>
    %174 = arith.mulf %172, %173 : vector<8x512xf32>
    %175 = arith.addf %170, %174 : vector<8x512xf32>
    %176 = vector.broadcast %5 : vector<1x512xf32> to vector<8x512xf32>
    %177 = arith.addf %175, %176 : vector<8x512xf32>
    %178 = vector.extract_strided_slice %177 {offsets = [0, 0], sizes = [8, 128], strides = [1, 1]} : vector<8x512xf32> to vector<8x128xf32>
    %179 = arith.negf %178 : vector<8x128xf32>
    %180 = math.exp %179 : vector<8x128xf32>
    %cst_48 = arith.constant 1.000000e+00 : f32
    %181 = vector.broadcast %cst_48 : f32 to vector<8x128xf32>
    %182 = arith.addf %181, %180 : vector<8x128xf32>
    %183 = arith.divf %181, %182 : vector<8x128xf32>
    %184 = vector.extract_strided_slice %177 {offsets = [0, 128], sizes = [8, 128], strides = [1, 1]} : vector<8x512xf32> to vector<8x128xf32>
    %185 = arith.negf %184 : vector<8x128xf32>
    %186 = math.exp %185 : vector<8x128xf32>
    %cst_49 = arith.constant 1.000000e+00 : f32
    %187 = vector.broadcast %cst_49 : f32 to vector<8x128xf32>
    %188 = arith.addf %187, %186 : vector<8x128xf32>
    %189 = arith.divf %187, %188 : vector<8x128xf32>
    %190 = vector.extract_strided_slice %177 {offsets = [0, 256], sizes = [8, 128], strides = [1, 1]} : vector<8x512xf32> to vector<8x128xf32>
    %191 = math.tanh %190 : vector<8x128xf32>
    %192 = vector.extract_strided_slice %177 {offsets = [0, 384], sizes = [8, 128], strides = [1, 1]} : vector<8x512xf32> to vector<8x128xf32>
    %193 = arith.negf %192 : vector<8x128xf32>
    %194 = math.exp %193 : vector<8x128xf32>
    %cst_50 = arith.constant 1.000000e+00 : f32
    %195 = vector.broadcast %cst_50 : f32 to vector<8x128xf32>
    %196 = arith.addf %195, %194 : vector<8x128xf32>
    %197 = arith.divf %195, %196 : vector<8x128xf32>
    %198 = arith.mulf %189, %156 : vector<8x128xf32>
    %199 = arith.mulf %183, %191 : vector<8x128xf32>
    %200 = arith.addf %198, %199 : vector<8x128xf32>
    %201 = math.tanh %200 : vector<8x128xf32>
    %202 = arith.mulf %197, %201 : vector<8x128xf32>
    %c4_i32_51 = arith.constant 4 : i32
    %203 = arith.muli %arg1, %c4_i32_51 : i32
    %204 = arith.addi %203, %c3_i32 : i32
    %c10_i32_52 = arith.constant 10 : i32
    %205 = arith.cmpi slt, %204, %c10_i32_52 : i32
    %206 = arith.select %205, %202, %155 : vector<8x128xf32>
    %207 = arith.select %205, %200, %156 : vector<8x128xf32>
    %208 = arith.index_cast %c3_i32 : i32 to index
    %c0_53 = arith.constant 0 : index
    %c0_54 = arith.constant 0 : index
    %209 = vector.load %arg6[%208, %c0_53, %c0_54] : memref<4x8x128xf32, #tpu.memory_space<vmem>>, vector<1x8x128xf32>
    %210 = vector.shape_cast %209 : vector<1x8x128xf32> to vector<8x128xf32>
    %211 = vector.shape_cast %206 : vector<8x128xf32> to vector<1x8x128xf32>
    tpu.vector_store %arg6[%208, %c0_53, %c0_54], %211 {strides = array<i32>} : memref<4x8x128xf32, #tpu.memory_space<vmem>>, vector<1x8x128xf32>,
    %c4_i32_55 = arith.constant 4 : i32
    %c0_56 = arith.constant 0 : index
    %c0_57 = arith.constant 0 : index
    %212 = vector.load %arg9[%c0_56, %c0_57] : memref<8x128xf32, #tpu.memory_space<vmem>>, vector<8x128xf32>
    tpu.vector_store %arg9[%c0_56, %c0_57], %206 {strides = array<i32>} : memref<8x128xf32, #tpu.memory_space<vmem>>, vector<8x128xf32>,
    %c0_58 = arith.constant 0 : index
    %c0_59 = arith.constant 0 : index
    %213 = vector.load %arg10[%c0_58, %c0_59] : memref<8x128xf32, #tpu.memory_space<vmem>>, vector<8x128xf32>
    tpu.vector_store %arg10[%c0_58, %c0_59], %207 {strides = array<i32>} : memref<8x128xf32, #tpu.memory_space<vmem>>, vector<8x128xf32>,
    %c2_i32_60 = arith.constant 2 : i32
    %214 = arith.cmpi eq, %arg1, %c2_i32_60 : i32
    %215 = arith.extui %214 : i1 to i32
    %c0_i32_61 = arith.constant 0 : i32
    %216 = arith.cmpi ne, %215, %c0_i32_61 : i32
    scf.if %216 {
      %c0_62 = arith.constant 0 : index
      %c0_63 = arith.constant 0 : index
      %217 = vector.load %arg7[%c0_62, %c0_63] : memref<8x128xf32, #tpu.memory_space<vmem>>, vector<8x128xf32>
      tpu.vector_store %arg7[%c0_62, %c0_63], %206 {strides = array<i32>} : memref<8x128xf32, #tpu.memory_space<vmem>>, vector<8x128xf32>,
      %c0_64 = arith.constant 0 : index
      %c0_65 = arith.constant 0 : index
      %218 = vector.load %arg8[%c0_64, %c0_65] : memref<8x128xf32, #tpu.memory_space<vmem>>, vector<8x128xf32>
      tpu.vector_store %arg8[%c0_64, %c0_65], %207 {strides = array<i32>} : memref<8x128xf32, #tpu.memory_space<vmem>>, vector<8x128xf32>,
    } else {
    }
    return
  }
  func.func @transform_0(%arg0: i32, %arg1: i32) -> (i32, i32, i32) {
    %c0_i32 = arith.constant 0 : i32
    %c0_i32_0 = arith.constant 0 : i32
    return %arg1, %arg0, %c0_i32 : i32, i32, i32
  }
  func.func @transform_1(%arg0: i32, %arg1: i32) -> (i32, i32) {
    %c0_i32 = arith.constant 0 : i32
    %c0_i32_0 = arith.constant 0 : i32
    %c0_i32_1 = arith.constant 0 : i32
    return %c0_i32, %c0_i32_0 : i32, i32
  }
  func.func @transform_2(%arg0: i32, %arg1: i32) -> (i32, i32) {
    %c0_i32 = arith.constant 0 : i32
    %c0_i32_0 = arith.constant 0 : i32
    %c0_i32_1 = arith.constant 0 : i32
    return %c0_i32, %c0_i32_0 : i32, i32
  }
  func.func @transform_3(%arg0: i32, %arg1: i32) -> (i32, i32) {
    %c0_i32 = arith.constant 0 : i32
    %c0_i32_0 = arith.constant 0 : i32
    %c0_i32_1 = arith.constant 0 : i32
    return %c0_i32, %c0_i32_0 : i32, i32
  }
  func.func @transform_4(%arg0: i32, %arg1: i32) -> (i32, i32, i32) {
    %c0_i32 = arith.constant 0 : i32
    %c0_i32_0 = arith.constant 0 : i32
    return %arg1, %arg0, %c0_i32 : i32, i32, i32
  }
  func.func @transform_5(%arg0: i32, %arg1: i32) -> (i32, i32) {
    %c0_i32 = arith.constant 0 : i32
    %c0_i32_0 = arith.constant 0 : i32
    return %arg0, %c0_i32 : i32, i32
  }
  func.func @transform_6(%arg0: i32, %arg1: i32) -> (i32, i32) {
    %c0_i32 = arith.constant 0 : i32
    %c0_i32_0 = arith.constant 0 : i32
    return %arg0, %c0_i32 : i32, i32
  }
}

</mosaic_0001>

<bundles_post_ra>
// kernel: custom_lstm_forward.1
= control target key start
LH: loop header
LB: loop body
LE: loop exit
PB: predicated region body
PF: predicated region fallthrough
CT: control target
= control target key end

     0   :  { %s13755_s0 = inlined_call_operand.vmem [shape: f32[12,16,2], index: 0, kind: input, shape index: {}]   ;;  %s13756_s1 = inlined_call_operand.vmem [shape: f32[2,512], index: 1, kind: input, shape index: {}]   ;;  %s13757_s2 = inlined_call_operand.vmem [shape: f32[1,512], index: 2, kind: input, shape index: {}]   ;;  %s13758_s3 = inlined_call_operand.vmem [shape: f32[128,512], index: 3, kind: input, shape index: {}]   ;;  %s13759_s4 = inlined_call_operand.vmem [shape: f32[12,16,128], index: 4, kind: output, shape index: {0}]   ;;  %s13760_s5 = inlined_call_operand.hbm [shape: f32[16,128], index: 5, kind: output, shape index: {1}]   ;;  %s13761_s6 = inlined_call_operand.hbm [shape: f32[16,128], index: 6, kind: output, shape index: {2}]  }
   0x1   :  { %14326 = sst [smem:[#allocation65_spill]] %s13755_s0 }
   0x2   :  { %12 = vsyncpa [#allocation7], 0 }
   0x3   :  { %14 = vsyncpa [#allocation7 + $0x1], 0 }
   0x4   :  { %15 = vsyncpa [#allocation9], 0 }
   0x5   :  { %17 = vsyncpa [#allocation9 + $0x1], 0  ;;  %s8379_s21 = smov 0   ;;  %s8381_s22 = smov 0  }
   0x6   :  { %s8383_s23 = smov 0   ;;  %s8385_s24 = smov 0  }
   0x7   :  { %s8387_s25 = smov 0   ;;  %s8389_s26 = smov 0  }
   0x8   :  { %s8391_s27 = smov 0   ;;  %s8393_s28 = smov 0  }
   0x9   :  { %s8395_s29 = smov 0   ;;  %s8397_s30 = smov 0  }
   0xa LB: > { %14327 = sst [smem:[#allocation12_spill]] %s8332_s29  ;;  %s7981_s7 = sadd.s32 4294967295, %s8336_s30   ;;  %s8336_s30 = sphi %s8397_s30, %s23_s30   ;;  %s8332_s29 = sphi %s8395_s29, %s15191_s29   ;;  %s8328_s28 = sphi %s8393_s28, %s15198_s28   ;;  %s8324_s27 = sphi %s8391_s27, %s15189_s27   ;;  %s8320_s26 = sphi %s8389_s26, %s15197_s26   ;;  %s8316_s25 = sphi %s8387_s25, %s15196_s25   ;;  %s8312_s24 = sphi %s8385_s24, %s15195_s24   ;;  %s8308_s23 = sphi %s8383_s23, %s15194_s23   ;;  %s8304_s22 = sphi %s8381_s22, %s15193_s22   ;;  %s8300_s21 = sphi %s8379_s21, %s15192_s21  }
   0xb   : > { %s7982_s8 = sadd.s32 4294967294, %s8336_s30   ;;  %s32_s9 = sadd.s32 1, %s8328_s28 }
   0xc   : > { %s35_s10 = sadd.s32 1, %s8332_s29  ;;  %p33_p0 = scmp.ge.s32.totalorder %s32_s9, 3 }
   0xd   : > { %s44_s11 = sadd.s32 1, %s8316_s25  ;;  %p51_p1 = scmp.ne.s32.totalorder %s8316_s25, %s8312_s24 }
   0xe   : > { %p52_p2 = scmp.eq.s32.totalorder %s8336_s30, 0  ;;  %s15200_s9 = smov (%p33_p0, %s32_s9), 0 }
   0xf   : > { %14328 = sst [smem:[#allocation13_spill]] %s15200_s9  ;;  %s15202_s10 = smov (!%p33_p0, %s35_s10), %s8332_s29 }
  0x10   : > { %s39_s12 = ssub.s32 %s8328_s28, %s15200_s9  ;;  %p8442_p3 = por %p52_p2, %p51_p1 }
  0x11   : > { %p37_p4 = scmp.ge.s32.totalorder %s15202_s10, 2  ;;  %p146_p5 = scmp.eq.s32.totalorder %s7981_s7, 5 }
  0x12   : > { %s161_s14 = sadd.s32 1, %s8308_s23  ;;  %p171_p6 = scmp.ne.s32.totalorder %s8308_s23, %s8304_s22 }
  0x13   : > { %s15204_s10 = smov (%p37_p4, %s15202_s10), 0  ;;  %p8451_p7 = por %p146_p5, %p51_p1 }
  0x14   : > { %14330 = sst [smem:[#allocation14_spill]] %s15204_s10  ;;  %p8455_p8 = por %p171_p6, %p146_p5 }
  0x15   : > { %s40_s17 = ssub.s32 %s8332_s29, %s15204_s10  ;;  %p177_p9 = scmp.ne.s32.totalorder %s8304_s22, %s8300_s21 }
  0x16   : > { %s41_s18 = sor.u32 %s40_s17, %s39_s12  ;;  %p159_p10 = scmp.eq.s32.totalorder %s40_s17, 0 }
  0x17   : > { %p42_p11 = scmp.eq.s32.totalorder %s41_s18, 0  ;;  %p178_p12 = scmp.eq.s32.totalorder %s7982_s8, 5 }
  0x18   : > { %s8464_s19 = scalar_select %p159_p10, %s8308_s23, %s161_s14  }
  0x19   : > { %s8467_s20 = scalar_select %p42_p11, %s8316_s25, %s44_s11  }
  0x1a   : > { %p8469_p13 = por %p178_p12, %p177_p9  ;;  %p7984_p0 = scmp.ge.s32.totalorder %s8336_s30, 6 }
  0x1b   : > { %14333 = sst [smem:[#allocation15_spill]] %s8467_s20 }
  0x1c   : > { %229 = sbr.rel (%p7984_p0) target bundleno = 45 (0x2d), region = 28 }
  0x21   : > { %232 = sbr.rel (!%p8442_p3) target bundleno = 45 (0x2d), region = 32  ;;  %s234_s12 = sand.u32 (%p8442_p3), 1, %s8316_s25  }
  0x22   : > { %s8026_s17 = sshll.u32 (%p8442_p3), %s8328_s28, 3  ;;  %s7985_s8 = sshll.u32 (%p8442_p3), %s234_s12, 5 }
  0x23   : > { %s239_s14 = sadd.s32 (%p8442_p3), %s8332_s29, %s8026_s17  ;;  %s14335_s0 = sld [smem:[#allocation65_spill]] (%p8442_p3) }
  0x24   : > { %s7988_s18 = sshll.u32 (%p8442_p3), %s239_s14, 3  ;;  %s236_s20 = scalar_lea.vmem (%p8442_p3), [#allocation4], %s7985_s8 }
  0x29   : > { %s241_s9 = scalar_lea.vmem %s14335_s0, %s7988_s18 }
  0x2a   : > { %v276_v0 = vld [vmem:[%s241_s9] sm:$0xff]  ;;  %v278_v1 = vld [vmem:[%s241_s9 + $0x10] sm:$0xff] }
  0x2b   : > { %v280_v2 = vld [vmem:[%s241_s9 + $0x20] sm:$0xff]  ;;  %277 = vst [vmem:[%s236_s20] sm:$0xff] %v276_v0  ;;  %279 = vst [vmem:[%s236_s20 + $0x8] sm:$0xff] %v278_v1  ;;  %v282_v3 = vld [vmem:[%s241_s9 + $0x30] sm:$0xff] }
  0x2c   : > { %281 = vst [vmem:[%s236_s20 + $0x10] sm:$0xff] %v280_v2  ;;  %283 = vst [vmem:[%s236_s20 + $0x18] sm:$0xff] %v282_v3 }
  0x2d PF: > { %p7989_p1 = scmp.ge.s32.totalorder %s8336_s30, 1  ;;  %p288_p2 = scmp.lt.s32.totalorder %s8336_s30, 7 }
  0x2f   : > { %p289_p3 = pnand %p7989_p1, %p288_p2 }
  0x31   : > { %292 = sbr.rel (%p289_p3) target bundleno = 1832 (0x728), region = 70 }
  0x36   : > { %s295_s10 = sand.u32 1, %s8312_s24   ;;  %s8486_s13 = sand.u32 1, %s8304_s22  }
  0x37   : > { %s7990_s12 = sshll.u32 %s295_s10, 5  ;;  %s7992_s17 = sshll.u32 %s8486_s13, 3 }
  0x38   : > { %s8489_s8 = scalar_lea.vmem [#allocation4], %s7990_s12  ;;  %s8491_s9 = scalar_lea.vmem [#allocation5], %s7990_s12 }
  0x39   : > { %s8493_s20 = scalar_lea.vmem [#allocation6], %s7992_s17  ;;  %s8495_s14 = scalar_lea.vmem [#allocation8], %s7992_s17 }
  0x3a   : > { %p7994_p4 = scmp.ne.s32.totalorder %s8320_s26, 0 }
  0x3c   : > { %338 = sbr.rel (%p7994_p4) target bundleno = 67 (0x43), region = 78 }
  0x41   : > { %v8338_v4 = vmov 0.0  }
  0x42   : > { %339 = vst [vmem:[#allocation2] sm:$0xff] %v8338_v4  ;;  %340 = vst [vmem:[#allocation3] sm:$0xff] %v8338_v4 }
  0x43 PF: > { %v408_v5 = vld [vmem:[%s13758_s3 + $0x1e8] sm:$0xff]  ;;  %v407_v6 = vld [vmem:[%s13758_s3 + $0x1e0] sm:$0xff]  ;;  %v13780_v14 = vmov 0.0   ;;  %v13765_v21 = vmov 0   ;;  %p8015_p11 = scmp.ne.s32.totalorder %s8320_s26, 2 }
  0x44   : > { %v404_v7 = vld [vmem:[%s13758_s3 + $0x1c8] sm:$0xff]  ;;  %v8507_v8 = vand.u32 4294901760, %v408_v5  ;;  %v8509_v9 = vand.u32 4294901760, %v407_v6  ;;  %v403_v11 = vld [vmem:[%s13758_s3 + $0x1c0] sm:$0xff]  ;;  %538 = vmatprep.mubr.f32.mxu0 %v13780_v14  ;;  %774 = vmatprep.mubr.f32.mxu1 %v13780_v14 }
  0x45   : > { %v8511_v10 = vand.u32 4294901760, %v404_v7  ;;  %v400_v12 = vld [vmem:[%s13758_s3 + $0x1a8] sm:$0xff]  ;;  %v399_v13 = vld [vmem:[%s13758_s3 + $0x1a0] sm:$0xff]  ;;  %v8524_v15 = vand.u32 4294901760, %v403_v11  ;;  %8124 = vset.pattern.permute.xlu0 %v13765_v21  ;;  %8126 = vset.pattern.permute.xlu1 %v13765_v21 }
  0x46   : > { %v8526_v16 = vand.u32 4294901760, %v400_v12  ;;  %v8528_v17 = vand.u32 4294901760, %v399_v13  ;;  %v396_v18 = vld [vmem:[%s13758_s3 + $0x188] sm:$0xff]  ;;  %v395_v19 = vld [vmem:[%s13758_s3 + $0x180] sm:$0xff]  ;;  %443 = vmatprep.subr.mxu0 %v8507_v8  ;;  %v8552_v25 = vsub.f32 %v408_v5, %v8507_v8  ;;  %v8574_v30 = vsub.f32 %v407_v6, %v8509_v9 }
  0x47   : > { %v8539_v20 = vld [vmem:[%s13758_s3 + $0x168] sm:$0xff]  ;;  %v8544_v22 = vand.u32 4294901760, %v396_v18  ;;  %v8546_v23 = vand.u32 4294901760, %v395_v19  ;;  %v8557_v26 = vld [vmem:[%s13758_s3 + $0x160] sm:$0xff]  ;;  %445 = vmatpush1.msra.mxu0 %v8509_v9  ;;  %v8580_v32 = vsub.f32 %v404_v7, %v8511_v10  ;;  %v8603_v38 = vsub.f32 %v403_v11, %v8524_v15 }
  0x48   : > { %v8549_v24 = vand.u32 4294901760, %v8539_v20  ;;  %v8562_v27 = vld [vmem:[%s13758_s3 + $0x148] sm:$0xff]  ;;  %v8567_v28 = vld [vmem:[%s13758_s3 + $0x140] sm:$0xff]  ;;  %v8571_v29 = vand.u32 4294901760, %v8557_v26  ;;  %447 = vmatprep.subr.mxu0 %v8511_v10  ;;  %v13779_v36 = vand.u32 4294901760, %v8552_v25  ;;  %v13777_v40 = vand.u32 4294901760, %v8574_v30 }
  0x49   : > { %v8577_v31 = vand.u32 4294901760, %v8562_v27  ;;  %v8585_v33 = vld [vmem:[%s13758_s3 + $0x128] sm:$0xff]  ;;  %v8590_v34 = vld [vmem:[%s13758_s3 + $0x120] sm:$0xff]  ;;  %v8600_v37 = vand.u32 4294901760, %v8567_v28  ;;  %449 = vmatpush1.msra.mxu0 %v8524_v15  ;;  %v13776_v41 = vand.u32 4294901760, %v8580_v32  ;;  %v8612_v42 = vsub.f32 %v400_v12, %v8526_v16 }
  0x4a   : > { %v8595_v35 = vld [vmem:[%s13758_s3 + $0x108] sm:$0xff]  ;;  %v8606_v39 = vand.u32 4294901760, %v8585_v33  ;;  %v8615_v43 = vand.u32 4294901760, %v8590_v34  ;;  %v8620_v44 = vld [vmem:[%s13758_s3 + $0x100] sm:$0xff]  ;;  %451 = vmatprep.subr.mxu0 %v8526_v16  ;;  %v553_v45 = vsub.f32 %v8552_v25, %v13779_v36  ;;  %v13773_v46 = vand.u32 4294901760, %v8603_v38 }
  0x4b   : > { %14336 = vst [vmem:[#allocation16_spill] sm:$0xff] %v8600_v37  ;;  %v8628_v47 = vsub.f32 %v399_v13, %v8528_v17  ;;  %v8631_v48 = vand.u32 4294901760, %v8595_v35  ;;  %453 = vmatpush1.msra.mxu0 %v8528_v17  ;;  %v559_v49 = vsub.f32 %v8574_v30, %v13777_v40  ;;  %v565_v50 = vsub.f32 %v8580_v32, %v13776_v41  ;;  %v8647_v53 = vld [vmem:[%s13758_s3 + $0xe8] sm:$0xff]  ;;  %v8660_v58 = vld [vmem:[%s13758_s3 + $0xe0] sm:$0xff] }
  0x4c   : > { %14337 = vst [vmem:[#allocation17_spill] sm:$0xff] %v8606_v39  ;;  %14338 = vst [vmem:[#allocation18_spill] sm:$0xff] %v8615_v43  ;;  %v13772_v51 = vand.u32 4294901760, %v8612_v42  ;;  %v8642_v52 = vsub.f32 %v396_v18, %v8544_v22  ;;  %455 = vmatprep.subr.mxu0 %v8544_v22  ;;  %v554_v54 = vand.u32 4294901760, %v553_v45  ;;  %v571_v55 = vsub.f32 %v8603_v38, %v13773_v46  ;;  %v8670_v63 = vld [vmem:[%s13758_s3 + $0xc8] sm:$0xff]  ;;  %v8685_v4 = vld [vmem:[%s13758_s3 + $0xc0] sm:$0xff] }
  0x4d   : > { %14339 = vst [vmem:[#allocation19_spill] sm:$0xff] %v8631_v48  ;;  %v13770_v56 = vand.u32 4294901760, %v8628_v47  ;;  %v8655_v57 = vand.u32 4294901760, %v8620_v44  ;;  %457 = vmatpush1.msra.mxu0 %v8546_v23  ;;  %v560_v59 = vand.u32 4294901760, %v559_v49  ;;  %v566_v60 = vand.u32 4294901760, %v565_v50  ;;  %v8701_v12 = vld [vmem:[%s13758_s3 + $0xa8] sm:$0xff] }
  0x4e   : > { %v577_v61 = vsub.f32 %v8612_v42, %v13772_v51  ;;  %v13768_v62 = vand.u32 4294901760, %v8642_v52  ;;  %459 = vmatprep.subr.mxu0 %v8549_v24  ;;  %555 = vmatprep.subr.mxu1 %v554_v54  ;;  %v572_v0 = vand.u32 4294901760, %v571_v55  ;;  %v8677_v2 = vsub.f32 %v395_v19, %v8546_v23  ;;  %v8715_v45 = vld [vmem:[%s13758_s3 + $0xa0] sm:$0xff]  ;;  %v8838_v36 = vld [vmem:[%s13758_s3 + $0x28] sm:$0xff] }
  0x4f   : > { %14340 = vst [vmem:[#allocation20_spill] sm:$0xff] %v8655_v57  ;;  %v583_v1 = vsub.f32 %v8628_v47, %v13770_v56  ;;  %v8680_v3 = vand.u32 4294901760, %v8647_v53  ;;  %461 = vmatpush1.msra.mxu0 %v8571_v29  ;;  %561 = vmatpush1.msra.mxu1 %v560_v59  ;;  %v8693_v7 = vsub.f32 %v8539_v20, %v8549_v24  ;;  %v8696_v11 = vand.u32 4294901760, %v8660_v58  ;;  %v8795_v46 = vld [vmem:[%s13758_s3 + $0x60] sm:$0xff] }
  0x50   : > { %v578_v5 = vand.u32 4294901760, %v577_v61  ;;  %v589_v6 = vsub.f32 %v8642_v52, %v13768_v62  ;;  %463 = vmatprep.subr.mxu0 %v8577_v31  ;;  %567 = vmatprep.subr.mxu1 %v566_v60  ;;  %v13766_v18 = vand.u32 4294901760, %v8677_v2  ;;  %v8707_v19 = vsub.f32 %v8557_v26, %v8571_v29 }
  0x51   : > { %14341 = vst [vmem:[#allocation21_spill] sm:$0xff] %v8680_v3  ;;  %14342 = vst [vmem:[#allocation22_spill] sm:$0xff] %v8696_v11  ;;  %v584_v13 = vand.u32 4294901760, %v583_v1  ;;  %v8710_v20 = vand.u32 4294901760, %v8670_v63  ;;  %465 = vmatpush1.msra.mxu0 %v8600_v37  ;;  %573 = vmatpush1.msra.mxu1 %v572_v0  ;;  %v13767_v50 = vand.u32 4294901760, %v8693_v7  ;;  %v8721_v54 = vsub.f32 %v8562_v27, %v8577_v31  ;;  %v8741_v27 = vld [vmem:[%s13758_s3 + $0x88] sm:$0xff] }
  0x52   : > { %v590_v49 = vand.u32 4294901760, %v589_v6  ;;  %v8724_v26 = vand.u32 4294901760, %v8685_v4  ;;  %467 = vmatprep.subr.mxu0 %v8606_v39  ;;  %579 = vmatprep.subr.mxu1 %v578_v5  ;;  %v595_v55 = vsub.f32 %v8677_v2, %v13766_v18  ;;  %v13769_v59 = vand.u32 4294901760, %v8707_v19  ;;  %v411_v0 = vld [vmem:[%s8489_s8] sm:$0xff] }
  0x53   : > { %14343 = vst [vmem:[#allocation23_spill] sm:$0xff] %v8710_v20  ;;  %v8733_v60 = vsub.f32 %v8567_v28, %v8600_v37  ;;  %v8736_v61 = vand.u32 4294901760, %v8701_v12  ;;  %469 = vmatpush1.msra.mxu0 %v8615_v43  ;;  %585 = vmatpush1.msra.mxu1 %v584_v13  ;;  %v601_v1 = vsub.f32 %v8693_v7, %v13767_v50  ;;  %v13771_v5 = vand.u32 4294901760, %v8721_v54 }
  0x54   : > { %14344 = vst [vmem:[#allocation24_spill] sm:$0xff] %v8724_v26  ;;  %v8751_v28 = vsub.f32 %v8585_v33, %v8606_v39  ;;  %v8754_v6 = vand.u32 4294901760, %v8715_v45  ;;  %471 = vmatprep.subr.mxu0 %v8631_v48  ;;  %591 = vmatprep.subr.mxu1 %v590_v49  ;;  %v596_v21 = vand.u32 4294901760, %v595_v55  ;;  %v607_v13 = vsub.f32 %v8707_v19, %v13769_v59  ;;  %v8768_v33 = vld [vmem:[%s13758_s3 + $0x80] sm:$0xff] }
  0x55   : > { %14345 = vst [vmem:[#allocation25_spill] sm:$0xff] %v8736_v61  ;;  %v13774_v18 = vand.u32 4294901760, %v8733_v60  ;;  %v8763_v50 = vsub.f32 %v8590_v34, %v8615_v43  ;;  %473 = vmatpush1.msra.mxu0 %v8655_v57  ;;  %v602_v62 = vand.u32 4294901760, %v601_v1  ;;  %v613_v49 = vsub.f32 %v8721_v54, %v13771_v5  ;;  %v8781_v34 = vld [vmem:[%s13758_s3 + $0x68] sm:$0xff]  ;;  %414 = vperm.xlu0 %8124, %v411_v0   ;;  %v345_v39 = vld [vmem:[#allocation2] sm:$0xff] }
  0x56   : > { %14346 = vst [vmem:[#allocation26_spill] sm:$0xff] %v8754_v6  ;;  %v13775_v55 = vand.u32 4294901760, %v8751_v28  ;;  %v8776_v59 = vand.u32 4294901760, %v8741_v27  ;;  %597 = vmatpush1.msra.mxu1 %v596_v21  ;;  %475 = vmatprep.subr.mxu0 %v8680_v3  ;;  %v608_v56 = vand.u32 4294901760, %v607_v13  ;;  %v8790_v51 = vsub.f32 %v8595_v35, %v8631_v48 }
  0x57   : > { %v619_v1 = vsub.f32 %v8733_v60, %v13774_v18  ;;  %v13778_v5 = vand.u32 4294901760, %v8763_v50  ;;  %603 = vmatprep.subr.mxu1 %v602_v62  ;;  %477 = vmatpush1.msra.mxu0 %v8696_v11  ;;  %v614_v21 = vand.u32 4294901760, %v613_v49  ;;  %v8802_v13 = vand.u32 4294901760, %v8768_v33  ;;  %v8811_v18 = vld [vmem:[%s13758_s3 + $0x48] sm:$0xff] }
  0x58   : > { %14347 = vst [vmem:[#allocation27_spill] sm:$0xff] %v8776_v59  ;;  %v625_v0 = vsub.f32 %v8751_v28, %v13775_v55  ;;  %v8806_v35 = vsub.f32 %v8620_v44, %v8655_v57  ;;  %609 = vmatpush1.msra.mxu1 %v608_v56  ;;  %479 = vmatprep.subr.mxu0 %v8710_v20  ;;  %v13784_v55 = vand.u32 4294901760, %v8790_v51  ;;  %v8819_v41 = vand.u32 4294901760, %v8781_v34  ;;  %v8824_v44 = vld [vmem:[%s13758_s3 + $0x40] sm:$0xff] }
  0x59   : > { %14348 = vst [vmem:[#allocation28_spill] sm:$0xff] %v8802_v13  ;;  %v620_v62 = vand.u32 4294901760, %v619_v1  ;;  %v631_v49 = vsub.f32 %v8763_v50, %v13778_v5  ;;  %615 = vmatprep.subr.mxu1 %v614_v21  ;;  %481 = vmatpush1.msra.mxu0 %v8724_v26  ;;  %v8830_v40 = vsub.f32 %v8647_v53, %v8680_v3  ;;  %v8833_v5 = vand.u32 4294901760, %v8795_v46 }
  0x5a   : > { %14349 = vst [vmem:[#allocation29_spill] sm:$0xff] %v8819_v41  ;;  %v626_v56 = vand.u32 4294901760, %v625_v0  ;;  %v13785_v1 = vand.u32 4294901760, %v8806_v35  ;;  %483 = vmatprep.subr.mxu0 %v8736_v61  ;;  %v637_v0 = vsub.f32 %v8790_v51, %v13784_v55  ;;  %v8846_v53 = vsub.f32 %v8660_v58, %v8696_v11  ;;  %v8866_v58 = vld [vmem:[%s13758_s3 + $0x20] sm:$0xff] }
  0x5b   : > { %14350 = vst [vmem:[#allocation30_spill] sm:$0xff] %v8833_v5  ;;  %621 = vmatpush1.msra.mxu1 %v620_v62  ;;  %v632_v21 = vand.u32 4294901760, %v631_v49  ;;  %v8849_v14 = vand.u32 4294901760, %v8811_v18  ;;  %485 = vmatpush1.msra.mxu0 %v8754_v6  ;;  %v8858_v3 = vsub.f32 %v8670_v63, %v8710_v20  ;;  %v8861_v55 = vand.u32 4294901760, %v8824_v44  ;;  %v8880_v20 = vld [vmem:[%s13758_s3 + $0x8] sm:$0xff] }
  0x5c   : > { %627 = vmatprep.subr.mxu1 %v626_v56  ;;  %v643_v62 = vsub.f32 %v8806_v35, %v13785_v1  ;;  %487 = vmatprep.subr.mxu0 %v8776_v59  ;;  %v638_v56 = vand.u32 4294901760, %v637_v0  ;;  %v8872_v49 = vsub.f32 %v8685_v4, %v8724_v26  ;;  %v8875_v63 = vand.u32 4294901760, %v8838_v36 }
  0x5d   : > { %14351 = vst [vmem:[#allocation31_spill] sm:$0xff] %v8849_v14  ;;  %14352 = vst [vmem:[#allocation32_spill] sm:$0xff] %v8861_v55  ;;  %633 = vmatpush1.msra.mxu1 %v632_v21  ;;  %489 = vmatpush1.msra.mxu0 %v8802_v13  ;;  %v14354_v11 = vand.u32 4294901760, %v8830_v40  ;;  %v13804_v1 = vand.u32 4294901760, %v8858_v3  ;;  %v8889_v4 = vsub.f32 %v8701_v12, %v8736_v61  ;;  %v14355_v26 = vand.u32 4294901760, %v8846_v53  ;;  %v8906_v12 = vld [vmem:[%s13758_s3] sm:$0xff] }
  0x5e   : > { %14353 = vst [vmem:[#allocation33_spill] sm:$0xff] %v8875_v63  ;;  %v644_v21 = vand.u32 4294901760, %v643_v62  ;;  %639 = vmatprep.subr.mxu1 %v638_v56  ;;  %491 = vmatprep.subr.mxu0 %v8819_v41  ;;  %v8897_v62 = vand.u32 4294901760, %v8866_v58  ;;  %v8914_v61 = vand.u32 4294901760, %v8880_v20  ;;  %v8930_v37 = vand.u32 4294901760, %v8906_v12 }
  0x5f   : > { %v649_v0 = vsub.f32 %v8830_v40, %v14354_v11  ;;  %v655_v57 = vsub.f32 %v8846_v53, %v14355_v26  ;;  %v8901_v11 = vsub.f32 %v8715_v45, %v8754_v6  ;;  %493 = vmatpush1.msra.mxu0 %v8833_v5  ;;  %v661_v26 = vsub.f32 %v8858_v3, %v13804_v1 }
  0x60   : > { %645 = vmatpush1.msra.mxu1 %v644_v21  ;;  %v13807_v48 = vand.u32 4294901760, %v8889_v4  ;;  %495 = vmatprep.subr.mxu0 %v8849_v14  ;;  %v14356_v6 = vand.u32 4294901760, %v8872_v49 }
  0x61   : > { %v650_v56 = vand.u32 4294901760, %v649_v0  ;;  %v656_v45 = vand.u32 4294901760, %v655_v57  ;;  %v8923_v0 = vsub.f32 %v8741_v27, %v8776_v59  ;;  %v662_v1 = vand.u32 4294901760, %v661_v26  ;;  %497 = vmatpush1.msra.mxu0 %v8861_v55 }
  0x62   : > { %v667_v43 = vsub.f32 %v8872_v49, %v14356_v6  ;;  %v673_v57 = vsub.f32 %v8889_v4, %v13807_v48  ;;  %v8934_v6 = vsub.f32 %v8768_v33, %v8802_v13  ;;  %499 = vmatprep.subr.mxu0 %v8875_v63  ;;  %v14357_v27 = vand.u32 4294901760, %v8901_v11 }
  0x63   : > { %651 = vmatprep.subr.mxu1 %v650_v56  ;;  %v13810_v26 = vand.u32 4294901760, %v8923_v0  ;;  %v8943_v48 = vsub.f32 %v8781_v34, %v8819_v41  ;;  %501 = vmatpush1.msra.mxu0 %v8897_v62 }
  0x64   : > { %657 = vmatpush1.msra.mxu1 %v656_v45  ;;  %v668_v21 = vand.u32 4294901760, %v667_v43  ;;  %v679_v56 = vsub.f32 %v8901_v11, %v14357_v27  ;;  %v674_v59 = vand.u32 4294901760, %v673_v57  ;;  %v13813_v33 = vand.u32 4294901760, %v8934_v6  ;;  %503 = vmatprep.subr.mxu0 %v8914_v61 }
  0x65   : > { %663 = vmatprep.subr.mxu1 %v662_v1  ;;  %v8947_v45 = vand.u32 4294901760, %v345_v39  ;;  %v8951_v43 = vsub.f32 %v8795_v46, %v8833_v5  ;;  %v685_v34 = vsub.f32 %v8923_v0, %v13810_v26  ;;  %v8960_v57 = vsub.f32 %v8811_v18, %v8849_v14  ;;  %505 = vmatpush1.msra.mxu0 %v8930_v37 }
  0x66   : > { %669 = vmatpush1.msra.mxu1 %v668_v21  ;;  %v680_v27 = vand.u32 4294901760, %v679_v56  ;;  %v691_v46 = vsub.f32 %v8934_v6, %v13813_v33  ;;  %v8972_v26 = vsub.f32 %v8824_v44, %v8861_v55  ;;  %v14360_v18 = vand.u32 4294901760, %v8943_v48  ;;  %784 = vmatprep.subr.mxu0 %v8552_v25 }
  0x67   : > { %14358 = vst [vmem:[#allocation34_spill] sm:$0xff] %v8947_v45  ;;  %675 = vmatprep.subr.mxu1 %v674_v59  ;;  %v8967_v21 = vsub.f32 %v345_v39, %v8947_v45  ;;  %v686_v1 = vand.u32 4294901760, %v685_v34  ;;  %v13820_v14 = vand.u32 4294901760, %v8960_v57  ;;  %v8981_v39 = vsub.f32 %v8838_v36, %v8875_v63 }
  0x68   : > { %681 = vmatpush1.msra.mxu1 %v680_v27  ;;  %v697_v59 = vsub.f32 %v8943_v48, %v14360_v18  ;;  %v692_v33 = vand.u32 4294901760, %v691_v46  ;;  %v14362_v44 = vand.u32 4294901760, %v8951_v43  ;;  %v13821_v34 = vand.u32 4294901760, %v8972_v26 }
  0x69   : > { %14359 = vst [vmem:[#allocation35_spill] sm:$0xff] %v8967_v21  ;;  %v8984_v56 = vand.u32 4294901760, %v8967_v21  ;;  %687 = vmatprep.subr.mxu1 %v686_v1  ;;  %v709_v55 = vsub.f32 %v8960_v57, %v13820_v14  ;;  %v13827_v5 = vand.u32 4294901760, %v8981_v39  ;;  %v8996_v36 = vsub.f32 %v8866_v58, %v8897_v62 }
  0x6a   : > { %v703_v27 = vsub.f32 %v8951_v43, %v14362_v44  ;;  %v698_v18 = vand.u32 4294901760, %v697_v59  ;;  %693 = vmatpush1.msra.mxu1 %v692_v33  ;;  %v715_v1 = vsub.f32 %v8972_v26, %v13821_v34  ;;  %v9005_v59 = vsub.f32 %v8880_v20, %v8914_v61 }
  0x6b   : > { %14361 = vst [vmem:[#allocation36_spill] sm:$0xff] %v8984_v56  ;;  %14363 = vst [vmem:[#allocation37_spill] sm:$0xff] %v8996_v36  ;;  %v542_v46 = vsub.f32 %v8967_v21, %v8984_v56  ;;  %v710_v44 = vand.u32 4294901760, %v709_v55  ;;  %v721_v58 = vsub.f32 %v8981_v39, %v13827_v5  ;;  %v13826_v33 = vand.u32 4294901760, %v8996_v36  ;;  %v14378_v5 = vld [vmem:[#allocation27_spill] sm:$0xff] }
  0x6c   : > { %v704_v63 = vand.u32 4294901760, %v703_v27  ;;  %699 = vmatprep.subr.mxu1 %v698_v18  ;;  %v9013_v14 = vsub.f32 %v8906_v12, %v8930_v37  ;;  %v716_v34 = vand.u32 4294901760, %v715_v1  ;;  %v13825_v56 = vand.u32 4294901760, %v9005_v59 }
  0x6d   : > { %v9015_v27 = vand.u32 4294901760, %v542_v46  ;;  %v722_v20 = vand.u32 4294901760, %v721_v58  ;;  %v727_v55 = vsub.f32 %v8996_v36, %v13826_v33  ;;  %v14367_v58 = vld [vmem:[#allocation16_spill] sm:$0xff]  ;;  %v14377_v33 = vld [vmem:[#allocation26_spill] sm:$0xff] }
  0x6e   : > { %14364 = vst [vmem:[#allocation38_spill] sm:$0xff] %v9013_v14  ;;  %705 = vmatpush1.msra.mxu1 %v704_v63  ;;  %v13824_v18 = vand.u32 4294901760, %v9013_v14  ;;  %v733_v12 = vsub.f32 %v9005_v59, %v13825_v56  ;;  %v14376_v56 = vld [vmem:[#allocation25_spill] sm:$0xff] }
  0x6f   : > { %14365 = vst [vmem:[#allocation39_spill] sm:$0xff] %v9015_v27  ;;  %711 = vmatprep.subr.mxu1 %v710_v44  ;;  %544 = vmatmul.mubr.f32.vlgmr.msra.gmra.mxu0 %v9015_v27  ;;  %v728_v63 = vand.u32 4294901760, %v727_v55  ;;  %v14366_v44 = vmov 0.0   ;;  %v14369_v55 = vld [vmem:[#allocation18_spill] sm:$0xff]  ;;  %v14379_v27 = vand.u32 4294901760, %v8552_v25  ;;  %v14387_v25 = vand.u32 4294901760, %v8612_v42 }
  0x70   : > { %717 = vmatpush1.msra.mxu1 %v716_v34  ;;  %787 = vmatpush1.msra.mxu0 %v8574_v30  ;;  %v739_v46 = vsub.f32 %v9013_v14, %v13824_v18  ;;  %v734_v1 = vand.u32 4294901760, %v733_v12  ;;  %v14370_v12 = vld [vmem:[#allocation19_spill] sm:$0xff]  ;;  %v14375_v18 = vld [vmem:[#allocation24_spill] sm:$0xff] }
  0x71   : > { %723 = vmatprep.subr.mxu1 %v722_v20  ;;  %790 = vmatprep.subr.mxu0 %v8580_v32  ;;  %v14368_v20 = vld [vmem:[#allocation17_spill] sm:$0xff] }
  0x72   : > { %910 = vmatprep.mubr.f32.mxu0 %v14366_v44  ;;  %793 = vmatpush1.msra.mxu0 %v8603_v38  ;;  %v740_v34 = vand.u32 4294901760, %v739_v46  ;;  %v14372_v46 = vld [vmem:[#allocation21_spill] sm:$0xff] }
  0x73   : > { %729 = vmatpush1.msra.mxu1 %v728_v63  ;;  %796 = vmatprep.subr.mxu0 %v8612_v42  ;;  %v14371_v63 = vld [vmem:[#allocation20_spill] sm:$0xff]  ;;  %v14392_v42 = vand.u32 4294901760, %v8693_v7 }
  0x74   : > { %735 = vmatprep.subr.mxu1 %v734_v1  ;;  %799 = vmatpush1.msra.mxu0 %v8628_v47  ;;  %v14373_v1 = vld [vmem:[#allocation22_spill] sm:$0xff] }
  0x75   : > { %741 = vmatpush1.msra.mxu1 %v740_v34  ;;  %802 = vmatprep.subr.mxu0 %v8642_v52  ;;  %v14374_v34 = vld [vmem:[#allocation23_spill] sm:$0xff] }
  0x76   : > { %776 = vmatmul.mubr.f32.vlgmr.msra.gmra.mxu1 %v8947_v45  ;;  %805 = vmatpush1.msra.mxu0 %v8677_v2  ;;  %v14380_v45 = vld [vmem:[#allocation30_spill] sm:$0xff] }
  0x77   : > { %920 = vmatprep.subr.mxu1 %v8507_v8  ;;  %808 = vmatprep.subr.mxu0 %v8693_v7  ;;  %v14396_v7 = vand.u32 4294901760, %v8751_v28 }
  0x78   : > { %922 = vmatpush1.msra.mxu1 %v8509_v9  ;;  %811 = vmatpush1.msra.mxu0 %v8707_v19 }
  0x79   : > { %924 = vmatprep.subr.mxu1 %v8511_v10  ;;  %814 = vmatprep.subr.mxu0 %v8721_v54 }
  0x7a   : > { %926 = vmatpush1.msra.mxu1 %v8524_v15  ;;  %817 = vmatpush1.msra.mxu0 %v8733_v60 }
  0x7b   : > { %928 = vmatprep.subr.mxu1 %v8526_v16  ;;  %820 = vmatprep.subr.mxu0 %v8751_v28 }
  0x7c   : > { %930 = vmatpush1.msra.mxu1 %v8528_v17  ;;  %823 = vmatpush1.msra.mxu0 %v8763_v50 }
  0x7d   : > { %932 = vmatprep.subr.mxu1 %v8544_v22  ;;  %826 = vmatprep.subr.mxu0 %v8790_v51 }
  0x7e   : > { %934 = vmatpush1.msra.mxu1 %v8546_v23  ;;  %829 = vmatpush1.msra.mxu0 %v8806_v35 }
  0x7f   : > { %936 = vmatprep.subr.mxu1 %v8549_v24  ;;  %832 = vmatprep.subr.mxu0 %v8830_v40 }
  0x80   : > { %938 = vmatpush1.msra.mxu1 %v8571_v29  ;;  %835 = vmatpush1.msra.mxu0 %v8846_v53 }
  0x81   : > { %940 = vmatprep.subr.mxu1 %v8577_v31  ;;  %838 = vmatprep.subr.mxu0 %v8858_v3 }
  0x82   : > { %942 = vmatpush1.msra.mxu1 %v14367_v58  ;;  %841 = vmatpush1.msra.mxu0 %v8872_v49 }
  0x83   : > { %944 = vmatprep.subr.mxu1 %v14368_v20  ;;  %844 = vmatprep.subr.mxu0 %v8889_v4 }
  0x84   : > { %946 = vmatpush1.msra.mxu1 %v14369_v55  ;;  %847 = vmatpush1.msra.mxu0 %v8901_v11 }
  0x85   : > { %948 = vmatprep.subr.mxu1 %v14370_v12  ;;  %850 = vmatprep.subr.mxu0 %v8923_v0 }
  0x86   : > { %950 = vmatpush1.msra.mxu1 %v14371_v63  ;;  %853 = vmatpush1.msra.mxu0 %v8934_v6 }
  0x87   : > { %952 = vmatprep.subr.mxu1 %v14372_v46  ;;  %856 = vmatprep.subr.mxu0 %v8943_v48 }
  0x88   : > { %954 = vmatpush1.msra.mxu1 %v14373_v1  ;;  %859 = vmatpush1.msra.mxu0 %v8951_v43 }
  0x89   : > { %956 = vmatprep.subr.mxu1 %v14374_v34  ;;  %862 = vmatprep.subr.mxu0 %v8960_v57 }
  0x8a   : > { %958 = vmatpush1.msra.mxu1 %v14375_v18  ;;  %865 = vmatpush1.msra.mxu0 %v8972_v26 }
  0x8b   : > { %960 = vmatprep.subr.mxu1 %v14376_v56  ;;  %868 = vmatprep.subr.mxu0 %v8981_v39 }
  0x8c   : > { %962 = vmatpush1.msra.mxu1 %v14377_v33  ;;  %871 = vmatpush1.msra.mxu0 %v8996_v36  ;;  %v14381_v33 = vand.u32 4294901760, %v8574_v30  ;;  %v14382_v36 = vld [vmem:[#allocation31_spill] sm:$0xff]  ;;  %v14388_v30 = vand.u32 4294901760, %v8628_v47  ;;  %v14393_v47 = vand.u32 4294901760, %v8707_v19 }
  0x8d   : > { %964 = vmatprep.subr.mxu1 %v14378_v5  ;;  %874 = vmatprep.subr.mxu0 %v9005_v59  ;;  %v14383_v5 = vand.u32 4294901760, %v8580_v32  ;;  %v14389_v32 = vand.u32 4294901760, %v8642_v52  ;;  %v14394_v52 = vand.u32 4294901760, %v8721_v54 }
  0x8e   : > { %966 = vmatpush1.msra.mxu1 %v8802_v13  ;;  %877 = vmatpush1.msra.mxu0 %v9013_v14  ;;  %v14384_v13 = vld [vmem:[#allocation32_spill] sm:$0xff]  ;;  %v14385_v14 = vand.u32 4294901760, %v8603_v38 }
  0x8f   : > { %968 = vmatprep.subr.mxu1 %v8819_v41  ;;  %913 = vmatmul.mubr.f32.vlgmr.msra.gmra.mxu0 %v8967_v21  ;;  %v14386_v41 = vld [vmem:[#allocation33_spill] sm:$0xff]  ;;  %v14391_v38 = vld [vmem:[#allocation36_spill] sm:$0xff] }
  0x90   : > { %1028 = vmatprep.subr.mxu0 %v14379_v27  ;;  %970 = vmatpush1.msra.mxu1 %v14380_v45 }
  0x91   : > { %1032 = vmatpush1.msra.mxu0 %v14381_v33  ;;  %972 = vmatprep.subr.mxu1 %v14382_v36  ;;  %v14407_v33 = vand.u32 4294901760, %v8934_v6  ;;  %v393_v6 = vld [vmem:[%s13758_s3 + $0x170] sm:$0xff] }
  0x92   : > { %1036 = vmatprep.subr.mxu0 %v14383_v5  ;;  %974 = vmatpush1.msra.mxu1 %v14384_v13 }
  0x93   : > { %1040 = vmatpush1.msra.mxu0 %v14385_v14  ;;  %976 = vmatprep.subr.mxu1 %v14386_v41  ;;  %v14390_v14 = vand.u32 4294901760, %v8677_v2  ;;  %v14395_v2 = vand.u32 4294901760, %v8733_v60  ;;  %v14405_v60 = vand.u32 4294901760, %v8901_v11 }
  0x94   : > { %1044 = vmatprep.subr.mxu0 %v14387_v25  ;;  %978 = vmatpush1.msra.mxu1 %v8897_v62  ;;  %v389_v25 = vld [vmem:[%s13758_s3 + $0x150] sm:$0xff] }
  0x95   : > { %1048 = vmatpush1.msra.mxu0 %v14388_v30  ;;  %980 = vmatprep.subr.mxu1 %v8914_v61  ;;  %v390_v30 = vld [vmem:[%s13758_s3 + $0x158] sm:$0xff] }
  0x96   : > { %1052 = vmatprep.subr.mxu0 %v14389_v32  ;;  %982 = vmatpush1.msra.mxu1 %v8930_v37 }
  0x97   : > { %1015 = vmatprep.mubr.f32.mxu1 %v14366_v44  ;;  %1056 = vmatpush1.msra.mxu0 %v14390_v14 }
  0x98   : > { %1019 = vmatmul.mubr.f32.vlgmr.msra.gmra.mxu1 %v14391_v38  ;;  %1060 = vmatprep.subr.mxu0 %v14392_v42  ;;  %v14413_v42 = vand.u32 4294901760, %v8972_v26  ;;  %v385_v26 = vld [vmem:[%s13758_s3 + $0x130] sm:$0xff] }
  0x99   : > { %1194 = vmatprep.subr.mxu1 %v8507_v8  ;;  %1064 = vmatpush1.msra.mxu0 %v14393_v47  ;;  %v14397_v8 = vand.u32 4294901760, %v8763_v50  ;;  %v14415_v47 = vand.u32 4294901760, %v8981_v39 }
  0x9a   : > { %1196 = vmatpush1.msra.mxu1 %v8509_v9  ;;  %1068 = vmatprep.subr.mxu0 %v14394_v52  ;;  %v14398_v9 = vand.u32 4294901760, %v8790_v51  ;;  %v14400_v51 = vand.u32 4294901760, %v8830_v40  ;;  %v406_v40 = vld [vmem:[%s13758_s3 + $0x1d8] sm:$0xff] }
  0x9b   : > { %1198 = vmatprep.subr.mxu1 %v8511_v10  ;;  %1072 = vmatpush1.msra.mxu0 %v14395_v2  ;;  %v410_v10 = vld [vmem:[%s13758_s3 + $0x1f8] sm:$0xff]  ;;  %v9182_v28 = vand.u32 4294901760, %v406_v40 }
  0x9c   : > { %1200 = vmatpush1.msra.mxu1 %v8524_v15  ;;  %1076 = vmatprep.subr.mxu0 %v14396_v7  ;;  %v409_v15 = vld [vmem:[%s13758_s3 + $0x1f0] sm:$0xff]  ;;  %v9152_v19 = vand.u32 4294901760, %v410_v10  ;;  %v9256_v7 = vand.u32 4294901760, %v389_v25 }
  0x9d   : > { %1202 = vmatprep.subr.mxu1 %v8526_v16  ;;  %1080 = vmatpush1.msra.mxu0 %v14397_v8  ;;  %v14399_v16 = vand.u32 4294901760, %v8806_v35  ;;  %v9154_v50 = vand.u32 4294901760, %v409_v15  ;;  %v397_v35 = vld [vmem:[%s13758_s3 + $0x190] sm:$0xff] }
  0x9e   : > { %1204 = vmatpush1.msra.mxu1 %v8528_v17  ;;  %1084 = vmatprep.subr.mxu0 %v14398_v9  ;;  %v405_v17 = vld [vmem:[%s13758_s3 + $0x1d0] sm:$0xff]  ;;  %14417 = vst [vmem:[#allocation20_spill] sm:$0xff] %v9256_v7  ;;  %v14420_v9 = vld [vmem:[#allocation26_spill] sm:$0xff] }
  0x9f   : > { %1206 = vmatprep.subr.mxu1 %v8544_v22  ;;  %1088 = vmatpush1.msra.mxu0 %v14399_v16  ;;  %v14401_v22 = vand.u32 4294901760, %v8846_v53  ;;  %v9162_v54 = vand.u32 4294901760, %v405_v17  ;;  %v9180_v5 = vsub.f32 %v409_v15, %v9154_v50  ;;  %v9188_v53 = vsub.f32 %v410_v10, %v9152_v19  ;;  %v386_v16 = vld [vmem:[%s13758_s3 + $0x138] sm:$0xff] }
  0xa0   : > { %1208 = vmatpush1.msra.mxu1 %v8546_v23  ;;  %1092 = vmatprep.subr.mxu0 %v14400_v51  ;;  %v14402_v23 = vand.u32 4294901760, %v8858_v3  ;;  %v14404_v3 = vand.u32 4294901760, %v8889_v4  ;;  %v9274_v10 = vand.u32 4294901760, %v390_v30  ;;  %v14423_v51 = vld [vmem:[#allocation27_spill] sm:$0xff] }
  0xa1   : > { %1210 = vmatprep.subr.mxu1 %v8549_v24  ;;  %1096 = vmatpush1.msra.mxu0 %v14401_v22  ;;  %v14403_v24 = vand.u32 4294901760, %v8872_v49  ;;  %v14406_v49 = vand.u32 4294901760, %v8923_v0  ;;  %v9194_v4 = vsub.f32 %v405_v17, %v9162_v54  ;;  %v14408_v0 = vand.u32 4294901760, %v8943_v48 }
  0xa2   : > { %1212 = vmatpush1.msra.mxu1 %v8571_v29  ;;  %1100 = vmatprep.subr.mxu0 %v14402_v23  ;;  %v402_v29 = vld [vmem:[%s13758_s3 + $0x1b8] sm:$0xff]  ;;  %v13841_v48 = vand.u32 4294901760, %v9188_v53  ;;  %14421 = vst [vmem:[#allocation21_spill] sm:$0xff] %v9274_v10  ;;  %v14422_v17 = vand.u32 4294901760, %v9005_v59 }
  0xa3   : > { %1214 = vmatprep.subr.mxu1 %v8577_v31  ;;  %1104 = vmatpush1.msra.mxu0 %v14403_v24  ;;  %v401_v31 = vld [vmem:[%s13758_s3 + $0x1b0] sm:$0xff]  ;;  %v9196_v11 = vand.u32 4294901760, %v402_v29  ;;  %v13838_v32 = vand.u32 4294901760, %v9194_v4  ;;  %v14424_v24 = vld [vmem:[#allocation38_spill] sm:$0xff] }
  0xa4   : > { %1216 = vmatpush1.msra.mxu1 %v14367_v58  ;;  %1108 = vmatprep.subr.mxu0 %v14404_v3  ;;  %v9201_v27 = vand.u32 4294901760, %v401_v31  ;;  %v398_v58 = vld [vmem:[%s13758_s3 + $0x198] sm:$0xff]  ;;  %v9298_v3 = vand.u32 4294901760, %v385_v26 }
  0xa5   : > { %1218 = vmatprep.subr.mxu1 %v14368_v20  ;;  %1112 = vmatpush1.msra.mxu0 %v14405_v60  ;;  %v9209_v20 = vand.u32 4294901760, %v397_v35  ;;  %v9238_v14 = vsub.f32 %v402_v29, %v9196_v11  ;;  %v9286_v22 = vsub.f32 %v9194_v4, %v13838_v32  ;;  %v14425_v29 = vand.u32 4294901760, %v14424_v24  ;;  %v382_v60 = vld [vmem:[%s13758_s3 + $0x118] sm:$0xff] }
  0xa6   : > { %1220 = vmatpush1.msra.mxu1 %v14369_v55  ;;  %1116 = vmatprep.subr.mxu0 %v14406_v49  ;;  %v14410_v55 = vand.u32 4294901760, %v8951_v43  ;;  %v14411_v43 = vand.u32 4294901760, %v8960_v57  ;;  %v9244_v57 = vsub.f32 %v401_v31, %v9201_v27  ;;  %14426 = vst [vmem:[#allocation22_spill] sm:$0xff] %v9298_v3  ;;  %v14428_v49 = vld [vmem:[#allocation34_spill] sm:$0xff] }
  0xa7   : > { %1222 = vmatprep.subr.mxu1 %v14370_v12  ;;  %1120 = vmatpush1.msra.mxu0 %v14407_v33  ;;  %14409 = vst [vmem:[#allocation16_spill] sm:$0xff] %v9209_v20  ;;  %v394_v12 = vld [vmem:[%s13758_s3 + $0x178] sm:$0xff]  ;;  %v9252_v52 = vsub.f32 %v397_v35, %v9209_v20  ;;  %v13836_v23 = vand.u32 4294901760, %v9238_v14  ;;  %v14427_v35 = vld [vmem:[#allocation28_spill] sm:$0xff]  ;;  %v9307_v33 = vsub.f32 %v389_v25, %v9256_v7 }
  0xa8   : > { %1224 = vmatpush1.msra.mxu1 %v14371_v63  ;;  %1124 = vmatprep.subr.mxu0 %v14408_v0  ;;  %v13840_v63 = vand.u32 4294901760, %v9180_v5  ;;  %v9254_v2 = vand.u32 4294901760, %v394_v12  ;;  %v13835_v31 = vand.u32 4294901760, %v9244_v57  ;;  %v381_v0 = vld [vmem:[%s13758_s3 + $0x110] sm:$0xff]  ;;  %v366_v25 = vld [vmem:[%s13758_s3 + $0x98] sm:$0xff] }
  0xa9   : > { %1226 = vmatprep.subr.mxu1 %v14372_v46  ;;  %1128 = vmatpush1.msra.mxu0 %v14410_v55  ;;  %v9223_v46 = vsub.f32 %v406_v40, %v9182_v28  ;;  %v9357_v24 = vand.u32 4294901760, %v381_v0 }
  0xaa   : > { %1228 = vmatpush1.msra.mxu1 %v14373_v1  ;;  %1132 = vmatprep.subr.mxu0 %v14411_v43  ;;  %v9231_v1 = vand.u32 4294901760, %v398_v58  ;;  %14416 = vst [vmem:[#allocation19_spill] sm:$0xff] %v9254_v2  ;;  %v9272_v39 = vsub.f32 %v9180_v5, %v13840_v63  ;;  %v9316_v55 = vsub.f32 %v394_v12, %v9254_v2  ;;  %v14430_v43 = vld [vmem:[#allocation29_spill] sm:$0xff] }
  0xab   : > { %1230 = vmatprep.subr.mxu1 %v14374_v34  ;;  %1136 = vmatpush1.msra.mxu0 %v14413_v42  ;;  %v9246_v34 = vand.u32 4294901760, %v393_v6  ;;  %v13839_v15 = vand.u32 4294901760, %v9223_v46  ;;  %v9331_v12 = vsub.f32 %v390_v30, %v9274_v10  ;;  %v373_v30 = vld [vmem:[%s13758_s3 + $0xd0] sm:$0xff]  ;;  %14432 = vst [vmem:[#allocation25_spill] sm:$0xff] %v9357_v24 }
  0xac   : > { %14412 = vst [vmem:[#allocation17_spill] sm:$0xff] %v9231_v1  ;;  %1232 = vmatpush1.msra.mxu1 %v14375_v18  ;;  %1140 = vmatprep.subr.mxu0 %v14415_v47  ;;  %v14418_v18 = vld [vmem:[#allocation37_spill] sm:$0xff]  ;;  %v9290_v40 = vsub.f32 %v398_v58, %v9231_v1  ;;  %v9309_v58 = vand.u32 4294901760, %v386_v16  ;;  %v9383_v32 = vand.u32 4294901760, %v373_v30 }
  0xad   : > { %14414 = vst [vmem:[#allocation18_spill] sm:$0xff] %v9246_v34  ;;  %1234 = vmatprep.subr.mxu1 %v14376_v56  ;;  %v14419_v8 = vand.u32 4294901760, %v14418_v18  ;;  %v9267_v56 = vsub.f32 %v9188_v53, %v13841_v48  ;;  %1185 = vmatprep.mubr.f32.mxu0 %v14366_v44  ;;  %v9296_v59 = vsub.f32 %v393_v6, %v9246_v34  ;;  %v13837_v6 = vand.u32 4294901760, %v9252_v52  ;;  %v377_v18 = vld [vmem:[%s13758_s3 + $0xf0] sm:$0xff] }
  0xae   : > { %1236 = vmatpush1.msra.mxu1 %v14420_v9  ;;  %14429 = vst [vmem:[#allocation23_spill] sm:$0xff] %v9309_v58  ;;  %v9325_v47 = vsub.f32 %v9223_v46, %v13839_v15  ;;  %v9339_v9 = vsub.f32 %v9238_v14, %v13836_v23  ;;  %v9377_v23 = vsub.f32 %v386_v16, %v9309_v58  ;;  %14434 = vst [vmem:[#allocation31_spill] sm:$0xff] %v9383_v32 }
  0xaf   : > { %1144 = vmatpush1.msra.mxu0 %v14419_v8  ;;  %1238 = vmatprep.subr.mxu1 %v14423_v51  ;;  %v1409_v42 = vand.u32 4294901760, %v9267_v56  ;;  %v9341_v56 = vand.u32 4294901760, %v382_v60  ;;  %v9355_v51 = vsub.f32 %v9244_v57, %v13835_v31  ;;  %v374_v31 = vld [vmem:[%s13758_s3 + $0xd8] sm:$0xff]  ;;  %v13847_v15 = vand.u32 4294901760, %v9307_v33  ;;  %v369_v8 = vld [vmem:[%s13758_s3 + $0xb0] sm:$0xff] }
  0xb0   : > { %1148 = vmatprep.subr.mxu0 %v14422_v17  ;;  %1240 = vmatpush1.msra.mxu1 %v14427_v35  ;;  %v13842_v17 = vand.u32 4294901760, %v9290_v40  ;;  %v13843_v35 = vand.u32 4294901760, %v9296_v59  ;;  %v1433_v63 = vand.u32 4294901760, %v9339_v9  ;;  %v9403_v48 = vsub.f32 %v381_v0, %v9357_v24 }
  0xb1   : > { %1152 = vmatpush1.msra.mxu0 %v14425_v29  ;;  %1242 = vmatprep.subr.mxu1 %v14430_v43  ;;  %14431 = vst [vmem:[#allocation24_spill] sm:$0xff] %v9341_v56  ;;  %v378_v29 = vld [vmem:[%s13758_s3 + $0xf8] sm:$0xff]  ;;  %v9371_v43 = vand.u32 4294901760, %v377_v18 }
  0xb2   : > { %1187 = vmatmul.mubr.f32.vlgmr.msra.gmra.mxu0 %v14428_v49  ;;  %1298 = vmatprep.subr.mxu0 %v9152_v19  ;;  %v9394_v16 = vand.u32 4294901760, %v378_v29  ;;  %v9408_v9 = vsub.f32 %v9296_v59, %v13843_v35  ;;  %v14440_v35 = vand.u32 4294901760, %v9272_v39  ;;  %v14443_v39 = vand.u32 4294901760, %v9377_v23 }
  0xb3   : > { %1244 = vmatpush1.msra.mxu1 %v14380_v45  ;;  %1300 = vmatpush1.msra.mxu0 %v9154_v50  ;;  %v9350_v45 = vsub.f32 %v385_v26, %v9298_v3  ;;  %v13844_v26 = vand.u32 4294901760, %v9316_v55  ;;  %14433 = vst [vmem:[#allocation30_spill] sm:$0xff] %v9371_v43 }
  0xb4   : > { %1246 = vmatprep.subr.mxu1 %v14382_v36  ;;  %1302 = vmatprep.subr.mxu0 %v9182_v28  ;;  %v9368_v36 = vsub.f32 %v9252_v52, %v13837_v6  ;;  %v13845_v6 = vand.u32 4294901760, %v9331_v12  ;;  %14435 = vst [vmem:[#allocation32_spill] sm:$0xff] %v9394_v16  ;;  %v9458_v21 = vsub.f32 %v378_v29, %v9394_v16  ;;  %v362_v29 = vld [vmem:[%s13758_s3 + $0x78] sm:$0xff] }
  0xb5   : > { %1248 = vmatpush1.msra.mxu1 %v14384_v13  ;;  %1304 = vmatpush1.msra.mxu0 %v9162_v54  ;;  %v1421_v13 = vand.u32 4294901760, %v9325_v47  ;;  %v9397_v47 = vsub.f32 %v382_v60, %v9341_v56  ;;  %v370_v60 = vld [vmem:[%s13758_s3 + $0xb8] sm:$0xff]  ;;  %v9421_v0 = vsub.f32 %v9316_v55, %v13844_v26  ;;  %v9446_v26 = vsub.f32 %v9307_v33, %v13847_v15  ;;  %v361_v15 = vld [vmem:[%s13758_s3 + $0x70] sm:$0xff] }
  0xb6   : > { %1250 = vmatprep.subr.mxu1 %v14386_v41  ;;  %1306 = vmatprep.subr.mxu0 %v9196_v11  ;;  %v9392_v41 = vsub.f32 %v9290_v40, %v13842_v17  ;;  %v9410_v17 = vand.u32 4294901760, %v374_v31  ;;  %v9454_v38 = vand.u32 4294901760, %v370_v60 }
  0xb7   : > { %1252 = vmatpush1.msra.mxu1 %v8897_v62  ;;  %1308 = vmatpush1.msra.mxu0 %v9201_v27  ;;  %14436 = vst [vmem:[#allocation33_spill] sm:$0xff] %v9397_v47  ;;  %v1439_v62 = vand.u32 4294901760, %v9355_v51  ;;  %v9424_v51 = vsub.f32 %v377_v18, %v9371_v43  ;;  %v9441_v18 = vsub.f32 %v373_v30, %v9383_v32  ;;  %v14445_v30 = vand.u32 4294901760, %v9286_v22 }
  0xb8   : > { %1254 = vmatprep.subr.mxu1 %v8914_v61  ;;  %1310 = vmatprep.subr.mxu0 %v9231_v1  ;;  %14437 = vst [vmem:[#allocation37_spill] sm:$0xff] %v9410_v17  ;;  %v1451_v61 = vand.u32 4294901760, %v9368_v36  ;;  %v9438_v36 = vsub.f32 %v9331_v12, %v13845_v6  ;;  %v1445_v6 = vand.u32 4294901760, %v9392_v41  ;;  %14439 = vst [vmem:[#allocation27_spill] sm:$0xff] %v9454_v38  ;;  %v14447_v22 = vand.u32 4294901760, %v9397_v47 }
  0xb9   : > { %1256 = vmatpush1.msra.mxu1 %v8930_v37  ;;  %1289 = vmatprep.mubr.f32.mxu1 %v14366_v44  ;;  %14438 = vst [vmem:[#allocation26_spill] sm:$0xff] %v9424_v51  ;;  %v365_v37 = vld [vmem:[%s13758_s3 + $0x90] sm:$0xff] }
  0xba   : > { %1312 = vmatpush1.msra.mxu0 %v9209_v20  ;;  %1291 = vmatmul.mubr.f32.vlgmr.msra.gmra.mxu1 %v14428_v49  ;;  %v9469_v41 = vand.u32 4294901760, %v365_v37  ;;  %v9485_v20 = vsub.f32 %v374_v31, %v9410_v17  ;;  %v357_v31 = vld [vmem:[%s13758_s3 + $0x50] sm:$0xff] }
  0xbb   : > { %1314 = vmatprep.subr.mxu0 %v9254_v2  ;;  %1410 = vmatprep.subr.mxu1 %v1409_v42  ;;  %v1463_v42 = vand.u32 4294901760, %v9408_v9  ;;  %v9467_v2 = vand.u32 4294901760, %v369_v8  ;;  %v9482_v9 = vand.u32 4294901760, %v366_v25 }
  0xbc   : > { %1316 = vmatpush1.msra.mxu0 %v9246_v34  ;;  %1416 = vmatpush1.msra.mxu1 %v14440_v35  ;;  %14442 = vst [vmem:[#allocation28_spill] sm:$0xff] %v9469_v41  ;;  %v1457_v34 = vand.u32 4294901760, %v9421_v0  ;;  %v9480_v35 = vsub.f32 %v9377_v23, %v14443_v39  ;;  %14444 = vst [vmem:[#allocation29_spill] sm:$0xff] %v9485_v20  ;;  %v14446_v0 = vand.u32 4294901760, %v9350_v45  ;;  %v9497_v39 = vand.u32 4294901760, %v361_v15 }
  0xbd   : > { %14441 = vst [vmem:[#allocation38_spill] sm:$0xff] %v9467_v2  ;;  %1318 = vmatprep.subr.mxu0 %v9274_v10  ;;  %1422 = vmatprep.subr.mxu1 %v1421_v13  ;;  %v1469_v10 = vand.u32 4294901760, %v9438_v36  ;;  %v1475_v13 = vand.u32 4294901760, %v9446_v26  ;;  %v9506_v36 = vsub.f32 %v9397_v47, %v14447_v22  ;;  %v9508_v26 = vand.u32 4294901760, %v362_v29  ;;  %v353_v47 = vld [vmem:[%s13758_s3 + $0x30] sm:$0xff] }
  0xbe   : > { %1320 = vmatpush1.msra.mxu0 %v9256_v7  ;;  %1428 = vmatpush1.msra.mxu1 %v14445_v30  ;;  %v9495_v1 = vsub.f32 %v9350_v45, %v14446_v0  ;;  %v358_v0 = vld [vmem:[%s13758_s3 + $0x58] sm:$0xff]  ;;  %v9515_v7 = vsub.f32 %v370_v60, %v9454_v38  ;;  %v9522_v22 = vsub.f32 %v365_v37, %v9469_v41  ;;  %v1481_v60 = vand.u32 4294901760, %v9480_v35 }
  0xbf   : > { %1322 = vmatprep.subr.mxu0 %v9309_v58  ;;  %1434 = vmatprep.subr.mxu1 %v1433_v63  ;;  %v9519_v63 = vsub.f32 %v369_v8, %v9467_v2  ;;  %v14449_v58 = vand.u32 4294901760, %v9403_v48  ;;  %v354_v8 = vld [vmem:[%s13758_s3 + $0x38] sm:$0xff]  ;;  %v9537_v37 = vsub.f32 %v366_v25, %v9482_v9  ;;  %v9544_v35 = vand.u32 4294901760, %v358_v0 }
  0xc0   : > { %1324 = vmatpush1.msra.mxu0 %v9298_v3  ;;  %1440 = vmatpush1.msra.mxu1 %v1439_v62  ;;  %14448 = vst [vmem:[#allocation40_spill] sm:$0xff] %v9522_v22  ;;  %v9531_v62 = vand.u32 4294901760, %v357_v31  ;;  %v1493_v25 = vand.u32 4294901760, %v9506_v36  ;;  %v9560_v3 = vsub.f32 %v362_v29, %v9508_v26  ;;  %v14452_v29 = vand.u32 4294901760, %v9485_v20 }
  0xc1   : > { %v1498_v30 = vsub.f32 %v9403_v48, %v14449_v58  ;;  %1326 = vmatprep.subr.mxu0 %v9341_v56  ;;  %1446 = vmatprep.subr.mxu1 %v1445_v6  ;;  %v1487_v58 = vand.u32 4294901760, %v9495_v1  ;;  %v9542_v6 = vsub.f32 %v361_v15, %v9497_v39  ;;  %v9566_v56 = vand.u32 4294901760, %v354_v8  ;;  %v349_v15 = vld [vmem:[%s13758_s3 + $0x10] sm:$0xff] }
  0xc2   : > { %1328 = vmatpush1.msra.mxu0 %v9357_v24  ;;  %1452 = vmatpush1.msra.mxu1 %v1451_v61  ;;  %v14450_v61 = vand.u32 4294901760, %v9458_v21  ;;  %v350_v24 = vld [vmem:[%s13758_s3 + $0x18] sm:$0xff] }
  0xc3   : > { %1330 = vmatprep.subr.mxu0 %v9394_v16  ;;  %1458 = vmatprep.subr.mxu1 %v1457_v34  ;;  %v1499_v16 = vand.u32 4294901760, %v1498_v30  ;;  %v14451_v34 = vand.u32 4294901760, %v9424_v51  ;;  %v9577_v30 = vsub.f32 %v357_v31, %v9531_v62 }
  0xc4   : > { %v1504_v1 = vsub.f32 %v9458_v21, %v14450_v61  ;;  %1332 = vmatpush1.msra.mxu0 %v9371_v43  ;;  %1464 = vmatpush1.msra.mxu1 %v1463_v42  ;;  %v1516_v42 = vsub.f32 %v9485_v20, %v14452_v29  ;;  %v9579_v43 = vand.u32 4294901760, %v353_v47  ;;  %v14454_v61 = vand.u32 4294901760, %v9441_v18 }
  0xc5   : > { %v1510_v36 = vsub.f32 %v9424_v51, %v14451_v34  ;;  %1334 = vmatprep.subr.mxu0 %v9410_v17  ;;  %1470 = vmatprep.subr.mxu1 %v1469_v10  ;;  %14453 = vst [vmem:[#allocation41_spill] sm:$0xff] %v9577_v30  ;;  %v9586_v17 = vand.u32 4294901760, %v350_v24  ;;  %v9590_v29 = vsub.f32 %v358_v0, %v9544_v35  ;;  %v14455_v34 = vand.u32 4294901760, %v9515_v7 }
  0xc6   : > { %1336 = vmatpush1.msra.mxu0 %v9383_v32  ;;  %1476 = vmatpush1.msra.mxu1 %v1475_v13  ;;  %v1522_v51 = vsub.f32 %v9441_v18, %v14454_v61  ;;  %v1505_v31 = vand.u32 4294901760, %v1504_v1  ;;  %v9596_v13 = vand.u32 4294901760, %v349_v15  ;;  %v14456_v10 = vand.u32 4294901760, %v9519_v63 }
  0xc7   : > { %1338 = vmatprep.subr.mxu0 %v9454_v38  ;;  %1482 = vmatprep.subr.mxu1 %v1481_v60  ;;  %v1528_v32 = vsub.f32 %v9515_v7, %v14455_v34  ;;  %v1511_v61 = vand.u32 4294901760, %v1510_v36  ;;  %v9604_v38 = vsub.f32 %v354_v8, %v9566_v56  ;;  %v1517_v60 = vand.u32 4294901760, %v1516_v42 }
  0xc8   : > { %1340 = vmatpush1.msra.mxu0 %v9467_v2  ;;  %1488 = vmatpush1.msra.mxu1 %v1487_v58  ;;  %v1534_v0 = vsub.f32 %v9519_v63, %v14456_v10  ;;  %v9608_v1 = vsub.f32 %v353_v47, %v9579_v43  ;;  %v14457_v34 = vand.u32 4294901760, %v9537_v37  ;;  %v1523_v36 = vand.u32 4294901760, %v1522_v51 }
  0xc9   : > { %1342 = vmatprep.subr.mxu0 %v9482_v9  ;;  %1494 = vmatprep.subr.mxu1 %v1493_v25  ;;  %v14458_v8 = vand.u32 4294901760, %v9522_v22  ;;  %v9620_v42 = vsub.f32 %v350_v24, %v9586_v17  ;;  %v1529_v47 = vand.u32 4294901760, %v1528_v32  ;;  %v14460_v58 = vand.u32 4294901760, %v9560_v3 }
  0xca   : > { %v1540_v20 = vsub.f32 %v9537_v37, %v14457_v34  ;;  %1344 = vmatpush1.msra.mxu0 %v9469_v41  ;;  %1500 = vmatpush1.msra.mxu1 %v1499_v16  ;;  %v9624_v34 = vsub.f32 %v349_v15, %v9596_v13  ;;  %v13886_v24 = vand.u32 4294901760, %v9604_v38  ;;  %v14461_v32 = vand.u32 4294901760, %v9542_v6 }
  0xcb   : > { %v1546_v10 = vsub.f32 %v9522_v22, %v14458_v8  ;;  %1346 = vmatprep.subr.mxu0 %v9508_v26  ;;  %1506 = vmatprep.subr.mxu1 %v1505_v31  ;;  %v1552_v16 = vsub.f32 %v9560_v3, %v14460_v58  ;;  %v1535_v8 = vand.u32 4294901760, %v1534_v0  ;;  %v14462_v51 = vand.u32 4294901760, %v9590_v29 }
  0xcc   : > { %14459 = vst [vmem:[#allocation42_spill] sm:$0xff] %v9624_v34  ;;  %1348 = vmatpush1.msra.mxu0 %v9497_v39  ;;  %1512 = vmatpush1.msra.mxu1 %v1511_v61  ;;  %v1541_v31 = vand.u32 4294901760, %v1540_v20  ;;  %v1558_v15 = vsub.f32 %v9542_v6, %v14461_v32  ;;  %v13885_v0 = vand.u32 4294901760, %v9620_v42  ;;  %v13884_v25 = vand.u32 4294901760, %v9624_v34 }
  0xcd   : > { %1350 = vmatprep.subr.mxu0 %v9544_v35  ;;  %1518 = vmatprep.subr.mxu1 %v1517_v60  ;;  %v1547_v58 = vand.u32 4294901760, %v1546_v10  ;;  %v1564_v61 = vsub.f32 %v9590_v29, %v14462_v51  ;;  %v1553_v20 = vand.u32 4294901760, %v1552_v16  ;;  %v14463_v60 = vand.u32 4294901760, %v9577_v30 }
  0xce   : > { %1352 = vmatpush1.msra.mxu0 %v9531_v62  ;;  %1524 = vmatpush1.msra.mxu1 %v1523_v36  ;;  %v1576_v36 = vsub.f32 %v9604_v38, %v13886_v24  ;;  %v1559_v10 = vand.u32 4294901760, %v1558_v15  ;;  %v14465_v15 = vld [vmem:[#allocation39_spill] sm:$0xff]  ;;  %v14481_v24 = vld [vmem:[#allocation37_spill] sm:$0xff] }
  0xcf   : > { %1354 = vmatprep.subr.mxu0 %v9566_v56  ;;  %1530 = vmatprep.subr.mxu1 %v1529_v47  ;;  %v1570_v32 = vsub.f32 %v9577_v30, %v14463_v60  ;;  %v14464_v47 = vand.u32 4294901760, %v9608_v1  ;;  %v1565_v51 = vand.u32 4294901760, %v1564_v61 }
  0xd0   : > { %1356 = vmatpush1.msra.mxu0 %v9579_v43  ;;  %1536 = vmatpush1.msra.mxu1 %v1535_v8  ;;  %v1588_v8 = vsub.f32 %v9620_v42, %v13885_v0  ;;  %v14480_v0 = vld [vmem:[#allocation30_spill] sm:$0xff] }
  0xd1   : > { %1358 = vmatprep.subr.mxu0 %v9586_v17  ;;  %1542 = vmatprep.subr.mxu1 %v1541_v31  ;;  %v1582_v16 = vsub.f32 %v9608_v1, %v14464_v47  ;;  %v1571_v60 = vand.u32 4294901760, %v1570_v32  ;;  %v1594_v31 = vsub.f32 %v9624_v34, %v13884_v25  ;;  %v1577_v47 = vand.u32 4294901760, %v1576_v36  ;;  %v14466_v32 = vld [vmem:[#allocation33_spill] sm:$0xff]  ;;  %v14479_v25 = vld [vmem:[#allocation32_spill] sm:$0xff] }
  0xd2   : > { %1360 = vmatpush1.msra.mxu0 %v9596_v13  ;;  %1548 = vmatpush1.msra.mxu1 %v1547_v58  ;;  %v1589_v61 = vand.u32 4294901760, %v1588_v8  ;;  %v14467_v36 = vld [vmem:[#allocation17_spill] sm:$0xff]  ;;  %v14471_v8 = vld [vmem:[#allocation18_spill] sm:$0xff] }
  0xd3   : > { %1393 = vmatprep.mubr.f32.mxu0 %v14366_v44  ;;  %1554 = vmatprep.subr.mxu1 %v1553_v20  ;;  %v1583_v58 = vand.u32 4294901760, %v1582_v16  ;;  %v1595_v20 = vand.u32 4294901760, %v1594_v31  ;;  %v14469_v16 = vld [vmem:[#allocation19_spill] sm:$0xff]  ;;  %v14473_v31 = vld [vmem:[#allocation21_spill] sm:$0xff] }
  0xd4   : > { %1639 = vmatprep.subr.mxu0 %v9188_v53  ;;  %1399 = vmatmul.mubr.f32.vlgmr.msra.gmra.mxu0 %v14465_v15  ;;  %v14474_v15 = vld [vmem:[#allocation20_spill] sm:$0xff] }
  0xd5   : > { %1560 = vmatpush1.msra.mxu1 %v1559_v10  ;;  %1642 = vmatpush1.msra.mxu0 %v9180_v5  ;;  %v14468_v10 = vld [vmem:[#allocation16_spill] sm:$0xff] }
  0xd6   : > { %1566 = vmatprep.subr.mxu1 %v1565_v51  ;;  %1645 = vmatprep.subr.mxu0 %v9223_v46  ;;  %v14470_v51 = vld [vmem:[#allocation26_spill] sm:$0xff] }
  0xd7   : > { %1572 = vmatpush1.msra.mxu1 %v1571_v60  ;;  %1648 = vmatpush1.msra.mxu0 %v9194_v4  ;;  %v14472_v60 = vld [vmem:[#allocation29_spill] sm:$0xff] }
  0xd8   : > { %1578 = vmatprep.subr.mxu1 %v1577_v47  ;;  %1651 = vmatprep.subr.mxu0 %v9238_v14  ;;  %v14475_v47 = vld [vmem:[#allocation23_spill] sm:$0xff] }
  0xd9   : > { %1584 = vmatpush1.msra.mxu1 %v1583_v58  ;;  %1654 = vmatpush1.msra.mxu0 %v9244_v57  ;;  %v14476_v58 = vld [vmem:[#allocation22_spill] sm:$0xff] }
  0xda   : > { %1590 = vmatprep.subr.mxu1 %v1589_v61  ;;  %1657 = vmatprep.subr.mxu0 %v9290_v40  ;;  %v14477_v61 = vld [vmem:[#allocation24_spill] sm:$0xff] }
  0xdb   : > { %1596 = vmatpush1.msra.mxu1 %v1595_v20  ;;  %1629 = vmatprep.mubr.f32.mxu1 %v14366_v44  ;;  %v14478_v20 = vld [vmem:[#allocation25_spill] sm:$0xff] }
  0xdc   : > { %1660 = vmatpush1.msra.mxu0 %v9252_v52  ;;  %1631 = vmatmul.mubr.f32.vlgmr.msra.gmra.mxu1 %v14428_v49  ;;  %v14482_v49 = vld [vmem:[#allocation31_spill] sm:$0xff] }
  0xdd   : > { %1663 = vmatprep.subr.mxu0 %v9316_v55  ;;  %1775 = vmatprep.subr.mxu1 %v9152_v19 }
  0xde   : > { %1666 = vmatpush1.msra.mxu0 %v9296_v59  ;;  %1777 = vmatpush1.msra.mxu1 %v9154_v50 }
  0xdf   : > { %1669 = vmatprep.subr.mxu0 %v9331_v12  ;;  %1779 = vmatprep.subr.mxu1 %v9182_v28 }
  0xe0   : > { %1672 = vmatpush1.msra.mxu0 %v9307_v33  ;;  %1781 = vmatpush1.msra.mxu1 %v9162_v54 }
  0xe1   : > { %1675 = vmatprep.subr.mxu0 %v9377_v23  ;;  %1783 = vmatprep.subr.mxu1 %v9196_v11 }
  0xe2   : > { %1678 = vmatpush1.msra.mxu0 %v9350_v45  ;;  %1785 = vmatpush1.msra.mxu1 %v9201_v27 }
  0xe3   : > { %1681 = vmatprep.subr.mxu0 %v14466_v32  ;;  %1787 = vmatprep.subr.mxu1 %v14467_v36 }
  0xe4   : > { %1684 = vmatpush1.msra.mxu0 %v9403_v48  ;;  %1789 = vmatpush1.msra.mxu1 %v14468_v10 }
  0xe5   : > { %1687 = vmatprep.subr.mxu0 %v9458_v21  ;;  %1791 = vmatprep.subr.mxu1 %v14469_v16 }
  0xe6   : > { %1690 = vmatpush1.msra.mxu0 %v14470_v51  ;;  %1793 = vmatpush1.msra.mxu1 %v14471_v8 }
  0xe7   : > { %1693 = vmatprep.subr.mxu0 %v14472_v60  ;;  %1795 = vmatprep.subr.mxu1 %v14473_v31 }
  0xe8   : > { %1696 = vmatpush1.msra.mxu0 %v9441_v18  ;;  %1797 = vmatpush1.msra.mxu1 %v14474_v15 }
  0xe9   : > { %1699 = vmatprep.subr.mxu0 %v9515_v7  ;;  %1799 = vmatprep.subr.mxu1 %v14475_v47 }
  0xea   : > { %1702 = vmatpush1.msra.mxu0 %v9519_v63  ;;  %1801 = vmatpush1.msra.mxu1 %v14476_v58 }
  0xeb   : > { %1705 = vmatprep.subr.mxu0 %v9537_v37  ;;  %1803 = vmatprep.subr.mxu1 %v14477_v61 }
  0xec   : > { %1708 = vmatpush1.msra.mxu0 %v9522_v22  ;;  %1805 = vmatpush1.msra.mxu1 %v14478_v20  ;;  %v14483_v22 = vld [vmem:[#allocation27_spill] sm:$0xff] }
  0xed   : > { %1711 = vmatprep.subr.mxu0 %v9560_v3  ;;  %1807 = vmatprep.subr.mxu1 %v14479_v25 }
  0xee   : > { %1714 = vmatpush1.msra.mxu0 %v9542_v6  ;;  %1809 = vmatpush1.msra.mxu1 %v14480_v0 }
  0xef   : > { %1717 = vmatprep.subr.mxu0 %v9590_v29  ;;  %1811 = vmatprep.subr.mxu1 %v14481_v24 }
  0xf0   : > { %1720 = vmatpush1.msra.mxu0 %v9577_v30  ;;  %1813 = vmatpush1.msra.mxu1 %v14482_v49  ;;  %v14484_v30 = vld [vmem:[#allocation35_spill] sm:$0xff] }
  0xf1   : > { %1723 = vmatprep.subr.mxu0 %v9604_v38  ;;  %1815 = vmatprep.subr.mxu1 %v14483_v22  ;;  %v14485_v22 = vand.u32 4294901760, %v9188_v53  ;;  %v14489_v53 = vand.u32 4294901760, %v9238_v14  ;;  %v14493_v14 = vld [vmem:[#allocation36_spill] sm:$0xff] }
  0xf2   : > { %1726 = vmatpush1.msra.mxu0 %v9608_v1  ;;  %1817 = vmatpush1.msra.mxu1 %v9467_v2  ;;  %v14486_v2 = vand.u32 4294901760, %v9180_v5  ;;  %v14490_v5 = vand.u32 4294901760, %v9244_v57  ;;  %v14495_v57 = vand.u32 4294901760, %v9296_v59  ;;  %v8193_v59 = vld [vmem:[%s8489_s8] sm:$0xff] }
  0xf3   : > { %1729 = vmatprep.subr.mxu0 %v9620_v42  ;;  %1819 = vmatprep.subr.mxu1 %v9482_v9 }
  0xf4   : > { %1732 = vmatpush1.msra.mxu0 %v9624_v34  ;;  %1765 = vmatprep.mubr.f32.mxu0 %v14366_v44  ;;  %v14487_v34 = vand.u32 4294901760, %v9223_v46  ;;  %v14491_v46 = vand.u32 4294901760, %v9290_v40  ;;  %v14496_v40 = vand.u32 4294901760, %v9331_v12  ;;  %v14509_v12 = vld [vmem:[#allocation40_spill] sm:$0xff] }
  0xf5   : > { %1821 = vmatpush1.msra.mxu1 %v9469_v41  ;;  %1768 = vmatmul.mubr.f32.vlgmr.msra.gmra.mxu0 %v14484_v30  ;;  %v14488_v41 = vand.u32 4294901760, %v9194_v4  ;;  %v14492_v4 = vand.u32 4294901760, %v9252_v52  ;;  %v14497_v52 = vand.u32 4294901760, %v9307_v33  ;;  %v14507_v33 = vand.u32 4294901760, %v9519_v63  ;;  %v14517_v30 = vld [vmem:[#allocation27_spill] sm:$0xff] }
  0xf6   : > { %1823 = vmatprep.subr.mxu1 %v9508_v26  ;;  %1883 = vmatprep.subr.mxu0 %v14485_v22  ;;  %v14513_v63 = vand.u32 4294901760, %v9590_v29  ;;  %v14514_v22 = vld [vmem:[#allocation41_spill] sm:$0xff]  ;;  %v14520_v29 = vand.u32 4294901760, %v9620_v42 }
  0xf7   : > { %1825 = vmatpush1.msra.mxu1 %v9497_v39  ;;  %1887 = vmatpush1.msra.mxu0 %v14486_v2  ;;  %v14494_v2 = vand.u32 4294901760, %v9316_v55  ;;  %v14508_v55 = vand.u32 4294901760, %v9537_v37  ;;  %v14515_v37 = vand.u32 4294901760, %v14514_v22 }
  0xf8   : > { %1827 = vmatprep.subr.mxu1 %v9544_v35  ;;  %1891 = vmatprep.subr.mxu0 %v14487_v34  ;;  %v14521_v34 = vld [vmem:[#allocation42_spill] sm:$0xff] }
  0xf9   : > { %1829 = vmatpush1.msra.mxu1 %v9531_v62  ;;  %1895 = vmatpush1.msra.mxu0 %v14488_v41  ;;  %v13913_v41 = vmov 1  }
  0xfa   : > { %1831 = vmatprep.subr.mxu1 %v9566_v56  ;;  %1899 = vmatprep.subr.mxu0 %v14489_v53  ;;  %v2290_v53 = vld [vmem:[%s13758_s3 + $0x180] sm:$0xff] }
  0xfb   : > { %1833 = vmatpush1.msra.mxu1 %v9579_v43  ;;  %1903 = vmatpush1.msra.mxu0 %v14490_v5 }
  0xfc   : > { %1835 = vmatprep.subr.mxu1 %v9586_v17  ;;  %1907 = vmatprep.subr.mxu0 %v14491_v46 }
  0xfd   : > { %1837 = vmatpush1.msra.mxu1 %v9596_v13  ;;  %1870 = vmatprep.mubr.f32.mxu1 %v14366_v44 }
  0xfe   : > { %1911 = vmatpush1.msra.mxu0 %v14492_v4  ;;  %1874 = vmatmul.mubr.f32.vlgmr.msra.gmra.mxu1 %v14493_v14  ;;  %v9917_v14 = vand.u32 4294901760, %v2290_v53 }
  0xff   : > { %1915 = vmatprep.subr.mxu0 %v14494_v2  ;;  %2049 = vmatprep.subr.mxu1 %v9152_v19  ;;  %v14498_v19 = vand.u32 4294901760, %v9377_v23  ;;  %v14502_v23 = vand.u32 4294901760, %v9458_v21  ;;  %v14506_v21 = vand.u32 4294901760, %v9515_v7  ;;  %v14511_v7 = vand.u32 4294901760, %v9560_v3  ;;  %v2287_v2 = vld [vmem:[%s13758_s3 + $0x168] sm:$0xff] }
 0x100   : > { %1919 = vmatpush1.msra.mxu0 %v14495_v57  ;;  %2051 = vmatpush1.msra.mxu1 %v9154_v50  ;;  %v14499_v50 = vand.u32 4294901760, %v9350_v45  ;;  %v14510_v45 = vand.u32 4294901760, %v14509_v12  ;;  %v14516_v3 = vand.u32 4294901760, %v9604_v38  ;;  %v9825_v38 = vld [vmem:[%s8489_s8 + $0x10] sm:$0xff] }
 0x101   : > { %1923 = vmatprep.subr.mxu0 %v14496_v40  ;;  %2053 = vmatprep.subr.mxu1 %v9182_v28  ;;  %v14500_v28 = vand.u32 4294901760, %v14466_v32  ;;  %v2295_v32 = vld [vmem:[%s13758_s3 + $0x1a8] sm:$0xff] }
 0x102   : > { %1927 = vmatpush1.msra.mxu0 %v14497_v52  ;;  %2055 = vmatpush1.msra.mxu1 %v9162_v54  ;;  %v14501_v54 = vand.u32 4294901760, %v9403_v48  ;;  %v14505_v48 = vand.u32 4294901760, %v9441_v18  ;;  %v14512_v18 = vand.u32 4294901760, %v9542_v6  ;;  %v14518_v6 = vand.u32 4294901760, %v9608_v1 }
 0x103   : > { %8125 = vset.pattern.permute.xlu0 %v13913_v41  ;;  %1931 = vmatprep.subr.mxu0 %v14498_v19 }
 0x104   : > { %2057 = vmatprep.subr.mxu1 %v9196_v11  ;;  %2153 = vperm.xlu0 %8125, %v8193_v59   ;;  %v14503_v11 = vand.u32 4294901760, %v14470_v51  ;;  %v2294_v51 = vld [vmem:[%s13758_s3 + $0x1a0] sm:$0xff] }
 0x105   : > { %1935 = vmatpush1.msra.mxu0 %v14499_v50  ;;  %2059 = vmatpush1.msra.mxu1 %v9201_v27  ;;  %v14504_v27 = vand.u32 4294901760, %v14472_v60  ;;  %v2286_v59 = vld [vmem:[%s13758_s3 + $0x160] sm:$0xff] }
 0x106   : > { %1939 = vmatprep.subr.mxu0 %v14500_v28  ;;  %2061 = vmatprep.subr.mxu1 %v14467_v36 }
 0x107   : > { %1943 = vmatpush1.msra.mxu0 %v14501_v54  ;;  %2063 = vmatpush1.msra.mxu1 %v14468_v10 }
 0x108   : > { %1947 = vmatprep.subr.mxu0 %v14502_v23  ;;  %2065 = vmatprep.subr.mxu1 %v14469_v16  ;;  %v9881_v16 = vand.u32 4294901760, %v2295_v32  ;;  %v9939_v23 = vsub.f32 %v2290_v53, %v9917_v14 }
 0x109   : > { %1951 = vmatpush1.msra.mxu0 %v14503_v11  ;;  %2067 = vmatpush1.msra.mxu1 %v14471_v8  ;;  %v2283_v11 = vld [vmem:[%s13758_s3 + $0x148] sm:$0xff] }
 0x10a   : > { %1955 = vmatprep.subr.mxu0 %v14504_v27  ;;  %2069 = vmatprep.subr.mxu1 %v14473_v31  ;;  %v9891_v31 = vand.u32 4294901760, %v2294_v51 }
 0x10b   : > { %1959 = vmatpush1.msra.mxu0 %v14505_v48  ;;  %2071 = vmatpush1.msra.mxu1 %v14474_v15  ;;  %v2291_v15 = vld [vmem:[%s13758_s3 + $0x188] sm:$0xff] }
 0x10c   : > { %1963 = vmatprep.subr.mxu0 %v14506_v21  ;;  %2073 = vmatprep.subr.mxu1 %v14475_v47  ;;  %v9915_v4 = vsub.f32 %v2294_v51, %v9891_v31 }
 0x10d   : > { %1967 = vmatpush1.msra.mxu0 %v14507_v33  ;;  %2075 = vmatpush1.msra.mxu1 %v14476_v58  ;;  %v9949_v33 = vand.u32 4294901760, %v2287_v2 }
 0x10e   : > { %1971 = vmatprep.subr.mxu0 %v14508_v55  ;;  %2077 = vmatprep.subr.mxu1 %v14477_v61  ;;  %v9902_v61 = vsub.f32 %v2295_v32, %v9881_v16  ;;  %v13903_v54 = vand.u32 4294901760, %v9915_v4  ;;  %v2282_v55 = vld [vmem:[%s13758_s3 + $0x140] sm:$0xff] }
 0x10f   : > { %1975 = vmatpush1.msra.mxu0 %v14510_v45  ;;  %2079 = vmatpush1.msra.mxu1 %v14478_v20  ;;  %v9904_v20 = vand.u32 4294901760, %v2291_v15 }
 0x110   : > { %1979 = vmatprep.subr.mxu0 %v14511_v7  ;;  %2081 = vmatprep.subr.mxu1 %v14479_v25  ;;  %v14519_v25 = vld [vmem:[#allocation38_spill] sm:$0xff]  ;;  %v13907_v52 = vand.u32 4294901760, %v9902_v61  ;;  %v2458_v45 = vsub.f32 %v9915_v4, %v13903_v54  ;;  %v13901_v7 = vand.u32 4294901760, %v9939_v23 }
 0x111   : > { %1983 = vmatpush1.msra.mxu0 %v14512_v18  ;;  %2083 = vmatpush1.msra.mxu1 %v14480_v0  ;;  %v14524_v0 = vld [vmem:[#allocation34_spill] sm:$0xff]  ;;  %v9928_v19 = vsub.f32 %v2291_v15, %v9904_v20  ;;  %v9958_v18 = vand.u32 4294901760, %v2286_v59 }
 0x112   : > { %1987 = vmatprep.subr.mxu0 %v14513_v63  ;;  %2085 = vmatprep.subr.mxu1 %v14481_v24  ;;  %v14522_v24 = vand.u32 4294901760, %v14521_v34  ;;  %v2452_v48 = vsub.f32 %v9902_v61, %v13907_v52  ;;  %v9978_v34 = vand.u32 4294901760, %v2282_v55  ;;  %v2274_v15 = vld [vmem:[%s13758_s3 + $0x100] sm:$0xff] }
 0x113   : > { %1991 = vmatpush1.msra.mxu0 %v14515_v37  ;;  %2087 = vmatpush1.msra.mxu1 %v14482_v49  ;;  %v14523_v49 = vld [vmem:[#allocation28_spill] sm:$0xff]  ;;  %v13902_v21 = vand.u32 4294901760, %v9928_v19  ;;  %v9964_v37 = vsub.f32 %v2287_v2, %v9949_v33 }
 0x114   : > { %1995 = vmatprep.subr.mxu0 %v14516_v3  ;;  %2089 = vmatprep.subr.mxu1 %v14517_v30  ;;  %v2453_v63 = vand.u32 4294901760, %v2452_v48  ;;  %v9966_v3 = vand.u32 4294901760, %v2283_v11  ;;  %v2279_v30 = vld [vmem:[%s13758_s3 + $0x128] sm:$0xff]  ;;  %v9994_v32 = vsub.f32 %v2282_v55, %v9978_v34 }
 0x115   : > { %1999 = vmatpush1.msra.mxu0 %v14518_v6  ;;  %2091 = vmatpush1.msra.mxu1 %v14519_v25  ;;  %v2464_v22 = vsub.f32 %v9928_v19, %v13902_v21  ;;  %v2459_v6 = vand.u32 4294901760, %v2458_v45  ;;  %v2470_v25 = vsub.f32 %v9939_v23, %v13901_v7  ;;  %v9996_v51 = vand.u32 4294901760, %v2279_v30 }
 0x116   : > { %2003 = vmatprep.subr.mxu0 %v14520_v29  ;;  %2093 = vmatprep.subr.mxu1 %v9482_v9  ;;  %v9835_v9 = vld [vmem:[%s8489_s8 + $0x18] sm:$0xff]  ;;  %v9976_v29 = vsub.f32 %v2286_v59, %v9958_v18 }
 0x117   : > { %2007 = vmatpush1.msra.mxu0 %v14522_v24  ;;  %2040 = vmatprep.mubr.f32.mxu0 %v14366_v44  ;;  %v2278_v24 = vld [vmem:[%s13758_s3 + $0x120] sm:$0xff] }
 0x118   : > { %2095 = vmatpush1.msra.mxu1 %v14523_v49  ;;  %2042 = vmatmul.mubr.f32.vlgmr.msra.gmra.mxu0 %v14524_v0  ;;  %v2465_v49 = vand.u32 4294901760, %v2464_v22  ;;  %v2270_v22 = vld [vmem:[%s13758_s3 + $0xe0] sm:$0xff] }
 0x119   : > { %2097 = vmatprep.subr.mxu1 %v9508_v26  ;;  %2144 = vmatprep.mubr.f32.mxu1 %v14366_v44 }
 0x11a   : > { %2099 = vmatpush1.msra.mxu1 %v9497_v39  ;;  %5862 = vperm.xlu0 %8125, %v9825_v38   ;;  %v2303_v39 = vld [vmem:[%s13758_s3 + $0x1e8] sm:$0xff] }
 0x11b   : > { %2101 = vmatprep.subr.mxu1 %v9544_v35  ;;  %2413 = vmatprep.mubr.f32.mxu0 %v14366_v44  ;;  %v9849_v26 = vand.u32 4294901760, %v2303_v39 }
 0x11c   : > { %2103 = vmatpush1.msra.mxu1 %v9531_v62 }
 0x11d   : > { %2105 = vmatprep.subr.mxu1 %v9566_v56  ;;  %14525 = vst [vmem:[#allocation39_spill] sm:$0xff] %v9849_v26  ;;  %v2302_v56 = vld [vmem:[%s13758_s3 + $0x1e0] sm:$0xff]  ;;  %v9860_v62 = vsub.f32 %v2303_v39, %v9849_v26  ;;  %2318 = vmatprep.subr.mxu0 %v9849_v26  ;;  %v9986_v39 = vsub.f32 %v2283_v11, %v9966_v3 }
 0x11e   : > { %2107 = vmatpush1.msra.mxu1 %v9579_v43  ;;  %7696 = vperm.xlu0 %8125, %v9835_v9   ;;  %v9854_v43 = vand.u32 4294901760, %v2302_v56 }
 0x11f   : > { %2109 = vmatprep.subr.mxu1 %v9586_v17  ;;  %v2299_v17 = vld [vmem:[%s13758_s3 + $0x1c8] sm:$0xff]  ;;  %14526 = vst [vmem:[#allocation33_spill] sm:$0xff] %v9860_v62  ;;  %v13911_v36 = vand.u32 4294901760, %v9860_v62  ;;  %v13896_v53 = vand.u32 4294901760, %v9986_v39 }
 0x120   : > { %2111 = vmatpush1.msra.mxu1 %v9596_v13  ;;  %v9862_v35 = vand.u32 4294901760, %v2299_v17  ;;  %v2298_v13 = vld [vmem:[%s13758_s3 + $0x1c0] sm:$0xff]  ;;  %v9869_v1 = vsub.f32 %v2302_v56, %v9854_v43  ;;  %2320 = vmatpush1.msra.mxu0 %v9854_v43  ;;  %v2275_v56 = vld [vmem:[%s13758_s3 + $0x108] sm:$0xff] }
 0x121   : > { %2146 = vmatmul.mubr.f32.vlgmr.msra.gmra.mxu1 %v14524_v0  ;;  %v9871_v42 = vand.u32 4294901760, %v2298_v13  ;;  %v2428_v47 = vsub.f32 %v9860_v62, %v13911_v36  ;;  %v13900_v0 = vand.u32 4294901760, %v9964_v37  ;;  %v10015_v59 = vand.u32 4294901760, %v2275_v56 }
 0x122   : > { %2649 = vmatprep.mubr.f32.mxu1 %v14366_v44  ;;  %v9879_v10 = vsub.f32 %v2299_v17, %v9862_v35  ;;  %2322 = vmatprep.subr.mxu0 %v9862_v35  ;;  %v13910_v8 = vand.u32 4294901760, %v9869_v1  ;;  %v2471_v17 = vand.u32 4294901760, %v2470_v25 }
 0x123   : > { %v9889_v60 = vsub.f32 %v2298_v13, %v9871_v42  ;;  %2324 = vmatpush1.msra.mxu0 %v9871_v42  ;;  %v2429_v57 = vand.u32 4294901760, %v2428_v47  ;;  %v13898_v13 = vand.u32 4294901760, %v9976_v29  ;;  %v2476_v47 = vsub.f32 %v9964_v37, %v13900_v0 }
 0x124   : > { %v13909_v58 = vand.u32 4294901760, %v9879_v10  ;;  %2326 = vmatprep.subr.mxu0 %v9881_v16  ;;  %v2434_v5 = vsub.f32 %v9869_v1, %v13910_v8  ;;  %v10032_v45 = vsub.f32 %v2275_v56, %v10015_v59  ;;  %v2254_v8 = vld [vmem:[%s13758_s3 + $0x60] sm:$0xff] }
 0x125   : > { %v13908_v46 = vand.u32 4294901760, %v9889_v60  ;;  %2328 = vmatpush1.msra.mxu0 %v9891_v31  ;;  %2430 = vmatprep.subr.mxu1 %v2429_v57  ;;  %v2482_v2 = vsub.f32 %v9976_v29, %v13898_v13  ;;  %v13895_v57 = vand.u32 4294901760, %v9994_v32 }
 0x126   : > { %v2440_v40 = vsub.f32 %v9879_v10, %v13909_v58  ;;  %2330 = vmatprep.subr.mxu0 %v9904_v20  ;;  %v2435_v50 = vand.u32 4294901760, %v2434_v5  ;;  %v10006_v5 = vand.u32 4294901760, %v2278_v24  ;;  %14528 = vst [vmem:[#allocation16_spill] sm:$0xff] %v10032_v45 }
 0x127   : > { %v2446_v28 = vsub.f32 %v9889_v60, %v13908_v46  ;;  %2332 = vmatpush1.msra.mxu0 %v9917_v14  ;;  %v2483_v48 = vand.u32 4294901760, %v2482_v2  ;;  %v2494_v55 = vsub.f32 %v9994_v32, %v13895_v57 }
 0x128   : > { %v2441_v27 = vand.u32 4294901760, %v2440_v40  ;;  %2436 = vmatpush1.msra.mxu1 %v2435_v50  ;;  %2334 = vmatprep.subr.mxu0 %v9949_v33  ;;  %v10013_v40 = vsub.f32 %v2279_v30, %v9996_v51  ;;  %v2477_v50 = vand.u32 4294901760, %v2476_v47  ;;  %v10022_v11 = vsub.f32 %v2278_v24, %v10006_v5  ;;  %v2267_v24 = vld [vmem:[%s13758_s3 + $0xc8] sm:$0xff] }
 0x129   : > { %v2447_v12 = vand.u32 4294901760, %v2446_v28  ;;  %2336 = vmatpush1.msra.mxu0 %v9958_v18  ;;  %v2488_v28 = vsub.f32 %v9986_v39, %v13896_v53 }
 0x12a   : > { %2442 = vmatprep.subr.mxu1 %v2441_v27  ;;  %2338 = vmatprep.subr.mxu0 %v9966_v3  ;;  %14527 = vst [vmem:[#allocation17_spill] sm:$0xff] %v10022_v11  ;;  %v10024_v27 = vand.u32 4294901760, %v2274_v15 }
 0x12b   : > { %2448 = vmatpush1.msra.mxu1 %v2447_v12  ;;  %2340 = vmatpush1.msra.mxu0 %v9978_v34  ;;  %v13894_v12 = vand.u32 4294901760, %v10013_v40  ;;  %v2489_v30 = vand.u32 4294901760, %v2488_v28  ;;  %v2266_v28 = vld [vmem:[%s13758_s3 + $0xc0] sm:$0xff] }
 0x12c   : > { %2454 = vmatprep.subr.mxu1 %v2453_v63  ;;  %2342 = vmatprep.subr.mxu0 %v9996_v51  ;;  %v2271_v63 = vld [vmem:[%s13758_s3 + $0xe8] sm:$0xff]  ;;  %v10043_v25 = vsub.f32 %v2274_v15, %v10024_v27  ;;  %v10088_v13 = vand.u32 4294901760, %v2266_v28 }
 0x12d   : > { %2460 = vmatpush1.msra.mxu1 %v2459_v6  ;;  %2344 = vmatpush1.msra.mxu0 %v10006_v5  ;;  %v13893_v6 = vand.u32 4294901760, %v10022_v11  ;;  %v2500_v56 = vsub.f32 %v10013_v40, %v13894_v12  ;;  %v10057_v2 = vand.u32 4294901760, %v2271_v63 }
 0x12e   : > { %2466 = vmatprep.subr.mxu1 %v2465_v49  ;;  %2346 = vmatprep.subr.mxu0 %v10015_v59  ;;  %14529 = vst [vmem:[#allocation19_spill] sm:$0xff] %v10043_v25  ;;  %v2495_v49 = vand.u32 4294901760, %v2494_v55  ;;  %v13899_v47 = vand.u32 4294901760, %v10043_v25 }
 0x12f   : > { %2472 = vmatpush1.msra.mxu1 %v2471_v17  ;;  %2348 = vmatpush1.msra.mxu0 %v10024_v27  ;;  %v13897_v17 = vand.u32 4294901760, %v10032_v45  ;;  %v2506_v15 = vsub.f32 %v10022_v11, %v13893_v6  ;;  %v2263_v6 = vld [vmem:[%s13758_s3 + $0xa8] sm:$0xff]  ;;  %v10076_v53 = vsub.f32 %v2271_v63, %v10057_v2 }
 0x130   : > { %2478 = vmatprep.subr.mxu1 %v2477_v50  ;;  %v10059_v50 = vand.u32 4294901760, %v2270_v22  ;;  %v2518_v57 = vsub.f32 %v10043_v25, %v13899_v47  ;;  %2350 = vmatprep.subr.mxu0 %v10057_v2  ;;  %v2259_v63 = vld [vmem:[%s13758_s3 + $0x88] sm:$0xff]  ;;  %v10096_v7 = vand.u32 4294901760, %v2263_v6  ;;  %v7995_v25 = vld [vmem:[%s13756_s1 + $0x1] ss:$2 sm:$0xf] }
 0x131   : > { %2484 = vmatpush1.msra.mxu1 %v2483_v48  ;;  %v2501_v48 = vand.u32 4294901760, %v2500_v56  ;;  %v2512_v55 = vsub.f32 %v10032_v45, %v13897_v17  ;;  %v2507_v12 = vand.u32 4294901760, %v2506_v15  ;;  %14530 = vst [vmem:[#allocation26_spill] sm:$0xff] %v10076_v53  ;;  %v2262_v56 = vld [vmem:[%s13758_s3 + $0xa0] sm:$0xff]  ;;  %v13904_v47 = vand.u32 4294901760, %v10076_v53 }
 0x132   : > { %2490 = vmatprep.subr.mxu1 %v2489_v30  ;;  %v10067_v30 = vand.u32 4294901760, %v2267_v24  ;;  %2352 = vmatpush1.msra.mxu0 %v10059_v50 }
 0x133   : > { %2496 = vmatpush1.msra.mxu1 %v2495_v49  ;;  %v10079_v49 = vsub.f32 %v2270_v22, %v10059_v50  ;;  %v2513_v17 = vand.u32 4294901760, %v2512_v55  ;;  %v2519_v22 = vand.u32 4294901760, %v2518_v57  ;;  %v10103_v55 = vand.u32 4294901760, %v2262_v56 }
 0x134   : > { %2502 = vmatprep.subr.mxu1 %v2501_v48  ;;  %v10086_v15 = vsub.f32 %v2267_v24, %v10067_v30  ;;  %2354 = vmatprep.subr.mxu0 %v10067_v30  ;;  %v10101_v48 = vsub.f32 %v2266_v28, %v10088_v13  ;;  %v10106_v57 = vand.u32 4294901760, %v2259_v63 }
 0x135   : > { %14531 = vst [vmem:[#allocation18_spill] sm:$0xff] %v10079_v49  ;;  %2508 = vmatpush1.msra.mxu1 %v2507_v12  ;;  %v13905_v0 = vand.u32 4294901760, %v10079_v49  ;;  %14534 = vst [vmem:[#allocation20_spill] sm:$0xff] %v10103_v55  ;;  %2356 = vmatpush1.msra.mxu0 %v10088_v13  ;;  %v2524_v12 = vsub.f32 %v10076_v53, %v13904_v47  ;;  %v10123_v54 = vsub.f32 %v2262_v56, %v10103_v55  ;;  %v2258_v47 = vld [vmem:[%s13758_s3 + $0x80] sm:$0xff] }
 0x136   : > { %14532 = vst [vmem:[#allocation29_spill] sm:$0xff] %v10086_v15  ;;  %2514 = vmatprep.subr.mxu1 %v2513_v17  ;;  %v13906_v24 = vand.u32 4294901760, %v10086_v15  ;;  %14533 = vst [vmem:[#allocation21_spill] sm:$0xff] %v10101_v48  ;;  %v13912_v21 = vand.u32 4294901760, %v10101_v48  ;;  %2358 = vmatprep.subr.mxu0 %v10096_v7 }
 0x137   : > { %2520 = vmatpush1.msra.mxu1 %v2519_v22  ;;  %14535 = vst [vmem:[#allocation23_spill] sm:$0xff] %v10106_v57  ;;  %v2530_v17 = vsub.f32 %v10079_v49, %v13905_v0  ;;  %v10120_v22 = vsub.f32 %v2263_v6, %v10096_v7  ;;  %14537 = vst [vmem:[#allocation24_spill] sm:$0xff] %v10123_v54  ;;  %v2255_v0 = vld [vmem:[%s13758_s3 + $0x68] sm:$0xff]  ;;  %2360 = vmatpush1.msra.mxu0 %v10103_v55  ;;  %v13919_v58 = vand.u32 4294901760, %v10123_v54 }
 0x138   : > { %v2536_v28 = vsub.f32 %v10086_v15, %v13906_v24  ;;  %v2525_v24 = vand.u32 4294901760, %v2524_v12  ;;  %v2542_v6 = vsub.f32 %v10101_v48, %v13912_v21  ;;  %2362 = vmatprep.subr.mxu0 %v10106_v57  ;;  %v10142_v12 = vsub.f32 %v2259_v63, %v10106_v57  ;;  %v2251_v21 = vld [vmem:[%s13758_s3 + $0x48] sm:$0xff] }
 0x139   : > { %14536 = vst [vmem:[#allocation22_spill] sm:$0xff] %v10120_v22  ;;  %v2531_v52 = vand.u32 4294901760, %v2530_v17  ;;  %v13918_v56 = vand.u32 4294901760, %v10120_v22  ;;  %v10144_v17 = vand.u32 4294901760, %v2258_v47  ;;  %v10164_v15 = vand.u32 4294901760, %v2254_v8 }
 0x13a   : > { %v2537_v46 = vand.u32 4294901760, %v2536_v28  ;;  %2526 = vmatprep.subr.mxu1 %v2525_v24  ;;  %v2543_v36 = vand.u32 4294901760, %v2542_v6  ;;  %14538 = vst [vmem:[#allocation25_spill] sm:$0xff] %v10142_v12  ;;  %v10146_v28 = vand.u32 4294901760, %v2255_v0  ;;  %v2554_v24 = vsub.f32 %v10123_v54, %v13919_v58 }
 0x13b   : > { %14539 = vst [vmem:[#allocation32_spill] sm:$0xff] %v10144_v17  ;;  %2532 = vmatpush1.msra.mxu1 %v2531_v52  ;;  %v2548_v41 = vsub.f32 %v10120_v22, %v13918_v56  ;;  %v13928_v63 = vand.u32 4294901760, %v10142_v12  ;;  %v10159_v6 = vsub.f32 %v2258_v47, %v10144_v17  ;;  %14543 = vst [vmem:[#allocation35_spill] sm:$0xff] %v10164_v15  ;;  %v2250_v52 = vld [vmem:[%s13758_s3 + $0x40] sm:$0xff]  ;;  %v2247_v56 = vld [vmem:[%s13758_s3 + $0x28] sm:$0xff]  ;;  %2364 = vmatpush1.msra.mxu0 %v10144_v17 }
 0x13c   : > { %14540 = vst [vmem:[#allocation30_spill] sm:$0xff] %v10146_v28  ;;  %2538 = vmatprep.subr.mxu1 %v2537_v46  ;;  %v10162_v48 = vsub.f32 %v2255_v0, %v10146_v28  ;;  %v2555_v58 = vand.u32 4294901760, %v2554_v24  ;;  %v10173_v47 = vand.u32 4294901760, %v2251_v21  ;;  %v2246_v0 = vld [vmem:[%s13758_s3 + $0x20] sm:$0xff]  ;;  %2366 = vmatprep.subr.mxu0 %v10146_v28  ;;  %v10191_v24 = vand.u32 4294901760, %v2250_v52 }
 0x13d   : > { %14541 = vst [vmem:[#allocation37_spill] sm:$0xff] %v10159_v6  ;;  %2544 = vmatpush1.msra.mxu1 %v2543_v36  ;;  %v2549_v46 = vand.u32 4294901760, %v2548_v41  ;;  %v2560_v54 = vsub.f32 %v10142_v12, %v13928_v63  ;;  %v13937_v22 = vand.u32 4294901760, %v10159_v6  ;;  %2368 = vmatpush1.msra.mxu0 %v10164_v15  ;;  %v10186_v41 = vsub.f32 %v2254_v8, %v10164_v15  ;;  %v2243_v63 = vld [vmem:[%s13758_s3 + $0x8] sm:$0xff] }
 0x13e   : > { %14542 = vst [vmem:[#allocation31_spill] sm:$0xff] %v10162_v48  ;;  %14544 = vst [vmem:[#allocation36_spill] sm:$0xff] %v10173_v47  ;;  %v10189_v36 = vsub.f32 %v2251_v21, %v10173_v47  ;;  %v10193_v28 = vand.u32 4294901760, %v2247_v56  ;;  %2370 = vmatprep.subr.mxu0 %v10173_v47  ;;  %v10205_v12 = vand.u32 4294901760, %v2246_v0  ;;  %v10210_v17 = vsub.f32 %v2250_v52, %v10191_v24 }
 0x13f   : > { %2550 = vmatprep.subr.mxu1 %v2549_v46  ;;  %14545 = vst [vmem:[#allocation40_spill] sm:$0xff] %v10186_v41  ;;  %14547 = vst [vmem:[#allocation27_spill] sm:$0xff] %v10191_v24  ;;  %v2561_v49 = vand.u32 4294901760, %v2560_v54  ;;  %v2566_v8 = vsub.f32 %v10159_v6, %v13937_v22  ;;  %v14549_v46 = vand.u32 4294901760, %v10162_v48  ;;  %v2242_v54 = vld [vmem:[%s13758_s3] sm:$0xff]  ;;  %2372 = vmatpush1.msra.mxu0 %v10191_v24  ;;  %v10222_v15 = vand.u32 4294901760, %v2243_v63 }
 0x140   : > { %14546 = vst [vmem:[#allocation41_spill] sm:$0xff] %v10189_v36  ;;  %14548 = vst [vmem:[#allocation38_spill] sm:$0xff] %v10193_v28  ;;  %2556 = vmatpush1.msra.mxu1 %v2555_v58  ;;  %v13946_v53 = vand.u32 4294901760, %v10189_v36  ;;  %v10213_v58 = vsub.f32 %v2247_v56, %v10193_v28  ;;  %2374 = vmatprep.subr.mxu0 %v10193_v28  ;;  %v14555_v52 = vand.u32 4294901760, %v10186_v41  ;;  %v13953_v24 = vand.u32 4294901760, %v10210_v17 }
 0x141   : > { %v2572_v21 = vsub.f32 %v10162_v48, %v14549_v46  ;;  %14550 = vst [vmem:[#allocation42_spill] sm:$0xff] %v10205_v12  ;;  %14551 = vst [vmem:[#allocation28_spill] sm:$0xff] %v10210_v17  ;;  %2562 = vmatprep.subr.mxu1 %v2561_v49  ;;  %v2567_v46 = vand.u32 4294901760, %v2566_v8  ;;  %v10220_v48 = vsub.f32 %v2246_v0, %v10205_v12  ;;  %2376 = vmatpush1.msra.mxu0 %v10205_v12 }
 0x142   : > { %14552 = vst [vmem:[#allocation34_spill] sm:$0xff] %v10213_v58  ;;  %14554 = vst [vmem:[#allocation44_spill] sm:$0xff] %v10222_v15  ;;  %v2578_v56 = vsub.f32 %v10186_v41, %v14555_v52  ;;  %v2584_v6 = vsub.f32 %v10189_v36, %v13946_v53  ;;  %v13951_v49 = vand.u32 4294901760, %v10213_v58  ;;  %v10236_v8 = vsub.f32 %v2243_v63, %v10222_v15 }
 0x143   : > { %v2573_v22 = vand.u32 4294901760, %v2572_v21  ;;  %14553 = vst [vmem:[#allocation43_spill] sm:$0xff] %v10220_v48  ;;  %2568 = vmatpush1.msra.mxu1 %v2567_v46  ;;  %v13952_v0 = vand.u32 4294901760, %v10220_v48  ;;  %v10238_v21 = vand.u32 4294901760, %v2242_v54  ;;  %2378 = vmatprep.subr.mxu0 %v10222_v15  ;;  %v2590_v53 = vsub.f32 %v10210_v17, %v13953_v24 }
 0x144   : > { %14556 = vst [vmem:[#allocation45_spill] sm:$0xff] %v10236_v8  ;;  %v2579_v52 = vand.u32 4294901760, %v2578_v56  ;;  %v2585_v41 = vand.u32 4294901760, %v2584_v6  ;;  %v2596_v46 = vsub.f32 %v10213_v58, %v13951_v49  ;;  %v13954_v36 = vand.u32 4294901760, %v10236_v8 }
 0x145   : > { %14557 = vst [vmem:[#allocation46_spill] sm:$0xff] %v10238_v21  ;;  %2574 = vmatprep.subr.mxu1 %v2573_v22  ;;  %v2602_v63 = vsub.f32 %v10220_v48, %v13952_v0  ;;  %v10252_v12 = vsub.f32 %v2242_v54, %v10238_v21  ;;  %2380 = vmatpush1.msra.mxu0 %v10238_v21  ;;  %v2591_v22 = vand.u32 4294901760, %v2590_v53 }
 0x146   : > { %2580 = vmatpush1.msra.mxu1 %v2579_v52  ;;  %v2597_v6 = vand.u32 4294901760, %v2596_v46  ;;  %2659 = vmatprep.subr.mxu0 %v9860_v62  ;;  %v2608_v49 = vsub.f32 %v10236_v8, %v13954_v36  ;;  %v415_v36 = vpop.permute.xlu0 %414 }
 0x147   : > { %14558 = vst [vmem:[#allocation47_spill] sm:$0xff] %v10252_v12  ;;  %2586 = vmatprep.subr.mxu1 %v2585_v41  ;;  %v2603_v56 = vand.u32 4294901760, %v2602_v63  ;;  %v13956_v0 = vand.u32 4294901760, %v10252_v12  ;;  %v418_v41 = vlaneseq  ;;  %v341_v63 = vld [vmem:[%s13756_s1] ss:$2 sm:$0xf] }
 0x148   : > { %2592 = vmatpush1.msra.mxu1 %v2591_v22  ;;  %v2609_v24 = vand.u32 4294901760, %v2608_v49 }
 0x149   : > { %2598 = vmatprep.subr.mxu1 %v2597_v6  ;;  %v2614_v54 = vsub.f32 %v10252_v12, %v13956_v0  ;;  %v419_v52 = vshrl.u32 %v418_v41, 7  ;;  %v545_v6 = vpop.f32.mrf.mxu0 }
 0x14a   : > { %2604 = vmatpush1.msra.mxu1 %v2603_v56  ;;  %v777_v56 = vpop.f32.mrf.mxu1 }
 0x14b   : > { %2610 = vmatprep.subr.mxu1 %v2609_v24  ;;  %v2615_v53 = vand.u32 4294901760, %v2614_v54  ;;  %v424_v46 = vsub.s32 1, %v419_v52  ;;  %v420_v22 = vsub.s32 0, %v419_v52  ;;  %v547_v24 = vpop.f32.mrf.mxu0 }
 0x14c   : > { %v779_v0 = vpop.f32.mrf.mxu1 }
 0x14d   : > { %2616 = vmatpush1.msra.mxu1 %v2615_v53  ;;  %v10267_v49 = vrot.slane %v341_v63, %v424_v46  ;;  %v10269_v62 = vrot.slane %v341_v63, %v420_v22  ;;  %v10278_v11 = vrot.slane %v7995_v25, %v420_v22 }
 0x14e   : > { %2795 = vmatprep.subr.mxu1 %v9849_v26 }
 0x14f   : > { %14559 = vst [vmem:[#allocation48_spill] sm:$0xff] %v10267_v49  ;;  %14560 = vst [vmem:[#allocation49_spill] sm:$0xff] %v10269_v62  ;;  %v439_v54 = vmul.f32 %v10267_v49, %v415_v36  ;;  %v438_v53 = vmul.f32 %v10269_v62, %v415_v36  ;;  %v914_v41 = vpop.f32.mrf.mxu0  ;;  %v10276_v62 = vrot.slane %v7995_v25, %v424_v46 }
 0x150   : > { %14562 = vst [vmem:[#allocation51_spill] sm:$0xff] %v10278_v11 }
 0x151   : > { %v548_v8 = vadd.f32 %v547_v24, %v439_v54  ;;  %v546_v48 = vadd.f32 %v545_v6, %v438_v53  ;;  %v916_v58 = vpop.f32.mrf.mxu0  ;;  %14561 = vst [vmem:[#allocation50_spill] sm:$0xff] %v10276_v62 }
 0x153   : > { %v780_v21 = vadd.f32 %v779_v0, %v548_v8  ;;  %v778_v15 = vadd.f32 %v777_v56, %v546_v48 }
 0x155   : > { %v917_v47 = vadd.f32 %v916_v58, %v780_v21  ;;  %v915_v57 = vadd.f32 %v914_v41, %v778_v15  ;;  %v344_v15 = vld [vmem:[%s13757_s2] sm:$0xf]  ;;  %v428_v21 = vsub.s32 2, %v419_v52 }
 0x158   : > { %v1020_v12 = vpop.f32.mrf.mxu1 }
 0x159   : > { %v1021_v55 = vadd.f32 %v1020_v12, %v915_v57  ;;  %v10287_v12 = vrot.slane %v344_v15, %v420_v22 }
 0x15a   : > { %v1022_v17 = vpop.f32.mrf.mxu1 }
 0x15b   : > { %v1023_v45 = vadd.f32 %v1022_v17, %v917_v47  ;;  %v10285_v47 = vrot.slane %v344_v15, %v424_v46  ;;  %14564 = vst [vmem:[#allocation53_spill] sm:$0xff] %v10287_v12 }
 0x15d   : > { %14563 = vst [vmem:[#allocation52_spill] sm:$0xff] %v10285_v47 }
 0x172   : > { %v1188_v26 = vpop.f32.mrf.mxu0 }
 0x173   : > { %v1189_v53 = vadd.f32 %v1188_v26, %v1021_v55  ;;  %v432_v55 = vsub.s32 3, %v419_v52 }
 0x174   : > { %v1190_v49 = vpop.f32.mrf.mxu0 }
 0x175   : > { %v1191_v24 = vadd.f32 %v1190_v49, %v1023_v45 }
 0x17a   : > { %v1292_v28 = vpop.f32.mrf.mxu1 }
 0x17b   : > { %v1293_v58 = vadd.f32 %v1292_v28, %v1189_v53  ;;  %v10291_v28 = vrot.slane %v341_v63, %v428_v21 }
 0x17c   : > { %v1294_v6 = vpop.f32.mrf.mxu1 }
 0x17d   : > { %v1295_v0 = vadd.f32 %v1294_v6, %v1191_v24  ;;  %14565 = vst [vmem:[#allocation54_spill] sm:$0xff] %v10291_v28  ;;  %v10293_v6 = vrot.slane %v341_v63, %v432_v55  ;;  %v440_v46 = vmul.f32 %v10291_v28, %v415_v36  ;;  %v10297_v28 = vrot.slane %v7995_v25, %v428_v21 }
 0x17f   : > { %v2154_v54 = vpop.permute.xlu0 %2153  ;;  %14566 = vst [vmem:[#allocation55_spill] sm:$0xff] %v10293_v6  ;;  %v441_v53 = vmul.f32 %v10293_v6, %v415_v36  ;;  %14567 = vst [vmem:[#allocation56_spill] sm:$0xff] %v10297_v28 }
 0x180   : > { %v2178_v48 = vmul.f32 %v10276_v62, %v2154_v54  ;;  %v2177_v8 = vmul.f32 %v10278_v11, %v2154_v54 }
 0x182   : > { %v2182_v17 = vadd.f32 %v2178_v48, %v1295_v0  ;;  %v2181_v57 = vadd.f32 %v2177_v8, %v1293_v58 }
 0x184   : > { %v2207_v45 = vadd.f32 %v10285_v47, %v2182_v17  ;;  %v2206_v26 = vadd.f32 %v10287_v12, %v2181_v57 }
 0x186   : > { %v7997_v49 = vmul.f32 -1.442695, %v2207_v45  ;;  %v7996_v56 = vmul.f32 -1.442695, %v2206_v26 }
 0x188   : > { %8129 = vpow2.f32 %v7997_v49 }
 0x189   : > { %8131 = vpow2.f32 %v7996_v56  ;;  %v8000_v56 = vld [vmem:[%s8489_s8 + $0x8] sm:$0xff]  ;;  %s10313_s8 = sshll.u32 %s8320_s26, 2 }
 0x18a   : > { %2310 = vperm.xlu1 %8126, %v8000_v56   ;;  %p2235_p5 = scmp.lt.s32.totalorder %s10313_s8, 10  ;;  %s4067_s17 = sadd.s32 1, %s10313_s8 }
 0x18b   : > { %p4068_p6 = scmp.lt.s32.totalorder %s4067_s17, 10  ;;  %s5901_s18 = sadd.s32 2, %s10313_s8 }
 0x18c   : > { %s2236_s12 = scalar_select %p2235_p5, 1, 0 }
 0x18d   : > { %s4069_s24 = scalar_select %p4068_p6, 1, 0 }
 0x18e   : > { %p5902_p9 = scmp.lt.s32.totalorder %s5901_s18, 10  ;;  %s7735_s10 = sadd.s32 3, %s10313_s8 }
 0x18f   : > { %p7736_p10 = scmp.lt.s32.totalorder %s7735_s10, 10 }
 0x190   : > { %s5903_s11 = scalar_select %p5902_p9, 1, 0 }
 0x191   : > { %s7737_s0 = scalar_select %p7736_p10, 1, 0 }
 0x194   : > { %v1400_v41 = vpop.f32.mrf.mxu0 }
 0x195   : > { %v1401_v48 = vadd.f32 %v1400_v41, %v440_v46  ;;  %v8130_v11 = vpop.eup %8129  ;;  %v10300_v41 = vrot.slane %v7995_v25, %v432_v55  ;;  %v10307_v25 = vrot.slane %v344_v15, %v432_v55 }
 0x196   : > { %v1402_v24 = vpop.f32.mrf.mxu0  ;;  %v8132_v36 = vpop.eup %8131 }
 0x197   : > { %v1403_v52 = vadd.f32 %v1402_v24, %v441_v53  ;;  %14568 = vst [vmem:[#allocation57_spill] sm:$0xff] %v10300_v41  ;;  %v10302_v53 = vrot.slane %v344_v15, %v428_v21  ;;  %14571 = vst [vmem:[#allocation59_spill] sm:$0xff] %v10307_v25  ;;  %v14572_v21 = vmov 0   ;;  %v346_v15 = vld [vmem:[#allocation3] sm:$0xff] }
 0x199   : > { %14569 = vst [vmem:[#allocation58_spill] sm:$0xff] %v10302_v53 }
 0x19c   : > { %v1632_v22 = vpop.f32.mrf.mxu1 }
 0x19d   : > { %v1633_v57 = vadd.f32 %v1632_v22, %v1401_v48  ;;  %v2219_v22 = vadd.f32 1.0, %v8130_v11 }
 0x19e   : > { %v1634_v58 = vpop.f32.mrf.mxu1 }
 0x19f   : > { %v1635_v26 = vadd.f32 %v1634_v58, %v1403_v52  ;;  %v2179_v58 = vmul.f32 %v10297_v28, %v2154_v54  ;;  %v2213_v52 = vadd.f32 1.0, %v8132_v36  ;;  %8133 = vrcp.f32 %v2219_v22  ;;  %v14604_v28 = vld [vmem:[#allocation28_spill] sm:$0xff] }
 0x1a1   : > { %8135 = vrcp.f32 %v2213_v52 }
 0x1b5   : > { %v1769_v0 = vpop.f32.mrf.mxu0 }
 0x1b6   : > { %v1770_v63 = vadd.f32 %v1769_v0, %v1633_v57 }
 0x1b7   : > { %v1771_v8 = vpop.f32.mrf.mxu0 }
 0x1b8   : > { %v1772_v49 = vadd.f32 %v1771_v8, %v1635_v26 }
 0x1be   : > { %v1875_v17 = vpop.f32.mrf.mxu1 }
 0x1bf   : > { %v1876_v47 = vadd.f32 %v1875_v17, %v1770_v63  ;;  %v14570_v17 = vmov 1  }
 0x1c0   : > { %v1877_v12 = vpop.f32.mrf.mxu1  ;;  %8127 = vset.pattern.permute.xlu1 %v14570_v17 }
 0x1c1   : > { %v1878_v6 = vadd.f32 %v1877_v12, %v1772_v49  ;;  %v2180_v12 = vmul.f32 %v10300_v41, %v2154_v54  ;;  %4028 = vperm.xlu1 %8127, %v8000_v56   ;;  %v8134_v54 = vpop.eup %8133  ;;  %v14603_v41 = vld [vmem:[#allocation41_spill] sm:$0xff] }
 0x1c2   : > { %v8136_v55 = vpop.eup %8135  ;;  %v2229_v49 = vmul.f32 %v8134_v54, %v346_v15  ;;  %v14584_v54 = vld [vmem:[#allocation26_spill] sm:$0xff] }
 0x1c5   : > { %8128 = vset.pattern.permute.xlu1 %v14572_v21  ;;  %v14582_v21 = vld [vmem:[#allocation19_spill] sm:$0xff] }
 0x1c6   : > { %4144 = vperm.xlu1 %8128, %v9825_v38  }
 0x1ca   : > { %5978 = vperm.xlu1 %8128, %v9835_v9  }
 0x1d8   : > { %v2043_v45 = vpop.f32.mrf.mxu0 }
 0x1d9   : > { %v2044_v46 = vadd.f32 %v2043_v45, %v1876_v47  ;;  %v2237_v45 = vstv %s2236_s12 }
 0x1da   : > { %v2045_v62 = vpop.f32.mrf.mxu0  ;;  %vm2238_vm0 = vcmp.eq.s32.totalorder %v2237_v45, 1  ;;  %v14587_v45 = vld [vmem:[#allocation35_spill] sm:$0xff] }
 0x1db   : > { %v2046_v48 = vadd.f32 %v2045_v62, %v1878_v6 }
 0x1e1   : > { %v2147_v24 = vpop.f32.mrf.mxu1 }
 0x1e2   : > { %v2148_v0 = vadd.f32 %v2147_v24, %v2044_v46 }
 0x1e3   : > { %v2149_v8 = vpop.f32.mrf.mxu1 }
 0x1e4   : > { %v2183_v57 = vadd.f32 %v2179_v58, %v2148_v0  ;;  %v2150_v26 = vadd.f32 %v2149_v8, %v2046_v48  ;;  %v8194_v0 = vld [vmem:[#allocation2] sm:$0xff] }
 0x1e6   : > { %v2208_v47 = vadd.f32 %v10302_v53, %v2183_v57  ;;  %v2184_v11 = vadd.f32 %v2180_v12, %v2150_v26  ;;  %v14578_v12 = vld [vmem:[#allocation17_spill] sm:$0xff]  ;;  %v14602_v53 = vld [vmem:[#allocation40_spill] sm:$0xff] }
 0x1e8   : > { %8137 = vtanh.f32 %v2208_v47  ;;  %v2209_v62 = vadd.f32 %v10307_v25, %v2184_v11  ;;  %v14579_v47 = vld [vmem:[#allocation20_spill] sm:$0xff]  ;;  %v14601_v25 = vld [vmem:[#allocation39_spill] sm:$0xff] }
 0x1e9   : > { %v14580_v11 = vld [vmem:[#allocation16_spill] sm:$0xff] }
 0x1ea   : > { %v7998_v6 = vmul.f32 -1.442695, %v2209_v62  ;;  %v14581_v62 = vld [vmem:[#allocation23_spill] sm:$0xff] }
 0x1ec   : > { %8139 = vpow2.f32 %v7998_v6  ;;  %v14583_v6 = vld [vmem:[#allocation32_spill] sm:$0xff] }
 0x1f5   : > { %v8138_v63 = vpop.eup %8137 }
 0x1f6   : > { %v2230_v56 = vmul.f32 %v8138_v63, %v8136_v55  ;;  %v14586_v55 = vld [vmem:[#allocation18_spill] sm:$0xff]  ;;  %v14588_v63 = vld [vmem:[#allocation29_spill] sm:$0xff] }
 0x1f8   : > { %v2231_v36 = vadd.f32 %v2230_v56, %v2229_v49  ;;  %v14589_v49 = vld [vmem:[#allocation36_spill] sm:$0xff]  ;;  %v14590_v56 = vld [vmem:[#allocation21_spill] sm:$0xff] }
 0x1f9   : > { %v8140_v46 = vpop.eup %8139 }
 0x1fa   : > { %v10318_v24 = vsel %vm2238_vm0, %v2231_v36, %v346_v15  ;;  %v2226_v38 = vadd.f32 1.0, %v8140_v46  ;;  %8141 = vtanh.f32 %v2231_v36  ;;  %v14585_v15 = vld [vmem:[#allocation30_spill] sm:$0xff]  ;;  %v14591_v36 = vld [vmem:[#allocation27_spill] sm:$0xff] }
 0x1fb   : > { %14573 = vst [vmem:[#allocation60_spill] sm:$0xff] %v10318_v24  ;;  %v14592_v46 = vld [vmem:[#allocation22_spill] sm:$0xff]  ;;  %v14600_v24 = vld [vmem:[#allocation31_spill] sm:$0xff] }
 0x1fc   : > { %8143 = vrcp.f32 %v2226_v38  ;;  %v14593_v38 = vld [vmem:[#allocation38_spill] sm:$0xff] }
 0x207   : > { %v8142_v22 = vpop.eup %8141 }
 0x209   : > { %v8144_v48 = vpop.eup %8143 }
 0x20a   : > { %v2233_v9 = vmul.f32 %v8144_v48, %v8142_v22  ;;  %v14594_v22 = vld [vmem:[#allocation24_spill] sm:$0xff]  ;;  %v14595_v48 = vld [vmem:[#allocation42_spill] sm:$0xff] }
 0x20c   : > { %v2239_v58 = vsel %vm2238_vm0, %v2233_v9, %v8194_v0  ;;  %v14596_v9 = vld [vmem:[#allocation25_spill] sm:$0xff]  ;;  %v14597_v0 = vld [vmem:[#allocation44_spill] sm:$0xff] }
 0x20d   : > { %2241 = vst [vmem:[%s8491_s9] sm:$0xff] %v2239_v58  ;;  %v10321_v52 = vand.u32 4294901760, %v2239_v58 }
 0x20f   : > { %14574 = vst [vmem:[#allocation61_spill] sm:$0xff] %v10321_v52  ;;  %2651 = vmatmul.mubr.f32.vlgmr.msra.gmra.mxu1 %v10321_v52  ;;  %v10325_v8 = vsub.f32 %v2239_v58, %v10321_v52  ;;  %v14598_v58 = vld [vmem:[#allocation37_spill] sm:$0xff]  ;;  %v14606_v52 = vld [vmem:[#allocation43_spill] sm:$0xff] }
 0x210   : > { %2797 = vmatpush1.msra.mxu1 %v9854_v43  ;;  %2890 = vmatprep.mubr.f32.mxu1 %v14366_v44 }
 0x211   : > { %14575 = vst [vmem:[#allocation62_spill] sm:$0xff] %v10325_v8  ;;  %2799 = vmatprep.subr.mxu1 %v9862_v35  ;;  %v10331_v17 = vand.u32 4294901760, %v10325_v8 }
 0x212   : > { %2801 = vmatpush1.msra.mxu1 %v9871_v42 }
 0x213   : > { %14576 = vst [vmem:[#allocation63_spill] sm:$0xff] %v10331_v17  ;;  %2803 = vmatprep.subr.mxu1 %v9881_v16  ;;  %v2417_v57 = vsub.f32 %v10325_v8, %v10331_v17 }
 0x214   : > { %2805 = vmatpush1.msra.mxu1 %v9891_v31 }
 0x215   : > { %2807 = vmatprep.subr.mxu1 %v9904_v20  ;;  %v10339_v26 = vand.u32 4294901760, %v2417_v57  ;;  %v14599_v57 = vld [vmem:[#allocation46_spill] sm:$0xff] }
 0x216   : > { %2809 = vmatpush1.msra.mxu1 %v9917_v14 }
 0x217   : > { %14577 = vst [vmem:[#allocation64_spill] sm:$0xff] %v10339_v26  ;;  %2811 = vmatprep.subr.mxu1 %v9949_v33  ;;  %2419 = vmatmul.mubr.f32.vlgmr.msra.gmra.mxu0 %v10339_v26  ;;  %v14605_v26 = vld [vmem:[#allocation34_spill] sm:$0xff] }
 0x218   : > { %2662 = vmatpush1.msra.mxu0 %v9869_v1  ;;  %2813 = vmatpush1.msra.mxu1 %v9958_v18 }
 0x219   : > { %2665 = vmatprep.subr.mxu0 %v9879_v10  ;;  %2815 = vmatprep.subr.mxu1 %v9966_v3 }
 0x21a   : > { %2668 = vmatpush1.msra.mxu0 %v9889_v60  ;;  %2817 = vmatpush1.msra.mxu1 %v9978_v34 }
 0x21b   : > { %2671 = vmatprep.subr.mxu0 %v9902_v61  ;;  %2819 = vmatprep.subr.mxu1 %v9996_v51 }
 0x21c   : > { %2674 = vmatpush1.msra.mxu0 %v9915_v4  ;;  %2821 = vmatpush1.msra.mxu1 %v10006_v5 }
 0x21d   : > { %2677 = vmatprep.subr.mxu0 %v9928_v19  ;;  %2823 = vmatprep.subr.mxu1 %v10015_v59 }
 0x21e   : > { %2680 = vmatpush1.msra.mxu0 %v9939_v23  ;;  %2825 = vmatpush1.msra.mxu1 %v10024_v27 }
 0x21f   : > { %2683 = vmatprep.subr.mxu0 %v9964_v37  ;;  %2827 = vmatprep.subr.mxu1 %v10057_v2 }
 0x220   : > { %2686 = vmatpush1.msra.mxu0 %v9976_v29  ;;  %2829 = vmatpush1.msra.mxu1 %v10059_v50 }
 0x221   : > { %2689 = vmatprep.subr.mxu0 %v9986_v39  ;;  %2831 = vmatprep.subr.mxu1 %v10067_v30 }
 0x222   : > { %2692 = vmatpush1.msra.mxu0 %v9994_v32  ;;  %2833 = vmatpush1.msra.mxu1 %v10088_v13 }
 0x223   : > { %2695 = vmatprep.subr.mxu0 %v10013_v40  ;;  %2835 = vmatprep.subr.mxu1 %v10096_v7 }
 0x224   : > { %2698 = vmatpush1.msra.mxu0 %v14578_v12  ;;  %2837 = vmatpush1.msra.mxu1 %v14579_v47 }
 0x225   : > { %2701 = vmatprep.subr.mxu0 %v14580_v11  ;;  %2839 = vmatprep.subr.mxu1 %v14581_v62 }
 0x226   : > { %2704 = vmatpush1.msra.mxu0 %v14582_v21  ;;  %2841 = vmatpush1.msra.mxu1 %v14583_v6 }
 0x227   : > { %2707 = vmatprep.subr.mxu0 %v14584_v54  ;;  %2843 = vmatprep.subr.mxu1 %v14585_v15 }
 0x228   : > { %2710 = vmatpush1.msra.mxu0 %v14586_v55  ;;  %2845 = vmatpush1.msra.mxu1 %v14587_v45 }
 0x229   : > { %2713 = vmatprep.subr.mxu0 %v14588_v63  ;;  %2847 = vmatprep.subr.mxu1 %v14589_v49 }
 0x22a   : > { %2716 = vmatpush1.msra.mxu0 %v14590_v56  ;;  %2849 = vmatpush1.msra.mxu1 %v14591_v36 }
 0x22b   : > { %2719 = vmatprep.subr.mxu0 %v14592_v46  ;;  %2851 = vmatprep.subr.mxu1 %v14593_v38 }
 0x22c   : > { %2722 = vmatpush1.msra.mxu0 %v14594_v22  ;;  %2853 = vmatpush1.msra.mxu1 %v14595_v48 }
 0x22d   : > { %2725 = vmatprep.subr.mxu0 %v14596_v9  ;;  %2855 = vmatprep.subr.mxu1 %v14597_v0 }
 0x22e   : > { %2728 = vmatpush1.msra.mxu0 %v14598_v58  ;;  %2857 = vmatpush1.msra.mxu1 %v14599_v57 }
 0x22f   : > { %2731 = vmatprep.subr.mxu0 %v14600_v24  ;;  %2894 = vmatmul.mubr.f32.vlgmr.msra.gmra.mxu1 %v10331_v17 }
 0x230   : > { %3069 = vmatprep.subr.mxu1 %v14601_v25  ;;  %2734 = vmatpush1.msra.mxu0 %v14602_v53  ;;  %v14607_v25 = vld [vmem:[#allocation45_spill] sm:$0xff] }
 0x231   : > { %3071 = vmatpush1.msra.mxu1 %v9854_v43  ;;  %2737 = vmatprep.subr.mxu0 %v14603_v41  ;;  %v14608_v43 = vld [vmem:[#allocation47_spill] sm:$0xff] }
 0x232   : > { %3073 = vmatprep.subr.mxu1 %v9862_v35  ;;  %2740 = vmatpush1.msra.mxu0 %v14604_v28  ;;  %v14609_v35 = vld [vmem:[#allocation33_spill] sm:$0xff] }
 0x233   : > { %3075 = vmatpush1.msra.mxu1 %v9871_v42  ;;  %2743 = vmatprep.subr.mxu0 %v14605_v26  ;;  %v14610_v42 = vand.u32 4294901760, %v14609_v35  ;;  %v2301_v35 = vld [vmem:[%s13758_s3 + $0x1d8] sm:$0xff] }
 0x234   : > { %3077 = vmatprep.subr.mxu1 %v9881_v16  ;;  %2746 = vmatpush1.msra.mxu0 %v14606_v52  ;;  %v2305_v16 = vld [vmem:[%s13758_s3 + $0x1f8] sm:$0xff] }
 0x235   : > { %3079 = vmatpush1.msra.mxu1 %v9891_v31  ;;  %2749 = vmatprep.subr.mxu0 %v14607_v25  ;;  %v14611_v31 = vand.u32 4294901760, %v9869_v1  ;;  %v10429_v1 = vand.u32 4294901760, %v2305_v16 }
 0x236   : > { %3081 = vmatprep.subr.mxu1 %v9904_v20  ;;  %2752 = vmatpush1.msra.mxu0 %v14608_v43  ;;  %v2304_v20 = vld [vmem:[%s13758_s3 + $0x1f0] sm:$0xff] }
 0x237   : > { %2785 = vmatprep.mubr.f32.mxu0 %v14366_v44  ;;  %3083 = vmatpush1.msra.mxu1 %v9917_v14  ;;  %v14612_v14 = vand.u32 4294901760, %v9879_v10  ;;  %v14614_v10 = vand.u32 4294901760, %v9902_v61  ;;  %v14616_v61 = vand.u32 4294901760, %v9928_v19  ;;  %v2292_v19 = vld [vmem:[%s13758_s3 + $0x190] sm:$0xff] }
 0x238   : > { %2788 = vmatmul.mubr.f32.vlgmr.msra.gmra.mxu0 %v10325_v8  ;;  %2903 = vmatprep.subr.mxu0 %v14610_v42  ;;  %v2300_v42 = vld [vmem:[%s13758_s3 + $0x1d0] sm:$0xff]  ;;  %v14637_v8 = vand.u32 4294901760, %v14586_v55 }
 0x239   : > { %3085 = vmatprep.subr.mxu1 %v9949_v33  ;;  %2907 = vmatpush1.msra.mxu0 %v14611_v31  ;;  %v14613_v33 = vand.u32 4294901760, %v9889_v60  ;;  %v14615_v60 = vand.u32 4294901760, %v9915_v4  ;;  %v10445_v31 = vand.u32 4294901760, %v2301_v35  ;;  %v14617_v4 = vand.u32 4294901760, %v9939_v23  ;;  %v2289_v23 = vld [vmem:[%s13758_s3 + $0x178] sm:$0xff] }
 0x23a   : > { %3087 = vmatpush1.msra.mxu1 %v9958_v18  ;;  %2911 = vmatprep.subr.mxu0 %v14612_v14  ;;  %v10437_v18 = vand.u32 4294901760, %v2304_v20  ;;  %v10453_v14 = vand.u32 4294901760, %v2300_v42 }
 0x23b   : > { %3089 = vmatprep.subr.mxu1 %v9966_v3  ;;  %2915 = vmatpush1.msra.mxu0 %v14613_v33  ;;  %v2297_v3 = vld [vmem:[%s13758_s3 + $0x1b8] sm:$0xff]  ;;  %v10462_v33 = vsub.f32 %v2305_v16, %v10429_v1  ;;  %v14620_v16 = vand.u32 4294901760, %v9976_v29 }
 0x23c   : > { %3091 = vmatpush1.msra.mxu1 %v9978_v34  ;;  %2919 = vmatprep.subr.mxu0 %v14614_v10  ;;  %v2296_v34 = vld [vmem:[%s13758_s3 + $0x1b0] sm:$0xff]  ;;  %v10464_v10 = vand.u32 4294901760, %v2297_v3  ;;  %v2285_v29 = vld [vmem:[%s13758_s3 + $0x158] sm:$0xff] }
 0x23d   : > { %3093 = vmatprep.subr.mxu1 %v9996_v51  ;;  %2923 = vmatpush1.msra.mxu0 %v14615_v60  ;;  %v2293_v51 = vld [vmem:[%s13758_s3 + $0x198] sm:$0xff]  ;;  %v10473_v60 = vsub.f32 %v2304_v20, %v10437_v18  ;;  %v14622_v20 = vand.u32 4294901760, %v9986_v39  ;;  %v10509_v39 = vand.u32 4294901760, %v2289_v23 }
 0x23e   : > { %3095 = vmatpush1.msra.mxu1 %v10006_v5  ;;  %2927 = vmatprep.subr.mxu0 %v14616_v61  ;;  %v14618_v5 = vand.u32 4294901760, %v9964_v37  ;;  %v10484_v61 = vsub.f32 %v2301_v35, %v10445_v31  ;;  %v2288_v37 = vld [vmem:[%s13758_s3 + $0x170] sm:$0xff]  ;;  %v14624_v35 = vand.u32 4294901760, %v9994_v32 }
 0x23f   : > { %3097 = vmatprep.subr.mxu1 %v10015_v59  ;;  %2931 = vmatpush1.msra.mxu0 %v14617_v4  ;;  %14619 = vst [vmem:[#allocation17_spill] sm:$0xff] %v10473_v60  ;;  %v10475_v59 = vand.u32 4294901760, %v2296_v34  ;;  %v10495_v4 = vsub.f32 %v2300_v42, %v10453_v14  ;;  %v2284_v42 = vld [vmem:[%s13758_s3 + $0x150] sm:$0xff] }
 0x240   : > { %3099 = vmatpush1.msra.mxu1 %v10024_v27  ;;  %2935 = vmatprep.subr.mxu0 %v14618_v5  ;;  %14621 = vst [vmem:[#allocation20_spill] sm:$0xff] %v10484_v61  ;;  %v10486_v27 = vand.u32 4294901760, %v2293_v51  ;;  %v14014_v5 = vand.u32 4294901760, %v10462_v33 }
 0x241   : > { %3101 = vmatprep.subr.mxu1 %v10057_v2  ;;  %2939 = vmatpush1.msra.mxu0 %v14620_v16  ;;  %14623 = vst [vmem:[#allocation16_spill] sm:$0xff] %v10495_v4  ;;  %v10497_v2 = vand.u32 4294901760, %v2292_v19  ;;  %v14626_v16 = vand.u32 4294901760, %v10013_v40  ;;  %v10519_v32 = vsub.f32 %v2296_v34, %v10475_v59  ;;  %v2280_v34 = vld [vmem:[%s13758_s3 + $0x130] sm:$0xff] }
 0x242   : > { %3103 = vmatpush1.msra.mxu1 %v10059_v50  ;;  %2943 = vmatprep.subr.mxu0 %v14622_v20  ;;  %v10507_v50 = vsub.f32 %v2297_v3, %v10464_v10  ;;  %v10521_v20 = vand.u32 4294901760, %v2288_v37  ;;  %v2281_v3 = vld [vmem:[%s13758_s3 + $0x138] sm:$0xff]  ;;  %v10531_v40 = vsub.f32 %v2293_v51, %v10486_v27 }
 0x243   : > { %3105 = vmatprep.subr.mxu1 %v10067_v30  ;;  %2947 = vmatpush1.msra.mxu0 %v14624_v35  ;;  %14627 = vst [vmem:[#allocation19_spill] sm:$0xff] %v10519_v32  ;;  %v14628_v35 = vand.u32 4294901760, %v14578_v12  ;;  %v14630_v30 = vand.u32 4294901760, %v14580_v11  ;;  %v10543_v12 = vsub.f32 %v2292_v19, %v10497_v2  ;;  %v2277_v51 = vld [vmem:[%s13758_s3 + $0x118] sm:$0xff]  ;;  %v10560_v19 = vsub.f32 %v2289_v23, %v10509_v39 }
 0x244   : > { %14625 = vst [vmem:[#allocation23_spill] sm:$0xff] %v10507_v50  ;;  %3107 = vmatpush1.msra.mxu1 %v10088_v13  ;;  %2951 = vmatprep.subr.mxu0 %v14626_v16  ;;  %14629 = vst [vmem:[#allocation32_spill] sm:$0xff] %v10531_v40  ;;  %v10533_v16 = vand.u32 4294901760, %v2285_v29  ;;  %v14632_v13 = vand.u32 4294901760, %v14582_v21  ;;  %v14635_v21 = vand.u32 4294901760, %v10473_v60  ;;  %v10577_v23 = vsub.f32 %v2288_v37, %v10521_v20 }
 0x245   : > { %3109 = vmatprep.subr.mxu1 %v10096_v7  ;;  %2955 = vmatpush1.msra.mxu0 %v14628_v35  ;;  %14631 = vst [vmem:[#allocation26_spill] sm:$0xff] %v10543_v12  ;;  %v10545_v35 = vand.u32 4294901760, %v2284_v42  ;;  %14633 = vst [vmem:[#allocation30_spill] sm:$0xff] %v10560_v19  ;;  %v2276_v7 = vld [vmem:[%s13758_s3 + $0x110] sm:$0xff]  ;;  %v10579_v11 = vand.u32 4294901760, %v2280_v34  ;;  %v14640_v37 = vand.u32 4294901760, %v14588_v63 }
 0x246   : > { %3111 = vmatpush1.msra.mxu1 %v14579_v47  ;;  %2959 = vmatprep.subr.mxu0 %v14630_v30  ;;  %v10556_v47 = vsub.f32 %v10462_v33, %v14014_v5  ;;  %v10562_v30 = vand.u32 4294901760, %v2281_v3  ;;  %14636 = vst [vmem:[#allocation18_spill] sm:$0xff] %v10577_v23  ;;  %v10593_v5 = vand.u32 4294901760, %v2277_v51  ;;  %v14644_v63 = vand.u32 4294901760, %v10507_v50 }
 0x247   : > { %3113 = vmatprep.subr.mxu1 %v14581_v62  ;;  %2963 = vmatpush1.msra.mxu0 %v14632_v13  ;;  %v14634_v62 = vand.u32 4294901760, %v14584_v54  ;;  %v10573_v13 = vsub.f32 %v10473_v60, %v14635_v21  ;;  %v10591_v21 = vsub.f32 %v2285_v29, %v10533_v16  ;;  %v14643_v29 = vand.u32 4294901760, %v14590_v56 }
 0x248   : > { %3115 = vmatpush1.msra.mxu1 %v14583_v6  ;;  %v14638_v6 = vand.u32 4294901760, %v10484_v61  ;;  %v10620_v55 = vsub.f32 %v2281_v3, %v10562_v30  ;;  %v14647_v56 = vand.u32 4294901760, %v10519_v32  ;;  %v2273_v3 = vld [vmem:[%s13758_s3 + $0xf8] sm:$0xff]  ;;  %3164 = vmatprep.mubr.f32.mxu1 %v14366_v44 }
 0x249   : > { %2967 = vmatprep.subr.mxu0 %v14634_v62  ;;  %3117 = vmatprep.subr.mxu1 %v14585_v15  ;;  %14639 = vst [vmem:[#allocation35_spill] sm:$0xff] %v10591_v21  ;;  %v14641_v15 = vand.u32 4294901760, %v10495_v4  ;;  %v10607_v62 = vand.u32 4294901760, %v2276_v7  ;;  %v14659_v17 = vand.u32 4294901760, %v10591_v21 }
 0x24a   : > { %2971 = vmatpush1.msra.mxu0 %v14637_v8  ;;  %v10587_v54 = vsub.f32 %v10484_v61, %v14638_v6  ;;  %3119 = vmatpush1.msra.mxu1 %v14587_v45  ;;  %v10605_v6 = vsub.f32 %v2284_v42, %v10545_v35  ;;  %v3284_v45 = vand.u32 4294901760, %v10556_v47  ;;  %14645 = vst [vmem:[#allocation36_spill] sm:$0xff] %v10620_v55  ;;  %v14646_v42 = vand.u32 4294901760, %v14592_v46 }
 0x24b   : > { %2975 = vmatprep.subr.mxu0 %v14640_v37  ;;  %v10601_v8 = vsub.f32 %v10495_v4, %v14641_v15  ;;  %3121 = vmatprep.subr.mxu1 %v14589_v49  ;;  %v10616_v37 = vsub.f32 %v10507_v50, %v14644_v63  ;;  %v14016_v15 = vand.u32 4294901760, %v10560_v19  ;;  %v3290_v49 = vand.u32 4294901760, %v10573_v13 }
 0x24c   : > { %14642 = vst [vmem:[#allocation29_spill] sm:$0xff] %v10605_v6  ;;  %2979 = vmatpush1.msra.mxu0 %v14643_v29  ;;  %3123 = vmatpush1.msra.mxu1 %v14591_v36  ;;  %v10629_v47 = vsub.f32 %v10519_v32, %v14647_v56  ;;  %v10633_v63 = vsub.f32 %v2280_v34, %v10579_v11  ;;  %v14649_v36 = vand.u32 4294901760, %v14594_v22  ;;  %v3296_v46 = vand.u32 4294901760, %v10587_v54  ;;  %v2272_v29 = vld [vmem:[%s13758_s3 + $0xf0] sm:$0xff]  ;;  %v2269_v56 = vld [vmem:[%s13758_s3 + $0xd8] sm:$0xff] }
 0x24d   : > { %2983 = vmatprep.subr.mxu0 %v14646_v42  ;;  %3125 = vmatprep.subr.mxu1 %v14593_v38  ;;  %v14650_v13 = vand.u32 4294901760, %v10531_v40  ;;  %v10649_v34 = vsub.f32 %v2277_v51, %v10593_v5  ;;  %v14652_v38 = vand.u32 4294901760, %v14596_v9  ;;  %v3302_v22 = vand.u32 4294901760, %v10601_v8  ;;  %v2244_v32 = vld [vmem:[%s13758_s3 + $0x10] sm:$0xff] }
 0x24e   : > { %14648 = vst [vmem:[#allocation21_spill] sm:$0xff] %v10633_v63  ;;  %2987 = vmatpush1.msra.mxu0 %v14649_v36  ;;  %3127 = vmatpush1.msra.mxu1 %v14595_v48  ;;  %v14653_v54 = vand.u32 4294901760, %v10543_v12  ;;  %v10665_v51 = vsub.f32 %v2276_v7, %v10607_v62  ;;  %v14655_v48 = vand.u32 4294901760, %v14598_v58  ;;  %v3308_v9 = vand.u32 4294901760, %v10616_v37 }
 0x24f   : > { %v10645_v42 = vsub.f32 %v10531_v40, %v14650_v13  ;;  %14651 = vst [vmem:[#allocation27_spill] sm:$0xff] %v10649_v34  ;;  %2991 = vmatprep.subr.mxu0 %v14652_v38  ;;  %3129 = vmatprep.subr.mxu1 %v14597_v0  ;;  %v10677_v8 = vsub.f32 %v10560_v19, %v14016_v15  ;;  %v10680_v7 = vand.u32 4294901760, %v2273_v3  ;;  %v3314_v0 = vand.u32 4294901760, %v10629_v47  ;;  %v2265_v38 = vld [vmem:[%s13758_s3 + $0xb8] sm:$0xff]  ;;  %v2264_v19 = vld [vmem:[%s13758_s3 + $0xb0] sm:$0xff] }
 0x250   : > { %v10661_v36 = vsub.f32 %v10543_v12, %v14653_v54  ;;  %14654 = vst [vmem:[#allocation22_spill] sm:$0xff] %v10665_v51  ;;  %2995 = vmatpush1.msra.mxu0 %v14655_v48  ;;  %v2268_v54 = vld [vmem:[%s13758_s3 + $0xd0] sm:$0xff]  ;;  %3131 = vmatpush1.msra.mxu1 %v14599_v57  ;;  %v14656_v58 = vand.u32 4294901760, %v10577_v23  ;;  %v10694_v15 = vand.u32 4294901760, %v2272_v29  ;;  %v14657_v13 = vand.u32 4294901760, %v14600_v24  ;;  %v14658_v57 = vld [vmem:[#allocation61_spill] sm:$0xff] }
 0x251   : > { %3166 = vmatmul.mubr.f32.vlgmr.msra.gmra.mxu1 %v14658_v57  ;;  %v3320_v47 = vand.u32 4294901760, %v10645_v42  ;;  %3285 = vmatprep.subr.mxu1 %v3284_v45  ;;  %v14660_v24 = vand.u32 4294901760, %v14602_v53  ;;  %v14661_v42 = vand.u32 4294901760, %v10605_v6  ;;  %v10723_v48 = vand.u32 4294901760, %v2268_v54 }
 0x252   : > { %v10691_v37 = vsub.f32 %v10577_v23, %v14656_v58  ;;  %2999 = vmatprep.subr.mxu0 %v14657_v13  ;;  %v10706_v58 = vsub.f32 %v10591_v21, %v14659_v17  ;;  %v10709_v23 = vand.u32 4294901760, %v2269_v56  ;;  %v3326_v13 = vand.u32 4294901760, %v10661_v36  ;;  %v2261_v21 = vld [vmem:[%s13758_s3 + $0x98] sm:$0xff]  ;;  %3291 = vmatpush1.msra.mxu1 %v3290_v49 }
 0x253   : > { %3003 = vmatpush1.msra.mxu0 %v14660_v24  ;;  %v10720_v12 = vsub.f32 %v10605_v6, %v14661_v42  ;;  %v14662_v45 = vand.u32 4294901760, %v14603_v41  ;;  %v3332_v53 = vand.u32 4294901760, %v10677_v8  ;;  %v14663_v36 = vand.u32 4294901760, %v10620_v55  ;;  %v2260_v6 = vld [vmem:[%s13758_s3 + $0x90] sm:$0xff]  ;;  %3297 = vmatprep.subr.mxu1 %v3296_v46 }
 0x254   : > { %v10737_v42 = vsub.f32 %v2273_v3, %v10680_v7  ;;  %v10739_v17 = vand.u32 4294901760, %v2265_v38  ;;  %v14666_v41 = vand.u32 4294901760, %v14604_v28  ;;  %v3338_v49 = vand.u32 4294901760, %v10691_v37  ;;  %3303 = vmatpush1.msra.mxu1 %v3302_v22  ;;  %3060 = vmatprep.mubr.f32.mxu0 %v14366_v44 }
 0x255   : > { %3007 = vmatprep.subr.mxu0 %v14662_v45  ;;  %v10734_v24 = vsub.f32 %v10620_v55, %v14663_v36  ;;  %v14667_v8 = vand.u32 4294901760, %v10633_v63  ;;  %v10753_v3 = vsub.f32 %v2272_v29, %v10694_v15  ;;  %v10755_v36 = vand.u32 4294901760, %v2264_v19  ;;  %v2257_v55 = vld [vmem:[%s13758_s3 + $0x78] sm:$0xff]  ;;  %3309 = vmatprep.subr.mxu1 %v3308_v9 }
 0x256   : > { %14664 = vst [vmem:[#allocation38_spill] sm:$0xff] %v10737_v42  ;;  %14665 = vst [vmem:[#allocation24_spill] sm:$0xff] %v10739_v17  ;;  %3011 = vmatpush1.msra.mxu0 %v14666_v41  ;;  %v14669_v28 = vand.u32 4294901760, %v14605_v26  ;;  %v3344_v46 = vand.u32 4294901760, %v10706_v58  ;;  %v14670_v37 = vand.u32 4294901760, %v10649_v34  ;;  %v10769_v29 = vsub.f32 %v2269_v56, %v10709_v23  ;;  %3315 = vmatpush1.msra.mxu1 %v3314_v0 }
 0x257   : > { %v10750_v45 = vsub.f32 %v10633_v63, %v14667_v8  ;;  %14668 = vst [vmem:[#allocation42_spill] sm:$0xff] %v10753_v3  ;;  %v10771_v8 = vand.u32 4294901760, %v2261_v21  ;;  %v2256_v63 = vld [vmem:[%s13758_s3 + $0x70] sm:$0xff]  ;;  %v14672_v26 = vand.u32 4294901760, %v14606_v52  ;;  %v3350_v22 = vand.u32 4294901760, %v10720_v12  ;;  %3321 = vmatprep.subr.mxu1 %v3320_v47  ;;  %3504 = vmatprep.mubr.f32.mxu1 %v14366_v44 }
 0x258   : > { %3015 = vmatprep.subr.mxu0 %v14669_v28  ;;  %v10766_v41 = vsub.f32 %v10649_v34, %v14670_v37  ;;  %14671 = vst [vmem:[#allocation25_spill] sm:$0xff] %v10769_v29  ;;  %v14673_v58 = vand.u32 4294901760, %v10665_v51  ;;  %v10785_v56 = vsub.f32 %v2268_v54, %v10723_v48  ;;  %v10787_v37 = vand.u32 4294901760, %v2260_v6  ;;  %v2253_v34 = vld [vmem:[%s13758_s3 + $0x58] sm:$0xff]  ;;  %v2252_v54 = vld [vmem:[%s13758_s3 + $0x50] sm:$0xff]  ;;  %3327 = vmatpush1.msra.mxu1 %v3326_v13 }
 0x259   : > { %3019 = vmatpush1.msra.mxu0 %v14672_v26  ;;  %v14674_v52 = vand.u32 4294901760, %v14607_v25  ;;  %v3356_v12 = vand.u32 4294901760, %v10734_v24  ;;  %v14042_v9 = vand.u32 4294901760, %v10737_v42  ;;  %v10797_v26 = vsub.f32 %v2265_v38, %v10739_v17  ;;  %v2249_v38 = vld [vmem:[%s13758_s3 + $0x38] sm:$0xff]  ;;  %3333 = vmatprep.subr.mxu1 %v3332_v53 }
 0x25a   : > { %v10782_v28 = vsub.f32 %v10665_v51, %v14673_v58  ;;  %v10799_v58 = vand.u32 4294901760, %v2257_v55  ;;  %v14675_v51 = vand.u32 4294901760, %v14608_v43  ;;  %v3362_v25 = vand.u32 4294901760, %v10750_v45  ;;  %3339 = vmatpush1.msra.mxu1 %v3338_v49 }
 0x25b   : > { %3023 = vmatprep.subr.mxu0 %v14674_v52  ;;  %v10809_v24 = vsub.f32 %v2264_v19, %v10755_v36  ;;  %v10811_v52 = vand.u32 4294901760, %v2256_v63  ;;  %v3368_v47 = vand.u32 4294901760, %v10766_v41  ;;  %v10822_v45 = vand.u32 4294901760, %v2253_v34  ;;  %v2248_v19 = vld [vmem:[%s13758_s3 + $0x30] sm:$0xff]  ;;  %3345 = vmatprep.subr.mxu1 %v3344_v46 }
 0x25c   : > { %3027 = vmatpush1.msra.mxu0 %v14675_v51  ;;  %v10820_v51 = vsub.f32 %v2261_v21, %v10771_v8  ;;  %v3374_v0 = vand.u32 4294901760, %v10782_v28  ;;  %v10832_v41 = vsub.f32 %v2260_v6, %v10787_v37  ;;  %v10834_v43 = vand.u32 4294901760, %v2252_v54  ;;  %v2245_v21 = vld [vmem:[%s13758_s3 + $0x18] sm:$0xff]  ;;  %3351 = vmatpush1.msra.mxu1 %v3350_v22 }
 0x25d   : > { %3062 = vmatmul.mubr.f32.vlgmr.msra.gmra.mxu0 %v14658_v57  ;;  %3173 = vmatprep.subr.mxu0 %v10429_v1  ;;  %v3379_v40 = vsub.f32 %v10737_v42, %v14042_v9  ;;  %v10845_v13 = vsub.f32 %v2257_v55, %v10799_v58  ;;  %v10847_v6 = vand.u32 4294901760, %v2249_v38  ;;  %v14677_v53 = vand.u32 4294901760, %v10753_v3 }
 0x25e   : > { %14676 = vst [vmem:[#allocation44_spill] sm:$0xff] %v10834_v43  ;;  %3175 = vmatpush1.msra.mxu0 %v10437_v18  ;;  %v10858_v28 = vsub.f32 %v2256_v63, %v10811_v52  ;;  %v10860_v55 = vand.u32 4294901760, %v2248_v19  ;;  %v14678_v42 = vand.u32 4294901760, %v10769_v29  ;;  %v10868_v61 = vsub.f32 %v2253_v34, %v10822_v45  ;;  %3357 = vmatprep.subr.mxu1 %v3356_v12 }
 0x25f   : > { %3177 = vmatprep.subr.mxu0 %v10445_v31  ;;  %v3385_v50 = vsub.f32 %v10753_v3, %v14677_v53  ;;  %v10870_v53 = vand.u32 4294901760, %v2245_v21  ;;  %v14679_v63 = vand.u32 4294901760, %v10785_v56  ;;  %v10878_v3 = vsub.f32 %v2252_v54, %v10834_v43  ;;  %3363 = vmatpush1.msra.mxu1 %v3362_v25 }
 0x260   : > { %3179 = vmatpush1.msra.mxu0 %v10453_v14  ;;  %v3391_v49 = vsub.f32 %v10769_v29, %v14678_v42  ;;  %v10880_v42 = vand.u32 4294901760, %v2244_v32  ;;  %v3380_v34 = vand.u32 4294901760, %v3379_v40  ;;  %v14680_v4 = vand.u32 4294901760, %v10797_v26  ;;  %3369 = vmatprep.subr.mxu1 %v3368_v47 }
 0x261   : > { %3181 = vmatprep.subr.mxu0 %v10464_v10  ;;  %v3397_v46 = vsub.f32 %v10785_v56, %v14679_v63  ;;  %v10888_v60 = vsub.f32 %v2249_v38, %v10847_v6  ;;  %v3386_v54 = vand.u32 4294901760, %v3385_v50  ;;  %v14681_v63 = vand.u32 4294901760, %v10809_v24  ;;  %3375 = vmatpush1.msra.mxu1 %v3374_v0 }
 0x262   : > { %3183 = vmatpush1.msra.mxu0 %v10475_v59  ;;  %v3403_v22 = vsub.f32 %v10797_v26, %v14680_v4  ;;  %v10896_v40 = vsub.f32 %v2248_v19, %v10860_v55  ;;  %v3392_v4 = vand.u32 4294901760, %v3391_v49  ;;  %v14682_v38 = vand.u32 4294901760, %v10820_v51  ;;  %3381 = vmatprep.subr.mxu1 %v3380_v34 }
 0x263   : > { %3185 = vmatprep.subr.mxu0 %v10486_v27  ;;  %v3409_v12 = vsub.f32 %v10809_v24, %v14681_v63  ;;  %v10904_v50 = vsub.f32 %v2245_v21, %v10870_v53  ;;  %v3398_v63 = vand.u32 4294901760, %v3397_v46  ;;  %v14683_v19 = vand.u32 4294901760, %v10832_v41  ;;  %3387 = vmatpush1.msra.mxu1 %v3386_v54 }
 0x264   : > { %3187 = vmatpush1.msra.mxu0 %v10497_v2  ;;  %v3415_v25 = vsub.f32 %v10820_v51, %v14682_v38  ;;  %v10912_v49 = vsub.f32 %v2244_v32, %v10880_v42  ;;  %v3404_v38 = vand.u32 4294901760, %v3403_v22  ;;  %v14684_v21 = vand.u32 4294901760, %v10845_v13  ;;  %3393 = vmatprep.subr.mxu1 %v3392_v4 }
 0x265   : > { %3189 = vmatprep.subr.mxu0 %v10509_v39  ;;  %v3421_v47 = vsub.f32 %v10832_v41, %v14683_v19  ;;  %v3410_v46 = vand.u32 4294901760, %v3409_v12  ;;  %v14685_v19 = vand.u32 4294901760, %v10858_v28  ;;  %v14686_v22 = vand.u32 4294901760, %v10868_v61  ;;  %3399 = vmatpush1.msra.mxu1 %v3398_v63 }
 0x266   : > { %3191 = vmatpush1.msra.mxu0 %v10521_v20  ;;  %v3427_v0 = vsub.f32 %v10845_v13, %v14684_v21  ;;  %v3416_v34 = vand.u32 4294901760, %v3415_v25  ;;  %v14687_v12 = vand.u32 4294901760, %v10878_v3  ;;  %v14055_v32 = vand.u32 4294901760, %v10912_v49  ;;  %3405 = vmatprep.subr.mxu1 %v3404_v38 }
 0x267   : > { %3193 = vmatprep.subr.mxu0 %v10533_v16  ;;  %v3433_v9 = vsub.f32 %v10858_v28, %v14685_v19  ;;  %v3439_v21 = vsub.f32 %v10868_v61, %v14686_v22  ;;  %v3422_v54 = vand.u32 4294901760, %v3421_v47  ;;  %v14688_v25 = vand.u32 4294901760, %v10888_v60  ;;  %3411 = vmatpush1.msra.mxu1 %v3410_v46 }
 0x268   : > { %3195 = vmatpush1.msra.mxu0 %v10545_v35  ;;  %v3445_v19 = vsub.f32 %v10878_v3, %v14687_v12  ;;  %v3428_v4 = vand.u32 4294901760, %v3427_v0  ;;  %v14689_v47 = vand.u32 4294901760, %v10896_v40  ;;  %3417 = vmatprep.subr.mxu1 %v3416_v34  ;;  %v14690_v38 = vand.u32 4294901760, %v10904_v50 }
 0x269   : > { %3197 = vmatprep.subr.mxu0 %v10562_v30  ;;  %v3451_v22 = vsub.f32 %v10888_v60, %v14688_v25  ;;  %v3434_v63 = vand.u32 4294901760, %v3433_v9  ;;  %v3440_v12 = vand.u32 4294901760, %v3439_v21  ;;  %3423 = vmatpush1.msra.mxu1 %v3422_v54  ;;  %v3469_v9 = vsub.f32 %v10912_v49, %v14055_v32  ;;  %v14707_v32 = vld [vmem:[#allocation38_spill] sm:$0xff] }
 0x26a   : > { %3199 = vmatpush1.msra.mxu0 %v10579_v11  ;;  %v3457_v29 = vsub.f32 %v10896_v40, %v14689_v47  ;;  %v3463_v0 = vsub.f32 %v10904_v50, %v14690_v38  ;;  %v3446_v25 = vand.u32 4294901760, %v3445_v19  ;;  %3429 = vmatprep.subr.mxu1 %v3428_v4  ;;  %v14692_v19 = vld [vmem:[#allocation17_spill] sm:$0xff]  ;;  %v14693_v4 = vld [vmem:[#allocation20_spill] sm:$0xff]  ;;  %v14696_v47 = vld [vmem:[#allocation19_spill] sm:$0xff] }
 0x26b   : > { %3201 = vmatprep.subr.mxu0 %v10593_v5  ;;  %v3452_v46 = vand.u32 4294901760, %v3451_v22  ;;  %3435 = vmatpush1.msra.mxu1 %v3434_v63  ;;  %v3470_v54 = vand.u32 4294901760, %v3469_v9  ;;  %v14694_v22 = vld [vmem:[#allocation16_spill] sm:$0xff]  ;;  %v14695_v63 = vld [vmem:[#allocation23_spill] sm:$0xff]  ;;  %v14698_v38 = vld [vmem:[#allocation26_spill] sm:$0xff] }
 0x26c   : > { %3203 = vmatpush1.msra.mxu0 %v10607_v62  ;;  %v3458_v34 = vand.u32 4294901760, %v3457_v29  ;;  %3441 = vmatprep.subr.mxu1 %v3440_v12  ;;  %v3464_v21 = vand.u32 4294901760, %v3463_v0  ;;  %v14691_v29 = vld [vmem:[#allocation64_spill] sm:$0xff]  ;;  %v14699_v0 = vld [vmem:[#allocation30_spill] sm:$0xff]  ;;  %v14701_v9 = vld [vmem:[#allocation35_spill] sm:$0xff] }
 0x26d   : > { %3205 = vmatprep.subr.mxu0 %v10680_v7  ;;  %3447 = vmatpush1.msra.mxu1 %v3446_v25  ;;  %v14697_v12 = vld [vmem:[#allocation32_spill] sm:$0xff]  ;;  %v14700_v25 = vld [vmem:[#allocation18_spill] sm:$0xff] }
 0x26e   : > { %3207 = vmatpush1.msra.mxu0 %v10694_v15  ;;  %3453 = vmatprep.subr.mxu1 %v3452_v46  ;;  %v14702_v46 = vld [vmem:[#allocation29_spill] sm:$0xff] }
 0x26f   : > { %3209 = vmatprep.subr.mxu0 %v10709_v23  ;;  %3459 = vmatpush1.msra.mxu1 %v3458_v34  ;;  %v14703_v34 = vld [vmem:[#allocation36_spill] sm:$0xff] }
 0x270   : > { %3211 = vmatpush1.msra.mxu0 %v10723_v48  ;;  %3465 = vmatprep.subr.mxu1 %v3464_v21  ;;  %v14704_v21 = vld [vmem:[#allocation21_spill] sm:$0xff] }
 0x271   : > { %3213 = vmatprep.subr.mxu0 %v10739_v17  ;;  %3471 = vmatpush1.msra.mxu1 %v3470_v54  ;;  %v14705_v54 = vld [vmem:[#allocation27_spill] sm:$0xff] }
 0x272   : > { %3215 = vmatpush1.msra.mxu0 %v10755_v36  ;;  %3506 = vmatmul.mubr.f32.vlgmr.msra.gmra.mxu1 %v14658_v57  ;;  %v14708_v57 = vld [vmem:[#allocation42_spill] sm:$0xff] }
 0x273   : > { %3217 = vmatprep.subr.mxu0 %v10771_v8  ;;  %3650 = vmatprep.subr.mxu1 %v10429_v1 }
 0x274   : > { %3219 = vmatpush1.msra.mxu0 %v10787_v37  ;;  %3652 = vmatpush1.msra.mxu1 %v10437_v18 }
 0x275   : > { %3221 = vmatprep.subr.mxu0 %v10799_v58  ;;  %3654 = vmatprep.subr.mxu1 %v10445_v31 }
 0x276   : > { %3223 = vmatpush1.msra.mxu0 %v10811_v52  ;;  %3656 = vmatpush1.msra.mxu1 %v10453_v14 }
 0x277   : > { %3225 = vmatprep.subr.mxu0 %v10822_v45  ;;  %3658 = vmatprep.subr.mxu1 %v10464_v10 }
 0x278   : > { %3227 = vmatpush1.msra.mxu0 %v10834_v43  ;;  %3660 = vmatpush1.msra.mxu1 %v10475_v59 }
 0x279   : > { %3229 = vmatprep.subr.mxu0 %v10847_v6  ;;  %3662 = vmatprep.subr.mxu1 %v10486_v27 }
 0x27a   : > { %3231 = vmatpush1.msra.mxu0 %v10860_v55  ;;  %3268 = vmatprep.mubr.f32.mxu0 %v14366_v44 }
 0x27b   : > { %3233 = vmatprep.subr.mxu0 %v10870_v53  ;;  %3664 = vmatpush1.msra.mxu1 %v10497_v2 }
 0x27c   : > { %3235 = vmatpush1.msra.mxu0 %v10880_v42  ;;  %3666 = vmatprep.subr.mxu1 %v10509_v39 }
 0x27d   : > { %3274 = vmatmul.mubr.f32.vlgmr.msra.gmra.mxu0 %v14691_v29  ;;  %3514 = vmatprep.subr.mxu0 %v10462_v33  ;;  %v14706_v29 = vld [vmem:[#allocation22_spill] sm:$0xff] }
 0x27e   : > { %3517 = vmatpush1.msra.mxu0 %v14692_v19  ;;  %3668 = vmatpush1.msra.mxu1 %v10521_v20 }
 0x27f   : > { %3520 = vmatprep.subr.mxu0 %v14693_v4  ;;  %3670 = vmatprep.subr.mxu1 %v10533_v16 }
 0x280   : > { %3523 = vmatpush1.msra.mxu0 %v14694_v22  ;;  %3672 = vmatpush1.msra.mxu1 %v10545_v35 }
 0x281   : > { %3526 = vmatprep.subr.mxu0 %v14695_v63  ;;  %3674 = vmatprep.subr.mxu1 %v10562_v30 }
 0x282   : > { %3529 = vmatpush1.msra.mxu0 %v14696_v47  ;;  %3676 = vmatpush1.msra.mxu1 %v10579_v11 }
 0x283   : > { %3532 = vmatprep.subr.mxu0 %v14697_v12  ;;  %3678 = vmatprep.subr.mxu1 %v10593_v5 }
 0x284   : > { %3535 = vmatpush1.msra.mxu0 %v14698_v38  ;;  %3680 = vmatpush1.msra.mxu1 %v10607_v62 }
 0x285   : > { %3538 = vmatprep.subr.mxu0 %v14699_v0  ;;  %3682 = vmatprep.subr.mxu1 %v10680_v7 }
 0x286   : > { %3541 = vmatpush1.msra.mxu0 %v14700_v25  ;;  %3684 = vmatpush1.msra.mxu1 %v10694_v15 }
 0x287   : > { %3544 = vmatprep.subr.mxu0 %v14701_v9  ;;  %3686 = vmatprep.subr.mxu1 %v10709_v23 }
 0x288   : > { %3547 = vmatpush1.msra.mxu0 %v14702_v46  ;;  %3688 = vmatpush1.msra.mxu1 %v10723_v48 }
 0x289   : > { %3550 = vmatprep.subr.mxu0 %v14703_v34  ;;  %3690 = vmatprep.subr.mxu1 %v10739_v17  ;;  %v14709_v17 = vld [vmem:[#allocation25_spill] sm:$0xff] }
 0x28a   : > { %3553 = vmatpush1.msra.mxu0 %v14704_v21  ;;  %3692 = vmatpush1.msra.mxu1 %v10755_v36 }
 0x28b   : > { %3556 = vmatprep.subr.mxu0 %v14705_v54  ;;  %3694 = vmatprep.subr.mxu1 %v10771_v8 }
 0x28c   : > { %3559 = vmatpush1.msra.mxu0 %v14706_v29  ;;  %3696 = vmatpush1.msra.mxu1 %v10787_v37 }
 0x28d   : > { %3562 = vmatprep.subr.mxu0 %v14707_v32  ;;  %3698 = vmatprep.subr.mxu1 %v10799_v58 }
 0x28e   : > { %3565 = vmatpush1.msra.mxu0 %v14708_v57  ;;  %3700 = vmatpush1.msra.mxu1 %v10811_v52 }
 0x28f   : > { %3568 = vmatprep.subr.mxu0 %v14709_v17  ;;  %3702 = vmatprep.subr.mxu1 %v10822_v45 }
 0x290   : > { %3571 = vmatpush1.msra.mxu0 %v10785_v56  ;;  %3704 = vmatpush1.msra.mxu1 %v10834_v43  ;;  %v14710_v43 = vld [vmem:[#allocation63_spill] sm:$0xff] }
 0x291   : > { %3574 = vmatprep.subr.mxu0 %v10797_v26  ;;  %3706 = vmatprep.subr.mxu1 %v10847_v6 }
 0x292   : > { %3577 = vmatpush1.msra.mxu0 %v10809_v24  ;;  %3708 = vmatpush1.msra.mxu1 %v10860_v55 }
 0x293   : > { %3580 = vmatprep.subr.mxu0 %v10820_v51  ;;  %3710 = vmatprep.subr.mxu1 %v10870_v53 }
 0x294   : > { %3583 = vmatpush1.msra.mxu0 %v10832_v41  ;;  %3712 = vmatpush1.msra.mxu1 %v10880_v42 }
 0x295   : > { %3745 = vmatprep.mubr.f32.mxu1 %v14366_v44  ;;  %3586 = vmatprep.subr.mxu0 %v10845_v13 }
 0x296   : > { %3749 = vmatmul.mubr.f32.vlgmr.msra.gmra.mxu1 %v14710_v43  ;;  %3924 = vmatprep.subr.mxu1 %v10429_v1  ;;  %v14711_v1 = vld [vmem:[#allocation62_spill] sm:$0xff]  ;;  %v14742_v43 = vand.u32 4294901760, %v10878_v3 }
 0x297   : > { %3589 = vmatpush1.msra.mxu0 %v10858_v28  ;;  %3926 = vmatpush1.msra.mxu1 %v10437_v18  ;;  %v14712_v18 = vand.u32 4294901760, %v10462_v33  ;;  %v14716_v33 = vand.u32 4294901760, %v14695_v63 }
 0x298   : > { %3592 = vmatprep.subr.mxu0 %v10868_v61  ;;  %3928 = vmatprep.subr.mxu1 %v10445_v31  ;;  %v14713_v31 = vand.u32 4294901760, %v14692_v19 }
 0x299   : > { %3595 = vmatpush1.msra.mxu0 %v10878_v3  ;;  %3930 = vmatpush1.msra.mxu1 %v10453_v14  ;;  %v14714_v14 = vand.u32 4294901760, %v14693_v4 }
 0x29a   : > { %3598 = vmatprep.subr.mxu0 %v10888_v60  ;;  %3932 = vmatprep.subr.mxu1 %v10464_v10  ;;  %v14715_v10 = vand.u32 4294901760, %v14694_v22  ;;  %v4128_v22 = vld [vmem:[%s13758_s3 + $0x1a0] sm:$0xff] }
 0x29b   : > { %3601 = vmatpush1.msra.mxu0 %v10896_v40  ;;  %3934 = vmatpush1.msra.mxu1 %v10475_v59  ;;  %v14717_v59 = vand.u32 4294901760, %v14696_v47 }
 0x29c   : > { %3604 = vmatprep.subr.mxu0 %v10904_v50  ;;  %3936 = vmatprep.subr.mxu1 %v10486_v27  ;;  %v14718_v27 = vand.u32 4294901760, %v14697_v12  ;;  %v11184_v12 = vand.u32 4294901760, %v4128_v22 }
 0x29d   : > { %3607 = vmatpush1.msra.mxu0 %v10912_v49  ;;  %3640 = vmatprep.mubr.f32.mxu0 %v14366_v44 }
 0x29e   : > { %3938 = vmatpush1.msra.mxu1 %v10497_v2  ;;  %3643 = vmatmul.mubr.f32.vlgmr.msra.gmra.mxu0 %v14711_v1  ;;  %v14719_v2 = vand.u32 4294901760, %v14698_v38  ;;  %v4125_v38 = vld [vmem:[%s13758_s3 + $0x188] sm:$0xff] }
 0x29f   : > { %3758 = vmatprep.subr.mxu0 %v14712_v18  ;;  %3940 = vmatprep.subr.mxu1 %v10509_v39  ;;  %v14720_v39 = vand.u32 4294901760, %v14699_v0  ;;  %v4121_v18 = vld [vmem:[%s13758_s3 + $0x168] sm:$0xff] }
 0x2a0   : > { %3762 = vmatpush1.msra.mxu0 %v14713_v31  ;;  %3942 = vmatpush1.msra.mxu1 %v10521_v20  ;;  %v14721_v20 = vand.u32 4294901760, %v14700_v25 }
 0x2a1   : > { %3766 = vmatprep.subr.mxu0 %v14714_v14  ;;  %3944 = vmatprep.subr.mxu1 %v10533_v16  ;;  %v14722_v16 = vand.u32 4294901760, %v14701_v9 }
 0x2a2   : > { %3770 = vmatpush1.msra.mxu0 %v14715_v10  ;;  %3946 = vmatpush1.msra.mxu1 %v10545_v35  ;;  %v14724_v35 = vand.u32 4294901760, %v14703_v34  ;;  %v4124_v34 = vld [vmem:[%s13758_s3 + $0x180] sm:$0xff] }
 0x2a3   : > { %3774 = vmatprep.subr.mxu0 %v14716_v33  ;;  %3948 = vmatprep.subr.mxu1 %v10562_v30  ;;  %v14726_v30 = vand.u32 4294901760, %v14704_v21  ;;  %v11210_v1 = vand.u32 4294901760, %v4124_v34 }
 0x2a4   : > { %3778 = vmatpush1.msra.mxu0 %v14717_v59  ;;  %3950 = vmatpush1.msra.mxu1 %v10579_v11  ;;  %v14725_v11 = vld [vmem:[#allocation24_spill] sm:$0xff]  ;;  %v4120_v59 = vld [vmem:[%s13758_s3 + $0x160] sm:$0xff] }
 0x2a5   : > { %3782 = vmatprep.subr.mxu0 %v14718_v27  ;;  %3952 = vmatprep.subr.mxu1 %v10593_v5  ;;  %v14723_v5 = vand.u32 4294901760, %v14702_v46  ;;  %v11197_v46 = vand.u32 4294901760, %v4125_v38 }
 0x2a6   : > { %3786 = vmatpush1.msra.mxu0 %v14719_v2  ;;  %3954 = vmatpush1.msra.mxu1 %v10607_v62  ;;  %v14727_v62 = vand.u32 4294901760, %v14705_v54 }
 0x2a7   : > { %3790 = vmatprep.subr.mxu0 %v14720_v39  ;;  %3956 = vmatprep.subr.mxu1 %v10680_v7  ;;  %v14730_v7 = vand.u32 4294901760, %v14708_v57  ;;  %v14735_v57 = vand.u32 4294901760, %v10809_v24  ;;  %v14740_v24 = vand.u32 4294901760, %v10858_v28  ;;  %v11221_v33 = vsub.f32 %v4125_v38, %v11197_v46 }
 0x2a8   : > { %3794 = vmatpush1.msra.mxu0 %v14721_v20  ;;  %3958 = vmatpush1.msra.mxu1 %v10694_v15  ;;  %v14729_v15 = vand.u32 4294901760, %v14707_v32  ;;  %v11232_v20 = vsub.f32 %v4124_v34, %v11210_v1 }
 0x2a9   : > { %3798 = vmatprep.subr.mxu0 %v14722_v16  ;;  %3960 = vmatprep.subr.mxu1 %v10709_v23  ;;  %v14728_v23 = vand.u32 4294901760, %v14706_v29  ;;  %v11208_v29 = vsub.f32 %v4128_v22, %v11184_v12  ;;  %v4117_v16 = vld [vmem:[%s13758_s3 + $0x148] sm:$0xff] }
 0x2aa   : > { %3802 = vmatpush1.msra.mxu0 %v14723_v5  ;;  %3962 = vmatpush1.msra.mxu1 %v10723_v48  ;;  %v14731_v48 = vand.u32 4294901760, %v14709_v17  ;;  %v14736_v17 = vand.u32 4294901760, %v10820_v51  ;;  %v14743_v51 = vand.u32 4294901760, %v10888_v60  ;;  %v4136_v60 = vld [vmem:[%s13758_s3 + $0x1e0] sm:$0xff] }
 0x2ab   : > { %3806 = vmatprep.subr.mxu0 %v14724_v35  ;;  %3964 = vmatprep.subr.mxu1 %v14725_v11  ;;  %v11147_v28 = vand.u32 4294901760, %v4136_v60  ;;  %v14072_v39 = vand.u32 4294901760, %v11208_v29  ;;  %v14071_v11 = vand.u32 4294901760, %v11221_v33 }
 0x2ac   : > { %3810 = vmatpush1.msra.mxu0 %v14726_v30  ;;  %3966 = vmatpush1.msra.mxu1 %v10755_v36  ;;  %v14732_v36 = vand.u32 4294901760, %v10785_v56  ;;  %v14737_v56 = vand.u32 4294901760, %v10832_v41  ;;  %v14746_v41 = vand.u32 4294901760, %v10912_v49  ;;  %v4129_v49 = vld [vmem:[%s13758_s3 + $0x1a8] sm:$0xff]  ;;  %v11242_v30 = vand.u32 4294901760, %v4121_v18 }
 0x2ad   : > { %3814 = vmatprep.subr.mxu0 %v14727_v62  ;;  %3968 = vmatprep.subr.mxu1 %v10771_v8  ;;  %v14733_v8 = vld [vmem:[#allocation44_spill] sm:$0xff]  ;;  %v11174_v4 = vand.u32 4294901760, %v4129_v49  ;;  %v4116_v62 = vld [vmem:[%s13758_s3 + $0x140] sm:$0xff] }
 0x2ae   : > { %3818 = vmatpush1.msra.mxu0 %v14728_v23  ;;  %3970 = vmatpush1.msra.mxu1 %v10787_v37  ;;  %v14734_v37 = vand.u32 4294901760, %v10797_v26  ;;  %v14738_v26 = vand.u32 4294901760, %v10845_v13  ;;  %v14745_v13 = vand.u32 4294901760, %v10904_v50 }
 0x2af   : > { %3822 = vmatprep.subr.mxu0 %v14729_v15  ;;  %3972 = vmatprep.subr.mxu1 %v10799_v58  ;;  %v14739_v58 = vld [vmem:[#allocation61_spill] sm:$0xff]  ;;  %v11195_v9 = vsub.f32 %v4129_v49, %v11174_v4  ;;  %v4292_v15 = vsub.f32 %v11208_v29, %v14072_v39  ;;  %v4088_v39 = vld [vmem:[%s13758_s3 + $0x60] sm:$0xff] }
 0x2b0   : > { %3826 = vmatpush1.msra.mxu0 %v14730_v7  ;;  %3974 = vmatpush1.msra.mxu1 %v10811_v52  ;;  %v14741_v52 = vand.u32 4294901760, %v10868_v61  ;;  %v4137_v61 = vld [vmem:[%s13758_s3 + $0x1e8] sm:$0xff]  ;;  %v14070_v7 = vand.u32 4294901760, %v11232_v20 }
 0x2b1   : > { %3830 = vmatprep.subr.mxu0 %v14731_v48  ;;  %3976 = vmatprep.subr.mxu1 %v10822_v45  ;;  %v14744_v45 = vand.u32 4294901760, %v10896_v40  ;;  %v11142_v3 = vand.u32 4294901760, %v4137_v61  ;;  %v11162_v40 = vsub.f32 %v4136_v60, %v11147_v28  ;;  %v14074_v10 = vand.u32 4294901760, %v11195_v9 }
 0x2b2   : > { %3834 = vmatpush1.msra.mxu0 %v14732_v36  ;;  %3978 = vmatpush1.msra.mxu1 %v14733_v8  ;;  %v11251_v48 = vand.u32 4294901760, %v4120_v59  ;;  %v4113_v36 = vld [vmem:[%s13758_s3 + $0x128] sm:$0xff] }
 0x2b3   : > { %3838 = vmatprep.subr.mxu0 %v14734_v37  ;;  %3980 = vmatprep.subr.mxu1 %v10847_v6  ;;  %14747 = vst [vmem:[#allocation37_spill] sm:$0xff] %v11142_v3  ;;  %v4133_v6 = vld [vmem:[%s13758_s3 + $0x1c8] sm:$0xff]  ;;  %v14078_v63 = vand.u32 4294901760, %v11162_v40  ;;  %v4286_v35 = vsub.f32 %v11195_v9, %v14074_v10  ;;  %v4298_v37 = vsub.f32 %v11221_v33, %v14071_v11 }
 0x2b4   : > { %3842 = vmatpush1.msra.mxu0 %v14735_v57  ;;  %3982 = vmatpush1.msra.mxu1 %v10860_v55  ;;  %v11153_v55 = vsub.f32 %v4137_v61, %v11142_v3  ;;  %v11260_v57 = vsub.f32 %v4121_v18, %v11242_v30  ;;  %v4108_v61 = vld [vmem:[%s13758_s3 + $0x100] sm:$0xff] }
 0x2b5   : > { %3846 = vmatprep.subr.mxu0 %v14736_v17  ;;  %3984 = vmatprep.subr.mxu1 %v10870_v53  ;;  %v11155_v53 = vand.u32 4294901760, %v4133_v6  ;;  %v4268_v21 = vsub.f32 %v11162_v40, %v14078_v63  ;;  %v4287_v8 = vand.u32 4294901760, %v4286_v35  ;;  %v11262_v17 = vand.u32 4294901760, %v4117_v16  ;;  %v4104_v35 = vld [vmem:[%s13758_s3 + $0xe0] sm:$0xff] }
 0x2b6   : > { %3850 = vmatpush1.msra.mxu0 %v14737_v56  ;;  %3986 = vmatpush1.msra.mxu1 %v10880_v42  ;;  %14748 = vst [vmem:[#allocation46_spill] sm:$0xff] %v11153_v55  ;;  %v4132_v42 = vld [vmem:[%s13758_s3 + $0x1c0] sm:$0xff]  ;;  %v14080_v32 = vand.u32 4294901760, %v11153_v55  ;;  %v11461_v63 = vand.u32 4294901760, %v4088_v39 }
 0x2b7   : > { %4019 = vmatprep.mubr.f32.mxu1 %v14366_v44  ;;  %3854 = vmatprep.subr.mxu0 %v14738_v26  ;;  %v11164_v50 = vand.u32 4294901760, %v4132_v42  ;;  %v11172_v19 = vsub.f32 %v4133_v6, %v11155_v53  ;;  %v4269_v27 = vand.u32 4294901760, %v4268_v21  ;;  %v4112_v56 = vld [vmem:[%s13758_s3 + $0x120] sm:$0xff]  ;;  %v4293_v26 = vand.u32 4294901760, %v4292_v15 }
 0x2b8   : > { %4021 = vmatmul.mubr.f32.vlgmr.msra.gmra.mxu1 %v14739_v58  ;;  %3858 = vmatpush1.msra.mxu0 %v14740_v24  ;;  %v4262_v0 = vsub.f32 %v11153_v55, %v14080_v32  ;;  %v11272_v24 = vsub.f32 %v4120_v59, %v11251_v48  ;;  %v11294_v49 = vand.u32 4294901760, %v4112_v56  ;;  %v4105_v59 = vld [vmem:[%s13758_s3 + $0xe8] sm:$0xff]  ;;  %14761 = vst [vmem:[#allocation20_spill] sm:$0xff] %v11461_v63 }
 0x2b9   : > { %3915 = vmatprep.mubr.f32.mxu0 %v14366_v44  ;;  %3862 = vmatprep.subr.mxu0 %v14741_v52  ;;  %v11182_v47 = vsub.f32 %v4132_v42, %v11164_v50  ;;  %v14077_v25 = vand.u32 4294901760, %v11172_v19  ;;  %v11274_v52 = vand.u32 4294901760, %v4116_v62 }
 0x2ba   : > { %4483 = vmatprep.mubr.f32.mxu1 %v14366_v44  ;;  %3866 = vmatpush1.msra.mxu0 %v14742_v43  ;;  %v4263_v31 = vand.u32 4294901760, %v4262_v0  ;;  %v4109_v43 = vld [vmem:[%s13758_s3 + $0x108] sm:$0xff]  ;;  %v14066_v6 = vand.u32 4294901760, %v11272_v24 }
 0x2bb   : > { %3870 = vmatprep.subr.mxu0 %v14743_v51  ;;  %v14076_v54 = vand.u32 4294901760, %v11182_v47  ;;  %v4274_v14 = vsub.f32 %v11172_v19, %v14077_v25  ;;  %v4299_v51 = vand.u32 4294901760, %v4298_v37  ;;  %v11292_v42 = vsub.f32 %v4116_v62, %v11274_v52 }
 0x2bc   : > { %3874 = vmatpush1.msra.mxu0 %v14744_v45  ;;  %4264 = vmatprep.subr.mxu1 %v4263_v31  ;;  %v14068_v45 = vand.u32 4294901760, %v11260_v57  ;;  %v11304_v34 = vand.u32 4294901760, %v4109_v43  ;;  %v4316_v21 = vsub.f32 %v11272_v24, %v14066_v6  ;;  %v11312_v31 = vsub.f32 %v4112_v56, %v11294_v49 }
 0x2bd   : > { %3878 = vmatprep.subr.mxu0 %v14745_v13  ;;  %v4280_v2 = vsub.f32 %v11182_v47, %v14076_v54  ;;  %v4275_v5 = vand.u32 4294901760, %v4274_v14  ;;  %4270 = vmatpush1.msra.mxu1 %v4269_v27  ;;  %v11282_v13 = vsub.f32 %v4117_v16, %v11262_v17  ;;  %v14063_v18 = vand.u32 4294901760, %v11292_v42 }
 0x2be   : > { %3882 = vmatpush1.msra.mxu0 %v14746_v41  ;;  %v11284_v41 = vand.u32 4294901760, %v4113_v36  ;;  %v4310_v22 = vsub.f32 %v11260_v57, %v14068_v45  ;;  %v11314_v14 = vand.u32 4294901760, %v4108_v61  ;;  %v4317_v62 = vand.u32 4294901760, %v4316_v21 }
 0x2bf   : > { %3917 = vmatmul.mubr.f32.vlgmr.msra.gmra.mxu0 %v14739_v58  ;;  %4152 = vmatprep.subr.mxu0 %v11142_v3  ;;  %v4281_v23 = vand.u32 4294901760, %v4280_v2  ;;  %v4304_v58 = vsub.f32 %v11232_v20, %v14070_v7  ;;  %v14065_v38 = vand.u32 4294901760, %v11282_v13  ;;  %v14059_v15 = vand.u32 4294901760, %v11312_v31 }
 0x2c0   : > { %4247 = vmatprep.mubr.f32.mxu0 %v14366_v44  ;;  %4154 = vmatpush1.msra.mxu0 %v11147_v28  ;;  %v11302_v0 = vsub.f32 %v4113_v36, %v11284_v41  ;;  %v4311_v27 = vand.u32 4294901760, %v4310_v22  ;;  %v11336_v36 = vsub.f32 %v4108_v61, %v11314_v14  ;;  %v4100_v22 = vld [vmem:[%s13758_s3 + $0xc0] sm:$0xff] }
 0x2c1   : > { %4156 = vmatprep.subr.mxu0 %v11155_v53  ;;  %4276 = vmatprep.subr.mxu1 %v4275_v5  ;;  %v4305_v60 = vand.u32 4294901760, %v4304_v58  ;;  %v4322_v2 = vsub.f32 %v11282_v13, %v14065_v38  ;;  %v11325_v5 = vsub.f32 %v4109_v43, %v11304_v34  ;;  %v11346_v58 = vand.u32 4294901760, %v4105_v59 }
 0x2c2   : > { %4158 = vmatpush1.msra.mxu0 %v11164_v50  ;;  %4282 = vmatpush1.msra.mxu1 %v4281_v23  ;;  %v14062_v16 = vand.u32 4294901760, %v11302_v0  ;;  %v4328_v23 = vsub.f32 %v11292_v42, %v14063_v18  ;;  %14749 = vst [vmem:[#allocation31_spill] sm:$0xff] %v11336_v36  ;;  %v14061_v61 = vand.u32 4294901760, %v11336_v36 }
 0x2c3   : > { %4160 = vmatprep.subr.mxu0 %v11174_v4  ;;  %4288 = vmatprep.subr.mxu1 %v4287_v8  ;;  %v4101_v8 = vld [vmem:[%s13758_s3 + $0xc8] sm:$0xff]  ;;  %v4323_v37 = vand.u32 4294901760, %v4322_v2  ;;  %v11361_v2 = vsub.f32 %v4105_v59, %v11346_v58 }
 0x2c4   : > { %4162 = vmatpush1.msra.mxu0 %v11184_v12  ;;  %4294 = vmatpush1.msra.mxu1 %v4293_v26  ;;  %v4334_v56 = vsub.f32 %v11302_v0, %v14062_v16  ;;  %v14060_v26 = vand.u32 4294901760, %v11325_v5  ;;  %v4329_v43 = vand.u32 4294901760, %v4328_v23 }
 0x2c5   : > { %4164 = vmatprep.subr.mxu0 %v11197_v46  ;;  %4300 = vmatprep.subr.mxu1 %v4299_v51  ;;  %v4340_v51 = vsub.f32 %v11312_v31, %v14059_v15  ;;  %14750 = vst [vmem:[#allocation39_spill] sm:$0xff] %v11361_v2  ;;  %v4352_v15 = vsub.f32 %v11336_v36, %v14061_v61  ;;  %v14778_v36 = vld [vmem:[#allocation50_spill] sm:$0xff] }
 0x2c6   : > { %4166 = vmatpush1.msra.mxu0 %v11210_v1  ;;  %4306 = vmatpush1.msra.mxu1 %v4305_v60  ;;  %v11352_v60 = vand.u32 4294901760, %v4104_v35  ;;  %v4335_v21 = vand.u32 4294901760, %v4334_v56  ;;  %v4097_v56 = vld [vmem:[%s13758_s3 + $0xa8] sm:$0xff] }
 0x2c7   : > { %4168 = vmatprep.subr.mxu0 %v11242_v30  ;;  %4312 = vmatprep.subr.mxu1 %v4311_v27  ;;  %v4346_v27 = vsub.f32 %v11325_v5, %v14060_v26  ;;  %v4341_v23 = vand.u32 4294901760, %v4340_v51  ;;  %v14064_v26 = vand.u32 4294901760, %v11361_v2  ;;  %v11380_v51 = vand.u32 4294901760, %v4100_v22 }
 0x2c8   : > { %4170 = vmatpush1.msra.mxu0 %v11251_v48  ;;  %4318 = vmatpush1.msra.mxu1 %v4317_v62  ;;  %v11363_v62 = vand.u32 4294901760, %v4101_v8  ;;  %v4353_v61 = vand.u32 4294901760, %v4352_v15  ;;  %v11394_v18 = vand.u32 4294901760, %v4097_v56 }
 0x2c9   : > { %4172 = vmatprep.subr.mxu0 %v11262_v17  ;;  %4324 = vmatprep.subr.mxu1 %v4323_v37  ;;  %v11370_v37 = vsub.f32 %v4104_v35, %v11352_v60  ;;  %v4347_v59 = vand.u32 4294901760, %v4346_v27  ;;  %v4096_v35 = vld [vmem:[%s13758_s3 + $0xa0] sm:$0xff]  ;;  %v11392_v27 = vsub.f32 %v4100_v22, %v11380_v51 }
 0x2ca   : > { %4174 = vmatpush1.msra.mxu0 %v11274_v52  ;;  %4330 = vmatpush1.msra.mxu1 %v4329_v43  ;;  %v11378_v43 = vsub.f32 %v4101_v8, %v11363_v62  ;;  %v11410_v6 = vsub.f32 %v4097_v56, %v11394_v18 }
 0x2cb   : > { %4176 = vmatprep.subr.mxu0 %v11284_v41  ;;  %14751 = vst [vmem:[#allocation40_spill] sm:$0xff] %v11370_v37  ;;  %4336 = vmatprep.subr.mxu1 %v4335_v21  ;;  %v14067_v16 = vand.u32 4294901760, %v11370_v37  ;;  %v4358_v21 = vsub.f32 %v11361_v2, %v14064_v26  ;;  %14753 = vst [vmem:[#allocation28_spill] sm:$0xff] %v11392_v27  ;;  %v14073_v38 = vand.u32 4294901760, %v11392_v27 }
 0x2cc   : > { %4178 = vmatpush1.msra.mxu0 %v11294_v49  ;;  %14752 = vst [vmem:[#allocation41_spill] sm:$0xff] %v11378_v43  ;;  %4342 = vmatpush1.msra.mxu1 %v4341_v23  ;;  %v14069_v8 = vand.u32 4294901760, %v11378_v43  ;;  %v11400_v23 = vand.u32 4294901760, %v4096_v35  ;;  %14754 = vst [vmem:[#allocation34_spill] sm:$0xff] %v11410_v6  ;;  %v14075_v7 = vand.u32 4294901760, %v11410_v6 }
 0x2cd   : > { %4180 = vmatprep.subr.mxu0 %v11304_v34  ;;  %4348 = vmatprep.subr.mxu1 %v4347_v59  ;;  %v4364_v15 = vsub.f32 %v11370_v37, %v14067_v16  ;;  %v4093_v59 = vld [vmem:[%s13758_s3 + $0x88] sm:$0xff]  ;;  %v4359_v26 = vand.u32 4294901760, %v4358_v21  ;;  %v4376_v56 = vsub.f32 %v11392_v27, %v14073_v38 }
 0x2ce   : > { %4182 = vmatpush1.msra.mxu0 %v11314_v14  ;;  %4354 = vmatpush1.msra.mxu1 %v4353_v61  ;;  %v4370_v22 = vsub.f32 %v11378_v43, %v14069_v8  ;;  %v4092_v61 = vld [vmem:[%s13758_s3 + $0x80] sm:$0xff]  ;;  %v11417_v45 = vsub.f32 %v4096_v35, %v11400_v23  ;;  %v4089_v21 = vld [vmem:[%s13758_s3 + $0x68] sm:$0xff]  ;;  %v11427_v11 = vand.u32 4294901760, %v4093_v59 }
 0x2cf   : > { %4184 = vmatprep.subr.mxu0 %v11346_v58  ;;  %v4365_v16 = vand.u32 4294901760, %v4364_v15  ;;  %4360 = vmatprep.subr.mxu1 %v4359_v26  ;;  %v11430_v15 = vand.u32 4294901760, %v4092_v61  ;;  %v4377_v26 = vand.u32 4294901760, %v4376_v56  ;;  %v11441_v10 = vand.u32 4294901760, %v4089_v21 }
 0x2d0   : > { %4186 = vmatpush1.msra.mxu0 %v11352_v60  ;;  %14755 = vst [vmem:[#allocation43_spill] sm:$0xff] %v11417_v45  ;;  %v4371_v8 = vand.u32 4294901760, %v4370_v22  ;;  %v14079_v35 = vand.u32 4294901760, %v11417_v45  ;;  %v4382_v22 = vsub.f32 %v11410_v6, %v14075_v7  ;;  %v11439_v38 = vsub.f32 %v4093_v59, %v11427_v11  ;;  %v4084_v59 = vld [vmem:[%s13758_s3 + $0x40] sm:$0xff] }
 0x2d1   : > { %4188 = vmatprep.subr.mxu0 %v11363_v62  ;;  %4366 = vmatpush1.msra.mxu1 %v4365_v16  ;;  %14756 = vst [vmem:[#allocation45_spill] sm:$0xff] %v11430_v15  ;;  %14758 = vst [vmem:[#allocation33_spill] sm:$0xff] %v11441_v10  ;;  %v4085_v16 = vld [vmem:[%s13758_s3 + $0x48] sm:$0xff]  ;;  %v11451_v56 = vsub.f32 %v4092_v61, %v11430_v15  ;;  %v11459_v25 = vsub.f32 %v4089_v21, %v11441_v10  ;;  %v11480_v27 = vand.u32 4294901760, %v4084_v59 }
 0x2d2   : > { %4190 = vmatpush1.msra.mxu0 %v11380_v51  ;;  %4372 = vmatprep.subr.mxu1 %v4371_v8  ;;  %14757 = vst [vmem:[#allocation47_spill] sm:$0xff] %v11439_v38  ;;  %v4388_v8 = vsub.f32 %v11417_v45, %v14079_v35  ;;  %v4383_v7 = vand.u32 4294901760, %v4382_v22  ;;  %v14089_v54 = vand.u32 4294901760, %v11439_v38  ;;  %v4081_v61 = vld [vmem:[%s13758_s3 + $0x28] sm:$0xff]  ;;  %v4080_v35 = vld [vmem:[%s13758_s3 + $0x20] sm:$0xff]  ;;  %v11471_v22 = vand.u32 4294901760, %v4085_v16 }
 0x2d3   : > { %4192 = vmatprep.subr.mxu0 %v11394_v18  ;;  %14759 = vst [vmem:[#allocation64_spill] sm:$0xff] %v11451_v56  ;;  %4378 = vmatpush1.msra.mxu1 %v4377_v26  ;;  %14760 = vst [vmem:[#allocation17_spill] sm:$0xff] %v11459_v25  ;;  %v14092_v26 = vand.u32 4294901760, %v11451_v56  ;;  %v11478_v6 = vsub.f32 %v4088_v39, %v11461_v63  ;;  %v11489_v43 = vand.u32 4294901760, %v4081_v61  ;;  %v4077_v39 = vld [vmem:[%s13758_s3 + $0x8] sm:$0xff] }
 0x2d4   : > { %4194 = vmatpush1.msra.mxu0 %v11400_v23  ;;  %v4389_v32 = vand.u32 4294901760, %v4388_v8  ;;  %14762 = vst [vmem:[#allocation16_spill] sm:$0xff] %v11471_v22  ;;  %4384 = vmatprep.subr.mxu1 %v4383_v7  ;;  %v4394_v21 = vsub.f32 %v11439_v38, %v14089_v54  ;;  %14764 = vst [vmem:[#allocation19_spill] sm:$0xff] %v11480_v27  ;;  %v11487_v7 = vsub.f32 %v4085_v16, %v11471_v22 }
 0x2d5   : > { %4196 = vmatprep.subr.mxu0 %v11427_v11  ;;  %14763 = vst [vmem:[#allocation23_spill] sm:$0xff] %v11478_v6  ;;  %v4400_v8 = vsub.f32 %v11451_v56, %v14092_v26  ;;  %14766 = vst [vmem:[#allocation26_spill] sm:$0xff] %v11489_v43  ;;  %v11491_v54 = vand.u32 4294901760, %v4080_v35  ;;  %v14105_v26 = vand.u32 4294901760, %v11478_v6  ;;  %v11502_v16 = vsub.f32 %v4084_v59, %v11480_v27  ;;  %v4076_v56 = vld [vmem:[%s13758_s3] sm:$0xff] }
 0x2d6   : > { %4198 = vmatpush1.msra.mxu0 %v11430_v15  ;;  %4390 = vmatpush1.msra.mxu1 %v4389_v32  ;;  %14765 = vst [vmem:[#allocation32_spill] sm:$0xff] %v11487_v7  ;;  %v4395_v45 = vand.u32 4294901760, %v4394_v21  ;;  %v14768_v32 = vand.u32 4294901760, %v11459_v25  ;;  %v14108_v37 = vand.u32 4294901760, %v11487_v7  ;;  %v11510_v21 = vsub.f32 %v4081_v61, %v11489_v43 }
 0x2d7   : > { %4200 = vmatprep.subr.mxu0 %v11441_v10  ;;  %14767 = vst [vmem:[#allocation30_spill] sm:$0xff] %v11491_v54  ;;  %14769 = vst [vmem:[#allocation18_spill] sm:$0xff] %v11502_v16 }
 0x2d8   : > { %4202 = vmatpush1.msra.mxu0 %v11461_v63  ;;  %v4406_v38 = vsub.f32 %v11459_v25, %v14768_v32  ;;  %v4401_v63 = vand.u32 4294901760, %v4400_v8  ;;  %14770 = vst [vmem:[#allocation35_spill] sm:$0xff] %v11510_v21  ;;  %4396 = vmatprep.subr.mxu1 %v4395_v45  ;;  %v4412_v32 = vsub.f32 %v11478_v6, %v14105_v26  ;;  %v14111_v25 = vand.u32 4294901760, %v11502_v16 }
 0x2d9   : > { %4204 = vmatprep.subr.mxu0 %v11471_v22  ;;  %v11513_v22 = vsub.f32 %v4080_v35, %v11491_v54  ;;  %v4418_v35 = vsub.f32 %v11487_v7, %v14108_v37  ;;  %v14112_v61 = vand.u32 4294901760, %v11510_v21 }
 0x2da   : > { %4206 = vmatpush1.msra.mxu0 %v11480_v27  ;;  %v4407_v59 = vand.u32 4294901760, %v4406_v38  ;;  %v11520_v27 = vand.u32 4294901760, %v4077_v39  ;;  %4402 = vmatpush1.msra.mxu1 %v4401_v63  ;;  %v11528_v38 = vand.u32 4294901760, %v4076_v56  ;;  %v4413_v8 = vand.u32 4294901760, %v4412_v32 }
 0x2db   : > { %14771 = vst [vmem:[#allocation29_spill] sm:$0xff] %v11513_v22  ;;  %4208 = vmatprep.subr.mxu0 %v11489_v43  ;;  %v14113_v45 = vand.u32 4294901760, %v11513_v22  ;;  %v4424_v26 = vsub.f32 %v11502_v16, %v14111_v25  ;;  %v4419_v63 = vand.u32 4294901760, %v4418_v35  ;;  %v4430_v37 = vsub.f32 %v11510_v21, %v14112_v61 }
 0x2dc   : > { %14772 = vst [vmem:[#allocation36_spill] sm:$0xff] %v11520_v27  ;;  %4210 = vmatpush1.msra.mxu0 %v11491_v54  ;;  %14773 = vst [vmem:[#allocation21_spill] sm:$0xff] %v11528_v38  ;;  %4408 = vmatprep.subr.mxu1 %v4407_v59  ;;  %v11534_v6 = vsub.f32 %v4077_v39, %v11520_v27  ;;  %v11544_v59 = vsub.f32 %v4076_v56, %v11528_v38 }
 0x2dd   : > { %4212 = vmatprep.subr.mxu0 %v11520_v27  ;;  %v4436_v7 = vsub.f32 %v11513_v22, %v14113_v45  ;;  %4414 = vmatpush1.msra.mxu1 %v4413_v8  ;;  %v4425_v32 = vand.u32 4294901760, %v4424_v26  ;;  %v4431_v35 = vand.u32 4294901760, %v4430_v37  ;;  %v2420_v37 = vpop.f32.mrf.mxu0 }
 0x2de   : > { %14774 = vst [vmem:[#allocation27_spill] sm:$0xff] %v11534_v6  ;;  %14775 = vst [vmem:[#allocation22_spill] sm:$0xff] %v11544_v59  ;;  %4214 = vmatpush1.msra.mxu0 %v11528_v38  ;;  %v14119_v39 = vand.u32 4294901760, %v11534_v6  ;;  %4420 = vmatprep.subr.mxu1 %v4419_v63  ;;  %v14126_v61 = vand.u32 4294901760, %v11544_v59  ;;  %v14776_v63 = vld [vmem:[#allocation48_spill] sm:$0xff] }
 0x2df   : > { %4493 = vmatprep.subr.mxu0 %v11153_v55  ;;  %v4437_v25 = vand.u32 4294901760, %v4436_v7  ;;  %4426 = vmatpush1.msra.mxu1 %v4425_v32  ;;  %v2311_v7 = vpop.permute.xlu1 %2310  ;;  %v14777_v55 = vld [vmem:[#allocation49_spill] sm:$0xff]  ;;  %v2422_v21 = vpop.f32.mrf.mxu0 }
 0x2e0   : > { %v4442_v45 = vsub.f32 %v11534_v6, %v14119_v39  ;;  %4432 = vmatprep.subr.mxu1 %v4431_v35  ;;  %v4448_v56 = vsub.f32 %v11544_v59, %v14126_v61  ;;  %v2314_v32 = vmul.f32 %v2311_v7, %v14776_v63  ;;  %v2313_v22 = vmul.f32 %v2311_v7, %v14777_v55  ;;  %v2652_v39 = vpop.f32.mrf.mxu1 }
 0x2e1   : > { %4438 = vmatpush1.msra.mxu1 %v4437_v25 }
 0x2e2   : > { %v4443_v26 = vand.u32 4294901760, %v4442_v45  ;;  %v4449_v8 = vand.u32 4294901760, %v4448_v56  ;;  %v2423_v6 = vadd.f32 %v2422_v21, %v2314_v32  ;;  %v2421_v16 = vadd.f32 %v2420_v37, %v2313_v22  ;;  %v2654_v38 = vpop.f32.mrf.mxu1  ;;  %v14779_v32 = vld [vmem:[#allocation51_spill] sm:$0xff] }
 0x2e3   : > { %v4029_v2 = vpop.permute.xlu1 %4028 }
 0x2e4   : > { %4444 = vmatprep.subr.mxu1 %v4443_v26  ;;  %v2655_v25 = vadd.f32 %v2654_v38, %v2423_v6  ;;  %v2653_v56 = vadd.f32 %v2652_v39, %v2421_v16  ;;  %v4032_v21 = vmul.f32 %v4029_v2, %v14778_v36  ;;  %v4031_v6 = vmul.f32 %v4029_v2, %v14779_v32  ;;  %v14780_v39 = vld [vmem:[#allocation52_spill] sm:$0xff]  ;;  %v14816_v36 = vld [vmem:[#allocation18_spill] sm:$0xff] }
 0x2e5   : > { %4450 = vmatpush1.msra.mxu1 %v4449_v8  ;;  %v14784_v32 = vld [vmem:[#allocation56_spill] sm:$0xff] }
 0x2e6   : > { %4629 = vmatprep.subr.mxu1 %v11142_v3 }
 0x2ef   : > { %v2895_v45 = vpop.f32.mrf.mxu1 }
 0x2f1   : > { %v2897_v3 = vpop.f32.mrf.mxu1 }
 0x2f8   : > { %v2789_v35 = vpop.f32.mrf.mxu0 }
 0x2f9   : > { %v2790_v59 = vadd.f32 %v2789_v35, %v2653_v56  ;;  %v14781_v35 = vld [vmem:[#allocation53_spill] sm:$0xff] }
 0x2fa   : > { %v2791_v61 = vpop.f32.mrf.mxu0 }
 0x2fb   : > { %v2792_v8 = vadd.f32 %v2791_v61, %v2655_v25  ;;  %v2896_v63 = vadd.f32 %v2895_v45, %v2790_v59  ;;  %v14782_v59 = vld [vmem:[#allocation54_spill] sm:$0xff] }
 0x2fd   : > { %v2898_v54 = vadd.f32 %v2897_v3, %v2792_v8 }
 0x311   : > { %v3167_v43 = vpop.f32.mrf.mxu1 }
 0x313   : > { %v3169_v15 = vpop.f32.mrf.mxu1 }
 0x31d   : > { %v3063_v26 = vpop.f32.mrf.mxu0 }
 0x31e   : > { %v3064_v55 = vadd.f32 %v3063_v26, %v2896_v63 }
 0x31f   : > { %v3065_v27 = vpop.f32.mrf.mxu0 }
 0x320   : > { %v3066_v10 = vadd.f32 %v3065_v27, %v2898_v54  ;;  %v3168_v37 = vadd.f32 %v3167_v43, %v3064_v55  ;;  %v2315_v54 = vmul.f32 %v2311_v7, %v14782_v59  ;;  %v14783_v27 = vld [vmem:[#allocation55_spill] sm:$0xff] }
 0x321   : > { %v2316_v63 = vmul.f32 %v2311_v7, %v14783_v27 }
 0x322   : > { %v3170_v22 = vadd.f32 %v3169_v15, %v3066_v10  ;;  %v4035_v16 = vadd.f32 %v4031_v6, %v3168_v37 }
 0x324   : > { %v4036_v38 = vadd.f32 %v4032_v21, %v3170_v22  ;;  %v4039_v25 = vadd.f32 %v4035_v16, %v14781_v35 }
 0x326   : > { %v4040_v61 = vadd.f32 %v4036_v38, %v14780_v39  ;;  %v8001_v3 = vmul.f32 -1.442695, %v4039_v25 }
 0x328   : > { %v8002_v56 = vmul.f32 -1.442695, %v4040_v61 }
 0x32a   : > { %8145 = vpow2.f32 %v8002_v56 }
 0x32b   : > { %8147 = vpow2.f32 %v8001_v3 }
 0x332   : > { %v3507_v45 = vpop.f32.mrf.mxu1 }
 0x334   : > { %v3509_v26 = vpop.f32.mrf.mxu1 }
 0x337   : > { %v8146_v35 = vpop.eup %8145 }
 0x338   : > { %v8148_v39 = vpop.eup %8147 }
 0x33d   : > { %v3275_v8 = vpop.f32.mrf.mxu0 }
 0x33e   : > { %v3276_v55 = vadd.f32 %v3275_v8, %v2315_v54  ;;  %v4033_v8 = vmul.f32 %v4029_v2, %v14784_v32  ;;  %v4052_v54 = vadd.f32 1.0, %v8146_v35  ;;  %v14815_v32 = vld [vmem:[#allocation32_spill] sm:$0xff] }
 0x33f   : > { %v3277_v10 = vpop.f32.mrf.mxu0 }
 0x340   : > { %v3278_v15 = vadd.f32 %v3277_v10, %v2316_v63  ;;  %v3508_v21 = vadd.f32 %v3507_v45, %v3276_v55  ;;  %v4046_v10 = vadd.f32 1.0, %v8148_v39  ;;  %8149 = vrcp.f32 %v4052_v54 }
 0x342   : > { %v3510_v38 = vadd.f32 %v3509_v26, %v3278_v15  ;;  %8151 = vrcp.f32 %v4046_v10 }
 0x34d   : > { %v8150_v35 = vpop.eup %8149 }
 0x34f   : > { %v8152_v39 = vpop.eup %8151 }
 0x356   : > { %v3750_v22 = vpop.f32.mrf.mxu1 }
 0x358   : > { %v3752_v61 = vpop.f32.mrf.mxu1 }
 0x35e   : > { %v3644_v43 = vpop.f32.mrf.mxu0 }
 0x35f   : > { %v3645_v6 = vadd.f32 %v3644_v43, %v3508_v21  ;;  %v14785_v43 = vld [vmem:[#allocation57_spill] sm:$0xff] }
 0x360   : > { %v3646_v37 = vpop.f32.mrf.mxu0  ;;  %v4034_v15 = vmul.f32 %v4029_v2, %v14785_v43  ;;  %v14814_v43 = vld [vmem:[#allocation23_spill] sm:$0xff] }
 0x361   : > { %v3647_v16 = vadd.f32 %v3646_v37, %v3510_v38  ;;  %v3751_v25 = vadd.f32 %v3750_v22, %v3645_v6  ;;  %v14786_v22 = vld [vmem:[#allocation58_spill] sm:$0xff]  ;;  %v14787_v38 = vld [vmem:[#allocation59_spill] sm:$0xff] }
 0x363   : > { %v3753_v3 = vadd.f32 %v3752_v61, %v3647_v16 }
 0x378   : > { %v4022_v59 = vpop.f32.mrf.mxu1 }
 0x37a   : > { %v4024_v55 = vpop.f32.mrf.mxu1 }
 0x37f   : > { %v3918_v56 = vpop.f32.mrf.mxu0 }
 0x380   : > { %v3919_v7 = vadd.f32 %v3918_v56, %v3751_v25 }
 0x381   : > { %v3920_v27 = vpop.f32.mrf.mxu0 }
 0x382   : > { %v4023_v63 = vadd.f32 %v4022_v59, %v3919_v7  ;;  %v3921_v45 = vadd.f32 %v3920_v27, %v3753_v3  ;;  %v4070_v59 = vstv %s4069_s24  ;;  %v14788_v27 = vld [vmem:[#allocation60_spill] sm:$0xff] }
 0x383   : > { %v4062_v25 = vmul.f32 %v8150_v35, %v14788_v27  ;;  %vm4071_vm1 = vcmp.eq.s32.totalorder %v4070_v59, 1  ;;  %v14795_v35 = vld [vmem:[#allocation45_spill] sm:$0xff] }
 0x384   : > { %v4037_v26 = vadd.f32 %v4033_v8, %v4023_v63  ;;  %v4025_v21 = vadd.f32 %v4024_v55, %v3921_v45  ;;  %v8195_v55 = vld [vmem:[%s8491_s9] sm:$0xff]  ;;  %v14797_v59 = vld [vmem:[#allocation33_spill] sm:$0xff] }
 0x386   : > { %v4041_v37 = vadd.f32 %v4037_v26, %v14786_v22  ;;  %v4038_v6 = vadd.f32 %v4034_v15, %v4025_v21  ;;  %v14813_v22 = vld [vmem:[#allocation37_spill] sm:$0xff] }
 0x388   : > { %8153 = vtanh.f32 %v4041_v37  ;;  %v4042_v16 = vadd.f32 %v4038_v6, %v14787_v38  ;;  %v14812_v38 = vld [vmem:[#allocation17_spill] sm:$0xff] }
 0x38a   : > { %v8003_v61 = vmul.f32 -1.442695, %v4042_v16 }
 0x38c   : > { %8155 = vpow2.f32 %v8003_v61  ;;  %v14794_v61 = vld [vmem:[#allocation31_spill] sm:$0xff] }
 0x395   : > { %v8154_v2 = vpop.eup %8153 }
 0x396   : > { %v4063_v56 = vmul.f32 %v8154_v2, %v8152_v39  ;;  %v14796_v39 = vld [vmem:[#allocation39_spill] sm:$0xff]  ;;  %v14798_v2 = vld [vmem:[#allocation40_spill] sm:$0xff] }
 0x398   : > { %v4064_v7 = vadd.f32 %v4063_v56, %v4062_v25  ;;  %v14800_v25 = vld [vmem:[#allocation41_spill] sm:$0xff]  ;;  %v14801_v56 = vld [vmem:[#allocation16_spill] sm:$0xff] }
 0x399   : > { %v8156_v3 = vpop.eup %8155 }
 0x39a   : > { %v4059_v8 = vadd.f32 1.0, %v8156_v3  ;;  %v11572_v54 = vsel %vm4071_vm1, %v4064_v7, %v14788_v27  ;;  %8157 = vtanh.f32 %v4064_v7  ;;  %v14799_v27 = vld [vmem:[#allocation20_spill] sm:$0xff]  ;;  %v14803_v3 = vld [vmem:[#allocation19_spill] sm:$0xff] }
 0x39b   : > { %14789 = vst [vmem:[#allocation38_spill] sm:$0xff] %v11572_v54  ;;  %v14802_v7 = vld [vmem:[#allocation28_spill] sm:$0xff]  ;;  %v14811_v54 = vld [vmem:[#allocation21_spill] sm:$0xff] }
 0x39c   : > { %8159 = vrcp.f32 %v4059_v8  ;;  %v14804_v8 = vld [vmem:[#allocation34_spill] sm:$0xff] }
 0x3a7   : > { %v8158_v63 = vpop.eup %8157 }
 0x3a9   : > { %v8160_v45 = vpop.eup %8159 }
 0x3aa   : > { %v4066_v10 = vmul.f32 %v8160_v45, %v8158_v63  ;;  %v14805_v63 = vld [vmem:[#allocation26_spill] sm:$0xff]  ;;  %v14806_v45 = vld [vmem:[#allocation43_spill] sm:$0xff] }
 0x3ac   : > { %v4072_v15 = vsel %vm4071_vm1, %v4066_v10, %v8195_v55  ;;  %v14807_v10 = vld [vmem:[#allocation30_spill] sm:$0xff]  ;;  %v14808_v55 = vld [vmem:[#allocation47_spill] sm:$0xff] }
 0x3ad   : > { %8004 = vst [vmem:[%s8491_s9 + $0x8] sm:$0xff] %v4072_v15  ;;  %v11576_v26 = vand.u32 4294901760, %v4072_v15 }
 0x3af   : > { %14790 = vst [vmem:[#allocation42_spill] sm:$0xff] %v11576_v26  ;;  %4485 = vmatmul.mubr.f32.vlgmr.msra.gmra.mxu1 %v11576_v26  ;;  %v11580_v21 = vsub.f32 %v4072_v15, %v11576_v26  ;;  %v14809_v15 = vld [vmem:[#allocation36_spill] sm:$0xff]  ;;  %v14818_v26 = vld [vmem:[#allocation29_spill] sm:$0xff] }
 0x3b0   : > { %4631 = vmatpush1.msra.mxu1 %v11147_v28  ;;  %4724 = vmatprep.mubr.f32.mxu1 %v14366_v44 }
 0x3b1   : > { %14791 = vst [vmem:[#allocation25_spill] sm:$0xff] %v11580_v21  ;;  %4633 = vmatprep.subr.mxu1 %v11155_v53  ;;  %v11586_v37 = vand.u32 4294901760, %v11580_v21 }
 0x3b2   : > { %4635 = vmatpush1.msra.mxu1 %v11164_v50 }
 0x3b3   : > { %14792 = vst [vmem:[#allocation63_spill] sm:$0xff] %v11586_v37  ;;  %4637 = vmatprep.subr.mxu1 %v11174_v4  ;;  %v4251_v6 = vsub.f32 %v11580_v21, %v11586_v37 }
 0x3b4   : > { %4639 = vmatpush1.msra.mxu1 %v11184_v12 }
 0x3b5   : > { %4641 = vmatprep.subr.mxu1 %v11197_v46  ;;  %v11594_v16 = vand.u32 4294901760, %v4251_v6  ;;  %v14810_v6 = vld [vmem:[#allocation64_spill] sm:$0xff] }
 0x3b6   : > { %4643 = vmatpush1.msra.mxu1 %v11210_v1 }
 0x3b7   : > { %14793 = vst [vmem:[#allocation62_spill] sm:$0xff] %v11594_v16  ;;  %4645 = vmatprep.subr.mxu1 %v11242_v30  ;;  %4253 = vmatmul.mubr.f32.vlgmr.msra.gmra.mxu0 %v11594_v16  ;;  %v14817_v16 = vld [vmem:[#allocation35_spill] sm:$0xff] }
 0x3b8   : > { %4496 = vmatpush1.msra.mxu0 %v11162_v40  ;;  %4647 = vmatpush1.msra.mxu1 %v11251_v48 }
 0x3b9   : > { %4499 = vmatprep.subr.mxu0 %v11172_v19  ;;  %4649 = vmatprep.subr.mxu1 %v11262_v17 }
 0x3ba   : > { %4502 = vmatpush1.msra.mxu0 %v11182_v47  ;;  %4651 = vmatpush1.msra.mxu1 %v11274_v52 }
 0x3bb   : > { %4505 = vmatprep.subr.mxu0 %v11195_v9  ;;  %4653 = vmatprep.subr.mxu1 %v11284_v41 }
 0x3bc   : > { %4508 = vmatpush1.msra.mxu0 %v11208_v29  ;;  %4655 = vmatpush1.msra.mxu1 %v11294_v49 }
 0x3bd   : > { %4511 = vmatprep.subr.mxu0 %v11221_v33  ;;  %4657 = vmatprep.subr.mxu1 %v11304_v34 }
 0x3be   : > { %4514 = vmatpush1.msra.mxu0 %v11232_v20  ;;  %4659 = vmatpush1.msra.mxu1 %v11314_v14 }
 0x3bf   : > { %4517 = vmatprep.subr.mxu0 %v11260_v57  ;;  %4661 = vmatprep.subr.mxu1 %v11346_v58 }
 0x3c0   : > { %4520 = vmatpush1.msra.mxu0 %v11272_v24  ;;  %4663 = vmatpush1.msra.mxu1 %v11352_v60 }
 0x3c1   : > { %4523 = vmatprep.subr.mxu0 %v11282_v13  ;;  %4665 = vmatprep.subr.mxu1 %v11363_v62 }
 0x3c2   : > { %4526 = vmatpush1.msra.mxu0 %v11292_v42  ;;  %4667 = vmatpush1.msra.mxu1 %v11380_v51 }
 0x3c3   : > { %4529 = vmatprep.subr.mxu0 %v11302_v0  ;;  %4669 = vmatprep.subr.mxu1 %v11394_v18 }
 0x3c4   : > { %4532 = vmatpush1.msra.mxu0 %v11312_v31  ;;  %4671 = vmatpush1.msra.mxu1 %v11400_v23 }
 0x3c5   : > { %4535 = vmatprep.subr.mxu0 %v11325_v5  ;;  %4673 = vmatprep.subr.mxu1 %v11427_v11 }
 0x3c6   : > { %4538 = vmatpush1.msra.mxu0 %v14794_v61  ;;  %4675 = vmatpush1.msra.mxu1 %v14795_v35 }
 0x3c7   : > { %4541 = vmatprep.subr.mxu0 %v14796_v39  ;;  %4677 = vmatprep.subr.mxu1 %v14797_v59 }
 0x3c8   : > { %4544 = vmatpush1.msra.mxu0 %v14798_v2  ;;  %4679 = vmatpush1.msra.mxu1 %v14799_v27 }
 0x3c9   : > { %4547 = vmatprep.subr.mxu0 %v14800_v25  ;;  %4681 = vmatprep.subr.mxu1 %v14801_v56 }
 0x3ca   : > { %4550 = vmatpush1.msra.mxu0 %v14802_v7  ;;  %4683 = vmatpush1.msra.mxu1 %v14803_v3 }
 0x3cb   : > { %4553 = vmatprep.subr.mxu0 %v14804_v8  ;;  %4685 = vmatprep.subr.mxu1 %v14805_v63 }
 0x3cc   : > { %4556 = vmatpush1.msra.mxu0 %v14806_v45  ;;  %4687 = vmatpush1.msra.mxu1 %v14807_v10 }
 0x3cd   : > { %4559 = vmatprep.subr.mxu0 %v14808_v55  ;;  %4689 = vmatprep.subr.mxu1 %v14809_v15 }
 0x3ce   : > { %4562 = vmatpush1.msra.mxu0 %v14810_v6  ;;  %4691 = vmatpush1.msra.mxu1 %v14811_v54 }
 0x3cf   : > { %4565 = vmatprep.subr.mxu0 %v14812_v38  ;;  %4728 = vmatmul.mubr.f32.vlgmr.msra.gmra.mxu1 %v11586_v37 }
 0x3d0   : > { %4903 = vmatprep.subr.mxu1 %v14813_v22  ;;  %4568 = vmatpush1.msra.mxu0 %v14814_v43  ;;  %v14819_v22 = vld [vmem:[#allocation27_spill] sm:$0xff] }
 0x3d1   : > { %4905 = vmatpush1.msra.mxu1 %v11147_v28  ;;  %4571 = vmatprep.subr.mxu0 %v14815_v32  ;;  %v14820_v28 = vld [vmem:[#allocation22_spill] sm:$0xff] }
 0x3d2   : > { %4907 = vmatprep.subr.mxu1 %v11155_v53  ;;  %4574 = vmatpush1.msra.mxu0 %v14816_v36  ;;  %v4139_v53 = vld [vmem:[%s13758_s3 + $0x1f8] sm:$0xff] }
 0x3d3   : > { %4909 = vmatpush1.msra.mxu1 %v11164_v50  ;;  %4577 = vmatprep.subr.mxu0 %v14817_v16  ;;  %v14821_v50 = vld [vmem:[#allocation46_spill] sm:$0xff]  ;;  %v11678_v37 = vand.u32 4294901760, %v4139_v53 }
 0x3d4   : > { %4911 = vmatprep.subr.mxu1 %v11174_v4  ;;  %4580 = vmatpush1.msra.mxu0 %v14818_v26  ;;  %v14822_v4 = vand.u32 4294901760, %v14821_v50  ;;  %v4135_v50 = vld [vmem:[%s13758_s3 + $0x1d8] sm:$0xff] }
 0x3d5   : > { %4913 = vmatpush1.msra.mxu1 %v11184_v12  ;;  %4583 = vmatprep.subr.mxu0 %v14819_v22  ;;  %v14823_v12 = vand.u32 4294901760, %v11162_v40  ;;  %v14825_v40 = vand.u32 4294901760, %v11182_v47  ;;  %v14827_v47 = vand.u32 4294901760, %v11208_v29  ;;  %v4127_v29 = vld [vmem:[%s13758_s3 + $0x198] sm:$0xff] }
 0x3d6   : > { %4915 = vmatprep.subr.mxu1 %v11197_v46  ;;  %4586 = vmatpush1.msra.mxu0 %v14820_v28  ;;  %v4138_v46 = vld [vmem:[%s13758_s3 + $0x1f0] sm:$0xff] }
 0x3d7   : > { %4619 = vmatprep.mubr.f32.mxu0 %v14366_v44  ;;  %4917 = vmatpush1.msra.mxu1 %v11210_v1  ;;  %v14824_v1 = vand.u32 4294901760, %v11172_v19  ;;  %v14826_v19 = vand.u32 4294901760, %v11195_v9  ;;  %v14828_v9 = vand.u32 4294901760, %v11221_v33  ;;  %v4126_v33 = vld [vmem:[%s13758_s3 + $0x190] sm:$0xff] }
 0x3d8   : > { %4622 = vmatmul.mubr.f32.vlgmr.msra.gmra.mxu0 %v11580_v21  ;;  %4737 = vmatprep.subr.mxu0 %v14822_v4  ;;  %v4131_v4 = vld [vmem:[%s13758_s3 + $0x1b8] sm:$0xff] }
 0x3d9   : > { %4919 = vmatprep.subr.mxu1 %v11242_v30  ;;  %4741 = vmatpush1.msra.mxu0 %v14823_v12  ;;  %v4134_v30 = vld [vmem:[%s13758_s3 + $0x1d0] sm:$0xff]  ;;  %v11709_v12 = vsub.f32 %v4139_v53, %v11678_v37 }
 0x3da   : > { %4921 = vmatpush1.msra.mxu1 %v11251_v48  ;;  %4745 = vmatprep.subr.mxu0 %v14824_v1  ;;  %v11692_v48 = vand.u32 4294901760, %v4138_v46  ;;  %v11711_v1 = vand.u32 4294901760, %v4134_v30 }
 0x3db   : > { %4923 = vmatprep.subr.mxu1 %v11262_v17  ;;  %4749 = vmatpush1.msra.mxu0 %v14825_v40  ;;  %v11700_v17 = vand.u32 4294901760, %v4135_v50  ;;  %v11719_v40 = vand.u32 4294901760, %v4131_v4 }
 0x3dc   : > { %4925 = vmatpush1.msra.mxu1 %v11274_v52  ;;  %4753 = vmatprep.subr.mxu0 %v14826_v19  ;;  %v4130_v52 = vld [vmem:[%s13758_s3 + $0x1b0] sm:$0xff]  ;;  %v11728_v53 = vsub.f32 %v4138_v46, %v11692_v48  ;;  %v14834_v46 = vand.u32 4294901760, %v11282_v13 }
 0x3dd   : > { %4927 = vmatprep.subr.mxu1 %v11284_v41  ;;  %4757 = vmatpush1.msra.mxu0 %v14827_v47  ;;  %v14829_v41 = vand.u32 4294901760, %v11232_v20  ;;  %v11730_v19 = vand.u32 4294901760, %v4130_v52  ;;  %v4123_v20 = vld [vmem:[%s13758_s3 + $0x178] sm:$0xff]  ;;  %v11739_v47 = vsub.f32 %v4135_v50, %v11700_v17 }
 0x3de   : > { %4929 = vmatpush1.msra.mxu1 %v11294_v49  ;;  %4761 = vmatprep.subr.mxu0 %v14828_v9  ;;  %v14830_v49 = vand.u32 4294901760, %v11260_v57  ;;  %14831 = vst [vmem:[#allocation24_spill] sm:$0xff] %v11728_v53  ;;  %v4122_v57 = vld [vmem:[%s13758_s3 + $0x170] sm:$0xff]  ;;  %v14149_v9 = vand.u32 4294901760, %v11709_v12  ;;  %v4119_v50 = vld [vmem:[%s13758_s3 + $0x158] sm:$0xff]  ;;  %v11764_v13 = vand.u32 4294901760, %v4123_v20 }
 0x3df   : > { %4931 = vmatprep.subr.mxu1 %v11304_v34  ;;  %4765 = vmatpush1.msra.mxu0 %v14829_v41  ;;  %v14832_v34 = vand.u32 4294901760, %v11272_v24  ;;  %14833 = vst [vmem:[#allocation44_spill] sm:$0xff] %v11739_v47  ;;  %v11753_v24 = vand.u32 4294901760, %v4126_v33  ;;  %v14836_v41 = vand.u32 4294901760, %v11292_v42  ;;  %v11776_v42 = vand.u32 4294901760, %v4122_v57 }
 0x3e0   : > { %4933 = vmatpush1.msra.mxu1 %v11314_v14  ;;  %4769 = vmatprep.subr.mxu0 %v14830_v49  ;;  %v11741_v14 = vand.u32 4294901760, %v4127_v29  ;;  %v14838_v49 = vand.u32 4294901760, %v11302_v0 }
 0x3e1   : > { %4935 = vmatprep.subr.mxu1 %v11346_v58  ;;  %4773 = vmatpush1.msra.mxu0 %v14832_v34  ;;  %v11751_v58 = vsub.f32 %v4134_v30, %v11711_v1  ;;  %v4118_v30 = vld [vmem:[%s13758_s3 + $0x150] sm:$0xff]  ;;  %v14150_v34 = vand.u32 4294901760, %v11728_v53 }
 0x3e2   : > { %4937 = vmatpush1.msra.mxu1 %v11352_v60  ;;  %4777 = vmatprep.subr.mxu0 %v14834_v46  ;;  %v11762_v60 = vsub.f32 %v4131_v4, %v11719_v40  ;;  %v4115_v4 = vld [vmem:[%s13758_s3 + $0x138] sm:$0xff]  ;;  %v14840_v46 = vand.u32 4294901760, %v11312_v31  ;;  %v11786_v0 = vsub.f32 %v4127_v29, %v11741_v14  ;;  %v11803_v29 = vsub.f32 %v4126_v33, %v11753_v24 }
 0x3e3   : > { %14835 = vst [vmem:[#allocation61_spill] sm:$0xff] %v11751_v58  ;;  %4939 = vmatprep.subr.mxu1 %v11363_v62  ;;  %4781 = vmatpush1.msra.mxu0 %v14836_v41  ;;  %v11774_v62 = vsub.f32 %v4130_v52, %v11730_v19  ;;  %v11788_v41 = vand.u32 4294901760, %v4119_v50  ;;  %v4114_v52 = vld [vmem:[%s13758_s3 + $0x130] sm:$0xff]  ;;  %v14846_v33 = vand.u32 4294901760, %v14796_v39  ;;  %v11825_v31 = vsub.f32 %v11728_v53, %v14150_v34 }
 0x3e4   : > { %14837 = vst [vmem:[#allocation60_spill] sm:$0xff] %v11762_v60  ;;  %4941 = vmatpush1.msra.mxu1 %v11380_v51  ;;  %4785 = vmatprep.subr.mxu0 %v14838_v49  ;;  %14841 = vst [vmem:[#allocation45_spill] sm:$0xff] %v11786_v0  ;;  %v14842_v49 = vand.u32 4294901760, %v11325_v5  ;;  %v4111_v51 = vld [vmem:[%s13758_s3 + $0x118] sm:$0xff]  ;;  %v14844_v5 = vand.u32 4294901760, %v14794_v61  ;;  %v11829_v61 = vsub.f32 %v4122_v57, %v11776_v42  ;;  %v14849_v39 = vand.u32 4294901760, %v11739_v47 }
 0x3e5   : > { %14839 = vst [vmem:[#allocation31_spill] sm:$0xff] %v11774_v62  ;;  %4943 = vmatprep.subr.mxu1 %v11394_v18  ;;  %4789 = vmatpush1.msra.mxu0 %v14840_v46  ;;  %v11799_v18 = vsub.f32 %v11709_v12, %v14149_v9  ;;  %14843 = vst [vmem:[#allocation39_spill] sm:$0xff] %v11803_v29  ;;  %v11805_v46 = vand.u32 4294901760, %v4118_v30  ;;  %v11817_v9 = vand.u32 4294901760, %v4115_v4 }
 0x3e6   : > { %4945 = vmatpush1.msra.mxu1 %v11400_v23  ;;  %4793 = vmatprep.subr.mxu0 %v14842_v49  ;;  %v11815_v49 = vsub.f32 %v4123_v20, %v11764_v13  ;;  %14847 = vst [vmem:[#allocation40_spill] sm:$0xff] %v11829_v61  ;;  %v4110_v20 = vld [vmem:[%s13758_s3 + $0x110] sm:$0xff]  ;;  %v11846_v57 = vsub.f32 %v4119_v50, %v11788_v41  ;;  %v14851_v23 = vand.u32 4294901760, %v14800_v25  ;;  %v14854_v50 = vand.u32 4294901760, %v14802_v7 }
 0x3e7   : > { %4947 = vmatprep.subr.mxu1 %v11427_v11  ;;  %4797 = vmatpush1.msra.mxu0 %v14844_v5  ;;  %v11831_v5 = vand.u32 4294901760, %v4114_v52  ;;  %v11848_v11 = vand.u32 4294901760, %v4111_v51  ;;  %v11861_v34 = vsub.f32 %v4118_v30, %v11805_v46  ;;  %v4107_v30 = vld [vmem:[%s13758_s3 + $0xf8] sm:$0xff]  ;;  %v5124_v7 = vand.u32 4294901760, %v11825_v31 }
 0x3e8   : > { %14845 = vst [vmem:[#allocation33_spill] sm:$0xff] %v11815_v49  ;;  %4949 = vmatpush1.msra.mxu1 %v14795_v35  ;;  %4801 = vmatprep.subr.mxu0 %v14846_v33  ;;  %v14848_v35 = vand.u32 4294901760, %v14798_v2  ;;  %v11842_v33 = vsub.f32 %v11739_v47, %v14849_v39  ;;  %14850 = vst [vmem:[#allocation20_spill] sm:$0xff] %v11846_v57  ;;  %v14852_v2 = vand.u32 4294901760, %v11751_v58  ;;  %v14860_v39 = vand.u32 4294901760, %v14806_v45 }
 0x3e9   : > { %4951 = vmatprep.subr.mxu1 %v14797_v59  ;;  %v5118_v59 = vand.u32 4294901760, %v11799_v18  ;;  %14853 = vst [vmem:[#allocation41_spill] sm:$0xff] %v11861_v34  ;;  %v11891_v18 = vsub.f32 %v4114_v52, %v11831_v5  ;;  %v4106_v52 = vld [vmem:[%s13758_s3 + $0xf0] sm:$0xff]  ;;  %4998 = vmatprep.mubr.f32.mxu1 %v14366_v44  ;;  %v14871_v21 = vand.u32 4294901760, %v11846_v57 }
 0x3ea   : > { %4805 = vmatpush1.msra.mxu0 %v14848_v35  ;;  %4953 = vmatpush1.msra.mxu1 %v14799_v27  ;;  %v11857_v35 = vsub.f32 %v11751_v58, %v14852_v2  ;;  %v14855_v27 = vand.u32 4294901760, %v11762_v60  ;;  %v11875_v2 = vand.u32 4294901760, %v4110_v20 }
 0x3eb   : > { %4809 = vmatprep.subr.mxu0 %v14851_v23  ;;  %4955 = vmatprep.subr.mxu1 %v14801_v56  ;;  %v11873_v23 = vsub.f32 %v4115_v4, %v11817_v9  ;;  %v14857_v56 = vand.u32 4294901760, %v14804_v8  ;;  %14859 = vst [vmem:[#allocation28_spill] sm:$0xff] %v11891_v18  ;;  %v14861_v8 = vand.u32 4294901760, %v11786_v0  ;;  %v4102_v4 = vld [vmem:[%s13758_s3 + $0xd0] sm:$0xff] }
 0x3ec   : > { %4813 = vmatpush1.msra.mxu0 %v14854_v50  ;;  %v11869_v25 = vsub.f32 %v11762_v60, %v14855_v27  ;;  %4957 = vmatpush1.msra.mxu1 %v14803_v3  ;;  %v14858_v50 = vand.u32 4294901760, %v11774_v62  ;;  %v5130_v3 = vand.u32 4294901760, %v11842_v33  ;;  %v5136_v45 = vand.u32 4294901760, %v11857_v35 }
 0x3ed   : > { %14856 = vst [vmem:[#allocation16_spill] sm:$0xff] %v11873_v23  ;;  %4817 = vmatprep.subr.mxu0 %v14857_v56  ;;  %4959 = vmatprep.subr.mxu1 %v14805_v63  ;;  %v11900_v31 = vsub.f32 %v11786_v0, %v14861_v8  ;;  %v14863_v63 = vand.u32 4294901760, %v14808_v55  ;;  %v14864_v33 = vand.u32 4294901760, %v11803_v29  ;;  %v4103_v56 = vld [vmem:[%s13758_s3 + $0xd8] sm:$0xff]  ;;  %v14866_v35 = vand.u32 4294901760, %v11815_v49 }
 0x3ee   : > { %v11887_v27 = vsub.f32 %v11774_v62, %v14858_v50  ;;  %4821 = vmatpush1.msra.mxu0 %v14860_v39  ;;  %v11904_v50 = vsub.f32 %v4111_v51, %v11848_v11  ;;  %4961 = vmatpush1.msra.mxu1 %v14807_v10  ;;  %v11919_v51 = vand.u32 4294901760, %v4107_v30  ;;  %v14865_v10 = vand.u32 4294901760, %v14810_v6 }
 0x3ef   : > { %4825 = vmatprep.subr.mxu0 %v14863_v63  ;;  %v11916_v39 = vsub.f32 %v11803_v29, %v14864_v33  ;;  %4963 = vmatprep.subr.mxu1 %v14809_v15  ;;  %v5142_v55 = vand.u32 4294901760, %v11869_v25  ;;  %v11931_v63 = vsub.f32 %v11815_v49, %v14866_v35  ;;  %v11935_v8 = vsub.f32 %v4110_v20, %v11875_v2  ;;  %v4099_v20 = vld [vmem:[%s13758_s3 + $0xb8] sm:$0xff]  ;;  %v4098_v49 = vld [vmem:[%s13758_s3 + $0xb0] sm:$0xff] }
 0x3f0   : > { %14862 = vst [vmem:[#allocation19_spill] sm:$0xff] %v11904_v50  ;;  %4829 = vmatpush1.msra.mxu0 %v14865_v10  ;;  %4965 = vmatpush1.msra.mxu1 %v14811_v54  ;;  %v5148_v15 = vand.u32 4294901760, %v11887_v27  ;;  %v14868_v6 = vand.u32 4294901760, %v11829_v61  ;;  %v11949_v35 = vand.u32 4294901760, %v4106_v52  ;;  %v14869_v33 = vand.u32 4294901760, %v14812_v38  ;;  %v14870_v54 = vld [vmem:[#allocation42_spill] sm:$0xff] }
 0x3f1   : > { %14867 = vst [vmem:[#allocation34_spill] sm:$0xff] %v11935_v8  ;;  %5000 = vmatmul.mubr.f32.vlgmr.msra.gmra.mxu1 %v14870_v54  ;;  %v5154_v27 = vand.u32 4294901760, %v11900_v31  ;;  %5119 = vmatprep.subr.mxu1 %v5118_v59  ;;  %v14872_v38 = vand.u32 4294901760, %v14814_v43  ;;  %v14873_v31 = vand.u32 4294901760, %v11861_v34  ;;  %v11980_v10 = vand.u32 4294901760, %v4102_v4 }
 0x3f2   : > { %v11946_v25 = vsub.f32 %v11829_v61, %v14868_v6  ;;  %4833 = vmatprep.subr.mxu0 %v14869_v33  ;;  %v11961_v6 = vsub.f32 %v11846_v57, %v14871_v21  ;;  %v11964_v61 = vand.u32 4294901760, %v4103_v56  ;;  %v5160_v33 = vand.u32 4294901760, %v11916_v39  ;;  %v4095_v57 = vld [vmem:[%s13758_s3 + $0x98] sm:$0xff]  ;;  %5125 = vmatpush1.msra.mxu1 %v5124_v7 }
 0x3f3   : > { %4837 = vmatpush1.msra.mxu0 %v14872_v38  ;;  %v11975_v29 = vsub.f32 %v11861_v34, %v14873_v31  ;;  %v11978_v21 = vsub.f32 %v4107_v30, %v11919_v51  ;;  %v14875_v43 = vand.u32 4294901760, %v14815_v32  ;;  %v5166_v59 = vand.u32 4294901760, %v11931_v63  ;;  %v4094_v34 = vld [vmem:[%s13758_s3 + $0x90] sm:$0xff]  ;;  %5131 = vmatprep.subr.mxu1 %v5130_v3 }
 0x3f4   : > { %v14876_v39 = vand.u32 4294901760, %v11873_v23  ;;  %v11994_v31 = vand.u32 4294901760, %v4099_v20  ;;  %v14878_v7 = vand.u32 4294901760, %v14816_v36  ;;  %v5172_v32 = vand.u32 4294901760, %v11946_v25  ;;  %5137 = vmatpush1.msra.mxu1 %v5136_v45  ;;  %4894 = vmatprep.mubr.f32.mxu0 %v14366_v44 }
 0x3f5   : > { %14874 = vst [vmem:[#allocation26_spill] sm:$0xff] %v11978_v21  ;;  %4841 = vmatprep.subr.mxu0 %v14875_v43  ;;  %v14879_v63 = vand.u32 4294901760, %v11891_v18  ;;  %v12010_v30 = vand.u32 4294901760, %v4098_v49  ;;  %v14881_v36 = vand.u32 4294901760, %v14817_v16  ;;  %v5178_v3 = vand.u32 4294901760, %v11961_v6  ;;  %5143 = vmatprep.subr.mxu1 %v5142_v55  ;;  %v4086_v6 = vld [vmem:[%s13758_s3 + $0x50] sm:$0xff] }
 0x3f6   : > { %v11991_v38 = vsub.f32 %v11873_v23, %v14876_v39  ;;  %14877 = vst [vmem:[#allocation43_spill] sm:$0xff] %v11994_v31  ;;  %4845 = vmatpush1.msra.mxu0 %v14878_v7  ;;  %v12008_v39 = vsub.f32 %v4106_v52, %v11949_v35  ;;  %v4091_v23 = vld [vmem:[%s13758_s3 + $0x78] sm:$0xff]  ;;  %v14882_v25 = vand.u32 4294901760, %v11904_v50  ;;  %v12024_v52 = vsub.f32 %v4103_v56, %v11964_v61 }
 0x3f7   : > { %v12005_v43 = vsub.f32 %v11891_v18, %v14879_v63  ;;  %4849 = vmatprep.subr.mxu0 %v14881_v36  ;;  %v12026_v63 = vand.u32 4294901760, %v4095_v57  ;;  %v4090_v18 = vld [vmem:[%s13758_s3 + $0x70] sm:$0xff]  ;;  %v14884_v16 = vand.u32 4294901760, %v14818_v26  ;;  %v5184_v45 = vand.u32 4294901760, %v11975_v29  ;;  %v4087_v56 = vld [vmem:[%s13758_s3 + $0x58] sm:$0xff]  ;;  %5149 = vmatpush1.msra.mxu1 %v5148_v15 }
 0x3f8   : > { %14880 = vst [vmem:[#allocation30_spill] sm:$0xff] %v12008_v39  ;;  %v12021_v7 = vsub.f32 %v11904_v50, %v14882_v25  ;;  %14883 = vst [vmem:[#allocation47_spill] sm:$0xff] %v12024_v52  ;;  %v12036_v36 = vsub.f32 %v4102_v4, %v11980_v10  ;;  %v12038_v25 = vand.u32 4294901760, %v4094_v34  ;;  %v14885_v50 = vand.u32 4294901760, %v14819_v22  ;;  %5155 = vmatprep.subr.mxu1 %v5154_v27 }
 0x3f9   : > { %4853 = vmatpush1.msra.mxu0 %v14884_v16  ;;  %v5190_v26 = vand.u32 4294901760, %v11991_v38  ;;  %v14886_v55 = vand.u32 4294901760, %v11935_v8  ;;  %v12052_v4 = vsub.f32 %v4099_v20, %v11994_v31  ;;  %v12054_v16 = vand.u32 4294901760, %v4091_v23  ;;  %v4083_v20 = vld [vmem:[%s13758_s3 + $0x38] sm:$0xff]  ;;  %5161 = vmatpush1.msra.mxu1 %v5160_v33 }
 0x3fa   : > { %4857 = vmatprep.subr.mxu0 %v14885_v50  ;;  %v14887_v22 = vand.u32 4294901760, %v14820_v28  ;;  %v5196_v50 = vand.u32 4294901760, %v12005_v43  ;;  %v12064_v38 = vsub.f32 %v4098_v49, %v12010_v30  ;;  %v5202_v27 = vand.u32 4294901760, %v12021_v7  ;;  %v4082_v49 = vld [vmem:[%s13758_s3 + $0x30] sm:$0xff]  ;;  %5167 = vmatprep.subr.mxu1 %v5166_v59 }
 0x3fb   : > { %v12049_v29 = vsub.f32 %v11935_v8, %v14886_v55  ;;  %v12066_v55 = vand.u32 4294901760, %v4090_v18  ;;  %v12075_v43 = vsub.f32 %v4095_v57, %v12026_v63  ;;  %v14888_v15 = vand.u32 4294901760, %v11978_v21  ;;  %v4079_v8 = vld [vmem:[%s13758_s3 + $0x18] sm:$0xff]  ;;  %5173 = vmatpush1.msra.mxu1 %v5172_v32  ;;  %5338 = vmatprep.mubr.f32.mxu1 %v14366_v44 }
 0x3fc   : > { %4861 = vmatpush1.msra.mxu0 %v14887_v22  ;;  %v12077_v22 = vand.u32 4294901760, %v4087_v56  ;;  %v12089_v28 = vsub.f32 %v4094_v34, %v12038_v25  ;;  %v12091_v57 = vand.u32 4294901760, %v4086_v6  ;;  %v12102_v7 = vand.u32 4294901760, %v4083_v20  ;;  %v4078_v34 = vld [vmem:[%s13758_s3 + $0x10] sm:$0xff]  ;;  %5179 = vmatprep.subr.mxu1 %v5178_v3 }
 0x3fd   : > { %4896 = vmatmul.mubr.f32.vlgmr.msra.gmra.mxu0 %v14870_v54  ;;  %5007 = vmatprep.subr.mxu0 %v11678_v37  ;;  %v5213_v33 = vsub.f32 %v11978_v21, %v14888_v15  ;;  %v5208_v0 = vand.u32 4294901760, %v12049_v29  ;;  %v12100_v15 = vsub.f32 %v4091_v23, %v12054_v16  ;;  %v14890_v59 = vand.u32 4294901760, %v12008_v39 }
 0x3fe   : > { %14889 = vst [vmem:[#allocation36_spill] sm:$0xff] %v12091_v57  ;;  %5009 = vmatpush1.msra.mxu0 %v11692_v48  ;;  %v12113_v62 = vsub.f32 %v4090_v18, %v12066_v55  ;;  %v12115_v23 = vand.u32 4294901760, %v4082_v49  ;;  %v14891_v60 = vand.u32 4294901760, %v12024_v52  ;;  %v12123_v47 = vsub.f32 %v4087_v56, %v12077_v22  ;;  %5185 = vmatpush1.msra.mxu1 %v5184_v45 }
 0x3ff   : > { %5011 = vmatprep.subr.mxu0 %v11700_v17  ;;  %v5219_v21 = vsub.f32 %v12008_v39, %v14890_v59  ;;  %v12125_v59 = vand.u32 4294901760, %v4079_v8  ;;  %v14892_v18 = vand.u32 4294901760, %v12036_v36  ;;  %v12133_v39 = vsub.f32 %v4086_v6, %v12091_v57  ;;  %5191 = vmatprep.subr.mxu1 %v5190_v26 }
 0x400   : > { %5013 = vmatpush1.msra.mxu0 %v11711_v1  ;;  %v5225_v32 = vsub.f32 %v12024_v52, %v14891_v60  ;;  %v12135_v60 = vand.u32 4294901760, %v4078_v34  ;;  %v5214_v56 = vand.u32 4294901760, %v5213_v33  ;;  %v14893_v58 = vand.u32 4294901760, %v12052_v4  ;;  %5197 = vmatpush1.msra.mxu1 %v5196_v50 }
 0x401   : > { %5015 = vmatprep.subr.mxu0 %v11719_v40  ;;  %v5231_v3 = vsub.f32 %v12036_v36, %v14892_v18  ;;  %v12143_v53 = vsub.f32 %v4083_v20, %v12102_v7  ;;  %v5220_v6 = vand.u32 4294901760, %v5219_v21  ;;  %v14894_v18 = vand.u32 4294901760, %v12064_v38  ;;  %5203 = vmatprep.subr.mxu1 %v5202_v27 }
 0x402   : > { %5017 = vmatpush1.msra.mxu0 %v11730_v19  ;;  %v5237_v45 = vsub.f32 %v12052_v4, %v14893_v58  ;;  %v12151_v33 = vsub.f32 %v4082_v49, %v12115_v23  ;;  %v5226_v58 = vand.u32 4294901760, %v5225_v32  ;;  %v14895_v20 = vand.u32 4294901760, %v12075_v43  ;;  %5209 = vmatpush1.msra.mxu1 %v5208_v0 }
 0x403   : > { %5019 = vmatprep.subr.mxu0 %v11741_v14  ;;  %v5243_v26 = vsub.f32 %v12064_v38, %v14894_v18  ;;  %v12159_v21 = vsub.f32 %v4079_v8, %v12125_v59  ;;  %v5232_v18 = vand.u32 4294901760, %v5231_v3  ;;  %v14896_v49 = vand.u32 4294901760, %v12089_v28  ;;  %5215 = vmatprep.subr.mxu1 %v5214_v56 }
 0x404   : > { %5021 = vmatpush1.msra.mxu0 %v11753_v24  ;;  %v5249_v50 = vsub.f32 %v12075_v43, %v14895_v20  ;;  %v12167_v32 = vsub.f32 %v4078_v34, %v12135_v60  ;;  %v5238_v20 = vand.u32 4294901760, %v5237_v45  ;;  %v14897_v8 = vand.u32 4294901760, %v12100_v15  ;;  %5221 = vmatpush1.msra.mxu1 %v5220_v6 }
 0x405   : > { %5023 = vmatprep.subr.mxu0 %v11764_v13  ;;  %v5255_v27 = vsub.f32 %v12089_v28, %v14896_v49  ;;  %v5244_v3 = vand.u32 4294901760, %v5243_v26  ;;  %v14898_v49 = vand.u32 4294901760, %v12113_v62  ;;  %5227 = vmatprep.subr.mxu1 %v5226_v58  ;;  %v14899_v45 = vand.u32 4294901760, %v12123_v47 }
 0x406   : > { %5025 = vmatpush1.msra.mxu0 %v11776_v42  ;;  %v5261_v0 = vsub.f32 %v12100_v15, %v14897_v8  ;;  %v5250_v56 = vand.u32 4294901760, %v5249_v50  ;;  %5233 = vmatpush1.msra.mxu1 %v5232_v18  ;;  %v14900_v26 = vand.u32 4294901760, %v12133_v39  ;;  %v14188_v34 = vand.u32 4294901760, %v12167_v32 }
 0x407   : > { %5027 = vmatprep.subr.mxu0 %v11788_v41  ;;  %v5267_v29 = vsub.f32 %v12113_v62, %v14898_v49  ;;  %v5273_v8 = vsub.f32 %v12123_v47, %v14899_v45  ;;  %v5256_v6 = vand.u32 4294901760, %v5255_v27  ;;  %5239 = vmatprep.subr.mxu1 %v5238_v20  ;;  %v14901_v50 = vand.u32 4294901760, %v12143_v53 }
 0x408   : > { %5029 = vmatpush1.msra.mxu0 %v11805_v46  ;;  %v5279_v49 = vsub.f32 %v12133_v39, %v14900_v26  ;;  %v5262_v58 = vand.u32 4294901760, %v5261_v0  ;;  %5245 = vmatpush1.msra.mxu1 %v5244_v3  ;;  %v14902_v27 = vand.u32 4294901760, %v12151_v33  ;;  %v14903_v20 = vand.u32 4294901760, %v12159_v21 }
 0x409   : > { %5031 = vmatprep.subr.mxu0 %v11817_v9  ;;  %v5285_v45 = vsub.f32 %v12143_v53, %v14901_v50  ;;  %v5268_v18 = vand.u32 4294901760, %v5267_v29  ;;  %5251 = vmatprep.subr.mxu1 %v5250_v56  ;;  %v5274_v26 = vand.u32 4294901760, %v5273_v8  ;;  %v5303_v29 = vsub.f32 %v12167_v32, %v14188_v34  ;;  %v14920_v34 = vld [vmem:[#allocation26_spill] sm:$0xff] }
 0x40a   : > { %5033 = vmatpush1.msra.mxu0 %v11831_v5  ;;  %v5291_v52 = vsub.f32 %v12151_v33, %v14902_v27  ;;  %v5297_v0 = vsub.f32 %v12159_v21, %v14903_v20  ;;  %5257 = vmatpush1.msra.mxu1 %v5256_v6  ;;  %v5280_v50 = vand.u32 4294901760, %v5279_v49  ;;  %v14905_v49 = vld [vmem:[#allocation24_spill] sm:$0xff]  ;;  %v14909_v27 = vld [vmem:[#allocation31_spill] sm:$0xff] }
 0x40b   : > { %5035 = vmatprep.subr.mxu0 %v11848_v11  ;;  %5263 = vmatprep.subr.mxu1 %v5262_v58  ;;  %v5286_v3 = vand.u32 4294901760, %v5285_v45  ;;  %v5304_v6 = vand.u32 4294901760, %v5303_v29  ;;  %v14906_v58 = vld [vmem:[#allocation44_spill] sm:$0xff]  ;;  %v14907_v45 = vld [vmem:[#allocation61_spill] sm:$0xff]  ;;  %v14911_v20 = vld [vmem:[#allocation39_spill] sm:$0xff] }
 0x40c   : > { %5037 = vmatpush1.msra.mxu0 %v11875_v2  ;;  %5269 = vmatpush1.msra.mxu1 %v5268_v18  ;;  %v5292_v56 = vand.u32 4294901760, %v5291_v52  ;;  %v5298_v8 = vand.u32 4294901760, %v5297_v0  ;;  %v14904_v52 = vld [vmem:[#allocation62_spill] sm:$0xff]  ;;  %v14908_v18 = vld [vmem:[#allocation60_spill] sm:$0xff]  ;;  %v14912_v0 = vld [vmem:[#allocation33_spill] sm:$0xff] }
 0x40d   : > { %5039 = vmatprep.subr.mxu0 %v11919_v51  ;;  %5275 = vmatprep.subr.mxu1 %v5274_v26  ;;  %v14910_v26 = vld [vmem:[#allocation45_spill] sm:$0xff]  ;;  %v14914_v29 = vld [vmem:[#allocation20_spill] sm:$0xff] }
 0x40e   : > { %5041 = vmatpush1.msra.mxu0 %v11949_v35  ;;  %5281 = vmatpush1.msra.mxu1 %v5280_v50  ;;  %v14913_v50 = vld [vmem:[#allocation40_spill] sm:$0xff] }
 0x40f   : > { %5043 = vmatprep.subr.mxu0 %v11964_v61  ;;  %5287 = vmatprep.subr.mxu1 %v5286_v3  ;;  %v14915_v3 = vld [vmem:[#allocation41_spill] sm:$0xff] }
 0x410   : > { %5045 = vmatpush1.msra.mxu0 %v11980_v10  ;;  %5293 = vmatpush1.msra.mxu1 %v5292_v56  ;;  %v14916_v56 = vld [vmem:[#allocation16_spill] sm:$0xff] }
 0x411   : > { %5047 = vmatprep.subr.mxu0 %v11994_v31  ;;  %5299 = vmatprep.subr.mxu1 %v5298_v8  ;;  %v14917_v8 = vld [vmem:[#allocation28_spill] sm:$0xff] }
 0x412   : > { %5049 = vmatpush1.msra.mxu0 %v12010_v30  ;;  %5305 = vmatpush1.msra.mxu1 %v5304_v6  ;;  %v14918_v6 = vld [vmem:[#allocation19_spill] sm:$0xff] }
 0x413   : > { %5051 = vmatprep.subr.mxu0 %v12026_v63  ;;  %5340 = vmatmul.mubr.f32.vlgmr.msra.gmra.mxu1 %v14870_v54  ;;  %v14921_v54 = vld [vmem:[#allocation30_spill] sm:$0xff] }
 0x414   : > { %5053 = vmatpush1.msra.mxu0 %v12038_v25  ;;  %5484 = vmatprep.subr.mxu1 %v11678_v37 }
 0x415   : > { %5055 = vmatprep.subr.mxu0 %v12054_v16  ;;  %5486 = vmatpush1.msra.mxu1 %v11692_v48 }
 0x416   : > { %5057 = vmatpush1.msra.mxu0 %v12066_v55  ;;  %5488 = vmatprep.subr.mxu1 %v11700_v17 }
 0x417   : > { %5059 = vmatprep.subr.mxu0 %v12077_v22  ;;  %5490 = vmatpush1.msra.mxu1 %v11711_v1 }
 0x418   : > { %5061 = vmatpush1.msra.mxu0 %v12091_v57  ;;  %5492 = vmatprep.subr.mxu1 %v11719_v40 }
 0x419   : > { %5063 = vmatprep.subr.mxu0 %v12102_v7  ;;  %5494 = vmatpush1.msra.mxu1 %v11730_v19 }
 0x41a   : > { %5065 = vmatpush1.msra.mxu0 %v12115_v23  ;;  %5496 = vmatprep.subr.mxu1 %v11741_v14 }
 0x41b   : > { %5067 = vmatprep.subr.mxu0 %v12125_v59  ;;  %5102 = vmatprep.mubr.f32.mxu0 %v14366_v44 }
 0x41c   : > { %5069 = vmatpush1.msra.mxu0 %v12135_v60  ;;  %5498 = vmatpush1.msra.mxu1 %v11753_v24 }
 0x41d   : > { %5108 = vmatmul.mubr.f32.vlgmr.msra.gmra.mxu0 %v14904_v52  ;;  %5348 = vmatprep.subr.mxu0 %v11709_v12  ;;  %v14919_v52 = vld [vmem:[#allocation34_spill] sm:$0xff] }
 0x41e   : > { %5500 = vmatprep.subr.mxu1 %v11764_v13  ;;  %5351 = vmatpush1.msra.mxu0 %v14905_v49 }
 0x41f   : > { %5502 = vmatpush1.msra.mxu1 %v11776_v42  ;;  %5354 = vmatprep.subr.mxu0 %v14906_v58 }
 0x420   : > { %5504 = vmatprep.subr.mxu1 %v11788_v41  ;;  %5357 = vmatpush1.msra.mxu0 %v14907_v45 }
 0x421   : > { %5506 = vmatpush1.msra.mxu1 %v11805_v46  ;;  %5360 = vmatprep.subr.mxu0 %v14908_v18 }
 0x422   : > { %5508 = vmatprep.subr.mxu1 %v11817_v9  ;;  %5363 = vmatpush1.msra.mxu0 %v14909_v27 }
 0x423   : > { %5510 = vmatpush1.msra.mxu1 %v11831_v5  ;;  %5366 = vmatprep.subr.mxu0 %v14910_v26 }
 0x424   : > { %5512 = vmatprep.subr.mxu1 %v11848_v11  ;;  %5369 = vmatpush1.msra.mxu0 %v14911_v20 }
 0x425   : > { %5514 = vmatpush1.msra.mxu1 %v11875_v2  ;;  %5372 = vmatprep.subr.mxu0 %v14912_v0 }
 0x426   : > { %5516 = vmatprep.subr.mxu1 %v11919_v51  ;;  %5375 = vmatpush1.msra.mxu0 %v14913_v50 }
 0x427   : > { %5518 = vmatpush1.msra.mxu1 %v11949_v35  ;;  %5378 = vmatprep.subr.mxu0 %v14914_v29 }
 0x428   : > { %5520 = vmatprep.subr.mxu1 %v11964_v61  ;;  %5381 = vmatpush1.msra.mxu0 %v14915_v3 }
 0x429   : > { %5522 = vmatpush1.msra.mxu1 %v11980_v10  ;;  %5384 = vmatprep.subr.mxu0 %v14916_v56 }
 0x42a   : > { %5524 = vmatprep.subr.mxu1 %v11994_v31  ;;  %5387 = vmatpush1.msra.mxu0 %v14917_v8  ;;  %v14922_v31 = vld [vmem:[#allocation47_spill] sm:$0xff] }
 0x42b   : > { %5526 = vmatpush1.msra.mxu1 %v12010_v30  ;;  %5390 = vmatprep.subr.mxu0 %v14918_v6 }
 0x42c   : > { %5528 = vmatprep.subr.mxu1 %v12026_v63  ;;  %5393 = vmatpush1.msra.mxu0 %v14919_v52 }
 0x42d   : > { %5530 = vmatpush1.msra.mxu1 %v12038_v25  ;;  %5396 = vmatprep.subr.mxu0 %v14920_v34 }
 0x42e   : > { %5532 = vmatprep.subr.mxu1 %v12054_v16  ;;  %5399 = vmatpush1.msra.mxu0 %v14921_v54 }
 0x42f   : > { %5534 = vmatpush1.msra.mxu1 %v12066_v55  ;;  %5402 = vmatprep.subr.mxu0 %v14922_v31 }
 0x430   : > { %5536 = vmatprep.subr.mxu1 %v12077_v22  ;;  %5405 = vmatpush1.msra.mxu0 %v12036_v36 }
 0x431   : > { %5538 = vmatpush1.msra.mxu1 %v12091_v57  ;;  %5408 = vmatprep.subr.mxu0 %v12052_v4  ;;  %v14923_v57 = vld [vmem:[#allocation63_spill] sm:$0xff] }
 0x432   : > { %5540 = vmatprep.subr.mxu1 %v12102_v7  ;;  %5411 = vmatpush1.msra.mxu0 %v12064_v38 }
 0x433   : > { %5542 = vmatpush1.msra.mxu1 %v12115_v23  ;;  %5414 = vmatprep.subr.mxu0 %v12075_v43 }
 0x434   : > { %5544 = vmatprep.subr.mxu1 %v12125_v59  ;;  %5417 = vmatpush1.msra.mxu0 %v12089_v28 }
 0x435   : > { %5546 = vmatpush1.msra.mxu1 %v12135_v60  ;;  %5579 = vmatprep.mubr.f32.mxu1 %v14366_v44 }
 0x436   : > { %5420 = vmatprep.subr.mxu0 %v12100_v15  ;;  %5583 = vmatmul.mubr.f32.vlgmr.msra.gmra.mxu1 %v14923_v57 }
 0x437   : > { %5758 = vmatprep.subr.mxu1 %v11678_v37  ;;  %5423 = vmatpush1.msra.mxu0 %v12113_v62  ;;  %v14924_v37 = vld [vmem:[#allocation25_spill] sm:$0xff] }
 0x438   : > { %5760 = vmatpush1.msra.mxu1 %v11692_v48  ;;  %5426 = vmatprep.subr.mxu0 %v12123_v47  ;;  %v14925_v48 = vand.u32 4294901760, %v11709_v12  ;;  %v14929_v12 = vand.u32 4294901760, %v14908_v18 }
 0x439   : > { %5762 = vmatprep.subr.mxu1 %v11700_v17  ;;  %5429 = vmatpush1.msra.mxu0 %v12133_v39  ;;  %v14926_v17 = vand.u32 4294901760, %v14905_v49 }
 0x43a   : > { %5764 = vmatpush1.msra.mxu1 %v11711_v1  ;;  %5432 = vmatprep.subr.mxu0 %v12143_v53  ;;  %v14927_v1 = vand.u32 4294901760, %v14906_v58 }
 0x43b   : > { %5766 = vmatprep.subr.mxu1 %v11719_v40  ;;  %5435 = vmatpush1.msra.mxu0 %v12151_v33  ;;  %v14928_v40 = vand.u32 4294901760, %v14907_v45  ;;  %v5962_v45 = vld [vmem:[%s13758_s3 + $0x1a0] sm:$0xff] }
 0x43c   : > { %5768 = vmatpush1.msra.mxu1 %v11730_v19  ;;  %5438 = vmatprep.subr.mxu0 %v12159_v21  ;;  %v14930_v19 = vand.u32 4294901760, %v14909_v27 }
 0x43d   : > { %5770 = vmatprep.subr.mxu1 %v11741_v14  ;;  %5441 = vmatpush1.msra.mxu0 %v12167_v32  ;;  %v14931_v14 = vand.u32 4294901760, %v14910_v26  ;;  %v12439_v26 = vand.u32 4294901760, %v5962_v45 }
 0x43e   : > { %5474 = vmatprep.mubr.f32.mxu0 %v14366_v44  ;;  %5772 = vmatpush1.msra.mxu1 %v11753_v24  ;;  %v14932_v24 = vand.u32 4294901760, %v14911_v20  ;;  %v5959_v20 = vld [vmem:[%s13758_s3 + $0x188] sm:$0xff] }
 0x43f   : > { %5477 = vmatmul.mubr.f32.vlgmr.msra.gmra.mxu0 %v14924_v37  ;;  %5592 = vmatprep.subr.mxu0 %v14925_v48  ;;  %v5955_v48 = vld [vmem:[%s13758_s3 + $0x168] sm:$0xff] }
 0x440   : > { %5774 = vmatprep.subr.mxu1 %v11764_v13  ;;  %5596 = vmatpush1.msra.mxu0 %v14926_v17  ;;  %v14933_v13 = vand.u32 4294901760, %v14912_v0 }
 0x441   : > { %5776 = vmatpush1.msra.mxu1 %v11776_v42  ;;  %5600 = vmatprep.subr.mxu0 %v14927_v1  ;;  %v14935_v42 = vand.u32 4294901760, %v14914_v29 }
 0x442   : > { %5778 = vmatprep.subr.mxu1 %v11788_v41  ;;  %5604 = vmatpush1.msra.mxu0 %v14928_v40  ;;  %v14936_v41 = vand.u32 4294901760, %v14915_v3  ;;  %v12452_v3 = vand.u32 4294901760, %v5959_v20 }
 0x443   : > { %5780 = vmatpush1.msra.mxu1 %v11805_v46  ;;  %5608 = vmatprep.subr.mxu0 %v14929_v12  ;;  %v14937_v46 = vand.u32 4294901760, %v14916_v56  ;;  %v5958_v56 = vld [vmem:[%s13758_s3 + $0x180] sm:$0xff] }
 0x444   : > { %5782 = vmatprep.subr.mxu1 %v11817_v9  ;;  %5612 = vmatpush1.msra.mxu0 %v14930_v19  ;;  %v14934_v9 = vand.u32 4294901760, %v14913_v50  ;;  %v12465_v37 = vand.u32 4294901760, %v5958_v56  ;;  %v12476_v12 = vsub.f32 %v5959_v20, %v12452_v3  ;;  %v5954_v19 = vld [vmem:[%s13758_s3 + $0x160] sm:$0xff] }
 0x445   : > { %5784 = vmatpush1.msra.mxu1 %v11831_v5  ;;  %5616 = vmatprep.subr.mxu0 %v14931_v14  ;;  %v14939_v5 = vand.u32 4294901760, %v14917_v8 }
 0x446   : > { %5786 = vmatprep.subr.mxu1 %v11848_v11  ;;  %5620 = vmatpush1.msra.mxu0 %v14932_v24  ;;  %v14938_v11 = vld [vmem:[#allocation43_spill] sm:$0xff] }
 0x447   : > { %5788 = vmatpush1.msra.mxu1 %v11875_v2  ;;  %5624 = vmatprep.subr.mxu0 %v14933_v13  ;;  %v14940_v2 = vand.u32 4294901760, %v14918_v6 }
 0x448   : > { %5790 = vmatprep.subr.mxu1 %v11919_v51  ;;  %5628 = vmatpush1.msra.mxu0 %v14934_v9  ;;  %v14942_v51 = vand.u32 4294901760, %v14920_v34  ;;  %v12487_v9 = vsub.f32 %v5958_v56, %v12465_v37 }
 0x449   : > { %5792 = vmatpush1.msra.mxu1 %v11949_v35  ;;  %5632 = vmatprep.subr.mxu0 %v14935_v42  ;;  %v14944_v35 = vand.u32 4294901760, %v14922_v31  ;;  %v14949_v31 = vand.u32 4294901760, %v12075_v43  ;;  %v14956_v43 = vand.u32 4294901760, %v12143_v53  ;;  %v5970_v53 = vld [vmem:[%s13758_s3 + $0x1e0] sm:$0xff]  ;;  %v5951_v42 = vld [vmem:[%s13758_s3 + $0x148] sm:$0xff] }
 0x44a   : > { %5794 = vmatprep.subr.mxu1 %v11964_v61  ;;  %5636 = vmatpush1.msra.mxu0 %v14936_v41  ;;  %v14941_v61 = vand.u32 4294901760, %v14919_v52  ;;  %v12402_v57 = vand.u32 4294901760, %v5970_v53  ;;  %v12463_v52 = vsub.f32 %v5962_v45, %v12439_v26 }
 0x44b   : > { %5796 = vmatpush1.msra.mxu1 %v11980_v10  ;;  %5640 = vmatprep.subr.mxu0 %v14937_v46  ;;  %v14943_v10 = vand.u32 4294901760, %v14921_v54  ;;  %v14948_v54 = vand.u32 4294901760, %v12064_v38  ;;  %v14953_v38 = vand.u32 4294901760, %v12113_v62  ;;  %v14959_v62 = vand.u32 4294901760, %v12167_v32  ;;  %v5963_v32 = vld [vmem:[%s13758_s3 + $0x1a8] sm:$0xff] }
 0x44c   : > { %5798 = vmatprep.subr.mxu1 %v14938_v11  ;;  %5644 = vmatpush1.msra.mxu0 %v14939_v5  ;;  %v12429_v58 = vand.u32 4294901760, %v5963_v32  ;;  %v14205_v13 = vand.u32 4294901760, %v12463_v52  ;;  %v14204_v11 = vand.u32 4294901760, %v12476_v12  ;;  %v12497_v5 = vand.u32 4294901760, %v5955_v48 }
 0x44d   : > { %5800 = vmatpush1.msra.mxu1 %v12010_v30  ;;  %5648 = vmatprep.subr.mxu0 %v14940_v2  ;;  %v14945_v30 = vand.u32 4294901760, %v12036_v36  ;;  %v14950_v36 = vand.u32 4294901760, %v12089_v28  ;;  %v14955_v28 = vand.u32 4294901760, %v12133_v39  ;;  %v5950_v2 = vld [vmem:[%s13758_s3 + $0x140] sm:$0xff] }
 0x44e   : > { %5802 = vmatprep.subr.mxu1 %v12026_v63  ;;  %5652 = vmatpush1.msra.mxu0 %v14941_v61  ;;  %v14946_v63 = vld [vmem:[#allocation36_spill] sm:$0xff]  ;;  %v12450_v29 = vsub.f32 %v5963_v32, %v12429_v58 }
 0x44f   : > { %5804 = vmatpush1.msra.mxu1 %v12038_v25  ;;  %5656 = vmatprep.subr.mxu0 %v14942_v51  ;;  %v14947_v25 = vand.u32 4294901760, %v12052_v4  ;;  %v14951_v4 = vand.u32 4294901760, %v12100_v15  ;;  %v5967_v15 = vld [vmem:[%s13758_s3 + $0x1c8] sm:$0xff]  ;;  %v6126_v51 = vsub.f32 %v12463_v52, %v14205_v13  ;;  %v5922_v13 = vld [vmem:[%s13758_s3 + $0x60] sm:$0xff] }
 0x450   : > { %5806 = vmatprep.subr.mxu1 %v12054_v16  ;;  %5660 = vmatpush1.msra.mxu0 %v14943_v10  ;;  %v14952_v16 = vld [vmem:[#allocation42_spill] sm:$0xff]  ;;  %v14207_v40 = vand.u32 4294901760, %v12450_v29  ;;  %v14203_v10 = vand.u32 4294901760, %v12487_v9 }
 0x451   : > { %5808 = vmatpush1.msra.mxu1 %v12066_v55  ;;  %5664 = vmatprep.subr.mxu0 %v14944_v35  ;;  %v14954_v55 = vand.u32 4294901760, %v12123_v47  ;;  %v5971_v47 = vld [vmem:[%s13758_s3 + $0x1e8] sm:$0xff]  ;;  %v12506_v35 = vand.u32 4294901760, %v5954_v19 }
 0x452   : > { %5810 = vmatprep.subr.mxu1 %v12077_v22  ;;  %5668 = vmatpush1.msra.mxu0 %v14945_v30  ;;  %v14957_v22 = vand.u32 4294901760, %v12151_v33  ;;  %v12397_v39 = vand.u32 4294901760, %v5971_v47  ;;  %v12417_v33 = vsub.f32 %v5970_v53, %v12402_v57  ;;  %v6120_v46 = vsub.f32 %v12450_v29, %v14207_v40  ;;  %v5947_v30 = vld [vmem:[%s13758_s3 + $0x128] sm:$0xff] }
 0x453   : > { %5812 = vmatpush1.msra.mxu1 %v14946_v63  ;;  %5672 = vmatprep.subr.mxu0 %v14947_v25  ;;  %v6132_v25 = vsub.f32 %v12476_v12, %v14204_v11 }
 0x454   : > { %5814 = vmatprep.subr.mxu1 %v12102_v7  ;;  %5676 = vmatpush1.msra.mxu0 %v14948_v54  ;;  %v14958_v7 = vand.u32 4294901760, %v12159_v21  ;;  %14960 = vst [vmem:[#allocation64_spill] sm:$0xff] %v12397_v39  ;;  %v14211_v18 = vand.u32 4294901760, %v12417_v33  ;;  %v6121_v63 = vand.u32 4294901760, %v6120_v46  ;;  %v12515_v54 = vsub.f32 %v5955_v48, %v12497_v5  ;;  %v5938_v46 = vld [vmem:[%s13758_s3 + $0xe0] sm:$0xff] }
 0x455   : > { %5816 = vmatpush1.msra.mxu1 %v12115_v23  ;;  %5680 = vmatprep.subr.mxu0 %v14949_v31  ;;  %v12408_v23 = vsub.f32 %v5971_v47, %v12397_v39  ;;  %v12517_v31 = vand.u32 4294901760, %v5951_v42  ;;  %v5942_v47 = vld [vmem:[%s13758_s3 + $0x100] sm:$0xff] }
 0x456   : > { %5818 = vmatprep.subr.mxu1 %v12125_v59  ;;  %5684 = vmatpush1.msra.mxu0 %v14950_v36  ;;  %v12410_v59 = vand.u32 4294901760, %v5967_v15  ;;  %v6102_v8 = vsub.f32 %v12417_v33, %v14211_v18  ;;  %v5946_v36 = vld [vmem:[%s13758_s3 + $0x120] sm:$0xff]  ;;  %v12716_v18 = vand.u32 4294901760, %v5922_v13 }
 0x457   : > { %5820 = vmatpush1.msra.mxu1 %v12135_v60  ;;  %5853 = vmatprep.mubr.f32.mxu1 %v14366_v44  ;;  %14961 = vst [vmem:[#allocation21_spill] sm:$0xff] %v12408_v23  ;;  %v5966_v60 = vld [vmem:[%s13758_s3 + $0x1c0] sm:$0xff]  ;;  %v14213_v34 = vand.u32 4294901760, %v12408_v23  ;;  %v12549_v32 = vand.u32 4294901760, %v5946_v36 }
 0x458   : > { %5688 = vmatprep.subr.mxu0 %v14951_v4  ;;  %5855 = vmatmul.mubr.f32.vlgmr.msra.gmra.mxu1 %v14952_v16  ;;  %v12419_v21 = vand.u32 4294901760, %v5966_v60  ;;  %v12427_v49 = vsub.f32 %v5967_v15, %v12410_v59  ;;  %v6103_v14 = vand.u32 4294901760, %v6102_v8  ;;  %v6127_v4 = vand.u32 4294901760, %v6126_v51  ;;  %14974 = vst [vmem:[#allocation44_spill] sm:$0xff] %v12716_v18 }
 0x459   : > { %5692 = vmatpush1.msra.mxu0 %v14953_v38  ;;  %5749 = vmatprep.mubr.f32.mxu0 %v14366_v44  ;;  %v6096_v0 = vsub.f32 %v12408_v23, %v14213_v34  ;;  %v12527_v38 = vsub.f32 %v5954_v19, %v12506_v35  ;;  %v5939_v19 = vld [vmem:[%s13758_s3 + $0xe8] sm:$0xff] }
 0x45a   : > { %5696 = vmatprep.subr.mxu0 %v14954_v55  ;;  %6317 = vmatprep.mubr.f32.mxu1 %v14366_v44  ;;  %v12437_v27 = vsub.f32 %v5966_v60, %v12419_v21  ;;  %v14210_v50 = vand.u32 4294901760, %v12427_v49  ;;  %v12529_v55 = vand.u32 4294901760, %v5950_v2 }
 0x45b   : > { %5700 = vmatpush1.msra.mxu0 %v14955_v28  ;;  %v6097_v17 = vand.u32 4294901760, %v6096_v0  ;;  %v5943_v28 = vld [vmem:[%s13758_s3 + $0x108] sm:$0xff]  ;;  %v14199_v15 = vand.u32 4294901760, %v12527_v38 }
 0x45c   : > { %5704 = vmatprep.subr.mxu0 %v14956_v43  ;;  %v14209_v6 = vand.u32 4294901760, %v12437_v27  ;;  %v6108_v1 = vsub.f32 %v12427_v49, %v14210_v50  ;;  %v6133_v43 = vand.u32 4294901760, %v6132_v25  ;;  %v12547_v60 = vsub.f32 %v5950_v2, %v12529_v55 }
 0x45d   : > { %5708 = vmatpush1.msra.mxu0 %v14957_v22  ;;  %6098 = vmatprep.subr.mxu1 %v6097_v17  ;;  %v14201_v22 = vand.u32 4294901760, %v12515_v54  ;;  %v12559_v56 = vand.u32 4294901760, %v5943_v28  ;;  %v6150_v8 = vsub.f32 %v12527_v38, %v14199_v15  ;;  %v12567_v17 = vsub.f32 %v5946_v36, %v12549_v32 }
 0x45e   : > { %5712 = vmatprep.subr.mxu0 %v14958_v7  ;;  %v6114_v24 = vsub.f32 %v12437_v27, %v14209_v6  ;;  %v6109_v41 = vand.u32 4294901760, %v6108_v1  ;;  %6104 = vmatpush1.msra.mxu1 %v6103_v14  ;;  %v12537_v7 = vsub.f32 %v5951_v42, %v12517_v31  ;;  %v14196_v48 = vand.u32 4294901760, %v12547_v60 }
 0x45f   : > { %5716 = vmatpush1.msra.mxu0 %v14959_v62  ;;  %v12539_v62 = vand.u32 4294901760, %v5947_v30  ;;  %v6144_v45 = vsub.f32 %v12515_v54, %v14201_v22  ;;  %v12569_v1 = vand.u32 4294901760, %v5942_v47  ;;  %v6151_v2 = vand.u32 4294901760, %v6150_v8 }
 0x460   : > { %5751 = vmatmul.mubr.f32.vlgmr.msra.gmra.mxu0 %v14952_v16  ;;  %5986 = vmatprep.subr.mxu0 %v12397_v39  ;;  %v6115_v61 = vand.u32 4294901760, %v6114_v24  ;;  %v6138_v16 = vsub.f32 %v12487_v9, %v14203_v10  ;;  %v14198_v20 = vand.u32 4294901760, %v12537_v7  ;;  %v14192_v51 = vand.u32 4294901760, %v12567_v17 }
 0x461   : > { %6081 = vmatprep.mubr.f32.mxu0 %v14366_v44  ;;  %5988 = vmatpush1.msra.mxu0 %v12402_v57  ;;  %v12557_v0 = vsub.f32 %v5947_v30, %v12539_v62  ;;  %v6145_v14 = vand.u32 4294901760, %v6144_v45  ;;  %v12591_v30 = vsub.f32 %v5942_v47, %v12569_v1  ;;  %v5934_v45 = vld [vmem:[%s13758_s3 + $0xc0] sm:$0xff] }
 0x462   : > { %5990 = vmatprep.subr.mxu0 %v12410_v59  ;;  %6110 = vmatprep.subr.mxu1 %v6109_v41  ;;  %v6139_v53 = vand.u32 4294901760, %v6138_v16  ;;  %v6156_v24 = vsub.f32 %v12537_v7, %v14198_v20  ;;  %v12580_v41 = vsub.f32 %v5943_v28, %v12559_v56  ;;  %v12601_v16 = vand.u32 4294901760, %v5939_v19 }
 0x463   : > { %5992 = vmatpush1.msra.mxu0 %v12419_v21  ;;  %6116 = vmatpush1.msra.mxu1 %v6115_v61  ;;  %v14195_v42 = vand.u32 4294901760, %v12557_v0  ;;  %v6162_v61 = vsub.f32 %v12547_v60, %v14196_v48  ;;  %14962 = vst [vmem:[#allocation17_spill] sm:$0xff] %v12591_v30  ;;  %v14194_v47 = vand.u32 4294901760, %v12591_v30 }
 0x464   : > { %5994 = vmatprep.subr.mxu0 %v12429_v58  ;;  %6122 = vmatprep.subr.mxu1 %v6121_v63  ;;  %v5935_v63 = vld [vmem:[%s13758_s3 + $0xc8] sm:$0xff]  ;;  %v6157_v25 = vand.u32 4294901760, %v6156_v24  ;;  %v12616_v24 = vsub.f32 %v5939_v19, %v12601_v16 }
 0x465   : > { %5996 = vmatpush1.msra.mxu0 %v12439_v26  ;;  %6128 = vmatpush1.msra.mxu1 %v6127_v4  ;;  %v6168_v36 = vsub.f32 %v12557_v0, %v14195_v42  ;;  %v14193_v4 = vand.u32 4294901760, %v12580_v41  ;;  %v6163_v28 = vand.u32 4294901760, %v6162_v61 }
 0x466   : > { %5998 = vmatprep.subr.mxu0 %v12452_v3  ;;  %6134 = vmatprep.subr.mxu1 %v6133_v43  ;;  %v6174_v43 = vsub.f32 %v12567_v17, %v14192_v51  ;;  %14963 = vst [vmem:[#allocation37_spill] sm:$0xff] %v12616_v24  ;;  %v6186_v51 = vsub.f32 %v12591_v30, %v14194_v47  ;;  %v5863_v30 = vpop.permute.xlu0 %5862 }
 0x467   : > { %6000 = vmatpush1.msra.mxu0 %v12465_v37  ;;  %6140 = vmatpush1.msra.mxu1 %v6139_v53  ;;  %v12607_v53 = vand.u32 4294901760, %v5938_v46  ;;  %v6169_v8 = vand.u32 4294901760, %v6168_v36  ;;  %v5931_v36 = vld [vmem:[%s13758_s3 + $0xa8] sm:$0xff] }
 0x468   : > { %6002 = vmatprep.subr.mxu0 %v12497_v5  ;;  %6146 = vmatprep.subr.mxu1 %v6145_v14  ;;  %v6180_v14 = vsub.f32 %v12580_v41, %v14193_v4  ;;  %v6175_v61 = vand.u32 4294901760, %v6174_v43  ;;  %v14197_v4 = vand.u32 4294901760, %v12616_v24  ;;  %v12635_v43 = vand.u32 4294901760, %v5934_v45 }
 0x469   : > { %6004 = vmatpush1.msra.mxu0 %v12506_v35  ;;  %6152 = vmatpush1.msra.mxu1 %v6151_v2  ;;  %v12618_v2 = vand.u32 4294901760, %v5935_v63  ;;  %v6187_v47 = vand.u32 4294901760, %v6186_v51  ;;  %v12649_v48 = vand.u32 4294901760, %v5931_v36 }
 0x46a   : > { %6006 = vmatprep.subr.mxu0 %v12517_v31  ;;  %6158 = vmatprep.subr.mxu1 %v6157_v25  ;;  %v12625_v25 = vsub.f32 %v5938_v46, %v12607_v53  ;;  %v6181_v19 = vand.u32 4294901760, %v6180_v14  ;;  %v5930_v46 = vld [vmem:[%s13758_s3 + $0xa0] sm:$0xff]  ;;  %v12647_v14 = vsub.f32 %v5934_v45, %v12635_v43 }
 0x46b   : > { %6008 = vmatpush1.msra.mxu0 %v12529_v55  ;;  %6164 = vmatpush1.msra.mxu1 %v6163_v28  ;;  %v12633_v28 = vsub.f32 %v5935_v63, %v12618_v2  ;;  %v12665_v15 = vsub.f32 %v5931_v36, %v12649_v48 }
 0x46c   : > { %6010 = vmatprep.subr.mxu0 %v12539_v62  ;;  %14964 = vst [vmem:[#allocation23_spill] sm:$0xff] %v12625_v25  ;;  %6170 = vmatprep.subr.mxu1 %v6169_v8  ;;  %v14200_v42 = vand.u32 4294901760, %v12625_v25  ;;  %v6192_v8 = vsub.f32 %v12616_v24, %v14197_v4  ;;  %14966 = vst [vmem:[#allocation18_spill] sm:$0xff] %v12647_v14  ;;  %v14206_v20 = vand.u32 4294901760, %v12647_v14 }
 0x46d   : > { %6012 = vmatpush1.msra.mxu0 %v12549_v32  ;;  %14965 = vst [vmem:[#allocation32_spill] sm:$0xff] %v12633_v28  ;;  %6176 = vmatpush1.msra.mxu1 %v6175_v61  ;;  %v14202_v63 = vand.u32 4294901760, %v12633_v28  ;;  %v12655_v61 = vand.u32 4294901760, %v5930_v46  ;;  %14967 = vst [vmem:[#allocation35_spill] sm:$0xff] %v12665_v15  ;;  %v14208_v10 = vand.u32 4294901760, %v12665_v15 }
 0x46e   : > { %6014 = vmatprep.subr.mxu0 %v12559_v56  ;;  %6182 = vmatprep.subr.mxu1 %v6181_v19  ;;  %v6198_v51 = vsub.f32 %v12625_v25, %v14200_v42  ;;  %v5927_v19 = vld [vmem:[%s13758_s3 + $0x88] sm:$0xff]  ;;  %v6193_v4 = vand.u32 4294901760, %v6192_v8  ;;  %v6210_v36 = vsub.f32 %v12647_v14, %v14206_v20 }
 0x46f   : > { %6016 = vmatpush1.msra.mxu0 %v12569_v1  ;;  %6188 = vmatpush1.msra.mxu1 %v6187_v47  ;;  %v6204_v45 = vsub.f32 %v12633_v28, %v14202_v63  ;;  %v5926_v47 = vld [vmem:[%s13758_s3 + $0x80] sm:$0xff]  ;;  %v12672_v22 = vsub.f32 %v5930_v46, %v12655_v61  ;;  %v5923_v8 = vld [vmem:[%s13758_s3 + $0x68] sm:$0xff]  ;;  %v12682_v11 = vand.u32 4294901760, %v5927_v19 }
 0x470   : > { %6018 = vmatprep.subr.mxu0 %v12601_v16  ;;  %v6199_v42 = vand.u32 4294901760, %v6198_v51  ;;  %6194 = vmatprep.subr.mxu1 %v6193_v4  ;;  %v12685_v51 = vand.u32 4294901760, %v5926_v47  ;;  %v6211_v4 = vand.u32 4294901760, %v6210_v36  ;;  %v12696_v40 = vand.u32 4294901760, %v5923_v8 }
 0x471   : > { %6020 = vmatpush1.msra.mxu0 %v12607_v53  ;;  %14968 = vst [vmem:[#allocation29_spill] sm:$0xff] %v12672_v22  ;;  %v6205_v63 = vand.u32 4294901760, %v6204_v45  ;;  %v14212_v46 = vand.u32 4294901760, %v12672_v22  ;;  %v6216_v45 = vsub.f32 %v12665_v15, %v14208_v10  ;;  %v12694_v20 = vsub.f32 %v5927_v19, %v12682_v11  ;;  %v5918_v19 = vld [vmem:[%s13758_s3 + $0x40] sm:$0xff] }
 0x472   : > { %6022 = vmatprep.subr.mxu0 %v12618_v2  ;;  %6200 = vmatpush1.msra.mxu1 %v6199_v42  ;;  %14969 = vst [vmem:[#allocation27_spill] sm:$0xff] %v12685_v51  ;;  %14971 = vst [vmem:[#allocation46_spill] sm:$0xff] %v12696_v40  ;;  %v5919_v42 = vld [vmem:[%s13758_s3 + $0x48] sm:$0xff]  ;;  %v12706_v36 = vsub.f32 %v5926_v47, %v12685_v51  ;;  %v12714_v50 = vsub.f32 %v5923_v8, %v12696_v40  ;;  %v12735_v14 = vand.u32 4294901760, %v5918_v19 }
 0x473   : > { %6024 = vmatpush1.msra.mxu0 %v12635_v43  ;;  %6206 = vmatprep.subr.mxu1 %v6205_v63  ;;  %14970 = vst [vmem:[#allocation22_spill] sm:$0xff] %v12694_v20  ;;  %v6222_v63 = vsub.f32 %v12672_v22, %v14212_v46  ;;  %v6217_v10 = vand.u32 4294901760, %v6216_v45  ;;  %v14222_v6 = vand.u32 4294901760, %v12694_v20  ;;  %v5915_v47 = vld [vmem:[%s13758_s3 + $0x28] sm:$0xff]  ;;  %v5914_v46 = vld [vmem:[%s13758_s3 + $0x20] sm:$0xff]  ;;  %v12726_v45 = vand.u32 4294901760, %v5919_v42 }
 0x474   : > { %6026 = vmatprep.subr.mxu0 %v12649_v48  ;;  %14972 = vst [vmem:[#allocation62_spill] sm:$0xff] %v12706_v36  ;;  %6212 = vmatpush1.msra.mxu1 %v6211_v4  ;;  %14973 = vst [vmem:[#allocation24_spill] sm:$0xff] %v12714_v50  ;;  %v14225_v4 = vand.u32 4294901760, %v12706_v36  ;;  %v12733_v15 = vsub.f32 %v5922_v13, %v12716_v18  ;;  %v12744_v28 = vand.u32 4294901760, %v5915_v47  ;;  %v5911_v13 = vld [vmem:[%s13758_s3 + $0x8] sm:$0xff] }
 0x475   : > { %6028 = vmatpush1.msra.mxu0 %v12655_v61  ;;  %v6223_v34 = vand.u32 4294901760, %v6222_v63  ;;  %14975 = vst [vmem:[#allocation61_spill] sm:$0xff] %v12726_v45  ;;  %6218 = vmatprep.subr.mxu1 %v6217_v10  ;;  %v6228_v8 = vsub.f32 %v12694_v20, %v14222_v6  ;;  %14977 = vst [vmem:[#allocation31_spill] sm:$0xff] %v12735_v14  ;;  %v12742_v10 = vsub.f32 %v5919_v42, %v12726_v45 }
 0x476   : > { %6030 = vmatprep.subr.mxu0 %v12682_v11  ;;  %14976 = vst [vmem:[#allocation60_spill] sm:$0xff] %v12733_v15  ;;  %v6234_v63 = vsub.f32 %v12706_v36, %v14225_v4  ;;  %14979 = vst [vmem:[#allocation39_spill] sm:$0xff] %v12744_v28  ;;  %v12746_v6 = vand.u32 4294901760, %v5914_v46  ;;  %v14238_v4 = vand.u32 4294901760, %v12733_v15  ;;  %v12757_v42 = vsub.f32 %v5918_v19, %v12735_v14  ;;  %v5910_v36 = vld [vmem:[%s13758_s3] sm:$0xff] }
 0x477   : > { %6032 = vmatpush1.msra.mxu0 %v12685_v51  ;;  %6224 = vmatpush1.msra.mxu1 %v6223_v34  ;;  %14978 = vst [vmem:[#allocation45_spill] sm:$0xff] %v12742_v10  ;;  %v6229_v22 = vand.u32 4294901760, %v6228_v8  ;;  %v14981_v34 = vand.u32 4294901760, %v12714_v50  ;;  %v14241_v25 = vand.u32 4294901760, %v12742_v10  ;;  %v12765_v8 = vsub.f32 %v5915_v47, %v12744_v28 }
 0x478   : > { %6034 = vmatprep.subr.mxu0 %v12696_v40  ;;  %14980 = vst [vmem:[#allocation33_spill] sm:$0xff] %v12746_v6  ;;  %14982 = vst [vmem:[#allocation40_spill] sm:$0xff] %v12757_v42 }
 0x479   : > { %6036 = vmatpush1.msra.mxu0 %v12716_v18  ;;  %v6240_v20 = vsub.f32 %v12714_v50, %v14981_v34  ;;  %v6235_v18 = vand.u32 4294901760, %v6234_v63  ;;  %14983 = vst [vmem:[#allocation20_spill] sm:$0xff] %v12765_v8  ;;  %6230 = vmatprep.subr.mxu1 %v6229_v22  ;;  %v6246_v34 = vsub.f32 %v12733_v15, %v14238_v4  ;;  %v14244_v50 = vand.u32 4294901760, %v12757_v42 }
 0x47a   : > { %6038 = vmatprep.subr.mxu0 %v12726_v45  ;;  %v12768_v45 = vsub.f32 %v5914_v46, %v12746_v6  ;;  %v6252_v46 = vsub.f32 %v12742_v10, %v14241_v25  ;;  %v14245_v47 = vand.u32 4294901760, %v12765_v8 }
 0x47b   : > { %6040 = vmatpush1.msra.mxu0 %v12735_v14  ;;  %v6241_v19 = vand.u32 4294901760, %v6240_v20  ;;  %v12775_v14 = vand.u32 4294901760, %v5911_v13  ;;  %6236 = vmatpush1.msra.mxu1 %v6235_v18  ;;  %v12783_v20 = vand.u32 4294901760, %v5910_v36  ;;  %v6247_v63 = vand.u32 4294901760, %v6246_v34 }
 0x47c   : > { %14984 = vst [vmem:[#allocation41_spill] sm:$0xff] %v12768_v45  ;;  %6042 = vmatprep.subr.mxu0 %v12744_v28  ;;  %v14246_v22 = vand.u32 4294901760, %v12768_v45  ;;  %v6258_v4 = vsub.f32 %v12757_v42, %v14244_v50  ;;  %v6253_v18 = vand.u32 4294901760, %v6252_v46  ;;  %v6264_v25 = vsub.f32 %v12765_v8, %v14245_v47 }
 0x47d   : > { %14985 = vst [vmem:[#allocation16_spill] sm:$0xff] %v12775_v14  ;;  %6044 = vmatpush1.msra.mxu0 %v12746_v6  ;;  %14986 = vst [vmem:[#allocation28_spill] sm:$0xff] %v12783_v20  ;;  %6242 = vmatprep.subr.mxu1 %v6241_v19  ;;  %v12789_v15 = vsub.f32 %v5911_v13, %v12775_v14  ;;  %v12799_v19 = vsub.f32 %v5910_v36, %v12783_v20 }
 0x47e   : > { %6046 = vmatprep.subr.mxu0 %v12775_v14  ;;  %v6270_v10 = vsub.f32 %v12768_v45, %v14246_v22  ;;  %6248 = vmatpush1.msra.mxu1 %v6247_v63  ;;  %v6259_v34 = vand.u32 4294901760, %v6258_v4  ;;  %v6265_v46 = vand.u32 4294901760, %v6264_v25  ;;  %v4254_v25 = vpop.f32.mrf.mxu0 }
 0x47f   : > { %14987 = vst [vmem:[#allocation19_spill] sm:$0xff] %v12789_v15  ;;  %14988 = vst [vmem:[#allocation34_spill] sm:$0xff] %v12799_v19  ;;  %6048 = vmatpush1.msra.mxu0 %v12783_v20  ;;  %v14252_v13 = vand.u32 4294901760, %v12789_v15  ;;  %6254 = vmatprep.subr.mxu1 %v6253_v18  ;;  %v14259_v47 = vand.u32 4294901760, %v12799_v19  ;;  %v14989_v18 = vld [vmem:[#allocation48_spill] sm:$0xff] }
 0x480   : > { %6327 = vmatprep.subr.mxu0 %v12408_v23  ;;  %v6271_v50 = vand.u32 4294901760, %v6270_v10  ;;  %6260 = vmatpush1.msra.mxu1 %v6259_v34  ;;  %v4145_v10 = vpop.permute.xlu1 %4144  ;;  %v14990_v23 = vld [vmem:[#allocation49_spill] sm:$0xff]  ;;  %v4256_v8 = vpop.f32.mrf.mxu0 }
 0x481   : > { %v6276_v22 = vsub.f32 %v12789_v15, %v14252_v13  ;;  %6266 = vmatprep.subr.mxu1 %v6265_v46  ;;  %v6282_v36 = vsub.f32 %v12799_v19, %v14259_v47  ;;  %v4148_v34 = vmul.f32 %v4145_v10, %v14989_v18  ;;  %v4147_v45 = vmul.f32 %v4145_v10, %v14990_v23  ;;  %v4486_v13 = vpop.f32.mrf.mxu1 }
 0x482   : > { %6272 = vmatpush1.msra.mxu1 %v6271_v50 }
 0x483   : > { %v6277_v4 = vand.u32 4294901760, %v6276_v22  ;;  %v6283_v63 = vand.u32 4294901760, %v6282_v36  ;;  %v4257_v15 = vadd.f32 %v4256_v8, %v4148_v34  ;;  %v4255_v42 = vadd.f32 %v4254_v25, %v4147_v45  ;;  %v4488_v20 = vpop.f32.mrf.mxu1  ;;  %v14991_v45 = vld [vmem:[#allocation50_spill] sm:$0xff]  ;;  %v14992_v34 = vld [vmem:[#allocation51_spill] sm:$0xff] }
 0x484   : > { %v5866_v25 = vmul.f32 %v5863_v30, %v14991_v45  ;;  %v15029_v45 = vld [vmem:[#allocation40_spill] sm:$0xff] }
 0x485   : > { %6278 = vmatprep.subr.mxu1 %v6277_v4  ;;  %v4489_v50 = vadd.f32 %v4488_v20, %v4257_v15  ;;  %v4487_v36 = vadd.f32 %v4486_v13, %v4255_v42  ;;  %v5865_v15 = vmul.f32 %v5863_v30, %v14992_v34  ;;  %v14993_v13 = vld [vmem:[#allocation52_spill] sm:$0xff] }
 0x486   : > { %6284 = vmatpush1.msra.mxu1 %v6283_v63  ;;  %v14997_v34 = vld [vmem:[#allocation56_spill] sm:$0xff] }
 0x487   : > { %6463 = vmatprep.subr.mxu1 %v12397_v39 }
 0x48f   : > { %v4729_v22 = vpop.f32.mrf.mxu1 }
 0x491   : > { %v4731_v39 = vpop.f32.mrf.mxu1 }
 0x498   : > { %v4623_v46 = vpop.f32.mrf.mxu0 }
 0x499   : > { %v4624_v19 = vadd.f32 %v4623_v46, %v4487_v36  ;;  %v14994_v46 = vld [vmem:[#allocation53_spill] sm:$0xff] }
 0x49a   : > { %v4625_v47 = vpop.f32.mrf.mxu0 }
 0x49b   : > { %v4626_v63 = vadd.f32 %v4625_v47, %v4489_v50  ;;  %v4730_v18 = vadd.f32 %v4729_v22, %v4624_v19  ;;  %v14995_v19 = vld [vmem:[#allocation54_spill] sm:$0xff] }
 0x49d   : > { %v4732_v6 = vadd.f32 %v4731_v39, %v4626_v63 }
 0x4b1   : > { %v5001_v28 = vpop.f32.mrf.mxu1 }
 0x4b3   : > { %v5003_v24 = vpop.f32.mrf.mxu1 }
 0x4bd   : > { %v4897_v4 = vpop.f32.mrf.mxu0 }
 0x4be   : > { %v4898_v23 = vadd.f32 %v4897_v4, %v4730_v18 }
 0x4bf   : > { %v4899_v14 = vpop.f32.mrf.mxu0 }
 0x4c0   : > { %v4900_v40 = vadd.f32 %v4899_v14, %v4732_v6  ;;  %v5002_v8 = vadd.f32 %v5001_v28, %v4898_v23  ;;  %v4149_v6 = vmul.f32 %v4145_v10, %v14995_v19  ;;  %v14996_v14 = vld [vmem:[#allocation55_spill] sm:$0xff] }
 0x4c2   : > { %v5004_v51 = vadd.f32 %v5003_v24, %v4900_v40  ;;  %v5869_v42 = vadd.f32 %v5865_v15, %v5002_v8  ;;  %v4150_v40 = vmul.f32 %v4145_v10, %v14996_v14 }
 0x4c4   : > { %v5870_v20 = vadd.f32 %v5866_v25, %v5004_v51  ;;  %v5873_v50 = vadd.f32 %v5869_v42, %v14994_v46 }
 0x4c6   : > { %v5874_v47 = vadd.f32 %v5870_v20, %v14993_v13  ;;  %v8006_v39 = vmul.f32 -1.442695, %v5873_v50 }
 0x4c8   : > { %v8007_v36 = vmul.f32 -1.442695, %v5874_v47 }
 0x4ca   : > { %8161 = vpow2.f32 %v8007_v36 }
 0x4cb   : > { %8163 = vpow2.f32 %v8006_v39 }
 0x4d3   : > { %v5341_v23 = vpop.f32.mrf.mxu1 }
 0x4d5   : > { %v5343_v51 = vpop.f32.mrf.mxu1 }
 0x4d7   : > { %v8162_v46 = vpop.eup %8161 }
 0x4d8   : > { %v8164_v13 = vpop.eup %8163 }
 0x4dd   : > { %v5109_v63 = vpop.f32.mrf.mxu0 }
 0x4de   : > { %v5110_v28 = vadd.f32 %v5109_v63, %v4149_v6  ;;  %v5867_v63 = vmul.f32 %v5863_v30, %v14997_v34  ;;  %v5886_v6 = vadd.f32 1.0, %v8162_v46  ;;  %v15028_v34 = vld [vmem:[#allocation45_spill] sm:$0xff] }
 0x4df   : > { %v5111_v24 = vpop.f32.mrf.mxu0 }
 0x4e0   : > { %v5112_v22 = vadd.f32 %v5111_v24, %v4150_v40  ;;  %v5342_v4 = vadd.f32 %v5341_v23, %v5110_v28  ;;  %v5880_v24 = vadd.f32 1.0, %v8164_v13  ;;  %8165 = vrcp.f32 %v5886_v6 }
 0x4e2   : > { %v5344_v20 = vadd.f32 %v5343_v51, %v5112_v22  ;;  %8167 = vrcp.f32 %v5880_v24 }
 0x4ed   : > { %v8166_v46 = vpop.eup %8165 }
 0x4ef   : > { %v8168_v13 = vpop.eup %8167 }
 0x4f6   : > { %v5584_v8 = vpop.f32.mrf.mxu1 }
 0x4f8   : > { %v5586_v47 = vpop.f32.mrf.mxu1 }
 0x4ff   : > { %v5478_v18 = vpop.f32.mrf.mxu0 }
 0x500   : > { %v5479_v15 = vadd.f32 %v5478_v18, %v5342_v4  ;;  %v14998_v18 = vld [vmem:[#allocation57_spill] sm:$0xff] }
 0x501   : > { %v5480_v25 = vpop.f32.mrf.mxu0  ;;  %v5868_v22 = vmul.f32 %v5863_v30, %v14998_v18  ;;  %v15027_v18 = vld [vmem:[#allocation60_spill] sm:$0xff] }
 0x502   : > { %v5481_v42 = vadd.f32 %v5480_v25, %v5344_v20  ;;  %v5585_v50 = vadd.f32 %v5584_v8, %v5479_v15  ;;  %v14999_v8 = vld [vmem:[#allocation58_spill] sm:$0xff]  ;;  %v15000_v20 = vld [vmem:[#allocation59_spill] sm:$0xff] }
 0x504   : > { %v5587_v39 = vadd.f32 %v5586_v47, %v5481_v42 }
 0x518   : > { %v5856_v19 = vpop.f32.mrf.mxu1 }
 0x51a   : > { %v5858_v28 = vpop.f32.mrf.mxu1 }
 0x520   : > { %v5752_v36 = vpop.f32.mrf.mxu0 }
 0x521   : > { %v5753_v10 = vadd.f32 %v5752_v36, %v5585_v50 }
 0x522   : > { %v5754_v14 = vpop.f32.mrf.mxu0 }
 0x523   : > { %v5857_v40 = vadd.f32 %v5856_v19, %v5753_v10  ;;  %v5755_v23 = vadd.f32 %v5754_v14, %v5587_v39  ;;  %v5904_v19 = vstv %s5903_s11  ;;  %v15001_v14 = vld [vmem:[#allocation38_spill] sm:$0xff] }
 0x524   : > { %v5896_v50 = vmul.f32 %v8166_v46, %v15001_v14  ;;  %vm5905_vm2 = vcmp.eq.s32.totalorder %v5904_v19, 1  ;;  %v15008_v46 = vld [vmem:[#allocation27_spill] sm:$0xff]  ;;  %v15010_v19 = vld [vmem:[#allocation46_spill] sm:$0xff] }
 0x525   : > { %v5871_v51 = vadd.f32 %v5867_v63, %v5857_v40  ;;  %v5859_v4 = vadd.f32 %v5858_v28, %v5755_v23  ;;  %v8196_v28 = vld [vmem:[%s8491_s9 + $0x8] sm:$0xff] }
 0x527   : > { %v5875_v25 = vadd.f32 %v5871_v51, %v14999_v8  ;;  %v5872_v15 = vadd.f32 %v5868_v22, %v5859_v4  ;;  %v15026_v8 = vld [vmem:[#allocation64_spill] sm:$0xff] }
 0x529   : > { %8169 = vtanh.f32 %v5875_v25  ;;  %v5876_v42 = vadd.f32 %v5872_v15, %v15000_v20  ;;  %v15025_v20 = vld [vmem:[#allocation24_spill] sm:$0xff] }
 0x52b   : > { %v8008_v47 = vmul.f32 -1.442695, %v5876_v42 }
 0x52d   : > { %8171 = vpow2.f32 %v8008_v47  ;;  %v15007_v47 = vld [vmem:[#allocation17_spill] sm:$0xff] }
 0x536   : > { %v8170_v30 = vpop.eup %8169 }
 0x537   : > { %v5897_v36 = vmul.f32 %v8170_v30, %v8168_v13  ;;  %v15009_v13 = vld [vmem:[#allocation37_spill] sm:$0xff]  ;;  %v15011_v30 = vld [vmem:[#allocation23_spill] sm:$0xff] }
 0x539   : > { %v5898_v10 = vadd.f32 %v5897_v36, %v5896_v50  ;;  %v15013_v50 = vld [vmem:[#allocation32_spill] sm:$0xff]  ;;  %v15014_v36 = vld [vmem:[#allocation61_spill] sm:$0xff] }
 0x53a   : > { %v8172_v39 = vpop.eup %8171 }
 0x53b   : > { %v5893_v63 = vadd.f32 1.0, %v8172_v39  ;;  %v12827_v6 = vsel %vm5905_vm2, %v5898_v10, %v15001_v14  ;;  %8173 = vtanh.f32 %v5898_v10  ;;  %v15012_v14 = vld [vmem:[#allocation44_spill] sm:$0xff]  ;;  %v15015_v10 = vld [vmem:[#allocation18_spill] sm:$0xff]  ;;  %v15016_v39 = vld [vmem:[#allocation31_spill] sm:$0xff] }
 0x53c   : > { %15002 = vst [vmem:[#allocation26_spill] sm:$0xff] %v12827_v6  ;;  %v15024_v6 = vld [vmem:[#allocation28_spill] sm:$0xff] }
 0x53d   : > { %8175 = vrcp.f32 %v5893_v63  ;;  %v15017_v63 = vld [vmem:[#allocation35_spill] sm:$0xff] }
 0x548   : > { %v8174_v40 = vpop.eup %8173 }
 0x54a   : > { %v8176_v23 = vpop.eup %8175 }
 0x54b   : > { %v5900_v24 = vmul.f32 %v8176_v23, %v8174_v40  ;;  %v15018_v40 = vld [vmem:[#allocation39_spill] sm:$0xff]  ;;  %v15019_v23 = vld [vmem:[#allocation29_spill] sm:$0xff] }
 0x54d   : > { %v5906_v22 = vsel %vm5905_vm2, %v5900_v24, %v8196_v28  ;;  %v15020_v24 = vld [vmem:[#allocation33_spill] sm:$0xff]  ;;  %v15021_v28 = vld [vmem:[#allocation22_spill] sm:$0xff] }
 0x54e   : > { %8009 = vst [vmem:[%s8491_s9 + $0x10] sm:$0xff] %v5906_v22  ;;  %v12831_v51 = vand.u32 4294901760, %v5906_v22 }
 0x550   : > { %15003 = vst [vmem:[#allocation30_spill] sm:$0xff] %v12831_v51  ;;  %6319 = vmatmul.mubr.f32.vlgmr.msra.gmra.mxu1 %v12831_v51  ;;  %v12835_v4 = vsub.f32 %v5906_v22, %v12831_v51  ;;  %v15022_v22 = vld [vmem:[#allocation16_spill] sm:$0xff]  ;;  %v15031_v51 = vld [vmem:[#allocation41_spill] sm:$0xff] }
 0x551   : > { %6465 = vmatpush1.msra.mxu1 %v12402_v57  ;;  %6558 = vmatprep.mubr.f32.mxu1 %v14366_v44 }
 0x552   : > { %15004 = vst [vmem:[#allocation47_spill] sm:$0xff] %v12835_v4  ;;  %6467 = vmatprep.subr.mxu1 %v12410_v59  ;;  %v12841_v25 = vand.u32 4294901760, %v12835_v4 }
 0x553   : > { %6469 = vmatpush1.msra.mxu1 %v12419_v21 }
 0x554   : > { %15005 = vst [vmem:[#allocation63_spill] sm:$0xff] %v12841_v25  ;;  %6471 = vmatprep.subr.mxu1 %v12429_v58  ;;  %v6085_v15 = vsub.f32 %v12835_v4, %v12841_v25 }
 0x555   : > { %6473 = vmatpush1.msra.mxu1 %v12439_v26 }
 0x556   : > { %6475 = vmatprep.subr.mxu1 %v12452_v3  ;;  %v12849_v42 = vand.u32 4294901760, %v6085_v15  ;;  %v15023_v15 = vld [vmem:[#allocation62_spill] sm:$0xff] }
 0x557   : > { %6477 = vmatpush1.msra.mxu1 %v12465_v37 }
 0x558   : > { %15006 = vst [vmem:[#allocation25_spill] sm:$0xff] %v12849_v42  ;;  %6479 = vmatprep.subr.mxu1 %v12497_v5  ;;  %6087 = vmatmul.mubr.f32.vlgmr.msra.gmra.mxu0 %v12849_v42  ;;  %v15030_v42 = vld [vmem:[#allocation20_spill] sm:$0xff] }
 0x559   : > { %6330 = vmatpush1.msra.mxu0 %v12417_v33  ;;  %6481 = vmatpush1.msra.mxu1 %v12506_v35 }
 0x55a   : > { %6333 = vmatprep.subr.mxu0 %v12427_v49  ;;  %6483 = vmatprep.subr.mxu1 %v12517_v31 }
 0x55b   : > { %6336 = vmatpush1.msra.mxu0 %v12437_v27  ;;  %6485 = vmatpush1.msra.mxu1 %v12529_v55 }
 0x55c   : > { %6339 = vmatprep.subr.mxu0 %v12450_v29  ;;  %6487 = vmatprep.subr.mxu1 %v12539_v62 }
 0x55d   : > { %6342 = vmatpush1.msra.mxu0 %v12463_v52  ;;  %6489 = vmatpush1.msra.mxu1 %v12549_v32 }
 0x55e   : > { %6345 = vmatprep.subr.mxu0 %v12476_v12  ;;  %6491 = vmatprep.subr.mxu1 %v12559_v56 }
 0x55f   : > { %6348 = vmatpush1.msra.mxu0 %v12487_v9  ;;  %6493 = vmatpush1.msra.mxu1 %v12569_v1 }
 0x560   : > { %6351 = vmatprep.subr.mxu0 %v12515_v54  ;;  %6495 = vmatprep.subr.mxu1 %v12601_v16 }
 0x561   : > { %6354 = vmatpush1.msra.mxu0 %v12527_v38  ;;  %6497 = vmatpush1.msra.mxu1 %v12607_v53 }
 0x562   : > { %6357 = vmatprep.subr.mxu0 %v12537_v7  ;;  %6499 = vmatprep.subr.mxu1 %v12618_v2 }
 0x563   : > { %6360 = vmatpush1.msra.mxu0 %v12547_v60  ;;  %6501 = vmatpush1.msra.mxu1 %v12635_v43 }
 0x564   : > { %6363 = vmatprep.subr.mxu0 %v12557_v0  ;;  %6503 = vmatprep.subr.mxu1 %v12649_v48 }
 0x565   : > { %6366 = vmatpush1.msra.mxu0 %v12567_v17  ;;  %6505 = vmatpush1.msra.mxu1 %v12655_v61 }
 0x566   : > { %6369 = vmatprep.subr.mxu0 %v12580_v41  ;;  %6507 = vmatprep.subr.mxu1 %v12682_v11 }
 0x567   : > { %6372 = vmatpush1.msra.mxu0 %v15007_v47  ;;  %6509 = vmatpush1.msra.mxu1 %v15008_v46 }
 0x568   : > { %6375 = vmatprep.subr.mxu0 %v15009_v13  ;;  %6511 = vmatprep.subr.mxu1 %v15010_v19 }
 0x569   : > { %6378 = vmatpush1.msra.mxu0 %v15011_v30  ;;  %6513 = vmatpush1.msra.mxu1 %v15012_v14 }
 0x56a   : > { %6381 = vmatprep.subr.mxu0 %v15013_v50  ;;  %6515 = vmatprep.subr.mxu1 %v15014_v36 }
 0x56b   : > { %6384 = vmatpush1.msra.mxu0 %v15015_v10  ;;  %6517 = vmatpush1.msra.mxu1 %v15016_v39 }
 0x56c   : > { %6387 = vmatprep.subr.mxu0 %v15017_v63  ;;  %6519 = vmatprep.subr.mxu1 %v15018_v40 }
 0x56d   : > { %6390 = vmatpush1.msra.mxu0 %v15019_v23  ;;  %6521 = vmatpush1.msra.mxu1 %v15020_v24 }
 0x56e   : > { %6393 = vmatprep.subr.mxu0 %v15021_v28  ;;  %6523 = vmatprep.subr.mxu1 %v15022_v22 }
 0x56f   : > { %6396 = vmatpush1.msra.mxu0 %v15023_v15  ;;  %6525 = vmatpush1.msra.mxu1 %v15024_v6 }
 0x570   : > { %6399 = vmatprep.subr.mxu0 %v15025_v20  ;;  %6562 = vmatmul.mubr.f32.vlgmr.msra.gmra.mxu1 %v12841_v25 }
 0x571   : > { %6737 = vmatprep.subr.mxu1 %v15026_v8  ;;  %6402 = vmatpush1.msra.mxu0 %v15027_v18  ;;  %v15032_v8 = vld [vmem:[#allocation19_spill] sm:$0xff] }
 0x572   : > { %6739 = vmatpush1.msra.mxu1 %v12402_v57  ;;  %6405 = vmatprep.subr.mxu0 %v15028_v34  ;;  %v15033_v57 = vld [vmem:[#allocation34_spill] sm:$0xff] }
 0x573   : > { %6741 = vmatprep.subr.mxu1 %v12410_v59  ;;  %6408 = vmatpush1.msra.mxu0 %v15029_v45  ;;  %v5973_v59 = vld [vmem:[%s13758_s3 + $0x1f8] sm:$0xff] }
 0x574   : > { %6743 = vmatpush1.msra.mxu1 %v12419_v21  ;;  %6411 = vmatprep.subr.mxu0 %v15030_v42  ;;  %v15034_v21 = vld [vmem:[#allocation21_spill] sm:$0xff]  ;;  %v12933_v25 = vand.u32 4294901760, %v5973_v59 }
 0x575   : > { %6745 = vmatprep.subr.mxu1 %v12429_v58  ;;  %6414 = vmatpush1.msra.mxu0 %v15031_v51  ;;  %v15035_v58 = vand.u32 4294901760, %v15034_v21  ;;  %v5969_v21 = vld [vmem:[%s13758_s3 + $0x1d8] sm:$0xff] }
 0x576   : > { %6747 = vmatpush1.msra.mxu1 %v12439_v26  ;;  %6417 = vmatprep.subr.mxu0 %v15032_v8  ;;  %v15036_v26 = vand.u32 4294901760, %v12417_v33  ;;  %v15038_v33 = vand.u32 4294901760, %v12437_v27  ;;  %v15040_v27 = vand.u32 4294901760, %v12463_v52  ;;  %v5961_v52 = vld [vmem:[%s13758_s3 + $0x198] sm:$0xff] }
 0x577   : > { %6749 = vmatprep.subr.mxu1 %v12452_v3  ;;  %6420 = vmatpush1.msra.mxu0 %v15033_v57  ;;  %v5972_v3 = vld [vmem:[%s13758_s3 + $0x1f0] sm:$0xff] }
 0x578   : > { %6453 = vmatprep.mubr.f32.mxu0 %v14366_v44  ;;  %6751 = vmatpush1.msra.mxu1 %v12465_v37  ;;  %v15037_v37 = vand.u32 4294901760, %v12427_v49  ;;  %v15039_v49 = vand.u32 4294901760, %v12450_v29  ;;  %v15041_v29 = vand.u32 4294901760, %v12476_v12  ;;  %v5960_v12 = vld [vmem:[%s13758_s3 + $0x190] sm:$0xff] }
 0x579   : > { %6456 = vmatmul.mubr.f32.vlgmr.msra.gmra.mxu0 %v12835_v4  ;;  %6571 = vmatprep.subr.mxu0 %v15035_v58  ;;  %v5965_v58 = vld [vmem:[%s13758_s3 + $0x1b8] sm:$0xff] }
 0x57a   : > { %6753 = vmatprep.subr.mxu1 %v12497_v5  ;;  %6575 = vmatpush1.msra.mxu0 %v15036_v26  ;;  %v5968_v5 = vld [vmem:[%s13758_s3 + $0x1d0] sm:$0xff]  ;;  %v12964_v26 = vsub.f32 %v5973_v59, %v12933_v25 }
 0x57b   : > { %6755 = vmatpush1.msra.mxu1 %v12506_v35  ;;  %6579 = vmatprep.subr.mxu0 %v15037_v37  ;;  %v12947_v35 = vand.u32 4294901760, %v5972_v3  ;;  %v12966_v37 = vand.u32 4294901760, %v5968_v5 }
 0x57c   : > { %6757 = vmatprep.subr.mxu1 %v12517_v31  ;;  %6583 = vmatpush1.msra.mxu0 %v15038_v33  ;;  %v12955_v31 = vand.u32 4294901760, %v5969_v21  ;;  %v12974_v33 = vand.u32 4294901760, %v5965_v58 }
 0x57d   : > { %6759 = vmatpush1.msra.mxu1 %v12529_v55  ;;  %6587 = vmatprep.subr.mxu0 %v15039_v49  ;;  %v5964_v55 = vld [vmem:[%s13758_s3 + $0x1b0] sm:$0xff]  ;;  %v12983_v59 = vsub.f32 %v5972_v3, %v12947_v35  ;;  %v15047_v3 = vand.u32 4294901760, %v12537_v7 }
 0x57e   : > { %6761 = vmatprep.subr.mxu1 %v12539_v62  ;;  %6591 = vmatpush1.msra.mxu0 %v15040_v27  ;;  %v15042_v62 = vand.u32 4294901760, %v12487_v9  ;;  %v12985_v49 = vand.u32 4294901760, %v5964_v55  ;;  %v5957_v9 = vld [vmem:[%s13758_s3 + $0x178] sm:$0xff]  ;;  %v12994_v27 = vsub.f32 %v5969_v21, %v12955_v31 }
 0x57f   : > { %6763 = vmatpush1.msra.mxu1 %v12549_v32  ;;  %6595 = vmatprep.subr.mxu0 %v15041_v29  ;;  %v15043_v32 = vand.u32 4294901760, %v12515_v54  ;;  %15044 = vst [vmem:[#allocation43_spill] sm:$0xff] %v12983_v59  ;;  %v5956_v54 = vld [vmem:[%s13758_s3 + $0x170] sm:$0xff]  ;;  %v14282_v29 = vand.u32 4294901760, %v12964_v26  ;;  %v5953_v21 = vld [vmem:[%s13758_s3 + $0x158] sm:$0xff]  ;;  %v13019_v7 = vand.u32 4294901760, %v5957_v9 }
 0x580   : > { %6765 = vmatprep.subr.mxu1 %v12559_v56  ;;  %6599 = vmatpush1.msra.mxu0 %v15042_v62  ;;  %v15045_v56 = vand.u32 4294901760, %v12527_v38  ;;  %15046 = vst [vmem:[#allocation36_spill] sm:$0xff] %v12994_v27  ;;  %v13008_v38 = vand.u32 4294901760, %v5960_v12  ;;  %v15049_v62 = vand.u32 4294901760, %v12547_v60  ;;  %v13031_v60 = vand.u32 4294901760, %v5956_v54 }
 0x581   : > { %6767 = vmatpush1.msra.mxu1 %v12569_v1  ;;  %6603 = vmatprep.subr.mxu0 %v15043_v32  ;;  %v12996_v1 = vand.u32 4294901760, %v5961_v52  ;;  %v15051_v32 = vand.u32 4294901760, %v12557_v0 }
 0x582   : > { %6769 = vmatprep.subr.mxu1 %v12601_v16  ;;  %6607 = vmatpush1.msra.mxu0 %v15045_v56  ;;  %v13006_v16 = vsub.f32 %v5968_v5, %v12966_v37  ;;  %v5952_v5 = vld [vmem:[%s13758_s3 + $0x150] sm:$0xff]  ;;  %v14283_v56 = vand.u32 4294901760, %v12983_v59 }
 0x583   : > { %6771 = vmatpush1.msra.mxu1 %v12607_v53  ;;  %6611 = vmatprep.subr.mxu0 %v15047_v3  ;;  %v13017_v53 = vsub.f32 %v5965_v58, %v12974_v33  ;;  %v5949_v58 = vld [vmem:[%s13758_s3 + $0x138] sm:$0xff]  ;;  %v15053_v3 = vand.u32 4294901760, %v12567_v17  ;;  %v13041_v0 = vsub.f32 %v5961_v52, %v12996_v1  ;;  %v13058_v52 = vsub.f32 %v5960_v12, %v13008_v38 }
 0x584   : > { %15048 = vst [vmem:[#allocation42_spill] sm:$0xff] %v13006_v16  ;;  %6773 = vmatprep.subr.mxu1 %v12618_v2  ;;  %6615 = vmatpush1.msra.mxu0 %v15049_v62  ;;  %v13029_v2 = vsub.f32 %v5964_v55, %v12985_v49  ;;  %v13043_v62 = vand.u32 4294901760, %v5953_v21  ;;  %v5948_v55 = vld [vmem:[%s13758_s3 + $0x130] sm:$0xff]  ;;  %v15059_v12 = vand.u32 4294901760, %v15009_v13  ;;  %v13080_v17 = vsub.f32 %v12983_v59, %v14283_v56 }
 0x585   : > { %15050 = vst [vmem:[#allocation38_spill] sm:$0xff] %v13017_v53  ;;  %6775 = vmatpush1.msra.mxu1 %v12635_v43  ;;  %6619 = vmatprep.subr.mxu0 %v15051_v32  ;;  %15054 = vst [vmem:[#allocation27_spill] sm:$0xff] %v13041_v0  ;;  %v15055_v32 = vand.u32 4294901760, %v12580_v41  ;;  %v5945_v43 = vld [vmem:[%s13758_s3 + $0x118] sm:$0xff]  ;;  %v15057_v41 = vand.u32 4294901760, %v15007_v47  ;;  %v13084_v47 = vsub.f32 %v5956_v54, %v13031_v60  ;;  %v15062_v13 = vand.u32 4294901760, %v12994_v27 }
 0x586   : > { %15052 = vst [vmem:[#allocation17_spill] sm:$0xff] %v13029_v2  ;;  %6777 = vmatprep.subr.mxu1 %v12649_v48  ;;  %6623 = vmatpush1.msra.mxu0 %v15053_v3  ;;  %v13054_v48 = vsub.f32 %v12964_v26, %v14282_v29  ;;  %15056 = vst [vmem:[#allocation37_spill] sm:$0xff] %v13058_v52  ;;  %v13060_v3 = vand.u32 4294901760, %v5952_v5  ;;  %v13072_v29 = vand.u32 4294901760, %v5949_v58 }
 0x587   : > { %6779 = vmatpush1.msra.mxu1 %v12655_v61  ;;  %6627 = vmatprep.subr.mxu0 %v15055_v32  ;;  %v13070_v32 = vsub.f32 %v5957_v9, %v13019_v7  ;;  %15060 = vst [vmem:[#allocation23_spill] sm:$0xff] %v13084_v47  ;;  %v5944_v9 = vld [vmem:[%s13758_s3 + $0x110] sm:$0xff]  ;;  %v13101_v54 = vsub.f32 %v5953_v21, %v13043_v62  ;;  %v15064_v61 = vand.u32 4294901760, %v15013_v50  ;;  %v15067_v21 = vand.u32 4294901760, %v15015_v10 }
 0x588   : > { %6781 = vmatprep.subr.mxu1 %v12682_v11  ;;  %6631 = vmatpush1.msra.mxu0 %v15057_v41  ;;  %v13086_v41 = vand.u32 4294901760, %v5948_v55  ;;  %v13103_v11 = vand.u32 4294901760, %v5945_v43  ;;  %v13116_v56 = vsub.f32 %v5952_v5, %v13060_v3  ;;  %v5941_v5 = vld [vmem:[%s13758_s3 + $0xf8] sm:$0xff]  ;;  %v6958_v10 = vand.u32 4294901760, %v13080_v17 }
 0x589   : > { %15058 = vst [vmem:[#allocation46_spill] sm:$0xff] %v13070_v32  ;;  %6783 = vmatpush1.msra.mxu1 %v15008_v46  ;;  %6635 = vmatprep.subr.mxu0 %v15059_v12  ;;  %v15061_v46 = vand.u32 4294901760, %v15011_v30  ;;  %v13097_v12 = vsub.f32 %v12994_v27, %v15062_v13  ;;  %15063 = vst [vmem:[#allocation44_spill] sm:$0xff] %v13101_v54  ;;  %v15065_v30 = vand.u32 4294901760, %v13006_v16  ;;  %v15073_v13 = vand.u32 4294901760, %v15019_v23 }
 0x58a   : > { %6785 = vmatprep.subr.mxu1 %v15010_v19  ;;  %v6952_v19 = vand.u32 4294901760, %v13054_v48  ;;  %15066 = vst [vmem:[#allocation32_spill] sm:$0xff] %v13116_v56  ;;  %v13146_v48 = vsub.f32 %v5948_v55, %v13086_v41  ;;  %v5940_v55 = vld [vmem:[%s13758_s3 + $0xf0] sm:$0xff]  ;;  %6832 = vmatprep.mubr.f32.mxu1 %v14366_v44  ;;  %v15084_v4 = vand.u32 4294901760, %v13101_v54 }
 0x58b   : > { %6639 = vmatpush1.msra.mxu0 %v15061_v46  ;;  %6787 = vmatpush1.msra.mxu1 %v15012_v14  ;;  %v13112_v46 = vsub.f32 %v13006_v16, %v15065_v30  ;;  %v15068_v14 = vand.u32 4294901760, %v13017_v53  ;;  %v13130_v30 = vand.u32 4294901760, %v5944_v9 }
 0x58c   : > { %6643 = vmatprep.subr.mxu0 %v15064_v61  ;;  %6789 = vmatprep.subr.mxu1 %v15014_v36  ;;  %v13128_v61 = vsub.f32 %v5949_v58, %v13072_v29  ;;  %v15070_v36 = vand.u32 4294901760, %v15017_v63  ;;  %15072 = vst [vmem:[#allocation18_spill] sm:$0xff] %v13146_v48  ;;  %v15074_v63 = vand.u32 4294901760, %v13041_v0  ;;  %v5936_v58 = vld [vmem:[%s13758_s3 + $0xd0] sm:$0xff] }
 0x58d   : > { %6647 = vmatpush1.msra.mxu0 %v15067_v21  ;;  %v13124_v50 = vsub.f32 %v13017_v53, %v15068_v14  ;;  %6791 = vmatpush1.msra.mxu1 %v15016_v39  ;;  %v15071_v21 = vand.u32 4294901760, %v13029_v2  ;;  %v6964_v39 = vand.u32 4294901760, %v13097_v12  ;;  %v6970_v23 = vand.u32 4294901760, %v13112_v46 }
 0x58e   : > { %15069 = vst [vmem:[#allocation61_spill] sm:$0xff] %v13128_v61  ;;  %6651 = vmatprep.subr.mxu0 %v15070_v36  ;;  %6793 = vmatprep.subr.mxu1 %v15018_v40  ;;  %v13155_v17 = vsub.f32 %v13041_v0, %v15074_v63  ;;  %v15076_v40 = vand.u32 4294901760, %v15021_v28  ;;  %v15077_v12 = vand.u32 4294901760, %v13058_v52  ;;  %v5937_v36 = vld [vmem:[%s13758_s3 + $0xd8] sm:$0xff]  ;;  %v15079_v46 = vand.u32 4294901760, %v13070_v32 }
 0x58f   : > { %v13142_v14 = vsub.f32 %v13029_v2, %v15071_v21  ;;  %6655 = vmatpush1.msra.mxu0 %v15073_v13  ;;  %v13159_v21 = vsub.f32 %v5945_v43, %v13103_v11  ;;  %6795 = vmatpush1.msra.mxu1 %v15020_v24  ;;  %v13174_v43 = vand.u32 4294901760, %v5941_v5  ;;  %v15078_v24 = vand.u32 4294901760, %v15023_v15 }
 0x590   : > { %6659 = vmatprep.subr.mxu0 %v15076_v40  ;;  %v13171_v13 = vsub.f32 %v13058_v52, %v15077_v12  ;;  %6797 = vmatprep.subr.mxu1 %v15022_v22  ;;  %v6976_v28 = vand.u32 4294901760, %v13124_v50  ;;  %v13186_v40 = vsub.f32 %v13070_v32, %v15079_v46  ;;  %v13190_v63 = vsub.f32 %v5944_v9, %v13130_v30  ;;  %v5933_v9 = vld [vmem:[%s13758_s3 + $0xb8] sm:$0xff]  ;;  %v5932_v32 = vld [vmem:[%s13758_s3 + $0xb0] sm:$0xff] }
 0x591   : > { %15075 = vst [vmem:[#allocation31_spill] sm:$0xff] %v13159_v21  ;;  %6663 = vmatpush1.msra.mxu0 %v15078_v24  ;;  %6799 = vmatpush1.msra.mxu1 %v15024_v6  ;;  %v6982_v22 = vand.u32 4294901760, %v13142_v14  ;;  %v15081_v15 = vand.u32 4294901760, %v13084_v47  ;;  %v13204_v46 = vand.u32 4294901760, %v5940_v55  ;;  %v15082_v12 = vand.u32 4294901760, %v15025_v20  ;;  %v15083_v6 = vld [vmem:[#allocation30_spill] sm:$0xff] }
 0x592   : > { %15080 = vst [vmem:[#allocation35_spill] sm:$0xff] %v13190_v63  ;;  %6834 = vmatmul.mubr.f32.vlgmr.msra.gmra.mxu1 %v15083_v6  ;;  %v6988_v14 = vand.u32 4294901760, %v13155_v17  ;;  %6953 = vmatprep.subr.mxu1 %v6952_v19  ;;  %v15085_v20 = vand.u32 4294901760, %v15027_v18  ;;  %v15086_v17 = vand.u32 4294901760, %v13116_v56  ;;  %v13235_v24 = vand.u32 4294901760, %v5936_v58 }
 0x593   : > { %v13201_v50 = vsub.f32 %v13084_v47, %v15081_v15  ;;  %6667 = vmatprep.subr.mxu0 %v15082_v12  ;;  %v13216_v15 = vsub.f32 %v13101_v54, %v15084_v4  ;;  %v13219_v47 = vand.u32 4294901760, %v5937_v36  ;;  %v6994_v12 = vand.u32 4294901760, %v13171_v13  ;;  %v5929_v54 = vld [vmem:[%s13758_s3 + $0x98] sm:$0xff]  ;;  %6959 = vmatpush1.msra.mxu1 %v6958_v10 }
 0x594   : > { %6671 = vmatpush1.msra.mxu0 %v15085_v20  ;;  %v13230_v52 = vsub.f32 %v13116_v56, %v15086_v17  ;;  %v13233_v4 = vsub.f32 %v5941_v5, %v13174_v43  ;;  %v15088_v18 = vand.u32 4294901760, %v15028_v34  ;;  %v7000_v19 = vand.u32 4294901760, %v13186_v40  ;;  %v5928_v56 = vld [vmem:[%s13758_s3 + $0x90] sm:$0xff]  ;;  %6965 = vmatprep.subr.mxu1 %v6964_v39 }
 0x595   : > { %v15089_v13 = vand.u32 4294901760, %v13128_v61  ;;  %v13249_v17 = vand.u32 4294901760, %v5933_v9  ;;  %v15091_v10 = vand.u32 4294901760, %v15029_v45  ;;  %v7006_v34 = vand.u32 4294901760, %v13201_v50  ;;  %6971 = vmatpush1.msra.mxu1 %v6970_v23  ;;  %6728 = vmatprep.mubr.f32.mxu0 %v14366_v44 }
 0x596   : > { %15087 = vst [vmem:[#allocation39_spill] sm:$0xff] %v13233_v4  ;;  %6675 = vmatprep.subr.mxu0 %v15088_v18  ;;  %v15092_v40 = vand.u32 4294901760, %v13146_v48  ;;  %v13265_v5 = vand.u32 4294901760, %v5932_v32  ;;  %v15094_v45 = vand.u32 4294901760, %v15030_v42  ;;  %v7012_v39 = vand.u32 4294901760, %v13216_v15  ;;  %6977 = vmatprep.subr.mxu1 %v6976_v28  ;;  %v5920_v15 = vld [vmem:[%s13758_s3 + $0x50] sm:$0xff] }
 0x597   : > { %v13246_v20 = vsub.f32 %v13128_v61, %v15089_v13  ;;  %15090 = vst [vmem:[#allocation29_spill] sm:$0xff] %v13249_v17  ;;  %6679 = vmatpush1.msra.mxu0 %v15091_v10  ;;  %v13263_v13 = vsub.f32 %v5940_v55, %v13204_v46  ;;  %v5925_v61 = vld [vmem:[%s13758_s3 + $0x78] sm:$0xff]  ;;  %v15095_v50 = vand.u32 4294901760, %v13159_v21  ;;  %v13279_v55 = vsub.f32 %v5937_v36, %v13219_v47 }
 0x598   : > { %v13260_v18 = vsub.f32 %v13146_v48, %v15092_v40  ;;  %6683 = vmatprep.subr.mxu0 %v15094_v45  ;;  %v13281_v40 = vand.u32 4294901760, %v5929_v54  ;;  %v5924_v48 = vld [vmem:[%s13758_s3 + $0x70] sm:$0xff]  ;;  %v15097_v42 = vand.u32 4294901760, %v15031_v51  ;;  %v7018_v23 = vand.u32 4294901760, %v13230_v52  ;;  %v5921_v36 = vld [vmem:[%s13758_s3 + $0x58] sm:$0xff]  ;;  %6983 = vmatpush1.msra.mxu1 %v6982_v22 }
 0x599   : > { %15093 = vst [vmem:[#allocation33_spill] sm:$0xff] %v13263_v13  ;;  %v13276_v10 = vsub.f32 %v13159_v21, %v15095_v50  ;;  %15096 = vst [vmem:[#allocation22_spill] sm:$0xff] %v13279_v55  ;;  %v13291_v45 = vsub.f32 %v5936_v58, %v13235_v24  ;;  %v13293_v50 = vand.u32 4294901760, %v5928_v56  ;;  %v15098_v21 = vand.u32 4294901760, %v15032_v8  ;;  %6989 = vmatprep.subr.mxu1 %v6988_v14 }
 0x59a   : > { %6687 = vmatpush1.msra.mxu0 %v15097_v42  ;;  %v7024_v51 = vand.u32 4294901760, %v13246_v20  ;;  %v15099_v28 = vand.u32 4294901760, %v13190_v63  ;;  %v13307_v58 = vsub.f32 %v5933_v9, %v13249_v17  ;;  %v13309_v42 = vand.u32 4294901760, %v5925_v61  ;;  %v5917_v9 = vld [vmem:[%s13758_s3 + $0x38] sm:$0xff]  ;;  %6995 = vmatpush1.msra.mxu1 %v6994_v12 }
 0x59b   : > { %6691 = vmatprep.subr.mxu0 %v15098_v21  ;;  %v15100_v8 = vand.u32 4294901760, %v15033_v57  ;;  %v7030_v21 = vand.u32 4294901760, %v13260_v18  ;;  %v13319_v20 = vsub.f32 %v5932_v32, %v13265_v5  ;;  %v7036_v14 = vand.u32 4294901760, %v13276_v10  ;;  %v5916_v32 = vld [vmem:[%s13758_s3 + $0x30] sm:$0xff]  ;;  %7001 = vmatprep.subr.mxu1 %v7000_v19 }
 0x59c   : > { %v13304_v52 = vsub.f32 %v13190_v63, %v15099_v28  ;;  %v13321_v28 = vand.u32 4294901760, %v5924_v48  ;;  %v13330_v18 = vsub.f32 %v5929_v54, %v13281_v40  ;;  %v15101_v22 = vand.u32 4294901760, %v13233_v4  ;;  %v5913_v63 = vld [vmem:[%s13758_s3 + $0x18] sm:$0xff]  ;;  %7007 = vmatpush1.msra.mxu1 %v7006_v34  ;;  %7172 = vmatprep.mubr.f32.mxu1 %v14366_v44 }
 0x59d   : > { %6695 = vmatpush1.msra.mxu0 %v15100_v8  ;;  %v13332_v8 = vand.u32 4294901760, %v5921_v36  ;;  %v13344_v57 = vsub.f32 %v5928_v56, %v13293_v50  ;;  %v13346_v54 = vand.u32 4294901760, %v5920_v15  ;;  %v13357_v10 = vand.u32 4294901760, %v5917_v9  ;;  %v5912_v56 = vld [vmem:[%s13758_s3 + $0x10] sm:$0xff]  ;;  %7013 = vmatprep.subr.mxu1 %v7012_v39 }
 0x59e   : > { %6730 = vmatmul.mubr.f32.vlgmr.msra.gmra.mxu0 %v15083_v6  ;;  %6841 = vmatprep.subr.mxu0 %v12933_v25  ;;  %v7047_v12 = vsub.f32 %v13233_v4, %v15101_v22  ;;  %v7042_v0 = vand.u32 4294901760, %v13304_v52  ;;  %v13355_v22 = vsub.f32 %v5925_v61, %v13309_v42  ;;  %v15103_v19 = vand.u32 4294901760, %v13263_v13 }
 0x59f   : > { %15102 = vst [vmem:[#allocation16_spill] sm:$0xff] %v13346_v54  ;;  %6843 = vmatpush1.msra.mxu0 %v12947_v35  ;;  %v13368_v2 = vsub.f32 %v5924_v48, %v13321_v28  ;;  %v13370_v61 = vand.u32 4294901760, %v5916_v32  ;;  %v15104_v53 = vand.u32 4294901760, %v13279_v55  ;;  %v13378_v27 = vsub.f32 %v5921_v36, %v13332_v8  ;;  %7019 = vmatpush1.msra.mxu1 %v7018_v23 }
 0x5a0   : > { %6845 = vmatprep.subr.mxu0 %v12955_v31  ;;  %v7053_v4 = vsub.f32 %v13263_v13, %v15103_v19  ;;  %v13380_v19 = vand.u32 4294901760, %v5913_v63  ;;  %v15105_v48 = vand.u32 4294901760, %v13291_v45  ;;  %v13388_v13 = vsub.f32 %v5920_v15, %v13346_v54  ;;  %7025 = vmatprep.subr.mxu1 %v7024_v51 }
 0x5a1   : > { %6847 = vmatpush1.msra.mxu0 %v12966_v37  ;;  %v7059_v34 = vsub.f32 %v13279_v55, %v15104_v53  ;;  %v13390_v53 = vand.u32 4294901760, %v5912_v56  ;;  %v7048_v36 = vand.u32 4294901760, %v7047_v12  ;;  %v15106_v16 = vand.u32 4294901760, %v13307_v58  ;;  %7031 = vmatpush1.msra.mxu1 %v7030_v21 }
 0x5a2   : > { %6849 = vmatprep.subr.mxu0 %v12974_v33  ;;  %v7065_v39 = vsub.f32 %v13291_v45, %v15105_v48  ;;  %v13398_v59 = vsub.f32 %v5917_v9, %v13357_v10  ;;  %v7054_v15 = vand.u32 4294901760, %v7053_v4  ;;  %v15107_v48 = vand.u32 4294901760, %v13319_v20  ;;  %7037 = vmatprep.subr.mxu1 %v7036_v14 }
 0x5a3   : > { %6851 = vmatpush1.msra.mxu0 %v12985_v49  ;;  %v7071_v23 = vsub.f32 %v13307_v58, %v15106_v16  ;;  %v13406_v12 = vsub.f32 %v5916_v32, %v13370_v61  ;;  %v7060_v16 = vand.u32 4294901760, %v7059_v34  ;;  %v15108_v9 = vand.u32 4294901760, %v13330_v18  ;;  %7043 = vmatpush1.msra.mxu1 %v7042_v0 }
 0x5a4   : > { %6853 = vmatprep.subr.mxu0 %v12996_v1  ;;  %v7077_v51 = vsub.f32 %v13319_v20, %v15107_v48  ;;  %v13414_v4 = vsub.f32 %v5913_v63, %v13380_v19  ;;  %v7066_v48 = vand.u32 4294901760, %v7065_v39  ;;  %v15109_v32 = vand.u32 4294901760, %v13344_v57  ;;  %7049 = vmatprep.subr.mxu1 %v7048_v36 }
 0x5a5   : > { %6855 = vmatpush1.msra.mxu0 %v13008_v38  ;;  %v7083_v21 = vsub.f32 %v13330_v18, %v15108_v9  ;;  %v13422_v34 = vsub.f32 %v5912_v56, %v13390_v53  ;;  %v7072_v9 = vand.u32 4294901760, %v7071_v23  ;;  %v15110_v63 = vand.u32 4294901760, %v13355_v22  ;;  %7055 = vmatpush1.msra.mxu1 %v7054_v15 }
 0x5a6   : > { %6857 = vmatprep.subr.mxu0 %v13019_v7  ;;  %v7089_v14 = vsub.f32 %v13344_v57, %v15109_v32  ;;  %v7078_v39 = vand.u32 4294901760, %v7077_v51  ;;  %v15111_v32 = vand.u32 4294901760, %v13368_v2  ;;  %7061 = vmatprep.subr.mxu1 %v7060_v16  ;;  %v15112_v23 = vand.u32 4294901760, %v13378_v27 }
 0x5a7   : > { %6859 = vmatpush1.msra.mxu0 %v13031_v60  ;;  %v7095_v0 = vsub.f32 %v13355_v22, %v15110_v63  ;;  %v7084_v36 = vand.u32 4294901760, %v7083_v21  ;;  %7067 = vmatpush1.msra.mxu1 %v7066_v48  ;;  %v15113_v51 = vand.u32 4294901760, %v13388_v13  ;;  %v14321_v56 = vand.u32 4294901760, %v13422_v34 }
 0x5a8   : > { %6861 = vmatprep.subr.mxu0 %v13043_v62  ;;  %v7101_v52 = vsub.f32 %v13368_v2, %v15111_v32  ;;  %v7107_v63 = vsub.f32 %v13378_v27, %v15112_v23  ;;  %v7090_v15 = vand.u32 4294901760, %v7089_v14  ;;  %7073 = vmatprep.subr.mxu1 %v7072_v9  ;;  %v15114_v21 = vand.u32 4294901760, %v13398_v59 }
 0x5a9   : > { %6863 = vmatpush1.msra.mxu0 %v13060_v3  ;;  %v7113_v32 = vsub.f32 %v13388_v13, %v15113_v51  ;;  %v7096_v16 = vand.u32 4294901760, %v7095_v0  ;;  %7079 = vmatpush1.msra.mxu1 %v7078_v39  ;;  %v15115_v14 = vand.u32 4294901760, %v13406_v12  ;;  %v15116_v9 = vand.u32 4294901760, %v13414_v4 }
 0x5aa   : > { %6865 = vmatprep.subr.mxu0 %v13072_v29  ;;  %v7119_v23 = vsub.f32 %v13398_v59, %v15114_v21  ;;  %v7102_v48 = vand.u32 4294901760, %v7101_v52  ;;  %7085 = vmatprep.subr.mxu1 %v7084_v36  ;;  %v7108_v51 = vand.u32 4294901760, %v7107_v63  ;;  %v7137_v52 = vsub.f32 %v13422_v34, %v14321_v56  ;;  %v15133_v56 = vld [vmem:[#allocation39_spill] sm:$0xff] }
 0x5ab   : > { %6867 = vmatpush1.msra.mxu0 %v13086_v41  ;;  %v7125_v55 = vsub.f32 %v13406_v12, %v15115_v14  ;;  %v7131_v0 = vsub.f32 %v13414_v4, %v15116_v9  ;;  %7091 = vmatpush1.msra.mxu1 %v7090_v15  ;;  %v7114_v21 = vand.u32 4294901760, %v7113_v32  ;;  %v15118_v32 = vld [vmem:[#allocation43_spill] sm:$0xff]  ;;  %v15122_v14 = vld [vmem:[#allocation17_spill] sm:$0xff] }
 0x5ac   : > { %6869 = vmatprep.subr.mxu0 %v13103_v11  ;;  %7097 = vmatprep.subr.mxu1 %v7096_v16  ;;  %v7120_v39 = vand.u32 4294901760, %v7119_v23  ;;  %v7138_v15 = vand.u32 4294901760, %v7137_v52  ;;  %v15119_v16 = vld [vmem:[#allocation36_spill] sm:$0xff]  ;;  %v15120_v23 = vld [vmem:[#allocation42_spill] sm:$0xff]  ;;  %v15124_v9 = vld [vmem:[#allocation37_spill] sm:$0xff] }
 0x5ad   : > { %6871 = vmatpush1.msra.mxu0 %v13130_v30  ;;  %7103 = vmatpush1.msra.mxu1 %v7102_v48  ;;  %v7126_v36 = vand.u32 4294901760, %v7125_v55  ;;  %v7132_v63 = vand.u32 4294901760, %v7131_v0  ;;  %v15117_v55 = vld [vmem:[#allocation25_spill] sm:$0xff]  ;;  %v15121_v48 = vld [vmem:[#allocation38_spill] sm:$0xff]  ;;  %v15127_v52 = vld [vmem:[#allocation44_spill] sm:$0xff] }
 0x5ae   : > { %6873 = vmatprep.subr.mxu0 %v13174_v43  ;;  %7109 = vmatprep.subr.mxu1 %v7108_v51  ;;  %v15123_v51 = vld [vmem:[#allocation27_spill] sm:$0xff]  ;;  %v15125_v0 = vld [vmem:[#allocation46_spill] sm:$0xff] }
 0x5af   : > { %6875 = vmatpush1.msra.mxu0 %v13204_v46  ;;  %7115 = vmatpush1.msra.mxu1 %v7114_v21  ;;  %v15126_v21 = vld [vmem:[#allocation23_spill] sm:$0xff] }
 0x5b0   : > { %6877 = vmatprep.subr.mxu0 %v13219_v47  ;;  %7121 = vmatprep.subr.mxu1 %v7120_v39  ;;  %v15128_v39 = vld [vmem:[#allocation32_spill] sm:$0xff] }
 0x5b1   : > { %6879 = vmatpush1.msra.mxu0 %v13235_v24  ;;  %7127 = vmatpush1.msra.mxu1 %v7126_v36  ;;  %v15129_v36 = vld [vmem:[#allocation61_spill] sm:$0xff] }
 0x5b2   : > { %6881 = vmatprep.subr.mxu0 %v13249_v17  ;;  %7133 = vmatprep.subr.mxu1 %v7132_v63  ;;  %v15130_v63 = vld [vmem:[#allocation18_spill] sm:$0xff] }
 0x5b3   : > { %6883 = vmatpush1.msra.mxu0 %v13265_v5  ;;  %7139 = vmatpush1.msra.mxu1 %v7138_v15  ;;  %v15131_v15 = vld [vmem:[#allocation31_spill] sm:$0xff] }
 0x5b4   : > { %6885 = vmatprep.subr.mxu0 %v13281_v40  ;;  %7174 = vmatmul.mubr.f32.vlgmr.msra.gmra.mxu1 %v15083_v6  ;;  %v15134_v6 = vld [vmem:[#allocation33_spill] sm:$0xff] }
 0x5b5   : > { %6887 = vmatpush1.msra.mxu0 %v13293_v50  ;;  %7318 = vmatprep.subr.mxu1 %v12933_v25 }
 0x5b6   : > { %6889 = vmatprep.subr.mxu0 %v13309_v42  ;;  %7320 = vmatpush1.msra.mxu1 %v12947_v35 }
 0x5b7   : > { %6891 = vmatpush1.msra.mxu0 %v13321_v28  ;;  %7322 = vmatprep.subr.mxu1 %v12955_v31 }
 0x5b8   : > { %6893 = vmatprep.subr.mxu0 %v13332_v8  ;;  %7324 = vmatpush1.msra.mxu1 %v12966_v37 }
 0x5b9   : > { %6895 = vmatpush1.msra.mxu0 %v13346_v54  ;;  %7326 = vmatprep.subr.mxu1 %v12974_v33 }
 0x5ba   : > { %6897 = vmatprep.subr.mxu0 %v13357_v10  ;;  %7328 = vmatpush1.msra.mxu1 %v12985_v49 }
 0x5bb   : > { %6899 = vmatpush1.msra.mxu0 %v13370_v61  ;;  %7330 = vmatprep.subr.mxu1 %v12996_v1 }
 0x5bc   : > { %6901 = vmatprep.subr.mxu0 %v13380_v19  ;;  %6936 = vmatprep.mubr.f32.mxu0 %v14366_v44 }
 0x5bd   : > { %6903 = vmatpush1.msra.mxu0 %v13390_v53  ;;  %7332 = vmatpush1.msra.mxu1 %v13008_v38 }
 0x5be   : > { %6942 = vmatmul.mubr.f32.vlgmr.msra.gmra.mxu0 %v15117_v55  ;;  %7182 = vmatprep.subr.mxu0 %v12964_v26  ;;  %v15132_v55 = vld [vmem:[#allocation35_spill] sm:$0xff] }
 0x5bf   : > { %7334 = vmatprep.subr.mxu1 %v13019_v7  ;;  %7185 = vmatpush1.msra.mxu0 %v15118_v32 }
 0x5c0   : > { %7336 = vmatpush1.msra.mxu1 %v13031_v60  ;;  %7188 = vmatprep.subr.mxu0 %v15119_v16 }
 0x5c1   : > { %7338 = vmatprep.subr.mxu1 %v13043_v62  ;;  %7191 = vmatpush1.msra.mxu0 %v15120_v23 }
 0x5c2   : > { %7340 = vmatpush1.msra.mxu1 %v13060_v3  ;;  %7194 = vmatprep.subr.mxu0 %v15121_v48 }
 0x5c3   : > { %7342 = vmatprep.subr.mxu1 %v13072_v29  ;;  %7197 = vmatpush1.msra.mxu0 %v15122_v14 }
 0x5c4   : > { %7344 = vmatpush1.msra.mxu1 %v13086_v41  ;;  %7200 = vmatprep.subr.mxu0 %v15123_v51 }
 0x5c5   : > { %7346 = vmatprep.subr.mxu1 %v13103_v11  ;;  %7203 = vmatpush1.msra.mxu0 %v15124_v9 }
 0x5c6   : > { %7348 = vmatpush1.msra.mxu1 %v13130_v30  ;;  %7206 = vmatprep.subr.mxu0 %v15125_v0 }
 0x5c7   : > { %7350 = vmatprep.subr.mxu1 %v13174_v43  ;;  %7209 = vmatpush1.msra.mxu0 %v15126_v21 }
 0x5c8   : > { %7352 = vmatpush1.msra.mxu1 %v13204_v46  ;;  %7212 = vmatprep.subr.mxu0 %v15127_v52 }
 0x5c9   : > { %7354 = vmatprep.subr.mxu1 %v13219_v47  ;;  %7215 = vmatpush1.msra.mxu0 %v15128_v39 }
 0x5ca   : > { %7356 = vmatpush1.msra.mxu1 %v13235_v24  ;;  %7218 = vmatprep.subr.mxu0 %v15129_v36 }
 0x5cb   : > { %7358 = vmatprep.subr.mxu1 %v13249_v17  ;;  %7221 = vmatpush1.msra.mxu0 %v15130_v63  ;;  %v15135_v17 = vld [vmem:[#allocation22_spill] sm:$0xff] }
 0x5cc   : > { %7360 = vmatpush1.msra.mxu1 %v13265_v5  ;;  %7224 = vmatprep.subr.mxu0 %v15131_v15 }
 0x5cd   : > { %7362 = vmatprep.subr.mxu1 %v13281_v40  ;;  %7227 = vmatpush1.msra.mxu0 %v15132_v55 }
 0x5ce   : > { %7364 = vmatpush1.msra.mxu1 %v13293_v50  ;;  %7230 = vmatprep.subr.mxu0 %v15133_v56 }
 0x5cf   : > { %7366 = vmatprep.subr.mxu1 %v13309_v42  ;;  %7233 = vmatpush1.msra.mxu0 %v15134_v6 }
 0x5d0   : > { %7368 = vmatpush1.msra.mxu1 %v13321_v28  ;;  %7236 = vmatprep.subr.mxu0 %v15135_v17 }
 0x5d1   : > { %7370 = vmatprep.subr.mxu1 %v13332_v8  ;;  %7239 = vmatpush1.msra.mxu0 %v13291_v45 }
 0x5d2   : > { %7372 = vmatpush1.msra.mxu1 %v13346_v54  ;;  %7242 = vmatprep.subr.mxu0 %v13307_v58  ;;  %v15136_v54 = vld [vmem:[#allocation63_spill] sm:$0xff] }
 0x5d3   : > { %7374 = vmatprep.subr.mxu1 %v13357_v10  ;;  %7245 = vmatpush1.msra.mxu0 %v13319_v20 }
 0x5d4   : > { %7376 = vmatpush1.msra.mxu1 %v13370_v61  ;;  %7248 = vmatprep.subr.mxu0 %v13330_v18 }
 0x5d5   : > { %7378 = vmatprep.subr.mxu1 %v13380_v19  ;;  %7251 = vmatpush1.msra.mxu0 %v13344_v57 }
 0x5d6   : > { %7380 = vmatpush1.msra.mxu1 %v13390_v53  ;;  %7413 = vmatprep.mubr.f32.mxu1 %v14366_v44 }
 0x5d7   : > { %7254 = vmatprep.subr.mxu0 %v13355_v22  ;;  %7417 = vmatmul.mubr.f32.vlgmr.msra.gmra.mxu1 %v15136_v54 }
 0x5d8   : > { %7592 = vmatprep.subr.mxu1 %v12933_v25  ;;  %7257 = vmatpush1.msra.mxu0 %v13368_v2  ;;  %v15137_v25 = vld [vmem:[#allocation47_spill] sm:$0xff] }
 0x5d9   : > { %7594 = vmatpush1.msra.mxu1 %v12947_v35  ;;  %7260 = vmatprep.subr.mxu0 %v13378_v27  ;;  %v15138_v35 = vand.u32 4294901760, %v12964_v26  ;;  %v15142_v26 = vand.u32 4294901760, %v15121_v48 }
 0x5da   : > { %7596 = vmatprep.subr.mxu1 %v12955_v31  ;;  %7263 = vmatpush1.msra.mxu0 %v13388_v13  ;;  %v15139_v31 = vand.u32 4294901760, %v15118_v32 }
 0x5db   : > { %7598 = vmatpush1.msra.mxu1 %v12966_v37  ;;  %7266 = vmatprep.subr.mxu0 %v13398_v59  ;;  %v15140_v37 = vand.u32 4294901760, %v15119_v16 }
 0x5dc   : > { %7600 = vmatprep.subr.mxu1 %v12974_v33  ;;  %7269 = vmatpush1.msra.mxu0 %v13406_v12  ;;  %v15141_v33 = vand.u32 4294901760, %v15120_v23 }
 0x5dd   : > { %7602 = vmatpush1.msra.mxu1 %v12985_v49  ;;  %7272 = vmatprep.subr.mxu0 %v13414_v4  ;;  %v15143_v49 = vand.u32 4294901760, %v15122_v14 }
 0x5de   : > { %7604 = vmatprep.subr.mxu1 %v12996_v1  ;;  %7275 = vmatpush1.msra.mxu0 %v13422_v34  ;;  %v15144_v1 = vand.u32 4294901760, %v15123_v51 }
 0x5df   : > { %7308 = vmatprep.mubr.f32.mxu0 %v14366_v44  ;;  %7606 = vmatpush1.msra.mxu1 %v13008_v38  ;;  %v15145_v38 = vand.u32 4294901760, %v15124_v9 }
 0x5e0   : > { %7311 = vmatmul.mubr.f32.vlgmr.msra.gmra.mxu0 %v15137_v25  ;;  %7426 = vmatprep.subr.mxu0 %v15138_v35 }
 0x5e1   : > { %7608 = vmatprep.subr.mxu1 %v13019_v7  ;;  %7430 = vmatpush1.msra.mxu0 %v15139_v31  ;;  %v15146_v7 = vand.u32 4294901760, %v15125_v0  ;;  %v15175_v31 = vld [vmem:[#allocation50_spill] sm:$0xff] }
 0x5e2   : > { %7610 = vmatpush1.msra.mxu1 %v13031_v60  ;;  %7434 = vmatprep.subr.mxu0 %v15140_v37  ;;  %v15148_v60 = vand.u32 4294901760, %v15127_v52 }
 0x5e3   : > { %7612 = vmatprep.subr.mxu1 %v13043_v62  ;;  %7438 = vmatpush1.msra.mxu0 %v15141_v33  ;;  %v15149_v62 = vand.u32 4294901760, %v15128_v39  ;;  %v15176_v33 = vld [vmem:[#allocation51_spill] sm:$0xff] }
 0x5e4   : > { %7614 = vmatpush1.msra.mxu1 %v13060_v3  ;;  %7442 = vmatprep.subr.mxu0 %v15142_v26  ;;  %v15150_v3 = vand.u32 4294901760, %v15129_v36 }
 0x5e5   : > { %7616 = vmatprep.subr.mxu1 %v13072_v29  ;;  %7446 = vmatpush1.msra.mxu0 %v15143_v49  ;;  %v15147_v29 = vand.u32 4294901760, %v15126_v21 }
 0x5e6   : > { %7618 = vmatpush1.msra.mxu1 %v13086_v41  ;;  %7450 = vmatprep.subr.mxu0 %v15144_v1  ;;  %v15152_v41 = vand.u32 4294901760, %v15130_v63 }
 0x5e7   : > { %7620 = vmatprep.subr.mxu1 %v13103_v11  ;;  %7454 = vmatpush1.msra.mxu0 %v15145_v38  ;;  %v15151_v11 = vld [vmem:[#allocation29_spill] sm:$0xff]  ;;  %v15177_v38 = vld [vmem:[#allocation52_spill] sm:$0xff] }
 0x5e8   : > { %7622 = vmatpush1.msra.mxu1 %v13130_v30  ;;  %7458 = vmatprep.subr.mxu0 %v15146_v7  ;;  %v15153_v30 = vand.u32 4294901760, %v15131_v15  ;;  %v7697_v15 = vpop.permute.xlu0 %7696 }
 0x5e9   : > { %7624 = vmatprep.subr.mxu1 %v13174_v43  ;;  %7462 = vmatpush1.msra.mxu0 %v15147_v29  ;;  %v15155_v43 = vand.u32 4294901760, %v15133_v56  ;;  %v7700_v37 = vmul.f32 %v7697_v15, %v15175_v31  ;;  %v7699_v26 = vmul.f32 %v7697_v15, %v15176_v33  ;;  %v15178_v29 = vld [vmem:[#allocation53_spill] sm:$0xff] }
 0x5ea   : > { %7626 = vmatpush1.msra.mxu1 %v13204_v46  ;;  %7466 = vmatprep.subr.mxu0 %v15148_v60  ;;  %v15157_v46 = vand.u32 4294901760, %v15135_v17  ;;  %v15162_v17 = vand.u32 4294901760, %v13330_v18  ;;  %v15169_v18 = vand.u32 4294901760, %v13398_v59 }
 0x5eb   : > { %7628 = vmatprep.subr.mxu1 %v13219_v47  ;;  %7470 = vmatpush1.msra.mxu0 %v15149_v62  ;;  %v15154_v47 = vand.u32 4294901760, %v15132_v55 }
 0x5ec   : > { %7630 = vmatpush1.msra.mxu1 %v13235_v24  ;;  %7474 = vmatprep.subr.mxu0 %v15150_v3  ;;  %v15156_v24 = vand.u32 4294901760, %v15134_v6  ;;  %v15161_v6 = vand.u32 4294901760, %v13319_v20  ;;  %v15166_v20 = vand.u32 4294901760, %v13368_v2  ;;  %v15172_v2 = vand.u32 4294901760, %v13422_v34 }
 0x5ed   : > { %7632 = vmatprep.subr.mxu1 %v15151_v11  ;;  %7478 = vmatpush1.msra.mxu0 %v15152_v41  ;;  %v15179_v41 = vld [vmem:[#allocation54_spill] sm:$0xff] }
 0x5ee   : > { %7634 = vmatpush1.msra.mxu1 %v13265_v5  ;;  %7482 = vmatprep.subr.mxu0 %v15153_v30  ;;  %v15158_v5 = vand.u32 4294901760, %v13291_v45  ;;  %v15163_v45 = vand.u32 4294901760, %v13344_v57  ;;  %v15168_v57 = vand.u32 4294901760, %v13388_v13 }
 0x5ef   : > { %7636 = vmatprep.subr.mxu1 %v13281_v40  ;;  %7486 = vmatpush1.msra.mxu0 %v15154_v47  ;;  %v15159_v40 = vld [vmem:[#allocation16_spill] sm:$0xff] }
 0x5f0   : > { %7638 = vmatpush1.msra.mxu1 %v13293_v50  ;;  %7490 = vmatprep.subr.mxu0 %v15155_v43  ;;  %v15160_v50 = vand.u32 4294901760, %v13307_v58  ;;  %v15164_v58 = vand.u32 4294901760, %v13355_v22  ;;  %v15173_v22 = vld [vmem:[#allocation48_spill] sm:$0xff] }
 0x5f1   : > { %7640 = vmatprep.subr.mxu1 %v13309_v42  ;;  %7494 = vmatpush1.msra.mxu0 %v15156_v24  ;;  %v15165_v42 = vld [vmem:[#allocation30_spill] sm:$0xff] }
 0x5f2   : > { %7642 = vmatpush1.msra.mxu1 %v13321_v28  ;;  %7498 = vmatprep.subr.mxu0 %v15157_v46  ;;  %v15167_v28 = vand.u32 4294901760, %v13378_v27  ;;  %v5979_v27 = vpop.permute.xlu1 %5978  ;;  %v15180_v46 = vld [vmem:[#allocation55_spill] sm:$0xff] }
 0x5f3   : > { %7644 = vmatprep.subr.mxu1 %v13332_v8  ;;  %7502 = vmatpush1.msra.mxu0 %v15158_v5  ;;  %v15170_v8 = vand.u32 4294901760, %v13406_v12  ;;  %v5982_v13 = vmul.f32 %v5979_v27, %v15173_v22  ;;  %v5983_v30 = vmul.f32 %v5979_v27, %v15179_v41  ;;  %v5984_v5 = vmul.f32 %v5979_v27, %v15180_v46 }
 0x5f4   : > { %7646 = vmatpush1.msra.mxu1 %v15159_v40  ;;  %7506 = vmatprep.subr.mxu0 %v15160_v50 }
 0x5f5   : > { %7648 = vmatprep.subr.mxu1 %v13357_v10  ;;  %7510 = vmatpush1.msra.mxu0 %v15161_v6  ;;  %v15171_v10 = vand.u32 4294901760, %v13414_v4 }
 0x5f6   : > { %7650 = vmatpush1.msra.mxu1 %v13370_v61  ;;  %7514 = vmatprep.subr.mxu0 %v15162_v17 }
 0x5f7   : > { %7652 = vmatprep.subr.mxu1 %v13380_v19  ;;  %7518 = vmatpush1.msra.mxu0 %v15163_v45  ;;  %v15174_v19 = vld [vmem:[#allocation49_spill] sm:$0xff] }
 0x5f8   : > { %7654 = vmatpush1.msra.mxu1 %v13390_v53  ;;  %7687 = vmatprep.mubr.f32.mxu1 %v14366_v44  ;;  %v5981_v59 = vmul.f32 %v5979_v27, %v15174_v19 }
 0x5f9   : > { %7522 = vmatprep.subr.mxu0 %v15164_v58  ;;  %7689 = vmatmul.mubr.f32.vlgmr.msra.gmra.mxu1 %v15165_v42 }
 0x5fa   : > { %7526 = vmatpush1.msra.mxu0 %v15166_v20  ;;  %7583 = vmatprep.mubr.f32.mxu0 %v14366_v44 }
 0x5fb   : > { %7530 = vmatprep.subr.mxu0 %v15167_v28 }
 0x5fc   : > { %7534 = vmatpush1.msra.mxu0 %v15168_v57 }
 0x5fd   : > { %7538 = vmatprep.subr.mxu0 %v15169_v18 }
 0x5fe   : > { %7542 = vmatpush1.msra.mxu0 %v15170_v8 }
 0x5ff   : > { %7546 = vmatprep.subr.mxu0 %v15171_v10 }
 0x600   : > { %7550 = vmatpush1.msra.mxu0 %v15172_v2 }
 0x601   : > { %7585 = vmatmul.mubr.f32.vlgmr.msra.gmra.mxu0 %v15165_v42 }
 0x610   : > { %v6320_v61 = vpop.f32.mrf.mxu1 }
 0x612   : > { %v6322_v32 = vpop.f32.mrf.mxu1 }
 0x618   : > { %v6088_v44 = vpop.f32.mrf.mxu0 }
 0x619   : > { %v6089_v12 = vadd.f32 %v6088_v44, %v5981_v59 }
 0x61a   : > { %v6090_v54 = vpop.f32.mrf.mxu0 }
 0x61b   : > { %v6091_v56 = vadd.f32 %v6090_v54, %v5982_v13  ;;  %v6321_v48 = vadd.f32 %v6320_v61, %v6089_v12  ;;  %v15181_v61 = vld [vmem:[#allocation56_spill] sm:$0xff] }
 0x61c   : > { %v7701_v27 = vmul.f32 %v7697_v15, %v15181_v61 }
 0x61d   : > { %v6323_v4 = vadd.f32 %v6322_v32, %v6091_v56  ;;  %v15182_v32 = vld [vmem:[#allocation57_spill] sm:$0xff] }
 0x630   : > { %v6563_v23 = vpop.f32.mrf.mxu1 }
 0x632   : > { %v6565_v9 = vpop.f32.mrf.mxu1 }
 0x639   : > { %v6457_v53 = vpop.f32.mrf.mxu0 }
 0x63a   : > { %v6458_v51 = vadd.f32 %v6457_v53, %v6321_v48  ;;  %v15183_v48 = vld [vmem:[#allocation58_spill] sm:$0xff] }
 0x63b   : > { %v6459_v16 = vpop.f32.mrf.mxu0 }
 0x63c   : > { %v6460_v14 = vadd.f32 %v6459_v16, %v6323_v4  ;;  %v6564_v39 = vadd.f32 %v6563_v23, %v6458_v51  ;;  %v7702_v16 = vmul.f32 %v7697_v15, %v15182_v32  ;;  %v15184_v51 = vld [vmem:[#allocation59_spill] sm:$0xff] }
 0x63e   : > { %v6566_v21 = vadd.f32 %v6565_v9, %v6460_v14 }
 0x652   : > { %v6835_v52 = vpop.f32.mrf.mxu1 }
 0x654   : > { %v6837_v55 = vpop.f32.mrf.mxu1 }
 0x65e   : > { %v6731_v34 = vpop.f32.mrf.mxu0 }
 0x65f   : > { %v6732_v63 = vadd.f32 %v6731_v34, %v6564_v39  ;;  %v7738_v39 = vstv %s7737_s0 }
 0x660   : > { %v6733_v0 = vpop.f32.mrf.mxu0  ;;  %vm7739_vm3 = vcmp.eq.s32.totalorder %v7738_v39, 1 }
 0x661   : > { %v6734_v36 = vadd.f32 %v6733_v0, %v6566_v21  ;;  %v6836_v35 = vadd.f32 %v6835_v52, %v6732_v63  ;;  %v15185_v63 = vld [vmem:[#allocation26_spill] sm:$0xff] }
 0x663   : > { %v6838_v25 = vadd.f32 %v6837_v55, %v6734_v36  ;;  %v7703_v1 = vadd.f32 %v7699_v26, %v6836_v35 }
 0x665   : > { %v7704_v49 = vadd.f32 %v7700_v37, %v6838_v25  ;;  %v7707_v60 = vadd.f32 %v7703_v1, %v15178_v29  ;;  %v8197_v1 = vld [vmem:[%s8491_s9 + $0x10] sm:$0xff] }
 0x667   : > { %v7708_v7 = vadd.f32 %v7704_v49, %v15177_v38  ;;  %v8011_v3 = vmul.f32 -1.442695, %v7707_v60 }
 0x669   : > { %v8012_v62 = vmul.f32 -1.442695, %v7708_v7 }
 0x66b   : > { %8177 = vpow2.f32 %v8012_v62 }
 0x66c   : > { %8179 = vpow2.f32 %v8011_v3 }
 0x674   : > { %v7175_v47 = vpop.f32.mrf.mxu1 }
 0x676   : > { %v7177_v6 = vpop.f32.mrf.mxu1 }
 0x678   : > { %v8178_v8 = vpop.eup %8177 }
 0x679   : > { %v8180_v44 = vpop.eup %8179  ;;  %v7720_v19 = vadd.f32 1.0, %v8178_v8 }
 0x67a   : > { %v7714_v56 = vadd.f32 1.0, %v8180_v44 }
 0x67b   : > { %8181 = vrcp.f32 %v7720_v19 }
 0x67c   : > { %8183 = vrcp.f32 %v7714_v56 }
 0x67e   : > { %v6943_v11 = vpop.f32.mrf.mxu0 }
 0x67f   : > { %v6944_v24 = vadd.f32 %v6943_v11, %v5983_v30 }
 0x680   : > { %v6945_v43 = vpop.f32.mrf.mxu0 }
 0x681   : > { %v6946_v50 = vadd.f32 %v6945_v43, %v5984_v5  ;;  %v7176_v17 = vadd.f32 %v7175_v47, %v6944_v24 }
 0x683   : > { %v7178_v20 = vadd.f32 %v7177_v6, %v6946_v50 }
 0x688   : > { %v8182_v21 = vpop.eup %8181 }
 0x689   : > { %v8184_v52 = vpop.eup %8183  ;;  %v7730_v15 = vmul.f32 %v8182_v21, %v15185_v63 }
 0x697   : > { %v7418_v45 = vpop.f32.mrf.mxu1 }
 0x699   : > { %v7420_v57 = vpop.f32.mrf.mxu1 }
 0x6a0   : > { %v7312_v40 = vpop.f32.mrf.mxu0 }
 0x6a1   : > { %v7313_v42 = vadd.f32 %v7312_v40, %v7176_v17 }
 0x6a2   : > { %v7314_v58 = vpop.f32.mrf.mxu0 }
 0x6a3   : > { %v7315_v28 = vadd.f32 %v7314_v58, %v7178_v20  ;;  %v7419_v18 = vadd.f32 %v7418_v45, %v7313_v42 }
 0x6a5   : > { %v7421_v22 = vadd.f32 %v7420_v57, %v7315_v28 }
 0x6b9   : > { %v7690_v10 = vpop.f32.mrf.mxu1 }
 0x6bb   : > { %v7692_v12 = vpop.f32.mrf.mxu1 }
 0x6c1   : > { %v7586_v2 = vpop.f32.mrf.mxu0 }
 0x6c2   : > { %v7587_v54 = vadd.f32 %v7586_v2, %v7419_v18 }
 0x6c3   : > { %v7588_v13 = vpop.f32.mrf.mxu0 }
 0x6c4   : > { %v7691_v59 = vadd.f32 %v7690_v10, %v7587_v54  ;;  %v7589_v53 = vadd.f32 %v7588_v13, %v7421_v22 }
 0x6c6   : > { %v7705_v4 = vadd.f32 %v7701_v27, %v7691_v59  ;;  %v7693_v23 = vadd.f32 %v7692_v12, %v7589_v53 }
 0x6c8   : > { %v7709_v34 = vadd.f32 %v7705_v4, %v15183_v48  ;;  %v7706_v14 = vadd.f32 %v7702_v16, %v7693_v23 }
 0x6ca   : > { %8185 = vtanh.f32 %v7709_v34  ;;  %v7710_v9 = vadd.f32 %v7706_v14, %v15184_v51 }
 0x6cc   : > { %v8013_v0 = vmul.f32 -1.442695, %v7710_v9 }
 0x6ce   : > { %8187 = vpow2.f32 %v8013_v0 }
 0x6d7   : > { %v8186_v36 = vpop.eup %8185 }
 0x6d8   : > { %v7731_v55 = vmul.f32 %v8186_v36, %v8184_v52 }
 0x6da   : > { %v7732_v25 = vadd.f32 %v7731_v55, %v7730_v15 }
 0x6db   : > { %v8188_v35 = vpop.eup %8187 }
 0x6dc   : > { %v7741_v31 = vsel %vm7739_vm3, %v7732_v25, %v15185_v63  ;;  %v7727_v37 = vadd.f32 1.0, %v8188_v35  ;;  %8189 = vtanh.f32 %v7732_v25 }
 0x6dd   : > { %7745 = vst [vmem:[#allocation3] sm:$0xff] %v7741_v31 }
 0x6de   : > { %8191 = vrcp.f32 %v7727_v37 }
 0x6e9   : > { %v8190_v33 = vpop.eup %8189 }
 0x6eb   : > { %v8192_v26 = vpop.eup %8191  ;;  %7749 = sbr.rel (%p8015_p11) target bundleno = 1777 (0x6f1), region = 82 }
 0x6ec   : > { %v7734_v49 = vmul.f32 %v8192_v26, %v8190_v33 }
 0x6ee   : > { %v7740_v38 = vsel %vm7739_vm3, %v7734_v49, %v8197_v1 }
 0x6ef   : > { %8014 = vst [vmem:[%s8491_s9 + $0x18] sm:$0xff] %v7740_v38  ;;  %7744 = vst [vmem:[#allocation2] sm:$0xff] %v7740_v38 }
 0x6f0   : > { %7750 = vst [vmem:[%s8493_s20] sm:$0xff] %v7740_v38  ;;  %7751 = vst [vmem:[%s8495_s14] sm:$0xff] %v7741_v31 }
 0x6f1 PF: > { %s7757_s8 = scalar_lea.sflag [#allocation7], %s8486_s13  ;;  %7768 = sbr.rel (!%p8451_p7) target bundleno = 1785 (0x6f9), region = 86  ;;  %v7808_v7 = vld [vmem:[%s8491_s9] sm:$0xff] (%p8451_p7)  ;;  %v7810_v29 = vld [vmem:[%s8491_s9 + $0x8] sm:$0xff] (%p8451_p7)  ;;  %v7812_v60 = vld [vmem:[%s8491_s9 + $0x10] sm:$0xff] (%p8451_p7) }
 0x6f2   : > { %s8027_s12 = sshll.u32 (%p8451_p7), %s8320_s26, 3 }
 0x6f3   : > { %s7771_s17 = sadd.s32 (%p8451_p7), %s8324_s27, %s8027_s12 }
 0x6f4   : > { %s8021_s24 = sshll.u32 (%p8451_p7), %s7771_s17, 3 }
 0x6f5   : > { %s7773_s10 = scalar_lea.vmem (%p8451_p7), %s13759_s4, %s8021_s24 }
 0x6f6   : > { %7809 = vst [vmem:[%s7773_s10] sm:$0xff] %v7808_v7  ;;  %7811 = vst [vmem:[%s7773_s10 + $0x10] sm:$0xff] %v7810_v29 }
 0x6f7   : > { %v7814_v62 = vld [vmem:[%s8491_s9 + $0x18] sm:$0xff]  ;;  %7813 = vst [vmem:[%s7773_s10 + $0x20] sm:$0xff] %v7812_v60 }
 0x6f8   : > { %7815 = vst [vmem:[%s7773_s10 + $0x30] sm:$0xff] %v7814_v62 }
 0x6f9 PF: > { %s14325_s26 = sshll.u32 %s8324_s27, 7  ;;  %s7828_s15 = sshll.u32 %s8493_s20, 4  ;;  %s7829_s15 = int_to_ptr.vmem [resolvable:$true] %s7828_s15 }
 0x6fa   : > { %s7826_s9 = scalar_lea.hbm %s13760_s5, %s14325_s26  ;;  %s8198_s17 = scalar_lea.vmem %s7829_s15, 128 }
 0x6fb   : > { %p8199_p7 = scmp.ne.s32.totalorder %s7829_s15, %s8198_s17  ;;  %s8342_s24 = smov [#allocation6]  }
 0x6fc   : > { %s8202_s18 = sshll.u32 %s8342_s24, 4  ;;  %s8203_s18 = int_to_ptr.vmem [resolvable:$false] %s8202_s18 }
 0x6fd   : > { %p8200_p12 = pnand %p8199_p7, %p8455_p8  ;;  %s8204_s11 = scalar_lea.vmem %s8203_s18, 256 }
 0x6fe   : > { %p8205_p1 = scmp.lt.s32.totalorder %s7829_s15, %s8203_s18  ;;  %p8206_p2 = scmp.lt.s32.totalorder %s8204_s11, %s8198_s17 }
 0x6ff   : > { %p8201_p0 = pneg %p8200_p12 }
 0x700   : > { %p8207_p3 = por %p8206_p2, %p8205_p1 }
 0x702   : > { %p8208_p4 = pnand %p8207_p3, %p8201_p0 }
 0x704   : > { %8211 = shalt.err (!%p8208_p4)
}
 0x705   : > { %s8212_s20 = scalar_lea.hbm %s7826_s9, 128  ;;  %s8216_s12 = scalar_lea.hbm %s13760_s5, 256 }
 0x706   : > { %p8213_p5 = scmp.ne.s32.totalorder %s7826_s9, %s8212_s20  ;;  %p8217_p10 = scmp.lt.s32.totalorder %s7826_s9, %s13760_s5 }
 0x707   : > { %p8218_p11 = scmp.lt.s32.totalorder %s8216_s12, %s8212_s20 }
 0x708   : > { %p8214_p6 = pnand %p8213_p5, %p8455_p8 }
 0x709   : > { %p8219_p7 = por %p8218_p11, %p8217_p10 }
 0x70a   : > { %p8215_p9 = pneg %p8214_p6 }
 0x70c   : > { %p8220_p12 = pnand %p8219_p7, %p8215_p9 }
 0x70e   : > { %8223 = shalt.err (!%p8220_p12)
}
 0x70f   : > { %8028 = dma.vmem_to_hbm [thread:$0]  (%p8455_p8), %s7829_s15, 128, %s7826_s9, %s7757_s8  }
 0x710   : > { %s15186_s17 = sshll.u32 %s8324_s27, 7  ;;  %s7841_s10 = sshll.u32 %s8495_s14, 4  ;;  %s7842_s10 = int_to_ptr.vmem [resolvable:$true] %s7841_s10 }
 0x711   : > { %s7839_s11 = scalar_lea.hbm %s13761_s6, %s15186_s17  ;;  %s8224_s29 = scalar_lea.vmem %s7842_s10, 128 }
 0x712   : > { %p8225_p0 = scmp.ne.s32.totalorder %s7842_s10, %s8224_s29  ;;  %s8343_s26 = smov [#allocation8]  }
 0x713   : > { %s8228_s20 = sshll.u32 %s8343_s26, 4  ;;  %s8229_s20 = int_to_ptr.vmem [resolvable:$false] %s8228_s20 }
 0x714   : > { %p8226_p1 = pnand %p8225_p0, %p8455_p8  ;;  %s8230_s0 = scalar_lea.vmem %s8229_s20, 256 }
 0x715   : > { %p8231_p3 = scmp.lt.s32.totalorder %s7842_s10, %s8229_s20  ;;  %p8232_p4 = scmp.lt.s32.totalorder %s8230_s0, %s8224_s29 }
 0x716   : > { %p8227_p2 = pneg %p8226_p1 }
 0x717   : > { %p8233_p5 = por %p8232_p4, %p8231_p3 }
 0x719   : > { %p8234_p6 = pnand %p8233_p5, %p8227_p2 }
 0x71b   : > { %8237 = shalt.err (!%p8234_p6)
}
 0x71c   : > { %s8238_s27 = scalar_lea.hbm %s7839_s11, 128  ;;  %s8242_s15 = scalar_lea.hbm %s13761_s6, 256 }
 0x71d   : > { %p8239_p9 = scmp.ne.s32.totalorder %s7839_s11, %s8238_s27  ;;  %p8243_p7 = scmp.lt.s32.totalorder %s7839_s11, %s13761_s6 }
 0x71e   : > { %p8244_p12 = scmp.lt.s32.totalorder %s8242_s15, %s8238_s27 }
 0x71f   : > { %p8240_p10 = pnand %p8239_p9, %p8455_p8 }
 0x720   : > { %p8245_p0 = por %p8244_p12, %p8243_p7 }
 0x721   : > { %p8241_p11 = pneg %p8240_p10 }
 0x723   : > { %p8246_p1 = pnand %p8245_p0, %p8241_p11 }
 0x725   : > { %8249 = shalt.err (!%p8246_p1)
}
 0x726   : > { %s15187_s17 = scalar_lea.sflag [#allocation9], %s8486_s13 }
 0x727   : > { %8029 = dma.vmem_to_hbm [thread:$0]  (%p8455_p8), %s7842_s10, 128, %s7839_s11, %s15187_s17  }
 0x728 PF: > { %p8039_p2 = scmp.ge.s32.totalorder %s8336_s30, 2  ;;  %s7860_s24 = sand.u32 1, %s8300_s21  }
 0x729   : > { %s7861_s18 = scalar_lea.sflag [#allocation7], %s7860_s24 }
 0x72a   : > { %p8033_p3 = pnand %p8039_p2, %p8469_p13 }
 0x72c   : > { %p8034_p4 = pneg %p8033_p3 }
 0x72e   : > { %8291 = dma.done.wait (%p8034_p4), %s7861_s18, 128  }
 0x72f   : > { %8293 = vsyncadd (%p8034_p4), %s7861_s18, 4294967168  ;;  %s7870_s29 = scalar_lea.sflag [#allocation9], %s7860_s24 }
 0x730   : > { %8295 = dma.done.wait (%p8034_p4), %s7870_s29, 128  }
 0x731   : > { %8297 = vsyncadd (%p8034_p4), %s7870_s29, 4294967168  ;;  %s23_s30 = sadd.s32 1, %s8336_s30   ;;  %s15188_s16 = sld [smem:[#allocation15_spill]] }
 0x732   : > { %p20_p5 = scmp.ge.s32.totalorder %s23_s30, 8   ;;  %s15189_s27 = sld [smem:[#allocation12_spill]] }
 0x733   : > { %s15190_s13 = sld [smem:[#allocation13_spill]]  ;;  %s15192_s21 = smov %s8304_s22 }
 0x734   : > { %s15191_s29 = sld [smem:[#allocation14_spill]]  ;;  %s15193_s22 = smov %s8308_s23 }
 0x735   : > { %s15194_s23 = smov %s8464_s19  ;;  %s15195_s24 = smov %s8316_s25 }
 0x736   : > { %s15197_s26 = smov %s8328_s28  ;;  %22 = sbr.rel (!%p20_p5) target bundleno = 10 (0xa), region = 196 }
 0x737   : > { %s15196_s25 = smov %s15188_s16 }
 0x739   : > { %s15198_s28 = smov %s15190_s13 }
 0x73b   :  { %7875 = vsyncpa [#allocation7], 1 }
 0x73c   :  { %7877 = vsyncpa [#allocation7 + $0x1], 1 }
 0x73d   :  { %7878 = vsyncpa [#allocation9], 1 }
 0x73e   :  { %7880 = vsyncpa [#allocation9 + $0x1], 1 }

</bundles_post_ra>
